<compile_context>
chip_gen: v6e
topology: v6e:2x2x1
jax: 0.10.0
libtpu: 0.0.40
codegen_flags: <defaults>
</compile_context>

<pallas_src>
import functools

import jax
import jax.numpy as jnp
import numpy as np
from jax.experimental import pallas as pl
from jax.experimental.pallas import tpu as pltpu


def _bottleneck_kernel(TB, H, W, use_im2col,
                       x_ref, w1_ref, b1_ref, w2_ref, b2_ref, w3_ref, b3_ref,
                       o_ref, pad_ref):
    C = x_ref.shape[-1]
    width = w1_ref.shape[-1]
    cout = w3_ref.shape[-1]
    M = TB * H * W

    # ---- conv1: 1x1x1 (channel matmul) + folded BN (scale in weights) + ReLU
    # Cast the MXU operand inline; do not hold the f32 input value live.
    t1 = jnp.dot(x_ref[...].reshape(M, C).astype(jnp.bfloat16), w1_ref[...],
                 preferred_element_type=jnp.float32)
    # Bias + ReLU in f32, then a single cast to bf16 before the padded scratch.
    t1 = jnp.maximum(t1 + b1_ref[...], 0.0).astype(jnp.bfloat16)

    # ---- conv2: (1,3,3) conv, padding (0,1,1), stride 1 ----------------------
    # bf16 padded scratch. Re-zero only the 1-wide border each step (interior
    # is fully overwritten below). Must stay per-step: under megacore each core
    # has its own scratch, so a program_id==0 guard would be wrong.
    zrow = jnp.zeros((TB, 1, W + 2, width), jnp.bfloat16)
    pad_ref[:, 0:1, :, :] = zrow
    pad_ref[:, H + 1:H + 2, :, :] = zrow
    zcol = jnp.zeros((TB, H, 1, width), jnp.bfloat16)
    pad_ref[:, 1:H + 1, 0:1, :] = zcol
    pad_ref[:, 1:H + 1, W + 1:W + 2, :] = zcol
    pad_ref[:, 1:H + 1, 1:W + 1, :] = t1.reshape(TB, H, W, width)

    if use_im2col:
        # width lane-dense (multiple of 128): one K = 9*width matmul.
        # Taps read straight from the ref as static slices (no full padded
        # load, no value-level slicing).
        taps = [pad_ref[:, dy:dy + H, dx:dx + W, :].reshape(M, width)
                for dy in range(3) for dx in range(3)]
        im2col = jnp.concatenate(taps, axis=-1)                 # (M, 9*width)
        t2 = jnp.dot(im2col, w2_ref[...], preferred_element_type=jnp.float32)
    else:
        # Narrow width: skip lane-packing; accumulate 9 dots into one f32
        # accumulator, each tap's weights statically sliced from w2.
        t2 = jnp.zeros((M, width), jnp.float32)
        tap_id = 0
        for dy in range(3):
            for dx in range(3):
                tap = pad_ref[:, dy:dy + H, dx:dx + W, :].reshape(M, width)
                w_tap = w2_ref[tap_id * width:(tap_id + 1) * width, :]
                t2 = t2 + jnp.dot(tap, w_tap, preferred_element_type=jnp.float32)
                tap_id += 1
    t2 = jnp.maximum(t2 + b2_ref[...], 0.0).astype(jnp.bfloat16)

    # ---- conv3: 1x1x1 + folded BN, residual add (identity), final ReLU ------
    t3 = jnp.dot(t2, w3_ref[...], preferred_element_type=jnp.float32)
    residual = x_ref[...].reshape(M, cout)     # re-read VMEM-resident block
    out = jnp.maximum(t3 + b3_ref[...] + residual, 0.0)
    o_ref[...] = out.reshape(TB, H, W, cout).astype(o_ref.dtype)


def _vmem_capacity_bytes():
    """Per-core VMEM capacity: 128 MiB on v5e/v6e, 64 MiB per TC on v7x."""
    try:
        return int(pltpu.get_tpu_info().vmem_capacity_bytes)
    except Exception:
        return 64 << 20   # conservative fallback (v7x per-TensorCore)


def _pick_tb(nd, H, W, C, width, cout, budget_bytes, const_bytes):
    """Largest slab-batch TB (dividing N*D, grid >= 2 steps) fitting the budget."""
    budget = max(budget_bytes - const_bytes, 1)
    io_f32 = 4 * H * W * 2 * (C + cout)            # double-buffered in/out blocks
    pad_bf16 = 2 * (H + 2) * (W + 2) * width       # bf16 padded scratch
    work = 4 * H * W * (2 * width + 3 * cout)      # f32 intermediates (t1/t2/t3/res)
    work += 2 * H * W * (C + 12 * width)           # bf16 MXU operands / taps
    per_slab = io_f32 + pad_bf16 + work
    tb = int(max(1, min(nd, budget // max(per_slab, 1))))
    # Keep the grid at >= 2 steps so v7x megacore can split the "parallel"
    # axis across its 2 TensorCores and the BlockSpec pipeline can overlap
    # input/output DMA with compute on every generation.
    tb = min(tb, max(1, nd // 2))
    while nd % tb:
        tb -= 1
    return tb


def bottleneck_pallas(x_ncdhw, kparams, *, tb=None, vmem_budget_bytes=None,
                      vmem_limit_bytes=None, single_buffer_weights=True):
    """Fused Bottleneck forward. x is NCDHW float32; returns NCDHW float32."""
    N, C, D, H, W = x_ncdhw.shape
    width = kparams["w1"].shape[-1]
    cout = kparams["w3"].shape[-1]
    assert C == cout, "identity shortcut requires inplanes == planes * 4"
    nd = N * D

    # Generation-aware VMEM sizing with headroom for compiler scratch/spills.
    cap = _vmem_capacity_bytes()
    if vmem_limit_bytes is None:
        vmem_limit_bytes = (cap * 3) // 4           # ~48 MiB on v7x, ~96 MiB v5e/v6e
    if vmem_budget_bytes is None:
        vmem_budget_bytes = (vmem_limit_bytes * 3) // 4

    # Weight/bias VMEM footprint (single- or double-buffered).
    nbuf = 1 if single_buffer_weights else 2
    const_bytes = nbuf * sum(
        int(np.prod(kparams[k].shape)) * kparams[k].dtype.itemsize
        for k in ("w1", "w2", "w3", "b1", "b2", "b3"))

    if tb is None:
        tb = _pick_tb(nd, H, W, C, width, cout, vmem_budget_bytes, const_bytes)

    # NCDHW -> channels-last slabs (N*D, H, W, C).
    x_slab = jnp.transpose(x_ncdhw, (0, 2, 3, 4, 1)).reshape(nd, H, W, C)

    def const_spec(arr):
        n = arr.ndim
        kwargs = {}
        if single_buffer_weights:
            # Block index never changes; double-buffering these only burns VMEM.
            kwargs["pipeline_mode"] = pl.Buffered(1)
        return pl.BlockSpec(arr.shape, lambda i, _n=n: (0,) * _n, **kwargs)

    use_im2col = (width % 128 == 0)
    kernel = functools.partial(_bottleneck_kernel, tb, H, W, use_im2col)
    out = pl.pallas_call(
        kernel,
        out_shape=jax.ShapeDtypeStruct((nd, H, W, cout), jnp.float32),
        grid_spec=pltpu.PrefetchScalarGridSpec(
            num_scalar_prefetch=0,
            grid=(nd // tb,),
            in_specs=[
                pl.BlockSpec((tb, H, W, C), lambda i: (i, 0, 0, 0)),
                const_spec(kparams["w1"]),
                const_spec(kparams["b1"]),
                const_spec(kparams["w2"]),
                const_spec(kparams["b2"]),
                const_spec(kparams["w3"]),
                const_spec(kparams["b3"]),
            ],
            out_specs=pl.BlockSpec((tb, H, W, cout), lambda i: (i, 0, 0, 0)),
            scratch_shapes=[pltpu.VMEM((tb, H + 2, W + 2, width), jnp.bfloat16)],
        ),
        compiler_params=pltpu.CompilerParams(
            dimension_semantics=("parallel",),
            vmem_limit_bytes=int(vmem_limit_bytes)),
    )(x_slab, kparams["w1"], kparams["b1"], kparams["w2"], kparams["b2"],
      kparams["w3"], kparams["b3"])

    # channels-last slabs -> NCDHW
    return out.reshape(N, D, H, W, cout).transpose(0, 4, 1, 2, 3)


def init_raw_params(key, inplanes, planes, base_width=64, groups=1):
    """Synthetic parameters in PyTorch layout (conv weights + BN statistics)."""
    width = int(planes * (base_width / 64.0)) * groups
    cout = planes * 4
    ks = jax.random.split(key, 15)

    def bn(kg, kb, km, kv, c):
        return dict(gamma=1.0 + 0.1 * jax.random.normal(kg, (c,), jnp.float32),
                    beta=0.1 * jax.random.normal(kb, (c,), jnp.float32),
                    mean=0.1 * jax.random.normal(km, (c,), jnp.float32),
                    var=jax.random.uniform(kv, (c,), jnp.float32, 0.5, 1.5))

    return dict(
        w1=0.1 * jax.random.normal(ks[0], (width, inplanes, 1, 1, 1), jnp.float32),
        w2=0.1 * jax.random.normal(ks[1], (width, width, 1, 3, 3), jnp.float32),
        w3=0.1 * jax.random.normal(ks[2], (cout, width, 1, 1, 1), jnp.float32),
        bn1=bn(*ks[3:7], width), bn2=bn(*ks[7:11], width), bn3=bn(*ks[11:15], cout))


def prep_kernel_params(raw, eps=1e-5):
    """Fold eval-mode BN into conv weights/biases, convert to kernel layout.

    Scales are folded in f32 and weights cast once to bf16 (MXU operands);
    biases stay f32.
      w1: (Cin, width)   w2: (9*width, width) taps row-major (dy, dx)
      w3: (width, Cout)  b*: (1, channels)
    """
    def fold(bnp):
        scale = bnp["gamma"] / jnp.sqrt(bnp["var"] + eps)
        return scale, bnp["beta"] - bnp["mean"] * scale

    s1, b1 = fold(raw["bn1"])
    s2, b2 = fold(raw["bn2"])
    s3, b3 = fold(raw["bn3"])
    w1 = (raw["w1"][:, :, 0, 0, 0].T * s1[None, :]).astype(jnp.bfloat16)
    w2 = jnp.transpose(raw["w2"][:, :, 0, :, :], (2, 3, 1, 0)) * s2   # (3,3,Win,Wout)
    w2 = w2.reshape(-1, w2.shape[-1]).astype(jnp.bfloat16)            # (9*Win, Wout)
    w3 = (raw["w3"][:, :, 0, 0, 0].T * s3[None, :]).astype(jnp.bfloat16)
    return dict(w1=w1, b1=b1.reshape(1, -1), w2=w2, b2=b2.reshape(1, -1),
                w3=w3, b3=b3.reshape(1, -1))


def bottleneck_ref(x_ncdhw, raw, eps=1e-5):
    """Independent pure-JAX (f32, unfolded-BN) reference."""
    N, C, D, H, W = x_ncdhw.shape
    cout = raw["w3"].shape[0]
    x = jnp.transpose(x_ncdhw, (0, 2, 3, 4, 1)).reshape(N * D, H, W, C)

    def bn(y, p):
        scale = p["gamma"] / jnp.sqrt(p["var"] + eps)
        return y * scale + (p["beta"] - p["mean"] * scale)

    t1 = jnp.einsum("nhwc,oc->nhwo", x, raw["w1"][:, :, 0, 0, 0])
    t1 = jnp.maximum(bn(t1, raw["bn1"]), 0.0)
    w2_hwio = jnp.transpose(raw["w2"][:, :, 0, :, :], (2, 3, 1, 0))
    t2 = jax.lax.conv_general_dilated(
        t1, w2_hwio, window_strides=(1, 1), padding="SAME",
        dimension_numbers=("NHWC", "HWIO", "NHWC"))
    t2 = jnp.maximum(bn(t2, raw["bn2"]), 0.0)
    t3 = bn(jnp.einsum("nhwc,oc->nhwo", t2, raw["w3"][:, :, 0, 0, 0]), raw["bn3"])
    out = jnp.maximum(t3 + x, 0.0)
    return out.reshape(N, D, H, W, cout).transpose(0, 4, 1, 2, 3)


if __name__ == "__main__":
    key = jax.random.PRNGKey(0)
    kx, kp = jax.random.split(key)

    # Half-scale identity Bottleneck: inplanes == planes*4 so the identity
    # shortcut applies (downsample=None, stride=1), and cout = 128 keeps the
    # output store lane-dense. width=32 exercises the 9-dot conv2 path.
    N, C, D, H, W = 2, 128, 2, 8, 8
    inplanes, planes = C, 32

    x = jax.random.normal(kx, (N, C, D, H, W), dtype=jnp.float32)
    raw = init_raw_params(kp, inplanes, planes)
    kparams = prep_kernel_params(raw)

    try:
        out = jax.block_until_ready(bottleneck_pallas(x, kparams))
    except Exception:
        # pipeline_mode=pl.Buffered(1) may be unsupported on some jax/libtpu
        # builds; retry with default double-buffered weight blocks.
        out = jax.block_until_ready(
            bottleneck_pallas(x, kparams, single_buffer_weights=False))

    ref = bottleneck_ref(x, raw)

    assert out.shape == (N, planes * 4, D, H, W), out.shape
    # bf16 MXU operands vs f32 reference -> loose-ish tolerance.
    np.testing.assert_allclose(np.asarray(out), np.asarray(ref),
                               rtol=5e-2, atol=5e-2)
    print("KERNEL_OK")
</pallas_src>

<mosaic_0001>
module attributes {stable_mosaic.version = 11 : i64} {
  func.func @_bottleneck_kernel(%arg0: i32, %arg1: memref<2x8x8x128xf32, #tpu.memory_space<vmem>>, %arg2: memref<128x32xbf16, #tpu.memory_space<vmem>>, %arg3: memref<1x32xf32, #tpu.memory_space<vmem>>, %arg4: memref<288x32xbf16, #tpu.memory_space<vmem>>, %arg5: memref<1x32xf32, #tpu.memory_space<vmem>>, %arg6: memref<32x128xbf16, #tpu.memory_space<vmem>>, %arg7: memref<1x128xf32, #tpu.memory_space<vmem>>, %arg8: memref<2x8x8x128xf32, #tpu.memory_space<vmem>>, %arg9: memref<2x10x10x32xbf16, #tpu.memory_space<vmem>>) attributes {dimension_semantics = [#tpu.dimension_semantics<parallel>], iteration_bounds = array<i64: 2>, scalar_prefetch = 0 : i64, scratch_operands = 1 : i64, tpu.core_type = #tpu.core_type<tc>, window_params = [{transform_indices = @transform_0, window_bounds = array<i64: 2, 8, 8, 128>}, {pipeline_mode = #tpu.pipeline_mode<synchronous>, transform_indices = @transform_1, window_bounds = array<i64: 128, 32>}, {pipeline_mode = #tpu.pipeline_mode<synchronous>, transform_indices = @transform_2, window_bounds = array<i64: 1, 32>}, {pipeline_mode = #tpu.pipeline_mode<synchronous>, transform_indices = @transform_3, window_bounds = array<i64: 288, 32>}, {pipeline_mode = #tpu.pipeline_mode<synchronous>, transform_indices = @transform_4, window_bounds = array<i64: 1, 32>}, {pipeline_mode = #tpu.pipeline_mode<synchronous>, transform_indices = @transform_5, window_bounds = array<i64: 32, 128>}, {pipeline_mode = #tpu.pipeline_mode<synchronous>, transform_indices = @transform_6, window_bounds = array<i64: 1, 128>}, {transform_indices = @transform_7, window_bounds = array<i64: 2, 8, 8, 128>}]} {
    %c0 = arith.constant 0 : index
    %c0_0 = arith.constant 0 : index
    %c0_1 = arith.constant 0 : index
    %c0_2 = arith.constant 0 : index
    %0 = vector.load %arg1[%c0, %c0_0, %c0_1, %c0_2] : memref<2x8x8x128xf32, #tpu.memory_space<vmem>>, vector<2x8x8x128xf32>
    %1 = vector.shape_cast %0 : vector<2x8x8x128xf32> to vector<128x128xf32>
    %2 = arith.truncf %1 : vector<128x128xf32> to vector<128x128xbf16>
    %c0_3 = arith.constant 0 : index
    %c0_4 = arith.constant 0 : index
    %3 = vector.load %arg2[%c0_3, %c0_4] : memref<128x32xbf16, #tpu.memory_space<vmem>>, vector<128x32xbf16>
    %cst = arith.constant dense<0.000000e+00> : vector<128x32xf32>
    %4 = tpu.matmul %2, %3, %cst {dimension_numbers = #tpu.dot_dimension_numbers<[1], [0], [0], [1], [0, 0, 1, 1], [], []>} : vector<128x128xbf16>, vector<128x32xbf16>, vector<128x32xf32> -> vector<128x32xf32>
    %c0_5 = arith.constant 0 : index
    %c0_6 = arith.constant 0 : index
    %5 = vector.load %arg3[%c0_5, %c0_6] : memref<1x32xf32, #tpu.memory_space<vmem>>, vector<1x32xf32>
    %6 = vector.broadcast %5 : vector<1x32xf32> to vector<128x32xf32>
    %7 = arith.addf %4, %6 : vector<128x32xf32>
    %cst_7 = arith.constant 0.000000e+00 : f32
    %8 = vector.broadcast %cst_7 : f32 to vector<128x32xf32>
    %9 = arith.maximumf %7, %8 : vector<128x32xf32>
    %10 = arith.truncf %9 : vector<128x32xf32> to vector<128x32xbf16>
    %cst_8 = arith.constant 0.000000e+00 : bf16
    %11 = vector.broadcast %cst_8 : bf16 to vector<2x1x10x32xbf16>
    %c0_9 = arith.constant 0 : index
    %c0_10 = arith.constant 0 : index
    %c0_11 = arith.constant 0 : index
    %c0_12 = arith.constant 0 : index
    %12 = vector.load %arg9[%c0_9, %c0_10, %c0_11, %c0_12] : memref<2x10x10x32xbf16, #tpu.memory_space<vmem>>, vector<2x1x10x32xbf16>
    tpu.vector_store %arg9[%c0_9, %c0_10, %c0_11, %c0_12], %11 {strides = array<i32>} : memref<2x10x10x32xbf16, #tpu.memory_space<vmem>>, vector<2x1x10x32xbf16>,
    %c0_13 = arith.constant 0 : index
    %c9 = arith.constant 9 : index
    %c0_14 = arith.constant 0 : index
    %c0_15 = arith.constant 0 : index
    %13 = vector.load %arg9[%c0_13, %c9, %c0_14, %c0_15] : memref<2x10x10x32xbf16, #tpu.memory_space<vmem>>, vector<2x1x10x32xbf16>
    tpu.vector_store %arg9[%c0_13, %c9, %c0_14, %c0_15], %11 {strides = array<i32>} : memref<2x10x10x32xbf16, #tpu.memory_space<vmem>>, vector<2x1x10x32xbf16>,
    %cst_16 = arith.constant 0.000000e+00 : bf16
    %14 = vector.broadcast %cst_16 : bf16 to vector<2x8x1x32xbf16>
    %c0_17 = arith.constant 0 : index
    %c1 = arith.constant 1 : index
    %c0_18 = arith.constant 0 : index
    %c0_19 = arith.constant 0 : index
    %15 = vector.load %arg9[%c0_17, %c1, %c0_18, %c0_19] : memref<2x10x10x32xbf16, #tpu.memory_space<vmem>>, vector<2x8x1x32xbf16>
    tpu.vector_store %arg9[%c0_17, %c1, %c0_18, %c0_19], %14 {strides = array<i32>} : memref<2x10x10x32xbf16, #tpu.memory_space<vmem>>, vector<2x8x1x32xbf16>,
    %c0_20 = arith.constant 0 : index
    %c1_21 = arith.constant 1 : index
    %c9_22 = arith.constant 9 : index
    %c0_23 = arith.constant 0 : index
    %16 = vector.load %arg9[%c0_20, %c1_21, %c9_22, %c0_23] : memref<2x10x10x32xbf16, #tpu.memory_space<vmem>>, vector<2x8x1x32xbf16>
    tpu.vector_store %arg9[%c0_20, %c1_21, %c9_22, %c0_23], %14 {strides = array<i32>} : memref<2x10x10x32xbf16, #tpu.memory_space<vmem>>, vector<2x8x1x32xbf16>,
    %17 = vector.shape_cast %10 : vector<128x32xbf16> to vector<2x8x8x32xbf16>
    %c0_24 = arith.constant 0 : index
    %c1_25 = arith.constant 1 : index
    %c1_26 = arith.constant 1 : index
    %c0_27 = arith.constant 0 : index
    %18 = vector.load %arg9[%c0_24, %c1_25, %c1_26, %c0_27] : memref<2x10x10x32xbf16, #tpu.memory_space<vmem>>, vector<2x8x8x32xbf16>
    tpu.vector_store %arg9[%c0_24, %c1_25, %c1_26, %c0_27], %17 {strides = array<i32>} : memref<2x10x10x32xbf16, #tpu.memory_space<vmem>>, vector<2x8x8x32xbf16>,
    %cst_28 = arith.constant 0.000000e+00 : f32
    %19 = vector.broadcast %cst_28 : f32 to vector<128x32xf32>
    %c0_29 = arith.constant 0 : index
    %c0_30 = arith.constant 0 : index
    %c0_31 = arith.constant 0 : index
    %c0_32 = arith.constant 0 : index
    %20 = vector.load %arg9[%c0_29, %c0_30, %c0_31, %c0_32] : memref<2x10x10x32xbf16, #tpu.memory_space<vmem>>, vector<2x8x8x32xbf16>
    %21 = vector.shape_cast %20 : vector<2x8x8x32xbf16> to vector<128x32xbf16>
    %c0_33 = arith.constant 0 : index
    %c0_34 = arith.constant 0 : index
    %22 = vector.load %arg4[%c0_33, %c0_34] : memref<288x32xbf16, #tpu.memory_space<vmem>>, vector<32x32xbf16>
    %cst_35 = arith.constant dense<0.000000e+00> : vector<128x32xf32>
    %23 = tpu.matmul %21, %22, %cst_35 {dimension_numbers = #tpu.dot_dimension_numbers<[1], [0], [0], [1], [0, 0, 1, 1], [], []>} : vector<128x32xbf16>, vector<32x32xbf16>, vector<128x32xf32> -> vector<128x32xf32>
    %24 = arith.addf %19, %23 : vector<128x32xf32>
    %c0_36 = arith.constant 0 : index
    %c0_37 = arith.constant 0 : index
    %c1_38 = arith.constant 1 : index
    %c0_39 = arith.constant 0 : index
    %25 = vector.load %arg9[%c0_36, %c0_37, %c1_38, %c0_39] : memref<2x10x10x32xbf16, #tpu.memory_space<vmem>>, vector<2x8x8x32xbf16>
    %26 = vector.shape_cast %25 : vector<2x8x8x32xbf16> to vector<128x32xbf16>
    %c32 = arith.constant 32 : index
    %c0_40 = arith.constant 0 : index
    %27 = vector.load %arg4[%c32, %c0_40] : memref<288x32xbf16, #tpu.memory_space<vmem>>, vector<32x32xbf16>
    %cst_41 = arith.constant dense<0.000000e+00> : vector<128x32xf32>
    %28 = tpu.matmul %26, %27, %cst_41 {dimension_numbers = #tpu.dot_dimension_numbers<[1], [0], [0], [1], [0, 0, 1, 1], [], []>} : vector<128x32xbf16>, vector<32x32xbf16>, vector<128x32xf32> -> vector<128x32xf32>
    %29 = arith.addf %24, %28 : vector<128x32xf32>
    %c0_42 = arith.constant 0 : index
    %c0_43 = arith.constant 0 : index
    %c2 = arith.constant 2 : index
    %c0_44 = arith.constant 0 : index
    %30 = vector.load %arg9[%c0_42, %c0_43, %c2, %c0_44] : memref<2x10x10x32xbf16, #tpu.memory_space<vmem>>, vector<2x8x8x32xbf16>
    %31 = vector.shape_cast %30 : vector<2x8x8x32xbf16> to vector<128x32xbf16>
    %c64 = arith.constant 64 : index
    %c0_45 = arith.constant 0 : index
    %32 = vector.load %arg4[%c64, %c0_45] : memref<288x32xbf16, #tpu.memory_space<vmem>>, vector<32x32xbf16>
    %cst_46 = arith.constant dense<0.000000e+00> : vector<128x32xf32>
    %33 = tpu.matmul %31, %32, %cst_46 {dimension_numbers = #tpu.dot_dimension_numbers<[1], [0], [0], [1], [0, 0, 1, 1], [], []>} : vector<128x32xbf16>, vector<32x32xbf16>, vector<128x32xf32> -> vector<128x32xf32>
    %34 = arith.addf %29, %33 : vector<128x32xf32>
    %c0_47 = arith.constant 0 : index
    %c1_48 = arith.constant 1 : index
    %c0_49 = arith.constant 0 : index
    %c0_50 = arith.constant 0 : index
    %35 = vector.load %arg9[%c0_47, %c1_48, %c0_49, %c0_50] : memref<2x10x10x32xbf16, #tpu.memory_space<vmem>>, vector<2x8x8x32xbf16>
    %36 = vector.shape_cast %35 : vector<2x8x8x32xbf16> to vector<128x32xbf16>
    %c96 = arith.constant 96 : index
    %c0_51 = arith.constant 0 : index
    %37 = vector.load %arg4[%c96, %c0_51] : memref<288x32xbf16, #tpu.memory_space<vmem>>, vector<32x32xbf16>
    %cst_52 = arith.constant dense<0.000000e+00> : vector<128x32xf32>
    %38 = tpu.matmul %36, %37, %cst_52 {dimension_numbers = #tpu.dot_dimension_numbers<[1], [0], [0], [1], [0, 0, 1, 1], [], []>} : vector<128x32xbf16>, vector<32x32xbf16>, vector<128x32xf32> -> vector<128x32xf32>
    %39 = arith.addf %34, %38 : vector<128x32xf32>
    %c0_53 = arith.constant 0 : index
    %c1_54 = arith.constant 1 : index
    %c1_55 = arith.constant 1 : index
    %c0_56 = arith.constant 0 : index
    %40 = vector.load %arg9[%c0_53, %c1_54, %c1_55, %c0_56] : memref<2x10x10x32xbf16, #tpu.memory_space<vmem>>, vector<2x8x8x32xbf16>
    %41 = vector.shape_cast %40 : vector<2x8x8x32xbf16> to vector<128x32xbf16>
    %c128 = arith.constant 128 : index
    %c0_57 = arith.constant 0 : index
    %42 = vector.load %arg4[%c128, %c0_57] : memref<288x32xbf16, #tpu.memory_space<vmem>>, vector<32x32xbf16>
    %cst_58 = arith.constant dense<0.000000e+00> : vector<128x32xf32>
    %43 = tpu.matmul %41, %42, %cst_58 {dimension_numbers = #tpu.dot_dimension_numbers<[1], [0], [0], [1], [0, 0, 1, 1], [], []>} : vector<128x32xbf16>, vector<32x32xbf16>, vector<128x32xf32> -> vector<128x32xf32>
    %44 = arith.addf %39, %43 : vector<128x32xf32>
    %c0_59 = arith.constant 0 : index
    %c1_60 = arith.constant 1 : index
    %c2_61 = arith.constant 2 : index
    %c0_62 = arith.constant 0 : index
    %45 = vector.load %arg9[%c0_59, %c1_60, %c2_61, %c0_62] : memref<2x10x10x32xbf16, #tpu.memory_space<vmem>>, vector<2x8x8x32xbf16>
    %46 = vector.shape_cast %45 : vector<2x8x8x32xbf16> to vector<128x32xbf16>
    %c160 = arith.constant 160 : index
    %c0_63 = arith.constant 0 : index
    %47 = vector.load %arg4[%c160, %c0_63] : memref<288x32xbf16, #tpu.memory_space<vmem>>, vector<32x32xbf16>
    %cst_64 = arith.constant dense<0.000000e+00> : vector<128x32xf32>
    %48 = tpu.matmul %46, %47, %cst_64 {dimension_numbers = #tpu.dot_dimension_numbers<[1], [0], [0], [1], [0, 0, 1, 1], [], []>} : vector<128x32xbf16>, vector<32x32xbf16>, vector<128x32xf32> -> vector<128x32xf32>
    %49 = arith.addf %44, %48 : vector<128x32xf32>
    %c0_65 = arith.constant 0 : index
    %c2_66 = arith.constant 2 : index
    %c0_67 = arith.constant 0 : index
    %c0_68 = arith.constant 0 : index
    %50 = vector.load %arg9[%c0_65, %c2_66, %c0_67, %c0_68] : memref<2x10x10x32xbf16, #tpu.memory_space<vmem>>, vector<2x8x8x32xbf16>
    %51 = vector.shape_cast %50 : vector<2x8x8x32xbf16> to vector<128x32xbf16>
    %c192 = arith.constant 192 : index
    %c0_69 = arith.constant 0 : index
    %52 = vector.load %arg4[%c192, %c0_69] : memref<288x32xbf16, #tpu.memory_space<vmem>>, vector<32x32xbf16>
    %cst_70 = arith.constant dense<0.000000e+00> : vector<128x32xf32>
    %53 = tpu.matmul %51, %52, %cst_70 {dimension_numbers = #tpu.dot_dimension_numbers<[1], [0], [0], [1], [0, 0, 1, 1], [], []>} : vector<128x32xbf16>, vector<32x32xbf16>, vector<128x32xf32> -> vector<128x32xf32>
    %54 = arith.addf %49, %53 : vector<128x32xf32>
    %c0_71 = arith.constant 0 : index
    %c2_72 = arith.constant 2 : index
    %c1_73 = arith.constant 1 : index
    %c0_74 = arith.constant 0 : index
    %55 = vector.load %arg9[%c0_71, %c2_72, %c1_73, %c0_74] : memref<2x10x10x32xbf16, #tpu.memory_space<vmem>>, vector<2x8x8x32xbf16>
    %56 = vector.shape_cast %55 : vector<2x8x8x32xbf16> to vector<128x32xbf16>
    %c224 = arith.constant 224 : index
    %c0_75 = arith.constant 0 : index
    %57 = vector.load %arg4[%c224, %c0_75] : memref<288x32xbf16, #tpu.memory_space<vmem>>, vector<32x32xbf16>
    %cst_76 = arith.constant dense<0.000000e+00> : vector<128x32xf32>
    %58 = tpu.matmul %56, %57, %cst_76 {dimension_numbers = #tpu.dot_dimension_numbers<[1], [0], [0], [1], [0, 0, 1, 1], [], []>} : vector<128x32xbf16>, vector<32x32xbf16>, vector<128x32xf32> -> vector<128x32xf32>
    %59 = arith.addf %54, %58 : vector<128x32xf32>
    %c0_77 = arith.constant 0 : index
    %c2_78 = arith.constant 2 : index
    %c2_79 = arith.constant 2 : index
    %c0_80 = arith.constant 0 : index
    %60 = vector.load %arg9[%c0_77, %c2_78, %c2_79, %c0_80] : memref<2x10x10x32xbf16, #tpu.memory_space<vmem>>, vector<2x8x8x32xbf16>
    %61 = vector.shape_cast %60 : vector<2x8x8x32xbf16> to vector<128x32xbf16>
    %c256 = arith.constant 256 : index
    %c0_81 = arith.constant 0 : index
    %62 = vector.load %arg4[%c256, %c0_81] : memref<288x32xbf16, #tpu.memory_space<vmem>>, vector<32x32xbf16>
    %cst_82 = arith.constant dense<0.000000e+00> : vector<128x32xf32>
    %63 = tpu.matmul %61, %62, %cst_82 {dimension_numbers = #tpu.dot_dimension_numbers<[1], [0], [0], [1], [0, 0, 1, 1], [], []>} : vector<128x32xbf16>, vector<32x32xbf16>, vector<128x32xf32> -> vector<128x32xf32>
    %64 = arith.addf %59, %63 : vector<128x32xf32>
    %c0_83 = arith.constant 0 : index
    %c0_84 = arith.constant 0 : index
    %65 = vector.load %arg5[%c0_83, %c0_84] : memref<1x32xf32, #tpu.memory_space<vmem>>, vector<1x32xf32>
    %66 = vector.broadcast %65 : vector<1x32xf32> to vector<128x32xf32>
    %67 = arith.addf %64, %66 : vector<128x32xf32>
    %cst_85 = arith.constant 0.000000e+00 : f32
    %68 = vector.broadcast %cst_85 : f32 to vector<128x32xf32>
    %69 = arith.maximumf %67, %68 : vector<128x32xf32>
    %70 = arith.truncf %69 : vector<128x32xf32> to vector<128x32xbf16>
    %c0_86 = arith.constant 0 : index
    %c0_87 = arith.constant 0 : index
    %71 = vector.load %arg6[%c0_86, %c0_87] : memref<32x128xbf16, #tpu.memory_space<vmem>>, vector<32x128xbf16>
    %cst_88 = arith.constant dense<0.000000e+00> : vector<128x128xf32>
    %72 = tpu.matmul %70, %71, %cst_88 {dimension_numbers = #tpu.dot_dimension_numbers<[1], [0], [0], [1], [0, 0, 1, 1], [], []>} : vector<128x32xbf16>, vector<32x128xbf16>, vector<128x128xf32> -> vector<128x128xf32>
    %c0_89 = arith.constant 0 : index
    %c0_90 = arith.constant 0 : index
    %c0_91 = arith.constant 0 : index
    %c0_92 = arith.constant 0 : index
    %73 = vector.load %arg1[%c0_89, %c0_90, %c0_91, %c0_92] : memref<2x8x8x128xf32, #tpu.memory_space<vmem>>, vector<2x8x8x128xf32>
    %74 = vector.shape_cast %73 : vector<2x8x8x128xf32> to vector<128x128xf32>
    %c0_93 = arith.constant 0 : index
    %c0_94 = arith.constant 0 : index
    %75 = vector.load %arg7[%c0_93, %c0_94] : memref<1x128xf32, #tpu.memory_space<vmem>>, vector<1x128xf32>
    %76 = vector.broadcast %75 : vector<1x128xf32> to vector<128x128xf32>
    %77 = arith.addf %72, %76 : vector<128x128xf32>
    %78 = arith.addf %77, %74 : vector<128x128xf32>
    %cst_95 = arith.constant 0.000000e+00 : f32
    %79 = vector.broadcast %cst_95 : f32 to vector<128x128xf32>
    %80 = arith.maximumf %78, %79 : vector<128x128xf32>
    %81 = vector.shape_cast %80 : vector<128x128xf32> to vector<2x8x8x128xf32>
    %c0_96 = arith.constant 0 : index
    %c0_97 = arith.constant 0 : index
    %c0_98 = arith.constant 0 : index
    %c0_99 = arith.constant 0 : index
    %82 = vector.load %arg8[%c0_96, %c0_97, %c0_98, %c0_99] : memref<2x8x8x128xf32, #tpu.memory_space<vmem>>, vector<2x8x8x128xf32>
    tpu.vector_store %arg8[%c0_96, %c0_97, %c0_98, %c0_99], %81 {strides = array<i32>} : memref<2x8x8x128xf32, #tpu.memory_space<vmem>>, vector<2x8x8x128xf32>,
    return
  }
  func.func @transform_0(%arg0: i32) -> (i32, i32, i32, i32) {
    %c0_i32 = arith.constant 0 : i32
    %c0_i32_0 = arith.constant 0 : i32
    %c0_i32_1 = arith.constant 0 : i32
    %c0_i32_2 = arith.constant 0 : i32
    return %arg0, %c0_i32, %c0_i32_0, %c0_i32_1 : i32, i32, i32, i32
  }
  func.func @transform_1(%arg0: i32) -> (i32, i32) {
    %c0_i32 = arith.constant 0 : i32
    %c0_i32_0 = arith.constant 0 : i32
    %c0_i32_1 = arith.constant 0 : i32
    return %c0_i32, %c0_i32_0 : i32, i32
  }
  func.func @transform_2(%arg0: i32) -> (i32, i32) {
    %c0_i32 = arith.constant 0 : i32
    %c0_i32_0 = arith.constant 0 : i32
    %c0_i32_1 = arith.constant 0 : i32
    return %c0_i32, %c0_i32_0 : i32, i32
  }
  func.func @transform_3(%arg0: i32) -> (i32, i32) {
    %c0_i32 = arith.constant 0 : i32
    %c0_i32_0 = arith.constant 0 : i32
    %c0_i32_1 = arith.constant 0 : i32
    return %c0_i32, %c0_i32_0 : i32, i32
  }
  func.func @transform_4(%arg0: i32) -> (i32, i32) {
    %c0_i32 = arith.constant 0 : i32
    %c0_i32_0 = arith.constant 0 : i32
    %c0_i32_1 = arith.constant 0 : i32
    return %c0_i32, %c0_i32_0 : i32, i32
  }
  func.func @transform_5(%arg0: i32) -> (i32, i32) {
    %c0_i32 = arith.constant 0 : i32
    %c0_i32_0 = arith.constant 0 : i32
    %c0_i32_1 = arith.constant 0 : i32
    return %c0_i32, %c0_i32_0 : i32, i32
  }
  func.func @transform_6(%arg0: i32) -> (i32, i32) {
    %c0_i32 = arith.constant 0 : i32
    %c0_i32_0 = arith.constant 0 : i32
    %c0_i32_1 = arith.constant 0 : i32
    return %c0_i32, %c0_i32_0 : i32, i32
  }
  func.func @transform_7(%arg0: i32) -> (i32, i32, i32, i32) {
    %c0_i32 = arith.constant 0 : i32
    %c0_i32_0 = arith.constant 0 : i32
    %c0_i32_1 = arith.constant 0 : i32
    %c0_i32_2 = arith.constant 0 : i32
    return %arg0, %c0_i32, %c0_i32_0, %c0_i32_1 : i32, i32, i32, i32
  }
}

module attributes {stable_mosaic.version = 11 : i64} {
  func.func @_bottleneck_kernel(%arg0: i32, %arg1: memref<2x8x8x128xf32, #tpu.memory_space<vmem>>, %arg2: memref<128x32xbf16, #tpu.memory_space<vmem>>, %arg3: memref<1x32xf32, #tpu.memory_space<vmem>>, %arg4: memref<288x32xbf16, #tpu.memory_space<vmem>>, %arg5: memref<1x32xf32, #tpu.memory_space<vmem>>, %arg6: memref<32x128xbf16, #tpu.memory_space<vmem>>, %arg7: memref<1x128xf32, #tpu.memory_space<vmem>>, %arg8: memref<2x8x8x128xf32, #tpu.memory_space<vmem>>, %arg9: memref<2x10x10x32xbf16, #tpu.memory_space<vmem>>) attributes {dimension_semantics = [#tpu.dimension_semantics<parallel>], iteration_bounds = array<i64: 2>, scalar_prefetch = 0 : i64, scratch_operands = 1 : i64, tpu.core_type = #tpu.core_type<tc>, window_params = [{transform_indices = @transform_0, window_bounds = array<i64: 2, 8, 8, 128>}, {pipeline_mode = #tpu.pipeline_mode<synchronous>, transform_indices = @transform_1, window_bounds = array<i64: 128, 32>}, {pipeline_mode = #tpu.pipeline_mode<synchronous>, transform_indices = @transform_2, window_bounds = array<i64: 1, 32>}, {pipeline_mode = #tpu.pipeline_mode<synchronous>, transform_indices = @transform_3, window_bounds = array<i64: 288, 32>}, {pipeline_mode = #tpu.pipeline_mode<synchronous>, transform_indices = @transform_4, window_bounds = array<i64: 1, 32>}, {pipeline_mode = #tpu.pipeline_mode<synchronous>, transform_indices = @transform_5, window_bounds = array<i64: 32, 128>}, {pipeline_mode = #tpu.pipeline_mode<synchronous>, transform_indices = @transform_6, window_bounds = array<i64: 1, 128>}, {transform_indices = @transform_7, window_bounds = array<i64: 2, 8, 8, 128>}]} {
    %c0 = arith.constant 0 : index
    %c0_0 = arith.constant 0 : index
    %c0_1 = arith.constant 0 : index
    %c0_2 = arith.constant 0 : index
    %0 = vector.load %arg1[%c0, %c0_0, %c0_1, %c0_2] : memref<2x8x8x128xf32, #tpu.memory_space<vmem>>, vector<2x8x8x128xf32>
    %1 = vector.shape_cast %0 : vector<2x8x8x128xf32> to vector<128x128xf32>
    %2 = arith.truncf %1 : vector<128x128xf32> to vector<128x128xbf16>
    %c0_3 = arith.constant 0 : index
    %c0_4 = arith.constant 0 : index
    %3 = vector.load %arg2[%c0_3, %c0_4] : memref<128x32xbf16, #tpu.memory_space<vmem>>, vector<128x32xbf16>
    %cst = arith.constant dense<0.000000e+00> : vector<128x32xf32>
    %4 = tpu.matmul %2, %3, %cst {dimension_numbers = #tpu.dot_dimension_numbers<[1], [0], [0], [1], [0, 0, 1, 1], [], []>} : vector<128x128xbf16>, vector<128x32xbf16>, vector<128x32xf32> -> vector<128x32xf32>
    %c0_5 = arith.constant 0 : index
    %c0_6 = arith.constant 0 : index
    %5 = vector.load %arg3[%c0_5, %c0_6] : memref<1x32xf32, #tpu.memory_space<vmem>>, vector<1x32xf32>
    %6 = vector.broadcast %5 : vector<1x32xf32> to vector<128x32xf32>
    %7 = arith.addf %4, %6 : vector<128x32xf32>
    %cst_7 = arith.constant 0.000000e+00 : f32
    %8 = vector.broadcast %cst_7 : f32 to vector<128x32xf32>
    %9 = arith.maximumf %7, %8 : vector<128x32xf32>
    %10 = arith.truncf %9 : vector<128x32xf32> to vector<128x32xbf16>
    %cst_8 = arith.constant 0.000000e+00 : bf16
    %11 = vector.broadcast %cst_8 : bf16 to vector<2x1x10x32xbf16>
    %c0_9 = arith.constant 0 : index
    %c0_10 = arith.constant 0 : index
    %c0_11 = arith.constant 0 : index
    %c0_12 = arith.constant 0 : index
    %12 = vector.load %arg9[%c0_9, %c0_10, %c0_11, %c0_12] : memref<2x10x10x32xbf16, #tpu.memory_space<vmem>>, vector<2x1x10x32xbf16>
    tpu.vector_store %arg9[%c0_9, %c0_10, %c0_11, %c0_12], %11 {strides = array<i32>} : memref<2x10x10x32xbf16, #tpu.memory_space<vmem>>, vector<2x1x10x32xbf16>,
    %c0_13 = arith.constant 0 : index
    %c9 = arith.constant 9 : index
    %c0_14 = arith.constant 0 : index
    %c0_15 = arith.constant 0 : index
    %13 = vector.load %arg9[%c0_13, %c9, %c0_14, %c0_15] : memref<2x10x10x32xbf16, #tpu.memory_space<vmem>>, vector<2x1x10x32xbf16>
    tpu.vector_store %arg9[%c0_13, %c9, %c0_14, %c0_15], %11 {strides = array<i32>} : memref<2x10x10x32xbf16, #tpu.memory_space<vmem>>, vector<2x1x10x32xbf16>,
    %cst_16 = arith.constant 0.000000e+00 : bf16
    %14 = vector.broadcast %cst_16 : bf16 to vector<2x8x1x32xbf16>
    %c0_17 = arith.constant 0 : index
    %c1 = arith.constant 1 : index
    %c0_18 = arith.constant 0 : index
    %c0_19 = arith.constant 0 : index
    %15 = vector.load %arg9[%c0_17, %c1, %c0_18, %c0_19] : memref<2x10x10x32xbf16, #tpu.memory_space<vmem>>, vector<2x8x1x32xbf16>
    tpu.vector_store %arg9[%c0_17, %c1, %c0_18, %c0_19], %14 {strides = array<i32>} : memref<2x10x10x32xbf16, #tpu.memory_space<vmem>>, vector<2x8x1x32xbf16>,
    %c0_20 = arith.constant 0 : index
    %c1_21 = arith.constant 1 : index
    %c9_22 = arith.constant 9 : index
    %c0_23 = arith.constant 0 : index
    %16 = vector.load %arg9[%c0_20, %c1_21, %c9_22, %c0_23] : memref<2x10x10x32xbf16, #tpu.memory_space<vmem>>, vector<2x8x1x32xbf16>
    tpu.vector_store %arg9[%c0_20, %c1_21, %c9_22, %c0_23], %14 {strides = array<i32>} : memref<2x10x10x32xbf16, #tpu.memory_space<vmem>>, vector<2x8x1x32xbf16>,
    %17 = vector.shape_cast %10 : vector<128x32xbf16> to vector<2x8x8x32xbf16>
    %c0_24 = arith.constant 0 : index
    %c1_25 = arith.constant 1 : index
    %c1_26 = arith.constant 1 : index
    %c0_27 = arith.constant 0 : index
    %18 = vector.load %arg9[%c0_24, %c1_25, %c1_26, %c0_27] : memref<2x10x10x32xbf16, #tpu.memory_space<vmem>>, vector<2x8x8x32xbf16>
    tpu.vector_store %arg9[%c0_24, %c1_25, %c1_26, %c0_27], %17 {strides = array<i32>} : memref<2x10x10x32xbf16, #tpu.memory_space<vmem>>, vector<2x8x8x32xbf16>,
    %cst_28 = arith.constant 0.000000e+00 : f32
    %19 = vector.broadcast %cst_28 : f32 to vector<128x32xf32>
    %c0_29 = arith.constant 0 : index
    %c0_30 = arith.constant 0 : index
    %c0_31 = arith.constant 0 : index
    %c0_32 = arith.constant 0 : index
    %20 = vector.load %arg9[%c0_29, %c0_30, %c0_31, %c0_32] : memref<2x10x10x32xbf16, #tpu.memory_space<vmem>>, vector<2x8x8x32xbf16>
    %21 = vector.shape_cast %20 : vector<2x8x8x32xbf16> to vector<128x32xbf16>
    %c0_33 = arith.constant 0 : index
    %c0_34 = arith.constant 0 : index
    %22 = vector.load %arg4[%c0_33, %c0_34] : memref<288x32xbf16, #tpu.memory_space<vmem>>, vector<32x32xbf16>
    %cst_35 = arith.constant dense<0.000000e+00> : vector<128x32xf32>
    %23 = tpu.matmul %21, %22, %cst_35 {dimension_numbers = #tpu.dot_dimension_numbers<[1], [0], [0], [1], [0, 0, 1, 1], [], []>} : vector<128x32xbf16>, vector<32x32xbf16>, vector<128x32xf32> -> vector<128x32xf32>
    %24 = arith.addf %19, %23 : vector<128x32xf32>
    %c0_36 = arith.constant 0 : index
    %c0_37 = arith.constant 0 : index
    %c1_38 = arith.constant 1 : index
    %c0_39 = arith.constant 0 : index
    %25 = vector.load %arg9[%c0_36, %c0_37, %c1_38, %c0_39] : memref<2x10x10x32xbf16, #tpu.memory_space<vmem>>, vector<2x8x8x32xbf16>
    %26 = vector.shape_cast %25 : vector<2x8x8x32xbf16> to vector<128x32xbf16>
    %c32 = arith.constant 32 : index
    %c0_40 = arith.constant 0 : index
    %27 = vector.load %arg4[%c32, %c0_40] : memref<288x32xbf16, #tpu.memory_space<vmem>>, vector<32x32xbf16>
    %cst_41 = arith.constant dense<0.000000e+00> : vector<128x32xf32>
    %28 = tpu.matmul %26, %27, %cst_41 {dimension_numbers = #tpu.dot_dimension_numbers<[1], [0], [0], [1], [0, 0, 1, 1], [], []>} : vector<128x32xbf16>, vector<32x32xbf16>, vector<128x32xf32> -> vector<128x32xf32>
    %29 = arith.addf %24, %28 : vector<128x32xf32>
    %c0_42 = arith.constant 0 : index
    %c0_43 = arith.constant 0 : index
    %c2 = arith.constant 2 : index
    %c0_44 = arith.constant 0 : index
    %30 = vector.load %arg9[%c0_42, %c0_43, %c2, %c0_44] : memref<2x10x10x32xbf16, #tpu.memory_space<vmem>>, vector<2x8x8x32xbf16>
    %31 = vector.shape_cast %30 : vector<2x8x8x32xbf16> to vector<128x32xbf16>
    %c64 = arith.constant 64 : index
    %c0_45 = arith.constant 0 : index
    %32 = vector.load %arg4[%c64, %c0_45] : memref<288x32xbf16, #tpu.memory_space<vmem>>, vector<32x32xbf16>
    %cst_46 = arith.constant dense<0.000000e+00> : vector<128x32xf32>
    %33 = tpu.matmul %31, %32, %cst_46 {dimension_numbers = #tpu.dot_dimension_numbers<[1], [0], [0], [1], [0, 0, 1, 1], [], []>} : vector<128x32xbf16>, vector<32x32xbf16>, vector<128x32xf32> -> vector<128x32xf32>
    %34 = arith.addf %29, %33 : vector<128x32xf32>
    %c0_47 = arith.constant 0 : index
    %c1_48 = arith.constant 1 : index
    %c0_49 = arith.constant 0 : index
    %c0_50 = arith.constant 0 : index
    %35 = vector.load %arg9[%c0_47, %c1_48, %c0_49, %c0_50] : memref<2x10x10x32xbf16, #tpu.memory_space<vmem>>, vector<2x8x8x32xbf16>
    %36 = vector.shape_cast %35 : vector<2x8x8x32xbf16> to vector<128x32xbf16>
    %c96 = arith.constant 96 : index
    %c0_51 = arith.constant 0 : index
    %37 = vector.load %arg4[%c96, %c0_51] : memref<288x32xbf16, #tpu.memory_space<vmem>>, vector<32x32xbf16>
    %cst_52 = arith.constant dense<0.000000e+00> : vector<128x32xf32>
    %38 = tpu.matmul %36, %37, %cst_52 {dimension_numbers = #tpu.dot_dimension_numbers<[1], [0], [0], [1], [0, 0, 1, 1], [], []>} : vector<128x32xbf16>, vector<32x32xbf16>, vector<128x32xf32> -> vector<128x32xf32>
    %39 = arith.addf %34, %38 : vector<128x32xf32>
    %c0_53 = arith.constant 0 : index
    %c1_54 = arith.constant 1 : index
    %c1_55 = arith.constant 1 : index
    %c0_56 = arith.constant 0 : index
    %40 = vector.load %arg9[%c0_53, %c1_54, %c1_55, %c0_56] : memref<2x10x10x32xbf16, #tpu.memory_space<vmem>>, vector<2x8x8x32xbf16>
    %41 = vector.shape_cast %40 : vector<2x8x8x32xbf16> to vector<128x32xbf16>
    %c128 = arith.constant 128 : index
    %c0_57 = arith.constant 0 : index
    %42 = vector.load %arg4[%c128, %c0_57] : memref<288x32xbf16, #tpu.memory_space<vmem>>, vector<32x32xbf16>
    %cst_58 = arith.constant dense<0.000000e+00> : vector<128x32xf32>
    %43 = tpu.matmul %41, %42, %cst_58 {dimension_numbers = #tpu.dot_dimension_numbers<[1], [0], [0], [1], [0, 0, 1, 1], [], []>} : vector<128x32xbf16>, vector<32x32xbf16>, vector<128x32xf32> -> vector<128x32xf32>
    %44 = arith.addf %39, %43 : vector<128x32xf32>
    %c0_59 = arith.constant 0 : index
    %c1_60 = arith.constant 1 : index
    %c2_61 = arith.constant 2 : index
    %c0_62 = arith.constant 0 : index
    %45 = vector.load %arg9[%c0_59, %c1_60, %c2_61, %c0_62] : memref<2x10x10x32xbf16, #tpu.memory_space<vmem>>, vector<2x8x8x32xbf16>
    %46 = vector.shape_cast %45 : vector<2x8x8x32xbf16> to vector<128x32xbf16>
    %c160 = arith.constant 160 : index
    %c0_63 = arith.constant 0 : index
    %47 = vector.load %arg4[%c160, %c0_63] : memref<288x32xbf16, #tpu.memory_space<vmem>>, vector<32x32xbf16>
    %cst_64 = arith.constant dense<0.000000e+00> : vector<128x32xf32>
    %48 = tpu.matmul %46, %47, %cst_64 {dimension_numbers = #tpu.dot_dimension_numbers<[1], [0], [0], [1], [0, 0, 1, 1], [], []>} : vector<128x32xbf16>, vector<32x32xbf16>, vector<128x32xf32> -> vector<128x32xf32>
    %49 = arith.addf %44, %48 : vector<128x32xf32>
    %c0_65 = arith.constant 0 : index
    %c2_66 = arith.constant 2 : index
    %c0_67 = arith.constant 0 : index
    %c0_68 = arith.constant 0 : index
    %50 = vector.load %arg9[%c0_65, %c2_66, %c0_67, %c0_68] : memref<2x10x10x32xbf16, #tpu.memory_space<vmem>>, vector<2x8x8x32xbf16>
    %51 = vector.shape_cast %50 : vector<2x8x8x32xbf16> to vector<128x32xbf16>
    %c192 = arith.constant 192 : index
    %c0_69 = arith.constant 0 : index
    %52 = vector.load %arg4[%c192, %c0_69] : memref<288x32xbf16, #tpu.memory_space<vmem>>, vector<32x32xbf16>
    %cst_70 = arith.constant dense<0.000000e+00> : vector<128x32xf32>
    %53 = tpu.matmul %51, %52, %cst_70 {dimension_numbers = #tpu.dot_dimension_numbers<[1], [0], [0], [1], [0, 0, 1, 1], [], []>} : vector<128x32xbf16>, vector<32x32xbf16>, vector<128x32xf32> -> vector<128x32xf32>
    %54 = arith.addf %49, %53 : vector<128x32xf32>
    %c0_71 = arith.constant 0 : index
    %c2_72 = arith.constant 2 : index
    %c1_73 = arith.constant 1 : index
    %c0_74 = arith.constant 0 : index
    %55 = vector.load %arg9[%c0_71, %c2_72, %c1_73, %c0_74] : memref<2x10x10x32xbf16, #tpu.memory_space<vmem>>, vector<2x8x8x32xbf16>
    %56 = vector.shape_cast %55 : vector<2x8x8x32xbf16> to vector<128x32xbf16>
    %c224 = arith.constant 224 : index
    %c0_75 = arith.constant 0 : index
    %57 = vector.load %arg4[%c224, %c0_75] : memref<288x32xbf16, #tpu.memory_space<vmem>>, vector<32x32xbf16>
    %cst_76 = arith.constant dense<0.000000e+00> : vector<128x32xf32>
    %58 = tpu.matmul %56, %57, %cst_76 {dimension_numbers = #tpu.dot_dimension_numbers<[1], [0], [0], [1], [0, 0, 1, 1], [], []>} : vector<128x32xbf16>, vector<32x32xbf16>, vector<128x32xf32> -> vector<128x32xf32>
    %59 = arith.addf %54, %58 : vector<128x32xf32>
    %c0_77 = arith.constant 0 : index
    %c2_78 = arith.constant 2 : index
    %c2_79 = arith.constant 2 : index
    %c0_80 = arith.constant 0 : index
    %60 = vector.load %arg9[%c0_77, %c2_78, %c2_79, %c0_80] : memref<2x10x10x32xbf16, #tpu.memory_space<vmem>>, vector<2x8x8x32xbf16>
    %61 = vector.shape_cast %60 : vector<2x8x8x32xbf16> to vector<128x32xbf16>
    %c256 = arith.constant 256 : index
    %c0_81 = arith.constant 0 : index
    %62 = vector.load %arg4[%c256, %c0_81] : memref<288x32xbf16, #tpu.memory_space<vmem>>, vector<32x32xbf16>
    %cst_82 = arith.constant dense<0.000000e+00> : vector<128x32xf32>
    %63 = tpu.matmul %61, %62, %cst_82 {dimension_numbers = #tpu.dot_dimension_numbers<[1], [0], [0], [1], [0, 0, 1, 1], [], []>} : vector<128x32xbf16>, vector<32x32xbf16>, vector<128x32xf32> -> vector<128x32xf32>
    %64 = arith.addf %59, %63 : vector<128x32xf32>
    %c0_83 = arith.constant 0 : index
    %c0_84 = arith.constant 0 : index
    %65 = vector.load %arg5[%c0_83, %c0_84] : memref<1x32xf32, #tpu.memory_space<vmem>>, vector<1x32xf32>
    %66 = vector.broadcast %65 : vector<1x32xf32> to vector<128x32xf32>
    %67 = arith.addf %64, %66 : vector<128x32xf32>
    %cst_85 = arith.constant 0.000000e+00 : f32
    %68 = vector.broadcast %cst_85 : f32 to vector<128x32xf32>
    %69 = arith.maximumf %67, %68 : vector<128x32xf32>
    %70 = arith.truncf %69 : vector<128x32xf32> to vector<128x32xbf16>
    %c0_86 = arith.constant 0 : index
    %c0_87 = arith.constant 0 : index
    %71 = vector.load %arg6[%c0_86, %c0_87] : memref<32x128xbf16, #tpu.memory_space<vmem>>, vector<32x128xbf16>
    %cst_88 = arith.constant dense<0.000000e+00> : vector<128x128xf32>
    %72 = tpu.matmul %70, %71, %cst_88 {dimension_numbers = #tpu.dot_dimension_numbers<[1], [0], [0], [1], [0, 0, 1, 1], [], []>} : vector<128x32xbf16>, vector<32x128xbf16>, vector<128x128xf32> -> vector<128x128xf32>
    %c0_89 = arith.constant 0 : index
    %c0_90 = arith.constant 0 : index
    %c0_91 = arith.constant 0 : index
    %c0_92 = arith.constant 0 : index
    %73 = vector.load %arg1[%c0_89, %c0_90, %c0_91, %c0_92] : memref<2x8x8x128xf32, #tpu.memory_space<vmem>>, vector<2x8x8x128xf32>
    %74 = vector.shape_cast %73 : vector<2x8x8x128xf32> to vector<128x128xf32>
    %c0_93 = arith.constant 0 : index
    %c0_94 = arith.constant 0 : index
    %75 = vector.load %arg7[%c0_93, %c0_94] : memref<1x128xf32, #tpu.memory_space<vmem>>, vector<1x128xf32>
    %76 = vector.broadcast %75 : vector<1x128xf32> to vector<128x128xf32>
    %77 = arith.addf %72, %76 : vector<128x128xf32>
    %78 = arith.addf %77, %74 : vector<128x128xf32>
    %cst_95 = arith.constant 0.000000e+00 : f32
    %79 = vector.broadcast %cst_95 : f32 to vector<128x128xf32>
    %80 = arith.maximumf %78, %79 : vector<128x128xf32>
    %81 = vector.shape_cast %80 : vector<128x128xf32> to vector<2x8x8x128xf32>
    %c0_96 = arith.constant 0 : index
    %c0_97 = arith.constant 0 : index
    %c0_98 = arith.constant 0 : index
    %c0_99 = arith.constant 0 : index
    %82 = vector.load %arg8[%c0_96, %c0_97, %c0_98, %c0_99] : memref<2x8x8x128xf32, #tpu.memory_space<vmem>>, vector<2x8x8x128xf32>
    tpu.vector_store %arg8[%c0_96, %c0_97, %c0_98, %c0_99], %81 {strides = array<i32>} : memref<2x8x8x128xf32, #tpu.memory_space<vmem>>, vector<2x8x8x128xf32>,
    return
  }
  func.func @transform_0(%arg0: i32) -> (i32, i32, i32, i32) {
    %c0_i32 = arith.constant 0 : i32
    %c0_i32_0 = arith.constant 0 : i32
    %c0_i32_1 = arith.constant 0 : i32
    %c0_i32_2 = arith.constant 0 : i32
    return %arg0, %c0_i32, %c0_i32_0, %c0_i32_1 : i32, i32, i32, i32
  }
  func.func @transform_1(%arg0: i32) -> (i32, i32) {
    %c0_i32 = arith.constant 0 : i32
    %c0_i32_0 = arith.constant 0 : i32
    %c0_i32_1 = arith.constant 0 : i32
    return %c0_i32, %c0_i32_0 : i32, i32
  }
  func.func @transform_2(%arg0: i32) -> (i32, i32) {
    %c0_i32 = arith.constant 0 : i32
    %c0_i32_0 = arith.constant 0 : i32
    %c0_i32_1 = arith.constant 0 : i32
    return %c0_i32, %c0_i32_0 : i32, i32
  }
  func.func @transform_3(%arg0: i32) -> (i32, i32) {
    %c0_i32 = arith.constant 0 : i32
    %c0_i32_0 = arith.constant 0 : i32
    %c0_i32_1 = arith.constant 0 : i32
    return %c0_i32, %c0_i32_0 : i32, i32
  }
  func.func @transform_4(%arg0: i32) -> (i32, i32) {
    %c0_i32 = arith.constant 0 : i32
    %c0_i32_0 = arith.constant 0 : i32
    %c0_i32_1 = arith.constant 0 : i32
    return %c0_i32, %c0_i32_0 : i32, i32
  }
  func.func @transform_5(%arg0: i32) -> (i32, i32) {
    %c0_i32 = arith.constant 0 : i32
    %c0_i32_0 = arith.constant 0 : i32
    %c0_i32_1 = arith.constant 0 : i32
    return %c0_i32, %c0_i32_0 : i32, i32
  }
  func.func @transform_6(%arg0: i32) -> (i32, i32) {
    %c0_i32 = arith.constant 0 : i32
    %c0_i32_0 = arith.constant 0 : i32
    %c0_i32_1 = arith.constant 0 : i32
    return %c0_i32, %c0_i32_0 : i32, i32
  }
  func.func @transform_7(%arg0: i32) -> (i32, i32, i32, i32) {
    %c0_i32 = arith.constant 0 : i32
    %c0_i32_0 = arith.constant 0 : i32
    %c0_i32_1 = arith.constant 0 : i32
    %c0_i32_2 = arith.constant 0 : i32
    return %arg0, %c0_i32, %c0_i32_0, %c0_i32_1 : i32, i32, i32, i32
  }
}

</mosaic_0001>

<bundles_post_ra>
// kernel: tpu_custom_call.1
= control target key start
LH: loop header
LB: loop body
LE: loop exit
PB: predicated region body
PF: predicated region fallthrough
CT: control target
= control target key end

     0   :  { %12 = vsyncpa [#allocation4], 0  ;;  %s6205_s0 = inlined_call_operand.vmem [shape: f32[4,8,8,128], index: 0, kind: input, shape index: {}]   ;;  %s6206_s1 = inlined_call_operand.vmem [shape: bf16[128,32], index: 1, kind: input, shape index: {}]   ;;  %s6207_s2 = inlined_call_operand.vmem [shape: f32[1,32], index: 2, kind: input, shape index: {}]   ;;  %s6208_s3 = inlined_call_operand.vmem [shape: bf16[288,32], index: 3, kind: input, shape index: {}]   ;;  %s6209_s4 = inlined_call_operand.vmem [shape: f32[1,32], index: 4, kind: input, shape index: {}]   ;;  %s6210_s5 = inlined_call_operand.vmem [shape: bf16[32,128], index: 5, kind: input, shape index: {}]   ;;  %s6211_s6 = inlined_call_operand.vmem [shape: f32[1,128], index: 6, kind: input, shape index: {}]   ;;  %s6212_s7 = inlined_call_operand.hbm [shape: f32[4,8,8,128], index: 7, kind: output, shape index: {}]  }
   0x1   :  { %14 = vsyncpa [#allocation4 + $0x1], 0  ;;  %s4826_s24 = smov 0   ;;  %s4828_s25 = smov 0  }
   0x2   :  { %s4830_s26 = smov 0   ;;  %s4832_s27 = smov 0  }
   0x3 LB: > { %s4847_s28 = sadd.s32 4294967295, %s4780_s27   ;;  %s3996_s29 = sadd.s32 4294967294, %s4780_s27   ;;  %s4780_s27 = sphi %s4832_s27, %s6276_s27   ;;  %s4776_s26 = sphi %s4830_s26, %s6275_s26   ;;  %s4772_s25 = sphi %s4828_s25, %s6274_s25   ;;  %s4768_s24 = sphi %s4826_s24, %s6273_s24  }
   0x4   : > { %s4851_s30 = sadd.s32 1, %s4780_s27   ;;  %s179_s8 = sadd.s32 1, %s4776_s26 }
   0x5   : > { %s176_s9 = ssub.s32 %s4780_s27, %s4851_s30  ;;  %p189_p0 = scmp.ne.s32.totalorder %s4776_s26, %s4772_s25 }
   0x6   : > { %p177_p1 = scmp.eq.s32.totalorder %s176_s9, 0  ;;  %p190_p2 = scmp.eq.s32.totalorder %s4847_s28, 1 }
   0x7   : > { %p195_p3 = scmp.ne.s32.totalorder %s4772_s25, %s4768_s24  ;;  %p196_p4 = scmp.eq.s32.totalorder %s3996_s29, 1 }
   0x8   : > { %s4862_s10 = scalar_select %p177_p1, %s4776_s26, %s179_s8  }
   0x9   : > { %p4864_p5 = por %p190_p2, %p189_p0  ;;  %p4868_p6 = por %p196_p4, %p195_p3 }
   0xa   : > { %p3999_p7 = scmp.ge.s32.totalorder %s4780_s27, 1  ;;  %p242_p8 = scmp.lt.s32.totalorder %s4780_s27, 3 }
   0xc   : > { %p243_p9 = pnand %p3999_p7, %p242_p8 }
   0xe   : > { %246 = sbr.rel (%p243_p9) target bundleno = 906 (0x38a), region = 48 }
  0x13   : > { %v4666_v0 = vld [vmem:[%s6206_s1 + $0x38] sm:$0xff]   ;;  %s4001_s15 = sshll.u32 %s4847_s28, 1  ;;  %v4667_v1 = vld [vmem:[%s6206_s1 + $0x30] sm:$0xff]   ;;  %v4668_v2 = vld [vmem:[%s6206_s1 + $0x28] sm:$0xff]   ;;  %vm502_vm0 = vcmask 253952   ;;  %vm500_vm5 = vcmask 257024  }
  0x14   : > { %p276_p10 = scmp.lt.s32.totalorder %s4001_s15, 3  ;;  %4392 = vmatprep.subr.bf16.mxu0 %v4666_v0  ;;  %v4669_v3 = vld [vmem:[%s6206_s1 + $0x20] sm:$0xff]   ;;  %v4670_v7 = vld [vmem:[%s6206_s1 + $0x18] sm:$0xff]   ;;  %v4671_v8 = vld [vmem:[%s6206_s1 + $0x10] sm:$0xff]   ;;  %vm513_vm1 = vsmask.f32 256 }
  0x15   : > { %4393 = vmatpush3.bf16.msra.mxu0 %v4666_v0  ;;  %v4672_v9 = vld [vmem:[%s6206_s1 + $0x8] sm:$0xff]   ;;  %v4673_v10 = vld [vmem:[%s6206_s1] sm:$0xff]   ;;  %vm563_vm2 = vsmask.f32 7938  ;;  %vm4921_vm3 = vmand %vm502_vm0, %vm513_vm1  ;;  %vm1557_vm7 = vcmask 1042432   ;;  %vm1558_vm8 = vcmask 1046532  }
  0x16   : > { %s6278_s15 = smov (!%p276_p10, %s4001_s15), 3  ;;  %4394 = vmatprep.subr.bf16.mxu0 %v4667_v1  ;;  %v521_v33 = vld [vmem:[#allocation2 + $0x18] sm:$0x1]  ;;  %v571_v34 = vld [vmem:[#allocation2 + $0x1c] sm:$0x1]  ;;  %vm4929_vm4 = vmand %vm502_vm0, %vm563_vm2  ;;  %vm1214_vm13 = vcmask 261120  }
  0x17   : > { %s4257_s20 = sshll.u32 %s6278_s15, 6  ;;  %v522_v35 = vsel %vm4921_vm3, 0, %v521_v33  ;;  %v572_v37 = vsel %vm4929_vm4, 0, %v571_v34  ;;  %v515_v38 = vld [vmem:[#allocation2 + $0x8] sm:$0x1]  ;;  %vm4945_vm6 = vmand %vm500_vm5, %vm563_vm2  ;;  %s272_s9 = sand.u32 1, %s4772_s25  }
  0x18   : > { %s4887_s23 = scalar_lea.vmem %s6205_s0, %s4257_s20  ;;  %523 = vst [vmem:[#allocation2 + $0x18] sm:$0x1] %v522_v35  ;;  %v565_v39 = vld [vmem:[#allocation2 + $0xc] sm:$0x1]  ;;  %573 = vst [vmem:[#allocation2 + $0x1c] sm:$0x1] %v572_v37 }
  0x19   : > { %4395 = vmatpush3.bf16.msra.mxu0 %v4667_v1  ;;  %v284_v4 = vld [vmem:[%s4887_s23] sm:$0xff]  ;;  %v285_v5 = vld [vmem:[%s4887_s23 + $0x8] sm:$0xff]  ;;  %v286_v11 = vld [vmem:[%s4887_s23 + $0x10] sm:$0xff]  ;;  %v516_v40 = vsel %vm4921_vm3, 0, %v515_v38  ;;  %v566_v41 = vsel %vm4929_vm4, 0, %v565_v39  ;;  %s4000_s15 = sshll.u32 %s272_s9, 7 }
  0x1a   : > { %4396 = vmatprep.subr.bf16.mxu0 %v4668_v2  ;;  %v300_v6 = vpack.c.bf16 %v285_v5, %v284_v4  ;;  %v287_v12 = vld [vmem:[%s4887_s23 + $0x18] sm:$0xff]  ;;  %v288_v13 = vld [vmem:[%s4887_s23 + $0x20] sm:$0xff]  ;;  %v289_v14 = vld [vmem:[%s4887_s23 + $0x28] sm:$0xff]  ;;  %517 = vst [vmem:[#allocation2 + $0x8] sm:$0x1] %v516_v40  ;;  %s6111_s16 = scalar_lea.vmem [#allocation3], %s4000_s15 }
  0x1b   : > { %v301_v15 = vpack.c.bf16 %v287_v12, %v286_v11  ;;  %v302_v16 = vpack.c.bf16 %v289_v14, %v288_v13  ;;  %v290_v17 = vld [vmem:[%s4887_s23 + $0x30] sm:$0xff]  ;;  %v291_v18 = vld [vmem:[%s4887_s23 + $0x38] sm:$0xff]  ;;  %v292_v19 = vld [vmem:[%s4887_s23 + $0x40] sm:$0xff]  ;;  %567 = vst [vmem:[#allocation2 + $0xc] sm:$0x1] %v566_v41  ;;  %s4275_s17 = sshll.u32 %s4847_s28, 11 }
  0x1c   : > { %4408 = vmatprep.mubr.bf16.mxu0 %v300_v6  ;;  %v293_v20 = vld [vmem:[%s4887_s23 + $0x48] sm:$0xff]  ;;  %v303_v21 = vpack.c.bf16 %v291_v18, %v290_v17  ;;  %v294_v23 = vld [vmem:[%s4887_s23 + $0x50] sm:$0xff]  ;;  %v295_v24 = vld [vmem:[%s4887_s23 + $0x58] sm:$0xff]  ;;  %vm947_vm9 = vsmask.f32 3328  ;;  %s3934_s18 = sshll.u32 %s6111_s16, 4  ;;  %s6157_s21 = scalar_lea.hbm %s6212_s7, %s4275_s17  ;;  %s6159_s18 = int_to_ptr.vmem [resolvable:$true] %s3934_s18 }
  0x1d   : > { %4397 = vmatpush3.bf16.msra.mxu0 %v4668_v2  ;;  %v304_v22 = vpack.c.bf16 %v293_v20, %v292_v19  ;;  %v296_v25 = vld [vmem:[%s4887_s23 + $0x60] sm:$0xff]  ;;  %v297_v26 = vld [vmem:[%s4887_s23 + $0x68] sm:$0xff]  ;;  %v305_v27 = vpack.c.bf16 %v295_v24, %v294_v23  ;;  %v298_v29 = vld [vmem:[%s4887_s23 + $0x70] sm:$0xff]  ;;  %vm948_vm10 = vsmask.f32 7440  ;;  %s4720_s28 = scalar_lea.vmem %s6159_s18, 2048 }
  0x1e   : > { %4398 = vmatprep.subr.bf16.mxu0 %v4669_v3  ;;  %v306_v28 = vpack.c.bf16 %v297_v26, %v296_v25  ;;  %v299_v30 = vld [vmem:[%s4887_s23 + $0x78] sm:$0xff]  ;;  %v524_v42 = vld [vmem:[#allocation2 + $0x20] sm:$0x1]  ;;  %v574_v43 = vld [vmem:[#allocation2 + $0x24] sm:$0x1]  ;;  %p4721_p11 = scmp.ne.s32.totalorder %s6159_s18, %s4720_s28  ;;  %s4783_s22 = smov [#allocation3]  }
  0x1f   : > { %v307_v31 = vpack.c.bf16 %v299_v30, %v298_v29  ;;  %v525_v44 = vsel %vm4921_vm3, 0, %v524_v42  ;;  %v575_v45 = vsel %vm4929_vm4, 0, %v574_v43  ;;  %v518_v46 = vld [vmem:[#allocation2 + $0x10] sm:$0x1]  ;;  %v568_v47 = vld [vmem:[#allocation2 + $0x14] sm:$0x1]  ;;  %vm5047_vm11 = vmor %vm1557_vm7, %vm1558_vm8 }
  0x20   : > { %526 = vst [vmem:[#allocation2 + $0x20] sm:$0x1] %v525_v44  ;;  %576 = vst [vmem:[#allocation2 + $0x24] sm:$0x1] %v575_v45  ;;  %v519_v49 = vsel %vm4921_vm3, 0, %v518_v46  ;;  %v569_v50 = vsel %vm4929_vm4, 0, %v568_v47  ;;  %p4722_p12 = pnand %p4721_p11, %p4864_p5 }
  0x21   : > { %4399 = vmatpush3.bf16.msra.mxu0 %v4669_v3  ;;  %520 = vst [vmem:[#allocation2 + $0x10] sm:$0x1] %v519_v49  ;;  %570 = vst [vmem:[#allocation2 + $0x14] sm:$0x1] %v569_v50  ;;  %v533_v51 = vld [vmem:[#allocation2 + $0x38] sm:$0x1] }
  0x22   : > { %4400 = vmatprep.subr.bf16.mxu0 %v4670_v7  ;;  %v583_v52 = vld [vmem:[#allocation2 + $0x3c] sm:$0x1]  ;;  %v534_v53 = vsel %vm4921_vm3, 0, %v533_v51  ;;  %v527_v55 = vld [vmem:[#allocation2 + $0x28] sm:$0x1]  ;;  %v4675_v25 = vld [vmem:[%s6208_s3 + $0x20] sm:$0xff]   ;;  %p4723_p13 = pneg %p4722_p12 }
  0x23   : > { %v584_v54 = vsel %vm4929_vm4, 0, %v583_v52  ;;  %535 = vst [vmem:[#allocation2 + $0x38] sm:$0x1] %v534_v53  ;;  %v577_v56 = vld [vmem:[#allocation2 + $0x2c] sm:$0x1]  ;;  %v528_v57 = vsel %vm4921_vm3, 0, %v527_v55  ;;  %vm5057_vm12 = vmor %vm947_vm9, %vm948_vm10 }
  0x24   : > { %585 = vst [vmem:[#allocation2 + $0x3c] sm:$0x1] %v584_v54  ;;  %v578_v58 = vsel %vm4929_vm4, 0, %v577_v56  ;;  %529 = vst [vmem:[#allocation2 + $0x28] sm:$0x1] %v528_v57  ;;  %v4676_v35 = vld [vmem:[%s6208_s3 + $0x18] sm:$0xff]  }
  0x25   : > { %4401 = vmatpush3.bf16.msra.mxu0 %v4670_v7  ;;  %579 = vst [vmem:[#allocation2 + $0x2c] sm:$0x1] %v578_v58  ;;  %v536_v59 = vld [vmem:[#allocation2 + $0x40] sm:$0x1]  ;;  %v586_v60 = vld [vmem:[#allocation2 + $0x44] sm:$0x1]  ;;  %4424 = vmatprep.subr.bf16.mxu1 %v4676_v35 }
  0x26   : > { %4402 = vmatprep.subr.bf16.mxu0 %v4671_v8  ;;  %v537_v61 = vsel %vm4921_vm3, 0, %v536_v59  ;;  %v587_v62 = vsel %vm4929_vm4, 0, %v586_v60  ;;  %v530_v63 = vld [vmem:[#allocation2 + $0x30] sm:$0x1]  ;;  %v580_v0 = vld [vmem:[#allocation2 + $0x34] sm:$0x1]  ;;  %4425 = vmatpush3.bf16.msra.mxu1 %v4676_v35 }
  0x27   : > { %538 = vst [vmem:[#allocation2 + $0x40] sm:$0x1] %v537_v61  ;;  %588 = vst [vmem:[#allocation2 + $0x44] sm:$0x1] %v587_v62  ;;  %v531_v1 = vsel %vm4921_vm3, 0, %v530_v63  ;;  %v581_v2 = vsel %vm4929_vm4, 0, %v580_v0 }
  0x28   : > { %532 = vst [vmem:[#allocation2 + $0x30] sm:$0x1] %v531_v1  ;;  %582 = vst [vmem:[#allocation2 + $0x34] sm:$0x1] %v581_v2  ;;  %v545_v3 = vld [vmem:[#allocation2 + $0x68] sm:$0x1] }
  0x29   : > { %4403 = vmatpush3.bf16.msra.mxu0 %v4671_v8  ;;  %v595_v4 = vld [vmem:[#allocation2 + $0x6c] sm:$0x1]  ;;  %v546_v5 = vsel %vm4921_vm3, 0, %v545_v3  ;;  %v4782_v7 = vmov 0   ;;  %v539_v8 = vld [vmem:[#allocation2 + $0x58] sm:$0x1] }
  0x2a   : > { %4404 = vmatprep.subr.bf16.mxu0 %v4672_v9  ;;  %v596_v6 = vsel %vm4929_vm4, 0, %v595_v4  ;;  %547 = vst [vmem:[#allocation2 + $0x68] sm:$0x1] %v546_v5  ;;  %501 = vst.msk [vmem:[#allocation2] sm:$0xf] %vm500_vm5, %v4782_v7  ;;  %v4677_v41 = vld [vmem:[%s6208_s3 + $0x10] sm:$0xff]  }
  0x2b   : > { %597 = vst [vmem:[#allocation2 + $0x6c] sm:$0x1] %v596_v6  ;;  %503 = vst.msk [vmem:[#allocation2 + $0x4] sm:$0x1] %vm502_vm0, %v4782_v7  ;;  %v548_v12 = vld [vmem:[#allocation2 + $0x70] sm:$0x1]  ;;  %4426 = vmatprep.subr.bf16.mxu1 %v4677_v41 }
  0x2c   : > { %504 = vst.msk [vmem:[#allocation2 + $0x50] sm:$0xf] %vm500_vm5, %v4782_v7  ;;  %507 = vst.msk [vmem:[#allocation2 + $0x48] sm:$0xf] %vm500_vm5, %v4782_v7  ;;  %v598_v13 = vld [vmem:[#allocation2 + $0x74] sm:$0x1]  ;;  %4427 = vmatpush3.bf16.msra.mxu1 %v4677_v41 }
  0x2d   : > { %4405 = vmatpush3.bf16.msra.mxu0 %v4672_v9  ;;  %505 = vst.msk [vmem:[#allocation2 + $0x54] sm:$0x1] %vm502_vm0, %v4782_v7  ;;  %508 = vst.msk [vmem:[#allocation2 + $0x4c] sm:$0x1] %vm502_vm0, %v4782_v7  ;;  %v589_v9 = vld [vmem:[#allocation2 + $0x5c] sm:$0x1] }
  0x2e   : > { %4406 = vmatprep.subr.bf16.mxu0 %v4673_v10  ;;  %509 = vst.msk [vmem:[#allocation2 + $0x98] sm:$0xf] %vm500_vm5, %v4782_v7  ;;  %v590_v11 = vsel %vm4929_vm4, 0, %v589_v9  ;;  %v549_v14 = vsel %vm4921_vm3, 0, %v548_v12  ;;  %v542_v17 = vld [vmem:[#allocation2 + $0x60] sm:$0x1] }
  0x2f   : > { %510 = vst.msk [vmem:[#allocation2 + $0x9c] sm:$0x1] %vm502_vm0, %v4782_v7  ;;  %591 = vst [vmem:[#allocation2 + $0x5c] sm:$0x1] %v590_v11  ;;  %v592_v18 = vld [vmem:[#allocation2 + $0x64] sm:$0x1] }
  0x30   : > { %550 = vst [vmem:[#allocation2 + $0x70] sm:$0x1] %v549_v14  ;;  %v543_v19 = vsel %vm4921_vm3, 0, %v542_v17  ;;  %v593_v20 = vsel %vm4929_vm4, 0, %v592_v18  ;;  %v551_v26 = vld [vmem:[#allocation2 + $0x78] sm:$0x1] }
  0x31   : > { %4407 = vmatpush3.bf16.msra.mxu0 %v4673_v10  ;;  %v540_v10 = vsel %vm4921_vm3, 0, %v539_v8  ;;  %544 = vst [vmem:[#allocation2 + $0x60] sm:$0x1] %v543_v19  ;;  %594 = vst [vmem:[#allocation2 + $0x64] sm:$0x1] %v593_v20  ;;  %v5024_v42 = vld [vmem:[%s6208_s3 + $0x8] sm:$0xff]  }
  0x32   : > { %541 = vst [vmem:[#allocation2 + $0x58] sm:$0x1] %v540_v10  ;;  %v560_v30 = vld [vmem:[#allocation2 + $0x90] sm:$0x1]  ;;  %v554_v37 = vld [vmem:[#allocation2 + $0x80] sm:$0x1]  ;;  %4444 = vmatprep.subr.bf16.mxu1 %v5024_v42 }
  0x33   : > { %v561_v33 = vsel %vm4921_vm3, 0, %v560_v30  ;;  %v604_v38 = vld [vmem:[#allocation2 + $0x84] sm:$0x1]  ;;  %v555_v39 = vsel %vm4921_vm3, 0, %v554_v37  ;;  %v5030_v36 = vld [vmem:[%s6208_s3 + $0x48] sm:$0xff]   ;;  %s4724_s29 = sshll.u32 %s4783_s22, 4  ;;  %s4725_s29 = int_to_ptr.vmem [resolvable:$false] %s4724_s29 }
  0x34   : > { %4409 = vmatmul.mubr.bf16.vlgmr.msra.gmra.mxu0 %v301_v15  ;;  %v599_v15 = vsel %vm4929_vm4, 0, %v598_v13  ;;  %562 = vst [vmem:[#allocation2 + $0x90] sm:$0x1] %v561_v33  ;;  %v605_v40 = vsel %vm4929_vm4, 0, %v604_v38  ;;  %556 = vst [vmem:[#allocation2 + $0x80] sm:$0x1] %v555_v39  ;;  %p4727_p0 = scmp.lt.s32.totalorder %s6159_s18, %s4725_s29 }
  0x35   : > { %4412 = vmatprep.mubr.bf16.mxu0 %v302_v16  ;;  %600 = vst [vmem:[#allocation2 + $0x74] sm:$0x1] %v599_v15  ;;  %v4674_v16 = vld [vmem:[%s6208_s3 + $0x28] sm:$0xff]   ;;  %606 = vst [vmem:[#allocation2 + $0x84] sm:$0x1] %v605_v40  ;;  %s4726_s8 = scalar_lea.vmem %s4725_s29, 4096 }
  0x36   : > { %4464 = vmatprep.subr.bf16.mxu0 %v4674_v16  ;;  %v911_v43 = vld [vmem:[#allocation2] sm:$0xf]  ;;  %v919_v44 = vld [vmem:[#allocation2 + $0x50] sm:$0xf]  ;;  %v931_v55 = vld [vmem:[#allocation2 + $0x4] sm:$0x1]  ;;  %p4728_p1 = scmp.lt.s32.totalorder %s4726_s8, %s4720_s28 }
  0x37   : > { %4465 = vmatpush3.bf16.msra.mxu0 %v4674_v16  ;;  %v951_v45 = vshrl.u32 %v911_v43, 16  ;;  %v954_v46 = vshll.u32 %v911_v43, 16  ;;  %v1063_v47 = vshrl.u32 %v919_v44, 16  ;;  %v1066_v49 = vshll.u32 %v919_v44, 16  ;;  %v5036_v52 = vld [vmem:[%s6207_s2] ss:$0 sm:$0xff] }
  0x38   : > { %4466 = vmatprep.subr.bf16.mxu0 %v4675_v25  ;;  %v1509_v56 = vld [vmem:[#allocation2] sm:$0xe]  ;;  %v960_v59 = vshll.u32 %v931_v55, 16  ;;  %v939_v61 = vld [vmem:[#allocation2 + $0x54] sm:$0x1]  ;;  %v1562_v1 = vrot.slane %v931_v55, 5  ;;  %p4729_p2 = por %p4728_p1, %p4727_p0 }
  0x39   : > { %v953_v50 = vrot.slane %v951_v45, 4  ;;  %v956_v51 = vrot.slane %v954_v46, 5  ;;  %v1065_v53 = vrot.slane %v1063_v47, 4  ;;  %v1068_v54 = vrot.slane %v1066_v49, 5  ;;  %v1517_v62 = vld [vmem:[#allocation2 + $0x50] sm:$0xe] }
  0x3a   : > { %v4065_v0 = vrot.slane %v1509_v56, 9  ;;  %v1072_v3 = vshll.u32 %v939_v61, 16  ;;  %v5042_v8 = vrot.slane %v960_v59, 5  ;;  %v4073_v9 = vrot.slane %v1517_v62, 9  ;;  %v830_v33 = vld [vmem:[#allocation2 + $0x1c] sm:$0x1]  ;;  %p4730_p3 = pnand %p4729_p2, %p4723_p13 }
  0x3b   : > { %4467 = vmatpush3.bf16.msra.mxu0 %v4675_v25  ;;  %v957_v58 = vor.u32 %v956_v51, %v953_v50  ;;  %v1069_v2 = vor.u32 %v1068_v54, %v1065_v53  ;;  %v1594_v10 = vrot.slane %v939_v61, 5  ;;  %v815_v45 = vld [vmem:[#allocation2 + $0x8] sm:$0xf]  ;;  %v818_v46 = vld [vmem:[#allocation2 + $0xc] sm:$0x1] }
  0x3c   : > { %4413 = vmatmul.mubr.bf16.gmra.mxu0 %v303_v21  ;;  %v557_v21 = vld [vmem:[#allocation2 + $0x88] sm:$0x1]  ;;  %4504 = vmatprep.subr.bf16.mxu0 %v5030_v36  ;;  %v5053_v17 = vrot.slane %v1072_v3, 5 }
  0x3d   : > { %4416 = vmatprep.mubr.bf16.mxu0 %v304_v22  ;;  %v607_v22 = vld [vmem:[#allocation2 + $0x8c] sm:$0x1]  ;;  %v558_v23 = vsel %vm4921_vm3, 0, %v557_v21  ;;  %v5040_v7 = vrot.slane %v957_v58, 4  ;;  %v5051_v16 = vrot.slane %v1069_v2, 4 }
  0x3e   : > { %v608_v24 = vsel %vm4929_vm4, 0, %v607_v22  ;;  %559 = vst [vmem:[#allocation2 + $0x88] sm:$0x1] %v558_v23  ;;  %v836_v2 = vld [vmem:[#allocation2 + $0x24] sm:$0x1]  ;;  %v4716_v21 = vld [vmem:[%s6210_s5 + $0x8] sm:$0xff]  }
  0x3f   : > { %609 = vst [vmem:[#allocation2 + $0x8c] sm:$0x1] %v608_v24  ;;  %v5064_v24 = vsel %vm5047_vm11, %v4065_v0, %v1562_v1  ;;  %v963_v25 = vsel %vm5057_vm12, %v5040_v7, %v5042_v8  ;;  %v1075_v39 = vsel %vm5057_vm12, %v5051_v16, %v5053_v17  ;;  %v833_v1 = vld [vmem:[#allocation2 + $0x20] sm:$0xf] }
  0x44   : > { %4417 = vmatmul.mubr.bf16.gmra.mxu0 %v305_v27  ;;  %v601_v27 = vld [vmem:[#allocation2 + $0x7c] sm:$0x1] }
  0x45   : > { %4420 = vmatprep.mubr.bf16.mxu0 %v306_v28  ;;  %v552_v28 = vsel %vm4921_vm3, 0, %v551_v26  ;;  %v602_v29 = vsel %vm4929_vm4, 0, %v601_v27  ;;  %v5072_v26 = vsel %vm5047_vm11, %v4073_v9, %v1594_v10 }
  0x46   : > { %553 = vst [vmem:[#allocation2 + $0x78] sm:$0x1] %v552_v28  ;;  %603 = vst [vmem:[#allocation2 + $0x7c] sm:$0x1] %v602_v29 }
  0x4c   : > { %4421 = vmatmul.mubr.bf16.gmra.mxu0 %v307_v31  ;;  %v610_v31 = vld [vmem:[#allocation2 + $0x94] sm:$0x1] }
  0x4d   : > { %v611_v34 = vsel %vm4929_vm4, 0, %v610_v31  ;;  %v827_v31 = vld [vmem:[#allocation2 + $0x18] sm:$0xf] }
  0x4e   : > { %612 = vst [vmem:[#allocation2 + $0x94] sm:$0x1] %v611_v34 }
  0xf4   : > { %v4410_v57 = vpop.f32.mrf.mxu0 }
  0xf5   : > { %v422_v60 = vadd.f32 %v4410_v57, %v5036_v52 }
  0xf6   : > { %v413_v63 = vpop.f32.mrf.mxu0 }
  0xf7   : > { %v478_v4 = vmax.f32 %v422_v60, 0.0  ;;  %v414_v5 = vadd.f32 %v5036_v52, %v413_v63 }
  0xf8   : > { %v4411_v6 = vpop.f32.mrf.mxu0 }
  0xf9   : > { %v4260_v11 = vpack.c.bf16 %v478_v4, %v478_v4  ;;  %v476_v12 = vmax.f32 %v414_v5, 0.0  ;;  %v425_v13 = vadd.f32 %v4411_v6, %v5036_v52 }
  0xfa   : > { %v416_v14 = vpop.f32.mrf.mxu0 }
  0xfb   : > { %v670_v18 = vshrl.u32 %v4260_v11, 16  ;;  %v4258_v19 = vpack.c.bf16 %v476_v12, %v476_v12  ;;  %v479_v20 = vmax.f32 %v425_v13, 0.0  ;;  %v417_v22 = vadd.f32 %v5036_v52, %v416_v14  ;;  %v821_v12 = vld [vmem:[#allocation2 + $0x10] sm:$0xf]  ;;  %v824_v13 = vld [vmem:[#allocation2 + $0x14] sm:$0x1] }
  0xfc   : > { %v4414_v23 = vpop.f32.mrf.mxu0  ;;  %v673_v28 = vshll.u32 %v4260_v11, 16 }
  0xfd   : > { %v672_v27 = vrot.slane %v670_v18, 7  ;;  %v654_v29 = vshrl.u32 %v4258_v19, 16  ;;  %v4261_v30 = vpack.c.bf16 %v479_v20, %v479_v20  ;;  %v657_v34 = vshll.u32 %v4258_v19, 16 }
  0xfe   : > { %v477_v35 = vmax.f32 %v417_v22, 0.0  ;;  %v438_v37 = vadd.f32 %v4414_v23, %v5036_v52  ;;  %v429_v38 = vpop.f32.mrf.mxu0 }
  0xff   : > { %v675_v40 = vor.u32 %v673_v28, %v672_v27  ;;  %v676_v41 = vrot.slane %v672_v27, 4  ;;  %v656_v43 = vrot.slane %v654_v29, 7  ;;  %v678_v44 = vshrl.u32 %v4261_v30, 16 }
 0x100   : > { %v681_v47 = vshll.u32 %v4261_v30, 16  ;;  %v4259_v49 = vpack.c.bf16 %v477_v35, %v477_v35  ;;  %v482_v50 = vmax.f32 %v438_v37, 0.0  ;;  %v430_v51 = vadd.f32 %v5036_v52, %v429_v38  ;;  %v4415_v53 = vpop.f32.mrf.mxu0  ;;  %v851_v38 = vld [vmem:[#allocation2 + $0x38] sm:$0xf] }
 0x101   : > { %v828_v54 = vsel %vm4945_vm6, %v675_v40, %v827_v31  ;;  %v831_v55 = vsel %vm4921_vm3, %v676_v41, %v830_v33  ;;  %v659_v56 = vor.u32 %v657_v34, %v656_v43  ;;  %v660_v57 = vrot.slane %v656_v43, 4  ;;  %v854_v40 = vld [vmem:[#allocation2 + $0x3c] sm:$0x1] }
 0x102   : > { %829 = vst [vmem:[#allocation2 + $0x18] sm:$0xf] %v828_v54  ;;  %832 = vst [vmem:[#allocation2 + $0x1c] sm:$0x1] %v831_v55  ;;  %v680_v58 = vrot.slane %v678_v44, 7  ;;  %v662_v59 = vshrl.u32 %v4259_v49, 16  ;;  %v4264_v61 = vpack.c.bf16 %v482_v50, %v482_v50  ;;  %v432_v62 = vpop.f32.mrf.mxu0  ;;  %v441_v4 = vadd.f32 %v4415_v53, %v5036_v52 }
 0x103   : > { %v665_v60 = vshll.u32 %v4259_v49, 16  ;;  %v816_v63 = vsel %vm4945_vm6, %v659_v56, %v815_v45  ;;  %v819_v0 = vsel %vm4921_vm3, %v660_v57, %v818_v46  ;;  %v480_v3 = vmax.f32 %v430_v51, 0.0  ;;  %v839_v50 = vld [vmem:[#allocation2 + $0x28] sm:$0xf]  ;;  %v842_v51 = vld [vmem:[#allocation2 + $0x2c] sm:$0x1] }
 0x104   : > { %817 = vst [vmem:[#allocation2 + $0x8] sm:$0xf] %v816_v63  ;;  %820 = vst [vmem:[#allocation2 + $0xc] sm:$0x1] %v819_v0  ;;  %v683_v5 = vor.u32 %v681_v47, %v680_v58  ;;  %v684_v6 = vrot.slane %v680_v58, 4  ;;  %v664_v9 = vrot.slane %v662_v59, 7  ;;  %v4418_v11 = vpop.f32.mrf.mxu0  ;;  %v433_v20 = vadd.f32 %v5036_v52, %v432_v62 }
 0x105   : > { %v702_v10 = vshrl.u32 %v4264_v61, 16  ;;  %v705_v14 = vshll.u32 %v4264_v61, 16  ;;  %v4262_v18 = vpack.c.bf16 %v480_v3, %v480_v3  ;;  %v483_v19 = vmax.f32 %v441_v4, 0.0 }
 0x106   : > { %v834_v22 = vsel %vm4945_vm6, %v683_v5, %v833_v1  ;;  %v837_v23 = vsel %vm4921_vm3, %v684_v6, %v836_v2  ;;  %v667_v27 = vor.u32 %v665_v60, %v664_v9  ;;  %v668_v28 = vrot.slane %v664_v9, 4  ;;  %v445_v29 = vpop.f32.mrf.mxu0  ;;  %v857_v5 = vld [vmem:[#allocation2 + $0x40] sm:$0xf]  ;;  %v860_v6 = vld [vmem:[#allocation2 + $0x44] sm:$0x1] }
 0x107   : > { %835 = vst [vmem:[#allocation2 + $0x20] sm:$0xf] %v834_v22  ;;  %838 = vst [vmem:[#allocation2 + $0x24] sm:$0x1] %v837_v23  ;;  %v704_v30 = vrot.slane %v702_v10, 7  ;;  %v686_v31 = vshrl.u32 %v4262_v18, 16  ;;  %v4265_v34 = vpack.c.bf16 %v483_v19, %v483_v19  ;;  %v454_v43 = vadd.f32 %v4418_v11, %v5036_v52 }
 0x108   : > { %v689_v33 = vshll.u32 %v4262_v18, 16  ;;  %v822_v35 = vsel %vm4945_vm6, %v667_v27, %v821_v12  ;;  %v825_v37 = vsel %vm4921_vm3, %v668_v28, %v824_v13  ;;  %v481_v41 = vmax.f32 %v433_v20, 0.0  ;;  %v4419_v44 = vpop.f32.mrf.mxu0  ;;  %v845_v18 = vld [vmem:[#allocation2 + $0x30] sm:$0xf]  ;;  %v848_v19 = vld [vmem:[#allocation2 + $0x34] sm:$0x1] }
 0x109   : > { %823 = vst [vmem:[#allocation2 + $0x10] sm:$0xf] %v822_v35  ;;  %826 = vst [vmem:[#allocation2 + $0x14] sm:$0x1] %v825_v37  ;;  %v707_v45 = vor.u32 %v705_v14, %v704_v30  ;;  %v708_v46 = vrot.slane %v704_v30, 4  ;;  %v688_v47 = vrot.slane %v686_v31, 7  ;;  %v446_v56 = vadd.f32 %v5036_v52, %v445_v29 }
 0x10a   : > { %v710_v49 = vshrl.u32 %v4265_v34, 16  ;;  %v713_v53 = vshll.u32 %v4265_v34, 16  ;;  %v4263_v54 = vpack.c.bf16 %v481_v41, %v481_v41  ;;  %v486_v55 = vmax.f32 %v454_v43, 0.0  ;;  %v448_v57 = vpop.f32.mrf.mxu0  ;;  %v875_v43 = vld [vmem:[#allocation2 + $0x68] sm:$0xf] }
 0x10b   : > { %v852_v58 = vsel %vm4945_vm6, %v707_v45, %v851_v38  ;;  %v855_v59 = vsel %vm4921_vm3, %v708_v46, %v854_v40  ;;  %v691_v60 = vor.u32 %v689_v33, %v688_v47  ;;  %v692_v61 = vrot.slane %v688_v47, 4 }
 0x10c   : > { %853 = vst [vmem:[#allocation2 + $0x38] sm:$0xf] %v852_v58  ;;  %856 = vst [vmem:[#allocation2 + $0x3c] sm:$0x1] %v855_v59  ;;  %v712_v62 = vrot.slane %v710_v49, 7  ;;  %v694_v63 = vshrl.u32 %v4263_v54, 16  ;;  %v4268_v1 = vpack.c.bf16 %v486_v55, %v486_v55  ;;  %v4422_v2 = vpop.f32.mrf.mxu0  ;;  %v457_v10 = vadd.f32 %v4419_v44, %v5036_v52 }
 0x10d   : > { %v697_v0 = vshll.u32 %v4263_v54, 16  ;;  %v840_v3 = vsel %vm4945_vm6, %v691_v60, %v839_v50  ;;  %v843_v4 = vsel %vm4921_vm3, %v692_v61, %v842_v51  ;;  %v484_v9 = vmax.f32 %v446_v56, 0.0  ;;  %v878_v44 = vld [vmem:[#allocation2 + $0x6c] sm:$0x1]  ;;  %v866_v54 = vld [vmem:[#allocation2 + $0x5c] sm:$0x1] }
 0x10e   : > { %841 = vst [vmem:[#allocation2 + $0x28] sm:$0xf] %v840_v3  ;;  %844 = vst [vmem:[#allocation2 + $0x2c] sm:$0x1] %v843_v4  ;;  %v715_v11 = vor.u32 %v713_v53, %v712_v62  ;;  %v716_v12 = vrot.slane %v712_v62, 4  ;;  %v696_v13 = vrot.slane %v694_v63, 7  ;;  %v449_v27 = vadd.f32 %v5036_v52, %v448_v57  ;;  %v461_v33 = vpop.f32.mrf.mxu0 }
 0x10f   : > { %v734_v14 = vshrl.u32 %v4268_v1, 16  ;;  %v737_v20 = vshll.u32 %v4268_v1, 16  ;;  %v4266_v22 = vpack.c.bf16 %v484_v9, %v484_v9  ;;  %v487_v23 = vmax.f32 %v457_v10, 0.0  ;;  %v863_v53 = vld [vmem:[#allocation2 + $0x58] sm:$0xf] }
 0x110   : > { %v858_v28 = vsel %vm4945_vm6, %v715_v11, %v857_v5  ;;  %v861_v29 = vsel %vm4921_vm3, %v716_v12, %v860_v6  ;;  %v699_v30 = vor.u32 %v697_v0, %v696_v13  ;;  %v700_v31 = vrot.slane %v696_v13, 4  ;;  %v4423_v59 = vpop.f32.mrf.mxu0  ;;  %v881_v0 = vld [vmem:[#allocation2 + $0x70] sm:$0xf]  ;;  %v1510_v5 = vld [vmem:[#allocation2 + $0x8] sm:$0xe] }
 0x111   : > { %859 = vst [vmem:[#allocation2 + $0x40] sm:$0xf] %v858_v28  ;;  %862 = vst [vmem:[#allocation2 + $0x44] sm:$0x1] %v861_v29  ;;  %v736_v34 = vrot.slane %v734_v14, 7  ;;  %v718_v35 = vshrl.u32 %v4266_v22, 16  ;;  %v4269_v38 = vpack.c.bf16 %v487_v23, %v487_v23  ;;  %v470_v46 = vadd.f32 %v4422_v2, %v5036_v52 }
 0x112   : > { %v721_v37 = vshll.u32 %v4266_v22, 16  ;;  %v846_v40 = vsel %vm4945_vm6, %v699_v30, %v845_v18  ;;  %v849_v41 = vsel %vm4921_vm3, %v700_v31, %v848_v19  ;;  %v485_v45 = vmax.f32 %v449_v27, 0.0  ;;  %v884_v10 = vld [vmem:[#allocation2 + $0x74] sm:$0x1]  ;;  %v869_v11 = vld [vmem:[#allocation2 + $0x60] sm:$0xf]  ;;  %v464_v31 = vpop.f32.mrf.mxu0 }
 0x113   : > { %847 = vst [vmem:[#allocation2 + $0x30] sm:$0xf] %v846_v40  ;;  %850 = vst [vmem:[#allocation2 + $0x34] sm:$0x1] %v849_v41  ;;  %v739_v47 = vor.u32 %v737_v20, %v736_v34  ;;  %v740_v49 = vrot.slane %v736_v34, 4  ;;  %v720_v50 = vrot.slane %v718_v35, 7  ;;  %v462_v58 = vadd.f32 %v5036_v52, %v461_v33 }
 0x114   : > { %v742_v51 = vshrl.u32 %v4269_v38, 16  ;;  %v745_v55 = vshll.u32 %v4269_v38, 16  ;;  %v4267_v56 = vpack.c.bf16 %v485_v45, %v485_v45  ;;  %v490_v57 = vmax.f32 %v470_v46, 0.0  ;;  %v872_v20 = vld [vmem:[#allocation2 + $0x64] sm:$0x1] }
 0x115   : > { %v876_v60 = vsel %vm4945_vm6, %v739_v47, %v875_v43  ;;  %v879_v61 = vsel %vm4921_vm3, %v740_v49, %v878_v44  ;;  %v723_v62 = vor.u32 %v721_v37, %v720_v50  ;;  %v724_v63 = vrot.slane %v720_v50, 4  ;;  %v5129_v29 = vld [vmem:[#allocation2 + $0xc] sm:$0x1]  ;;  %v899_v38 = vld [vmem:[#allocation2 + $0x88] sm:$0xf] }
 0x116   : > { %877 = vst [vmem:[#allocation2 + $0x68] sm:$0xf] %v876_v60  ;;  %880 = vst [vmem:[#allocation2 + $0x6c] sm:$0x1] %v879_v61  ;;  %v744_v1 = vrot.slane %v742_v51, 7  ;;  %v726_v2 = vshrl.u32 %v4267_v56, 16  ;;  %v4272_v4 = vpack.c.bf16 %v490_v57, %v490_v57  ;;  %v473_v13 = vadd.f32 %v4423_v59, %v5036_v52 }
 0x117   : > { %v729_v3 = vshll.u32 %v4267_v56, 16  ;;  %v864_v6 = vsel %vm4945_vm6, %v723_v62, %v863_v53  ;;  %v867_v9 = vsel %vm4921_vm3, %v724_v63, %v866_v54  ;;  %v488_v12 = vmax.f32 %v462_v58, 0.0  ;;  %v902_v40 = vld [vmem:[#allocation2 + $0x8c] sm:$0x1]  ;;  %v1511_v46 = vld [vmem:[#allocation2 + $0x10] sm:$0xe] }
 0x118   : > { %865 = vst [vmem:[#allocation2 + $0x58] sm:$0xf] %v864_v6  ;;  %868 = vst [vmem:[#allocation2 + $0x5c] sm:$0x1] %v867_v9  ;;  %v747_v14 = vor.u32 %v745_v55, %v744_v1  ;;  %v748_v18 = vrot.slane %v744_v1, 4  ;;  %v728_v19 = vrot.slane %v726_v2, 7  ;;  %v465_v54 = vadd.f32 %v5036_v52, %v464_v31 }
 0x119   : > { %v766_v22 = vshrl.u32 %v4272_v4, 16  ;;  %v769_v23 = vshll.u32 %v4272_v4, 16  ;;  %v4270_v27 = vpack.c.bf16 %v488_v12, %v488_v12  ;;  %v491_v28 = vmax.f32 %v473_v13, 0.0  ;;  %v887_v50 = vld [vmem:[#allocation2 + $0x78] sm:$0xf] }
 0x11a   : > { %v4066_v30 = vrot.slane %v1510_v5, 9  ;;  %v882_v33 = vsel %vm4945_vm6, %v747_v14, %v881_v0  ;;  %v885_v34 = vsel %vm4921_vm3, %v748_v18, %v884_v10  ;;  %v731_v35 = vor.u32 %v729_v3, %v728_v19  ;;  %v890_v51 = vld [vmem:[#allocation2 + $0x7c] sm:$0x1]  ;;  %v5143_v60 = vld [vmem:[#allocation2 + $0x14] sm:$0x1] }
 0x11b   : > { %v732_v37 = vrot.slane %v728_v19, 4  ;;  %883 = vst [vmem:[#allocation2 + $0x70] sm:$0xf] %v882_v33  ;;  %886 = vst [vmem:[#allocation2 + $0x74] sm:$0x1] %v885_v34  ;;  %v768_v41 = vrot.slane %v766_v22, 7  ;;  %v4273_v45 = vpack.c.bf16 %v491_v28, %v491_v28 }
 0x11c   : > { %v750_v43 = vshrl.u32 %v4270_v27, 16  ;;  %v753_v44 = vshll.u32 %v4270_v27, 16  ;;  %v870_v47 = vsel %vm4945_vm6, %v731_v35, %v869_v11  ;;  %v1566_v53 = vrot.slane %v5129_v29, 5  ;;  %v5141_v55 = vld [vmem:[#allocation2 + $0x1c] sm:$0x1] }
 0x11d   : > { %v873_v49 = vsel %vm4921_vm3, %v732_v37, %v872_v20  ;;  %871 = vst [vmem:[#allocation2 + $0x60] sm:$0xf] %v870_v47  ;;  %v771_v56 = vor.u32 %v769_v23, %v768_v41  ;;  %v772_v57 = vrot.slane %v768_v41, 4  ;;  %v774_v59 = vshrl.u32 %v4273_v45, 16  ;;  %v1512_v0 = vld [vmem:[#allocation2 + $0x18] sm:$0xe] }
 0x11e   : > { %874 = vst [vmem:[#allocation2 + $0x64] sm:$0x1] %v873_v49  ;;  %v752_v58 = vrot.slane %v750_v43, 7  ;;  %v777_v61 = vshll.u32 %v4273_v45, 16  ;;  %v1567_v62 = vsel %vm5047_vm11, %v4066_v30, %v1566_v53  ;;  %v489_v63 = vmax.f32 %v465_v54, 0.0  ;;  %v4681_v47 = vld [vmem:[%s6208_s3 + $0x40] sm:$0xff]  }
 0x11f   : > { %v4067_v1 = vrot.slane %v1511_v46, 9  ;;  %v900_v52 = vsel %vm4945_vm6, %v771_v56, %v899_v38  ;;  %v903_v2 = vsel %vm4921_vm3, %v772_v57, %v902_v40  ;;  %v776_v5 = vrot.slane %v774_v59, 7  ;;  %v5153_v11 = vld [vmem:[#allocation2 + $0x8] sm:$0xf]  ;;  %v905_v14 = vld [vmem:[#allocation2 + $0x90] sm:$0xf] }
 0x120   : > { %v755_v3 = vor.u32 %v753_v44, %v752_v58  ;;  %v756_v4 = vrot.slane %v752_v58, 4  ;;  %901 = vst [vmem:[#allocation2 + $0x88] sm:$0xf] %v900_v52  ;;  %904 = vst [vmem:[#allocation2 + $0x8c] sm:$0x1] %v903_v2  ;;  %v4081_v6 = vcombine.low %v5064_v24, %v1567_v62  ;;  %v4271_v9 = vpack.c.bf16 %v489_v63, %v489_v63 }
 0x121   : > { %v1570_v10 = vrot.slane %v5143_v60, 5  ;;  %v908_v18 = vld [vmem:[#allocation2 + $0x94] sm:$0x1]  ;;  %v4068_v19 = vrot.slane %v1512_v0, 9  ;;  %v1574_v20 = vrot.slane %v5141_v55, 5  ;;  %v779_v22 = vor.u32 %v777_v61, %v776_v5 }
 0x122   : > { %v888_v12 = vsel %vm4945_vm6, %v755_v3, %v887_v50  ;;  %v891_v13 = vsel %vm4921_vm3, %v756_v4, %v890_v51  ;;  %v780_v24 = vrot.slane %v776_v5, 4  ;;  %4468 = vmatprep.mubr.msk.bf16.mxu0 %vm1214_vm13, %v4081_v6  ;;  %v758_v23 = vshrl.u32 %v4271_v9, 16  ;;  %v1513_v28 = vld [vmem:[#allocation2 + $0x20] sm:$0xe]  ;;  %v5167_v37 = vld [vmem:[#allocation2 + $0x24] sm:$0x1] }
 0x123   : > { %889 = vst [vmem:[#allocation2 + $0x78] sm:$0xf] %v888_v12  ;;  %892 = vst [vmem:[#allocation2 + $0x7c] sm:$0x1] %v891_v13  ;;  %v761_v27 = vshll.u32 %v4271_v9, 16  ;;  %v1571_v31 = vsel %vm5047_vm11, %v4067_v1, %v1570_v10  ;;  %v1575_v33 = vsel %vm5047_vm11, %v4068_v19, %v1574_v20  ;;  %v965_v34 = vshrl.u32 %v5153_v11, 16 }
 0x124   : > { %v893_v30 = vld [vmem:[#allocation2 + $0x80] sm:$0xf]  ;;  %v968_v35 = vshll.u32 %v5153_v11, 16  ;;  %v1514_v38 = vld [vmem:[#allocation2 + $0x28] sm:$0xe]  ;;  %v906_v40 = vsel %vm4945_vm6, %v779_v22, %v905_v14  ;;  %v909_v41 = vsel %vm4921_vm3, %v780_v24, %v908_v18  ;;  %v760_v43 = vrot.slane %v758_v23, 7 }
 0x125   : > { %v4082_v44 = vcombine.low %v1571_v31, %v1575_v33  ;;  %v5173_v45 = vld [vmem:[#allocation2 + $0x2c] sm:$0x1]  ;;  %v5175_v46 = vld [vmem:[#allocation2 + $0x10] sm:$0xf]  ;;  %907 = vst [vmem:[#allocation2 + $0x90] sm:$0xf] %v906_v40 }
 0x126   : > { %910 = vst [vmem:[#allocation2 + $0x94] sm:$0x1] %v909_v41  ;;  %v896_v49 = vld [vmem:[#allocation2 + $0x84] sm:$0x1]  ;;  %v967_v50 = vrot.slane %v965_v34, 4  ;;  %v970_v51 = vrot.slane %v968_v35, 5  ;;  %v763_v56 = vor.u32 %v761_v27, %v760_v43 }
 0x127   : > { %v974_v53 = vshll.u32 %v5129_v29, 16  ;;  %v4069_v54 = vrot.slane %v1513_v28, 9  ;;  %v764_v57 = vrot.slane %v760_v43, 4  ;;  %4469 = vmatmul.mubr.msk.bf16.vlgmr.msra.gmra.mxu0 %vm1214_vm13, %v4082_v44  ;;  %v1578_v58 = vrot.slane %v5167_v37, 5  ;;  %v5184_v0 = vld [vmem:[#allocation2 + $0x18] sm:$0xf] }
 0x128   : > { %v4070_v59 = vrot.slane %v1514_v38, 9  ;;  %v971_v61 = vor.u32 %v970_v51, %v967_v50  ;;  %v1582_v63 = vrot.slane %v5173_v45, 5  ;;  %v979_v1 = vshrl.u32 %v5175_v46, 16  ;;  %4505 = vmatpush3.bf16.msra.mxu0 %v5030_v36  ;;  %v5195_v4 = vld [vmem:[#allocation2 + $0x3c] sm:$0x1]  ;;  %v5200_v6 = vld [vmem:[%s6208_s3 + $0x68] sm:$0xff]  }
 0x129   : > { %v976_v62 = vrot.slane %v974_v53, 5  ;;  %v894_v29 = vsel %vm4945_vm6, %v763_v56, %v893_v30  ;;  %v897_v52 = vsel %vm4921_vm3, %v764_v57, %v896_v49  ;;  %v1579_v2 = vsel %vm5047_vm11, %v4069_v54, %v1578_v58  ;;  %v1515_v5 = vld [vmem:[#allocation2 + $0x30] sm:$0xe]  ;;  %4506 = vmatprep.subr.bf16.mxu0 %v4681_v47  ;;  %v1516_v10 = vld [vmem:[#allocation2 + $0x38] sm:$0xe] }
 0x12a   : > { %v982_v3 = vshll.u32 %v5175_v46, 16  ;;  %895 = vst [vmem:[#allocation2 + $0x80] sm:$0xf] %v894_v29  ;;  %898 = vst [vmem:[#allocation2 + $0x84] sm:$0x1] %v897_v52  ;;  %v972_v48 = vrot.slane %v971_v61, 4  ;;  %v1583_v32 = vsel %vm5047_vm11, %v4070_v59, %v1582_v63 }
 0x12b   : > { %v981_v36 = vrot.slane %v979_v1, 4  ;;  %v988_v9 = vshll.u32 %v5143_v60, 16  ;;  %v4083_v12 = vcombine.low %v1579_v2, %v1583_v32  ;;  %v993_v14 = vshrl.u32 %v5184_v0, 16  ;;  %v5207_v19 = vld [vmem:[#allocation2 + $0x34] sm:$0x1]  ;;  %v4679_v32 = vld [vmem:[%s6208_s3] sm:$0xff]  }
 0x12c   : > { %v984_v13 = vrot.slane %v982_v3, 5  ;;  %v996_v18 = vshll.u32 %v5184_v0, 16  ;;  %v977_v20 = vsel %vm5057_vm12, %v972_v48, %v976_v62  ;;  %v1002_v24 = vshll.u32 %v5141_v55, 16  ;;  %v5212_v27 = vld [vmem:[#allocation2 + $0x20] sm:$0xf]  ;;  %4507 = vmatpush3.bf16.msra.mxu0 %v4681_v47 }
 0x12d   : > { %v990_v22 = vrot.slane %v988_v9, 5  ;;  %v4071_v23 = vrot.slane %v1515_v5, 9  ;;  %v4029_v60 = vcombine.low %v963_v25, %v977_v20  ;;  %4472 = vmatprep.mubr.msk.bf16.mxu0 %vm1214_vm13, %v4083_v12  ;;  %v995_v30 = vrot.slane %v993_v14, 4  ;;  %v5220_v33 = vld [vmem:[#allocation2 + $0x28] sm:$0xf]  ;;  %4544 = vmatprep.subr.bf16.mxu0 %v5200_v6 }
 0x12e   : > { %v985_v28 = vor.u32 %v984_v13, %v981_v36  ;;  %v998_v31 = vrot.slane %v996_v18, 5  ;;  %v1004_v55 = vrot.slane %v1002_v24, 5  ;;  %v1586_v34 = vrot.slane %v5207_v19, 5  ;;  %v5234_v49 = vld [vmem:[#allocation2 + $0x5c] sm:$0x1] }
 0x12f   : > { %v4072_v35 = vrot.slane %v1516_v10, 9  ;;  %v1590_v38 = vrot.slane %v5195_v4, 5  ;;  %4428 = vmatprep.mubr.msk.bf16.mxu1 %vm1214_vm13, %v4029_v60  ;;  %v1007_v8 = vshrl.u32 %v5212_v27, 16  ;;  %v1010_v25 = vshll.u32 %v5212_v27, 16  ;;  %v1518_v50 = vld [vmem:[#allocation2 + $0x58] sm:$0xe] }
 0x130   : > { %v986_v40 = vrot.slane %v985_v28, 4  ;;  %v999_v7 = vor.u32 %v998_v31, %v995_v30  ;;  %v1587_v41 = vsel %vm5047_vm11, %v4071_v23, %v1586_v34  ;;  %v1016_v44 = vshll.u32 %v5167_v37, 16  ;;  %v5238_v57 = vld [vmem:[#allocation2 + $0x30] sm:$0xf]  ;;  %v5246_v5 = vld [vmem:[#allocation2 + $0x38] sm:$0xf] }
 0x131   : > { %v1591_v43 = vsel %vm5047_vm11, %v4072_v35, %v1590_v38  ;;  %v1021_v47 = vshrl.u32 %v5220_v33, 16  ;;  %v1009_v56 = vrot.slane %v1007_v8, 4  ;;  %v1012_v58 = vrot.slane %v1010_v25, 5  ;;  %v1519_v12 = vld [vmem:[#allocation2 + $0x60] sm:$0xe] }
 0x132   : > { %v991_v51 = vsel %vm5057_vm12, %v986_v40, %v990_v22  ;;  %v1000_v53 = vrot.slane %v999_v7, 4  ;;  %v4084_v54 = vcombine.low %v1587_v41, %v1591_v43  ;;  %v1018_v59 = vrot.slane %v1016_v44, 5  ;;  %v5258_v22 = vld [vmem:[#allocation2 + $0x64] sm:$0x1]  ;;  %v5260_v24 = vld [vmem:[#allocation2 + $0x6c] sm:$0x1] }
 0x133   : > { %v1023_v61 = vrot.slane %v1021_v47, 4  ;;  %v1024_v62 = vshll.u32 %v5220_v33, 16  ;;  %v1030_v63 = vshll.u32 %v5173_v45, 16  ;;  %v4074_v1 = vrot.slane %v1518_v50, 9  ;;  %v1520_v30 = vld [vmem:[#allocation2 + $0x68] sm:$0xe] }
 0x134   : > { %v1005_v37 = vsel %vm5057_vm12, %v1000_v53, %v1004_v55  ;;  %4473 = vmatmul.mubr.msk.bf16.gmra.mxu0 %vm1214_vm13, %v4084_v54  ;;  %v1598_v29 = vrot.slane %v5234_v49, 5  ;;  %v1013_v2 = vor.u32 %v1012_v58, %v1009_v56  ;;  %v1035_v48 = vshrl.u32 %v5238_v57, 16  ;;  %v5269_v35 = vld [vmem:[#allocation2 + $0x58] sm:$0xf]  ;;  %v5277_v25 = vld [vmem:[#allocation2 + $0x74] sm:$0x1] }
 0x135   : > { %v4030_v52 = vcombine.low %v991_v51, %v1005_v37  ;;  %v1026_v3 = vrot.slane %v1024_v62, 5  ;;  %v1032_v36 = vrot.slane %v1030_v63, 5  ;;  %v1038_v45 = vshll.u32 %v5238_v57, 16  ;;  %v1521_v47 = vld [vmem:[#allocation2 + $0x70] sm:$0xe] }
 0x136   : > { %v1599_v9 = vsel %vm5047_vm11, %v4074_v1, %v1598_v29  ;;  %v1044_v10 = vshll.u32 %v5207_v19, 16  ;;  %v1014_v13 = vrot.slane %v1013_v2, 4  ;;  %v1037_v20 = vrot.slane %v1035_v48, 4  ;;  %v5284_v56 = vld [vmem:[#allocation2 + $0x7c] sm:$0x1] }
 0x137   : > { %4429 = vmatmul.mubr.msk.bf16.vlgmr.msra.gmra.mxu1 %vm1214_vm13, %v4030_v52  ;;  %v1027_v14 = vor.u32 %v1026_v3, %v1023_v61  ;;  %v4085_v18 = vcombine.low %v5072_v26, %v1599_v9  ;;  %v1040_v23 = vrot.slane %v1038_v45, 5  ;;  %v1049_v28 = vshrl.u32 %v5246_v5, 16  ;;  %v5286_v58 = vld [vmem:[#allocation2 + $0x60] sm:$0xf]  ;;  %v1522_v63 = vld [vmem:[#allocation2 + $0x78] sm:$0xe] }
 0x138   : > { %4445 = vmatpush3.bf16.msra.mxu1 %v5024_v42  ;;  %v1046_v60 = vrot.slane %v1044_v10, 5  ;;  %v1052_v19 = vshll.u32 %v5246_v5, 16  ;;  %v1019_v31 = vsel %vm5057_vm12, %v1014_v13, %v1018_v59  ;;  %v1058_v26 = vshll.u32 %v5195_v4, 16  ;;  %v5274_v42 = vld [vmem:[%s6208_s3 + $0x38] sm:$0xff]   ;;  %v5298_v9 = vld [vmem:[#allocation2 + $0x68] sm:$0xf] }
 0x139   : > { %v1028_v55 = vrot.slane %v1027_v14, 4  ;;  %4476 = vmatprep.mubr.msk.bf16.mxu0 %vm1214_vm13, %v4085_v18  ;;  %v4075_v34 = vrot.slane %v1519_v12, 9  ;;  %4446 = vmatprep.subr.bf16.mxu1 %v4679_v32  ;;  %v1041_v38 = vor.u32 %v1040_v23, %v1037_v20  ;;  %v1051_v40 = vrot.slane %v1049_v28, 4  ;;  %v5305_v13 = vld [vmem:[#allocation2 + $0x84] sm:$0x1] }
 0x13a   : > { %v1054_v7 = vrot.slane %v1052_v19, 5  ;;  %v1602_v8 = vrot.slane %v5258_v22, 5  ;;  %v1060_v4 = vrot.slane %v1058_v26, 5  ;;  %v4076_v43 = vrot.slane %v1520_v30, 9  ;;  %v1523_v28 = vld [vmem:[#allocation2 + $0x80] sm:$0xe] }
 0x13b   : > { %v1033_v41 = vsel %vm5057_vm12, %v1028_v55, %v1032_v36  ;;  %v1606_v44 = vrot.slane %v5260_v24, 5  ;;  %v1042_v51 = vrot.slane %v1041_v38, 4  ;;  %v1077_v61 = vshrl.u32 %v5269_v35, 16  ;;  %v1524_v19 = vld [vmem:[#allocation2 + $0x88] sm:$0xe] }
 0x13c   : > { %v4031_v50 = vcombine.low %v1019_v31, %v1033_v41  ;;  %v1055_v53 = vor.u32 %v1054_v7, %v1051_v40  ;;  %v1603_v54 = vsel %vm5047_vm11, %v4075_v34, %v1602_v8  ;;  %4447 = vmatpush3.bf16.msra.mxu1 %v4679_v32  ;;  %v1080_v62 = vshll.u32 %v5269_v35, 16  ;;  %v2010_v34 = vld [vmem:[#allocation2 + $0x8] sm:$0xf]  ;;  %v5318_v41 = vld [vmem:[#allocation2 + $0xc] sm:$0x1] }
 0x13d   : > { %v1607_v59 = vsel %vm5047_vm11, %v4076_v43, %v1606_v44  ;;  %v1086_v37 = vshll.u32 %v5234_v49, 16  ;;  %4484 = vmatprep.subr.bf16.mxu1 %v5274_v42  ;;  %v1047_v1 = vsel %vm5057_vm12, %v1042_v51, %v1046_v60  ;;  %v4077_v2 = vrot.slane %v1521_v47, 9  ;;  %v5310_v60 = vld [vmem:[#allocation2 + $0x8c] sm:$0x1] }
 0x13e   : > { %4432 = vmatprep.mubr.msk.bf16.mxu1 %vm1214_vm13, %v4031_v50  ;;  %v1056_v29 = vrot.slane %v1055_v53, 4  ;;  %v4086_v52 = vcombine.low %v1603_v54, %v1607_v59  ;;  %v1079_v3 = vrot.slane %v1077_v61, 4  ;;  %v1082_v48 = vrot.slane %v1080_v62, 5  ;;  %v2012_v50 = vld [vmem:[#allocation2 + $0x10] sm:$0xf] }
 0x13f   : > { %v1088_v32 = vrot.slane %v1086_v37, 5  ;;  %v1610_v36 = vrot.slane %v5277_v25, 5  ;;  %v4078_v45 = vrot.slane %v1522_v63, 9  ;;  %v1614_v10 = vrot.slane %v5284_v56, 5 }
 0x140   : > { %v1061_v49 = vsel %vm5057_vm12, %v1056_v29, %v1060_v4  ;;  %4477 = vmatmul.mubr.msk.bf16.gmra.mxu0 %vm1214_vm13, %v4086_v52  ;;  %v1091_v12 = vshrl.u32 %v5286_v58, 16  ;;  %v1083_v18 = vor.u32 %v1082_v48, %v1079_v3  ;;  %v1094_v23 = vshll.u32 %v5286_v58, 16  ;;  %v5333_v29 = vld [vmem:[#allocation2 + $0x14] sm:$0x1] }
 0x141   : > { %v4032_v14 = vcombine.low %v1047_v1, %v1061_v49  ;;  %v1611_v20 = vsel %vm5047_vm11, %v4077_v2, %v1610_v36  ;;  %v1615_v30 = vsel %vm5047_vm11, %v4078_v45, %v1614_v10  ;;  %v1100_v55 = vshll.u32 %v5258_v22, 16 }
 0x142   : > { %v1093_v31 = vrot.slane %v1091_v12, 4  ;;  %v1105_v26 = vshrl.u32 %v5298_v9, 16  ;;  %v1084_v38 = vrot.slane %v1083_v18, 4  ;;  %v4087_v40 = vcombine.low %v1611_v20, %v1615_v30 }
 0x143   : > { %4433 = vmatmul.mubr.msk.bf16.gmra.mxu1 %vm1214_vm13, %v4032_v14  ;;  %v1096_v7 = vrot.slane %v1094_v23, 5  ;;  %v1108_v8 = vshll.u32 %v5298_v9, 16  ;;  %v1102_v4 = vrot.slane %v1100_v55, 5  ;;  %v1114_v44 = vshll.u32 %v5260_v24, 16  ;;  %v5343_v14 = vld [vmem:[#allocation2 + $0x78] sm:$0xf] }
 0x144   : > { %v1107_v43 = vrot.slane %v1105_v26, 4  ;;  %v4079_v47 = vrot.slane %v1523_v28, 9  ;;  %v1089_v22 = vsel %vm5057_vm12, %v1084_v38, %v1088_v32  ;;  %4480 = vmatprep.mubr.msk.bf16.mxu0 %vm1214_vm13, %v4087_v40  ;;  %v1618_v54 = vrot.slane %v5305_v13, 5  ;;  %v5351_v55 = vld [vmem:[#allocation2 + $0x80] sm:$0xf] }
 0x145   : > { %v1097_v51 = vor.u32 %v1096_v7, %v1093_v31  ;;  %v1110_v53 = vrot.slane %v1108_v8, 5  ;;  %v4033_v59 = vcombine.low %v1075_v39, %v1089_v22  ;;  %v1116_v61 = vrot.slane %v1114_v44, 5  ;;  %v5339_v39 = vld [vmem:[#allocation2 + $0x70] sm:$0xf]  ;;  %v5357_v44 = vld [vmem:[#allocation2 + $0x88] sm:$0xf] }
 0x146   : > { %v4080_v62 = vrot.slane %v1524_v19, 9  ;;  %v1622_v24 = vrot.slane %v5310_v60, 5  ;;  %v1619_v1 = vsel %vm5047_vm11, %v4079_v47, %v1618_v54  ;;  %v2043_v52 = vshrl.u32 %v2010_v34, 16 }
 0x147   : > { %v1098_v37 = vrot.slane %v1097_v51, 4  ;;  %v1111_v63 = vor.u32 %v1110_v53, %v1107_v43  ;;  %4436 = vmatprep.mubr.msk.bf16.mxu1 %vm1214_vm13, %v4033_v59  ;;  %v2046_v3 = vshll.u32 %v2010_v34, 16  ;;  %v2052_v16 = vshll.u32 %v5318_v41, 16 }
 0x148   : > { %v1623_v2 = vsel %vm5047_vm11, %v4080_v62, %v1622_v24  ;;  %v2057_v17 = vshrl.u32 %v2012_v50, 16  ;;  %v2045_v49 = vrot.slane %v2043_v52, 4  ;;  %v2060_v12 = vshll.u32 %v2012_v50, 16 }
 0x149   : > { %v1103_v48 = vsel %vm5057_vm12, %v1098_v37, %v1102_v4  ;;  %v1112_v32 = vrot.slane %v1111_v63, 4  ;;  %v4088_v36 = vcombine.low %v1619_v1, %v1623_v2  ;;  %v2048_v45 = vrot.slane %v2046_v3, 5  ;;  %v2014_v63 = vld [vmem:[#allocation2 + $0x18] sm:$0xf] }
 0x14a   : > { %v2059_v10 = vrot.slane %v2057_v17, 4  ;;  %v1119_v20 = vshrl.u32 %v5339_v39, 16  ;;  %v1122_v23 = vshll.u32 %v5339_v39, 16  ;;  %v2062_v30 = vrot.slane %v2060_v12, 5  ;;  %v5372_v12 = vld [vmem:[#allocation2 + $0x24] sm:$0x1] }
 0x14b   : > { %v1117_v18 = vsel %vm5057_vm12, %v1112_v32, %v1116_v61  ;;  %4481 = vmatmul.mubr.msk.bf16.gmra.mxu0 %vm1214_vm13, %v4088_v36  ;;  %v2049_v19 = vor.u32 %v2048_v45, %v2045_v49  ;;  %v2066_v31 = vshll.u32 %v5333_v29, 16  ;;  %v2054_v26 = vrot.slane %v2052_v16, 5  ;;  %v5369_v32 = vld [vmem:[#allocation2 + $0x1c] sm:$0x1]  ;;  %v2016_v36 = vld [vmem:[#allocation2 + $0x20] sm:$0xf] }
 0x14c   : > { %v4034_v28 = vcombine.low %v1103_v48, %v1117_v18  ;;  %v1121_v34 = vrot.slane %v1119_v20, 4  ;;  %v1124_v38 = vrot.slane %v1122_v23, 5  ;;  %v1133_v40 = vshrl.u32 %v5343_v14, 16 }
 0x14d   : > { %v2050_v7 = vrot.slane %v2049_v19, 4  ;;  %v2063_v8 = vor.u32 %v2062_v30, %v2059_v10  ;;  %v1128_v4 = vshll.u32 %v5277_v25, 16  ;;  %v1136_v43 = vshll.u32 %v5343_v14, 16  ;;  %v2018_v19 = vld [vmem:[#allocation2 + $0x28] sm:$0xf] }
 0x14e   : > { %4437 = vmatmul.mubr.msk.bf16.gmra.mxu1 %vm1214_vm13, %v4034_v28  ;;  %v1125_v47 = vor.u32 %v1124_v38, %v1121_v34  ;;  %v1135_v50 = vrot.slane %v1133_v40, 4  ;;  %v1142_v22 = vshll.u32 %v5284_v56, 16  ;;  %v1147_v51 = vshrl.u32 %v5351_v55, 16 }
 0x14f   : > { %v2064_v53 = vrot.slane %v2063_v8, 4  ;;  %v2068_v54 = vrot.slane %v2066_v31, 5  ;;  %v1138_v59 = vrot.slane %v1136_v43, 5  ;;  %v1150_v61 = vshll.u32 %v5351_v55, 16  ;;  %v5379_v8 = vld [vmem:[#allocation2 + $0x2c] sm:$0x1] }
 0x150   : > { %v2055_v62 = vsel %vm5057_vm12, %v2050_v7, %v2054_v26  ;;  %v1126_v24 = vrot.slane %v1125_v47, 4  ;;  %v1149_v25 = vrot.slane %v1147_v51, 4  ;;  %v1156_v37 = vshll.u32 %v5305_v13, 16 }
 0x151   : > { %v2069_v1 = vsel %vm5057_vm12, %v2064_v53, %v2068_v54  ;;  %v1139_v52 = vor.u32 %v1138_v59, %v1135_v50  ;;  %v1152_v56 = vrot.slane %v1150_v61, 5  ;;  %v1161_v2 = vshrl.u32 %v5357_v44, 16 }
 0x152   : > { %v4117_v3 = vcombine.low %v2055_v62, %v2069_v1  ;;  %v1130_v16 = vrot.slane %v1128_v4, 5  ;;  %v1144_v17 = vrot.slane %v1142_v22, 5  ;;  %v1164_v48 = vshll.u32 %v5357_v44, 16  ;;  %v2020_v62 = vld [vmem:[#allocation2 + $0x30] sm:$0xf] }
 0x153   : > { %v1140_v49 = vrot.slane %v1139_v52, 4  ;;  %v1153_v45 = vor.u32 %v1152_v56, %v1149_v25  ;;  %v1163_v10 = vrot.slane %v1161_v2, 4  ;;  %v1170_v13 = vshll.u32 %v5310_v60, 16  ;;  %v5390_v56 = vld [vmem:[#allocation2 + $0x34] sm:$0x1] }
 0x154   : > { %4508 = vmatprep.mubr.msk.bf16.mxu0 %vm1214_vm13, %v4117_v3  ;;  %v1131_v18 = vsel %vm5057_vm12, %v1126_v24, %v1130_v16  ;;  %v1166_v20 = vrot.slane %v1164_v48, 5  ;;  %v2071_v23 = vshrl.u32 %v2014_v63, 16  ;;  %v2074_v28 = vshll.u32 %v2014_v63, 16  ;;  %v4718_v63 = vld [vmem:[#allocation2] sm:$0xf] }
 0x155   : > { %v1145_v30 = vsel %vm5057_vm12, %v1140_v49, %v1144_v17  ;;  %v1154_v31 = vrot.slane %v1153_v45, 4  ;;  %v1158_v26 = vrot.slane %v1156_v37, 5  ;;  %v1172_v34 = vrot.slane %v1170_v13, 5 }
 0x156   : > { %v4035_v38 = vcombine.low %v1131_v18, %v1145_v30  ;;  %v1167_v40 = vor.u32 %v1166_v20, %v1163_v10  ;;  %v2073_v60 = vrot.slane %v2071_v23, 4  ;;  %v2076_v7 = vrot.slane %v2074_v28, 5  ;;  %v5396_v28 = vld [vmem:[#allocation2 + $0x3c] sm:$0x1] }
 0x157   : > { %v1159_v4 = vsel %vm5057_vm12, %v1154_v31, %v1158_v26  ;;  %v2080_v43 = vshll.u32 %v5369_v32, 16  ;;  %v2085_v47 = vshrl.u32 %v2016_v36, 16  ;;  %v2088_v50 = vshll.u32 %v2016_v36, 16  ;;  %v2022_v36 = vld [vmem:[#allocation2 + $0x38] sm:$0xf] }
 0x158   : > { %4440 = vmatprep.mubr.msk.bf16.mxu1 %vm1214_vm13, %v4035_v38  ;;  %v1168_v22 = vrot.slane %v1167_v40, 4  ;;  %v2077_v51 = vor.u32 %v2076_v7, %v2073_v60  ;;  %v2094_v53 = vshll.u32 %v5372_v12, 16  ;;  %v2099_v54 = vshrl.u32 %v2018_v19, 16  ;;  %v4693_v40 = vld [vmem:[%s6208_s3 + $0x60] sm:$0xff]  }
 0x159   : > { %v2087_v59 = vrot.slane %v2085_v47, 4  ;;  %v2090_v61 = vrot.slane %v2088_v50, 5  ;;  %v2102_v24 = vshll.u32 %v2018_v19, 16  ;;  %v2108_v25 = vshll.u32 %v5379_v8, 16  ;;  %v2024_v19 = vld [vmem:[#allocation2 + $0x40] sm:$0xf] }
 0x15a   : > { %v1173_v37 = vsel %vm5057_vm12, %v1168_v22, %v1172_v34  ;;  %v4047_v1 = vcombine.low %v4718_v63, %v5153_v11  ;;  %v2078_v52 = vrot.slane %v2077_v51, 4  ;;  %v2101_v2 = vrot.slane %v2099_v54, 4  ;;  %v5401_v34 = vld [vmem:[#allocation2 + $0x44] sm:$0x1]  ;;  %v2026_v47 = vld [vmem:[#allocation2 + $0x58] sm:$0xf] }
 0x15b   : > { %v4036_v3 = vcombine.low %v1159_v4, %v1173_v37  ;;  %v2082_v16 = vrot.slane %v2080_v43, 5  ;;  %v2091_v17 = vor.u32 %v2090_v61, %v2087_v59  ;;  %v2104_v48 = vrot.slane %v2102_v24, 5  ;;  %v5410_v50 = vld [vmem:[#allocation2 + $0x5c] sm:$0x1] }
 0x15c   : > { %v2096_v49 = vrot.slane %v2094_v53, 5  ;;  %v2110_v45 = vrot.slane %v2108_v25, 5  ;;  %v2113_v10 = vshrl.u32 %v2020_v62, 16  ;;  %v2116_v13 = vshll.u32 %v2020_v62, 16  ;;  %v2028_v53 = vld [vmem:[#allocation2 + $0x60] sm:$0xf] }
 0x15d   : > { %4441 = vmatmul.mubr.msk.bf16.gmra.mxu1 %vm1214_vm13, %v4036_v3  ;;  %v2083_v18 = vsel %vm5057_vm12, %v2078_v52, %v2082_v16  ;;  %v2092_v20 = vrot.slane %v2091_v17, 4  ;;  %v2105_v11 = vor.u32 %v2104_v48, %v2101_v2  ;;  %v2122_v23 = vshll.u32 %v5390_v56, 16  ;;  %v4688_v2 = vld [vmem:[%s6208_s3 + $0x30] sm:$0xff]   ;;  %v5423_v16 = vld [vmem:[#allocation2 + $0x64] sm:$0x1] }
 0x15e   : > { %4448 = vmatprep.mubr.msk.bf16.mxu1 %vm1214_vm13, %v4047_v1  ;;  %v2115_v30 = vrot.slane %v2113_v10, 4  ;;  %v2118_v31 = vrot.slane %v2116_v13, 5  ;;  %v4048_v26 = vcombine.low %v5175_v46, %v5184_v0  ;;  %v2127_v38 = vshrl.u32 %v2022_v36, 16 }
 0x15f   : > { %v2097_v60 = vsel %vm5057_vm12, %v2092_v20, %v2096_v49  ;;  %v2106_v7 = vrot.slane %v2105_v11, 4  ;;  %v4049_v4 = vcombine.low %v5212_v27, %v5220_v33  ;;  %v2130_v43 = vshll.u32 %v2022_v36, 16 }
 0x160   : > { %v4118_v22 = vcombine.low %v2083_v18, %v2097_v60  ;;  %v2119_v46 = vor.u32 %v2118_v31, %v2115_v30  ;;  %v2129_v0 = vrot.slane %v2127_v38, 4  ;;  %v2141_v51 = vshrl.u32 %v2024_v19, 16  ;;  %v2030_v18 = vld [vmem:[#allocation2 + $0x68] sm:$0xf]  ;;  %v2032_v38 = vld [vmem:[#allocation2 + $0x70] sm:$0xf] }
 0x161   : > { %v2124_v54 = vrot.slane %v2122_v23, 5  ;;  %v2132_v59 = vrot.slane %v2130_v43, 5  ;;  %v2136_v61 = vshll.u32 %v5396_v28, 16  ;;  %v2144_v62 = vshll.u32 %v2024_v19, 16  ;;  %v5439_v60 = vld [vmem:[%s6208_s3 + $0x58] sm:$0xff]  }
 0x162   : > { %4509 = vmatmul.mubr.msk.bf16.vlgmr.msra.gmra.mxu0 %vm1214_vm13, %v4118_v22  ;;  %v2111_v24 = vsel %vm5057_vm12, %v2106_v7, %v2110_v45  ;;  %v2120_v27 = vrot.slane %v2119_v46, 4  ;;  %v2143_v33 = vrot.slane %v2141_v51, 4  ;;  %v2155_v25 = vshrl.u32 %v2026_v47, 16 }
 0x163   : > { %v2133_v37 = vor.u32 %v2132_v59, %v2129_v0  ;;  %v2146_v63 = vrot.slane %v2144_v62, 5  ;;  %v2150_v1 = vshll.u32 %v5401_v34, 16  ;;  %v2158_v52 = vshll.u32 %v2026_v47, 16  ;;  %4545 = vmatpush3.bf16.msra.mxu0 %v5200_v6  ;;  %v5430_v6 = vld [vmem:[%s6208_s3 + $0x88] sm:$0xff]  }
 0x164   : > { %v2125_v3 = vsel %vm5057_vm12, %v2120_v27, %v2124_v54  ;;  %v2157_v17 = vrot.slane %v2155_v25, 4  ;;  %v2164_v48 = vshll.u32 %v5410_v50, 16  ;;  %v2169_v36 = vshrl.u32 %v2028_v53, 16  ;;  %4546 = vmatprep.subr.bf16.mxu0 %v4693_v40  ;;  %v5447_v0 = vld [vmem:[#allocation2 + $0x6c] sm:$0x1] }
 0x165   : > { %v4119_v49 = vcombine.low %v2111_v24, %v2125_v3  ;;  %4449 = vmatmul.mubr.msk.bf16.vlgmr.msra.gmra.mxu1 %vm1214_vm13, %v4048_v26  ;;  %v2134_v45 = vrot.slane %v2133_v37, 4  ;;  %v2147_v10 = vor.u32 %v2146_v63, %v2143_v33  ;;  %v2160_v13 = vrot.slane %v2158_v52, 5  ;;  %v4719_v27 = vld [vmem:[#allocation2 + $0x50] sm:$0xf] }
 0x166   : > { %4485 = vmatpush3.bf16.msra.mxu1 %v5274_v42  ;;  %4452 = vmatprep.mubr.msk.bf16.mxu1 %vm1214_vm13, %v4049_v4  ;;  %v2138_v20 = vrot.slane %v2136_v61, 5  ;;  %v2171_v11 = vrot.slane %v2169_v36, 4  ;;  %v2172_v23 = vshll.u32 %v2028_v53, 16  ;;  %v2152_v30 = vrot.slane %v2150_v1, 5  ;;  %v2034_v53 = vld [vmem:[#allocation2 + $0x78] sm:$0xf] }
 0x167   : > { %4512 = vmatprep.mubr.msk.bf16.mxu0 %vm1214_vm13, %v4119_v49  ;;  %v2148_v19 = vrot.slane %v2147_v10, 4  ;;  %v2161_v31 = vor.u32 %v2160_v13, %v2157_v17  ;;  %v2178_v26 = vshll.u32 %v5423_v16, 16  ;;  %4486 = vmatprep.subr.bf16.mxu1 %v4688_v2  ;;  %v2166_v7 = vrot.slane %v2164_v48, 5  ;;  %v5450_v61 = vld [vmem:[#allocation2 + $0x74] sm:$0x1] }
 0x168   : > { %v2139_v42 = vsel %vm5057_vm12, %v2134_v45, %v2138_v20  ;;  %v2174_v4 = vrot.slane %v2172_v23, 5  ;;  %v2183_v43 = vshrl.u32 %v2030_v18, 16  ;;  %4547 = vmatpush3.bf16.msra.mxu0 %v4693_v40  ;;  %v4050_v46 = vcombine.low %v5238_v57, %v5246_v5  ;;  %v2036_v57 = vld [vmem:[#allocation2 + $0x80] sm:$0xf]  ;;  %v5458_v48 = vld [vmem:[#allocation2 + $0x7c] sm:$0x1] }
 0x169   : > { %v2153_v47 = vsel %vm5057_vm12, %v2148_v19, %v2152_v30  ;;  %v2162_v22 = vrot.slane %v2161_v31, 4  ;;  %v2186_v51 = vshll.u32 %v2030_v18, 16  ;;  %4584 = vmatprep.subr.bf16.mxu0 %v5430_v6  ;;  %v2197_v24 = vshrl.u32 %v2032_v38, 16  ;;  %v5465_v45 = vld [vmem:[#allocation2 + $0x84] sm:$0x1] }
 0x16a   : > { %v4120_v54 = vcombine.low %v2139_v42, %v2153_v47  ;;  %v2175_v59 = vor.u32 %v2174_v4, %v2171_v11  ;;  %v2185_v62 = vrot.slane %v2183_v43, 4  ;;  %4487 = vmatpush3.bf16.msra.mxu1 %v4688_v2  ;;  %v2180_v40 = vrot.slane %v2178_v26, 5  ;;  %v2038_v19 = vld [vmem:[#allocation2 + $0x88] sm:$0xf]  ;;  %v2040_v47 = vld [vmem:[#allocation2 + $0x90] sm:$0xf] }
 0x16b   : > { %v4051_v33 = vcombine.low %v4719_v27, %v5269_v35  ;;  %v2188_v25 = vrot.slane %v2186_v51, 5  ;;  %v2200_v37 = vshll.u32 %v2032_v38, 16  ;;  %4524 = vmatprep.subr.bf16.mxu1 %v5439_v60  ;;  %v2192_v63 = vshll.u32 %v5447_v0, 16 }
 0x16c   : > { %4513 = vmatmul.mubr.msk.bf16.gmra.mxu0 %vm1214_vm13, %v4120_v54  ;;  %v2176_v5 = vrot.slane %v2175_v59, 4  ;;  %v2199_v1 = vrot.slane %v2197_v24, 4  ;;  %v2211_v52 = vshrl.u32 %v2034_v53, 16  ;;  %v2206_v17 = vshll.u32 %v5450_v61, 16  ;;  %v5478_v24 = vld [vmem:[#allocation2 + $0x8c] sm:$0x1] }
 0x16d   : > { %4453 = vmatmul.mubr.msk.bf16.gmra.mxu1 %vm1214_vm13, %v4050_v46  ;;  %v2189_v3 = vor.u32 %v2188_v25, %v2185_v62  ;;  %v2202_v2 = vrot.slane %v2200_v37, 5  ;;  %v2214_v35 = vshll.u32 %v2034_v53, 16  ;;  %v2167_v36 = vsel %vm5057_vm12, %v2162_v22, %v2166_v7  ;;  %v5480_v25 = vld [vmem:[#allocation2 + $0x94] sm:$0x1] }
 0x16e   : > { %v2181_v49 = vsel %vm5057_vm12, %v2176_v5, %v2180_v40  ;;  %4456 = vmatprep.mubr.msk.bf16.mxu1 %vm1214_vm13, %v4051_v33  ;;  %v2213_v10 = vrot.slane %v2211_v52, 4  ;;  %v2225_v13 = vshrl.u32 %v2036_v57, 16  ;;  %v2194_v30 = vrot.slane %v2192_v63, 5 }
 0x16f   : > { %v4121_v18 = vcombine.low %v2167_v36, %v2181_v49  ;;  %v2190_v20 = vrot.slane %v2189_v3, 4  ;;  %v2203_v11 = vor.u32 %v2202_v2, %v2199_v1  ;;  %v2216_v23 = vrot.slane %v2214_v35, 5  ;;  %v2444_v35 = vld [vmem:[#allocation2 + $0x10] sm:$0xe] }
 0x170   : > { %v2220_v31 = vshll.u32 %v5458_v48, 16  ;;  %v2227_v26 = vrot.slane %v2225_v13, 4  ;;  %v2228_v38 = vshll.u32 %v2036_v57, 16  ;;  %v2208_v7 = vrot.slane %v2206_v17, 5  ;;  %v2443_v17 = vld [vmem:[#allocation2 + $0x8] sm:$0xe] }
 0x171   : > { %4516 = vmatprep.mubr.msk.bf16.mxu0 %vm1214_vm13, %v4121_v18  ;;  %v2204_v42 = vrot.slane %v2203_v11, 4  ;;  %v2217_v4 = vor.u32 %v2216_v23, %v2213_v10  ;;  %v2234_v43 = vshll.u32 %v5465_v45, 16  ;;  %v2195_v22 = vsel %vm5057_vm12, %v2190_v20, %v2194_v30 }
 0x172   : > { %v2230_v46 = vrot.slane %v2228_v38, 5  ;;  %v4052_v51 = vcombine.low %v5286_v58, %v5298_v9  ;;  %v2239_v53 = vshrl.u32 %v2038_v19, 16  ;;  %v4053_v62 = vcombine.low %v5339_v39, %v5343_v14 }
 0x173   : > { %v2209_v54 = vsel %vm5057_vm12, %v2204_v42, %v2208_v7  ;;  %v2218_v59 = vrot.slane %v2217_v4, 4  ;;  %v2242_v40 = vshll.u32 %v2038_v19, 16  ;;  %v2253_v57 = vshrl.u32 %v2040_v47, 16  ;;  %v4695_v42 = vld [vmem:[#allocation2 + $0x8] ss:$8 sps:$4 sm:$0xff]  }
 0x174   : > { %v4122_v27 = vcombine.low %v2195_v22, %v2209_v54  ;;  %v2231_v33 = vor.u32 %v2230_v46, %v2227_v26  ;;  %v2241_v37 = vrot.slane %v2239_v53, 4  ;;  %v2222_v5 = vrot.slane %v2220_v31, 5  ;;  %v2445_v7 = vld [vmem:[#allocation2 + $0x18] sm:$0xe]  ;;  %v2447_v22 = vld [vmem:[#allocation2 + $0x28] sm:$0xe] }
 0x175   : > { %4457 = vmatmul.mubr.msk.bf16.gmra.mxu1 %vm1214_vm13, %v4052_v51  ;;  %v2244_v58 = vrot.slane %v2242_v40, 5  ;;  %v2256_v9 = vshll.u32 %v2040_v47, 16  ;;  %v2236_v1 = vrot.slane %v2234_v43, 5  ;;  %v2248_v39 = vshll.u32 %v5478_v24, 16  ;;  %v4692_v46 = vld [vmem:[#allocation2 + $0x10] ss:$8 sps:$4 sm:$0xff]  }
 0x176   : > { %4517 = vmatmul.mubr.msk.bf16.gmra.mxu0 %vm1214_vm13, %v4122_v27  ;;  %v2232_v63 = vrot.slane %v2231_v33, 4  ;;  %4460 = vmatprep.mubr.msk.bf16.mxu1 %vm1214_vm13, %v4053_v62  ;;  %v2255_v14 = vrot.slane %v2253_v57, 4  ;;  %v2262_v2 = vshll.u32 %v5480_v25, 16  ;;  %v2223_v36 = vsel %vm5057_vm12, %v2218_v59, %v2222_v5  ;;  %v2448_v53 = vld [vmem:[#allocation2 + $0x30] sm:$0xe] }
 0x177   : > { %v2245_v52 = vor.u32 %v2244_v58, %v2241_v37  ;;  %v2258_v3 = vrot.slane %v2256_v9, 5  ;;  %v2250_v20 = vrot.slane %v2248_v39, 5  ;;  %v4135_v11 = vrot.slane %v2443_v17, 9  ;;  %v4699_v57 = vld [vmem:[#allocation2 + $0x18] ss:$8 sps:$4 sm:$0xff]   ;;  %v4707_v5 = vld [vmem:[%s6208_s3 + $0x50] sm:$0xff]  }
 0x178   : > { %v2237_v49 = vsel %vm5057_vm12, %v2232_v63, %v2236_v1  ;;  %v2493_v23 = vrot.slane %v5318_v41, 5  ;;  %v4136_v19 = vrot.slane %v2444_v35, 9  ;;  %v2264_v31 = vrot.slane %v2262_v2, 5  ;;  %v4700_v9 = vld [vmem:[#allocation2 + $0x28] ss:$8 sps:$4 sm:$0xff]   ;;  %v5550_v17 = vld [vmem:[%s6208_s3 + $0x78] sm:$0xff]  }
 0x179   : > { %v4123_v10 = vcombine.low %v2223_v36, %v2237_v49  ;;  %v2246_v13 = vrot.slane %v2245_v52, 4  ;;  %v2259_v18 = vor.u32 %v2258_v3, %v2255_v14  ;;  %v4054_v26 = vcombine.low %v5351_v55, %v5357_v44  ;;  %v2446_v55 = vld [vmem:[#allocation2 + $0x20] sm:$0xe]  ;;  %v4697_v2 = vld [vmem:[#allocation2 + $0x30] ss:$8 sps:$4 sm:$0xff]  }
 0x17a   : > { %v2497_v38 = vrot.slane %v5333_v29, 5  ;;  %v5503_v41 = vsel %vm5047_vm11, %v4135_v11, %v2493_v23  ;;  %v4137_v51 = vrot.slane %v2445_v7, 9  ;;  %v2501_v54 = vrot.slane %v5369_v32, 5  ;;  %v2450_v1 = vld [vmem:[#allocation2 + $0x40] sm:$0xe] }
 0x17b   : > { %4520 = vmatprep.mubr.msk.bf16.mxu0 %vm1214_vm13, %v4123_v10  ;;  %v2260_v30 = vrot.slane %v2259_v18, 4  ;;  %v2251_v4 = vsel %vm5057_vm12, %v2246_v13, %v2250_v20  ;;  %v4138_v59 = vrot.slane %v2446_v55, 9  ;;  %v2505_v62 = vrot.slane %v5372_v12, 5  ;;  %v2449_v12 = vld [vmem:[#allocation2 + $0x38] sm:$0xe]  ;;  %v4712_v52 = vld [vmem:[%s6208_s3 + $0x80] sm:$0xff]  }
 0x17c   : > { %v5507_v47 = vsel %vm5047_vm11, %v4136_v19, %v2497_v38  ;;  %v4139_v40 = vrot.slane %v2447_v22, 9  ;;  %v2509_v27 = vrot.slane %v5379_v8, 5  ;;  %v4140_v33 = vrot.slane %v2448_v53, 9  ;;  %v4696_v14 = vld [vmem:[#allocation2 + $0x20] ss:$8 sps:$4 sm:$0xff]  }
 0x17d   : > { %v2265_v43 = vsel %vm5057_vm12, %v2260_v30, %v2264_v31  ;;  %4461 = vmatmul.mubr.msk.bf16.gmra.mxu1 %vm1214_vm13, %v4054_v26  ;;  %v4151_v44 = vcombine.low %v5503_v41, %v5507_v47  ;;  %v2513_v37 = vrot.slane %v5390_v56, 5  ;;  %v5523_v58 = vsel %vm5047_vm11, %v4137_v51, %v2501_v54  ;;  %v4703_v13 = vld [vmem:[#allocation2 + $0x38] ss:$8 sps:$4 sm:$0xff]   ;;  %v2454_v18 = vld [vmem:[#allocation2 + $0x70] sm:$0xe] }
 0x17e   : > { %v4124_v29 = vcombine.low %v2251_v4, %v2265_v43  ;;  %4488 = vmatprep.mubr.msk.bf16.mxu1 %vm1214_vm13, %v4695_v42  ;;  %v5527_v32 = vsel %vm5047_vm11, %v4138_v59, %v2505_v62  ;;  %v5533_v56 = vsel %vm5047_vm11, %v4139_v40, %v2509_v27  ;;  %v4141_v3 = vrot.slane %v2449_v12, 9  ;;  %v4704_v20 = vld [vmem:[#allocation2 + $0x58] ss:$8 sps:$4 sm:$0xff]   ;;  %v5574_v26 = vld [vmem:[#allocation2 + $0x14] sm:$0x1] }
 0x17f   : > { %v4152_v8 = vcombine.low %v5523_v58, %v5527_v32  ;;  %v5537_v63 = vsel %vm5047_vm11, %v4140_v33, %v2513_v37  ;;  %v2517_v35 = vrot.slane %v5396_v28, 5  ;;  %v4142_v36 = vrot.slane %v2450_v1, 9  ;;  %v2453_v28 = vld [vmem:[#allocation2 + $0x68] sm:$0xe]  ;;  %v3375_v38 = vld [vmem:[#allocation2 + $0x10] sm:$0xe] }
 0x180   : > { %4521 = vmatmul.mubr.msk.bf16.gmra.mxu0 %vm1214_vm13, %v4124_v29  ;;  %v4153_v39 = vcombine.low %v5533_v56, %v5537_v63  ;;  %v4701_v11 = vld [vmem:[#allocation2 + $0x40] ss:$8 sps:$4 sm:$0xff]   ;;  %v2533_v23 = vrot.slane %v5447_v0, 5  ;;  %v4146_v19 = vrot.slane %v2454_v18, 9  ;;  %v2537_v31 = vrot.slane %v5450_v61, 5 }
 0x181   : > { %4548 = vmatprep.mubr.msk.bf16.mxu0 %vm1214_vm13, %v4692_v46  ;;  %v5559_v49 = vsel %vm5047_vm11, %v4141_v3, %v2517_v35  ;;  %v4702_v30 = vld [vmem:[#allocation2 + $0x60] ss:$8 sps:$4 sm:$0xff]   ;;  %v5586_v43 = vld [vmem:[#allocation2 + $0x1c] sm:$0x1]  ;;  %v3376_v55 = vld [vmem:[#allocation2 + $0x18] sm:$0xe] }
 0x182   : > { %v5582_v7 = vsel %vm5047_vm11, %v4146_v19, %v2537_v31  ;;  %v4708_v0 = vld [vmem:[#allocation2 + $0x68] ss:$8 sps:$4 sm:$0xff]   ;;  %v4709_v61 = vld [vmem:[#allocation2 + $0x78] ss:$8 sps:$4 sm:$0xff]   ;;  %v4205_v29 = vrot.slane %v3375_v38, 9  ;;  %v3425_v22 = vrot.slane %v5574_v26, 5 }
 0x183   : > { %v5589_v46 = vld [vmem:[#allocation2 + $0x24] sm:$0x1]  ;;  %v3377_v51 = vld [vmem:[#allocation2 + $0x20] sm:$0xe]  ;;  %v5592_v53 = vld [vmem:[#allocation2 + $0x2c] sm:$0x1] }
 0x184   : > { %v3378_v54 = vld [vmem:[#allocation2 + $0x28] sm:$0xe]  ;;  %v4705_v59 = vld [vmem:[#allocation2 + $0x70] ss:$8 sps:$4 sm:$0xff]   ;;  %v4206_v40 = vrot.slane %v3376_v55, 9  ;;  %v3429_v27 = vrot.slane %v5586_v43, 5  ;;  %v3426_v1 = vsel %vm5047_vm11, %v4205_v29, %v3425_v22 }
 0x185   : > { %4489 = vmatmul.mubr.msk.bf16.vlgmr.msra.gmra.mxu1 %vm1214_vm13, %v4699_v57  ;;  %v4706_v62 = vld [vmem:[#allocation2 + $0x80] ss:$8 sps:$4 sm:$0xff]   ;;  %v4207_v33 = vrot.slane %v3377_v51, 9  ;;  %v3433_v37 = vrot.slane %v5589_v46, 5  ;;  %v5597_v57 = vld [vmem:[#allocation2 + $0x34] sm:$0x1] }
 0x186   : > { %4525 = vmatpush3.bf16.msra.mxu1 %v5439_v60  ;;  %4492 = vmatprep.mubr.msk.bf16.mxu1 %vm1214_vm13, %v4700_v9  ;;  %v2521_v60 = vrot.slane %v5401_v34, 5  ;;  %v3379_v12 = vld [vmem:[#allocation2 + $0x30] sm:$0xe]  ;;  %v3380_v9 = vld [vmem:[#allocation2 + $0x38] sm:$0xe]  ;;  %v2541_v63 = vrot.slane %v5458_v48, 5 }
 0x187   : > { %4526 = vmatprep.subr.bf16.mxu1 %v4707_v5  ;;  %v5605_v3 = vld [vmem:[#allocation2 + $0x44] sm:$0x1]  ;;  %v4713_v35 = vld [vmem:[#allocation2 + $0x88] ss:$8 sps:$4 sm:$0xff]   ;;  %v5614_v18 = vld [vmem:[#allocation2 + $0x6c] sm:$0x1] }
 0x188   : > { %4549 = vmatmul.mubr.msk.bf16.vlgmr.msra.gmra.mxu0 %vm1214_vm13, %v4696_v14  ;;  %v5563_v10 = vsel %vm5047_vm11, %v4142_v36, %v2521_v60  ;;  %v4208_v14 = vrot.slane %v3378_v54, 9  ;;  %v3381_v36 = vld [vmem:[#allocation2 + $0x40] sm:$0xe]  ;;  %v3382_v60 = vld [vmem:[#allocation2 + $0x48] sm:$0xe]  ;;  %v4209_v19 = vrot.slane %v3379_v12, 9 }
 0x189   : > { %4552 = vmatprep.mubr.msk.bf16.mxu0 %vm1214_vm13, %v4697_v2  ;;  %4585 = vmatpush3.bf16.msra.mxu0 %v5430_v6  ;;  %v4154_v34 = vcombine.low %v5559_v49, %v5563_v10  ;;  %v4145_v6 = vrot.slane %v2453_v28, 9  ;;  %v5607_v2 = vld [vmem:[#allocation2 + $0x4c] sm:$0x1]  ;;  %v5610_v28 = vld [vmem:[#allocation2 + $0x64] sm:$0x1]  ;;  %v4210_v55 = vrot.slane %v3380_v9, 9 }
 0x18a   : > { %4527 = vmatpush3.bf16.msra.mxu1 %v4707_v5  ;;  %4586 = vmatprep.subr.bf16.mxu0 %v4712_v52  ;;  %v5599_v5 = vld [vmem:[#allocation2 + $0x3c] sm:$0x1]  ;;  %v4710_v38 = vld [vmem:[#allocation2 + $0x90] ss:$8 sps:$4 sm:$0xff]   ;;  %v4211_v51 = vrot.slane %v3381_v36, 9  ;;  %v3449_v54 = vrot.slane %v5605_v3, 5 }
 0x18b   : > { %4564 = vmatprep.subr.bf16.mxu1 %v5550_v17  ;;  %v5578_v42 = vsel %vm5047_vm11, %v4145_v6, %v2533_v23  ;;  %v3384_v6 = vld [vmem:[#allocation2 + $0x68] sm:$0xe]  ;;  %v5618_v23 = vsel %vm5047_vm11, %v4207_v33, %v3433_v37  ;;  %v5620_v31 = vld [vmem:[#allocation2 + $0x7c] sm:$0x1]  ;;  %v3445_v29 = vrot.slane %v5599_v5, 5  ;;  %v3457_v33 = vrot.slane %v5610_v28, 5 }
 0x18c   : > { %v4156_v4 = vcombine.low %v5578_v42, %v5582_v7  ;;  %v3386_v22 = vld [vmem:[#allocation2 + $0x78] sm:$0xe]  ;;  %v4214_v37 = vrot.slane %v3384_v6, 9  ;;  %v3461_v12 = vrot.slane %v5614_v18, 5  ;;  %v5637_v9 = vld [vmem:[#allocation2 + $0x74] sm:$0x1] }
 0x18d   : > { %4493 = vmatmul.mubr.msk.bf16.gmra.mxu1 %vm1214_vm13, %v4703_v13  ;;  %4587 = vmatpush3.bf16.msra.mxu0 %v4712_v52  ;;  %v3437_v52 = vrot.slane %v5592_v53, 5  ;;  %v3430_v13 = vsel %vm5047_vm11, %v4206_v40, %v3429_v27  ;;  %v2451_v40 = vld [vmem:[#allocation2 + $0x58] sm:$0xe]  ;;  %v3469_v36 = vrot.slane %v5620_v31, 5  ;;  %v3012_v15 = vshll.u32 %v5589_v46, 16 }
 0x18e   : > { %4496 = vmatprep.mubr.msk.bf16.mxu1 %vm1214_vm13, %v4704_v20  ;;  %v3383_v20 = vld [vmem:[#allocation2 + $0x60] sm:$0xe]  ;;  %v3040_v42 = vshll.u32 %v5597_v57, 16 }
 0x18f   : > { %v4213_v27 = vrot.slane %v3383_v20, 9  ;;  %v5655_v20 = vsel %vm5047_vm11, %v4211_v51, %v3449_v54  ;;  %v4715_v54 = vld [vmem:[%s6208_s3 + $0x70] sm:$0xff]  }
 0x190   : > { %4553 = vmatmul.mubr.msk.bf16.gmra.mxu0 %vm1214_vm13, %v4701_v11  ;;  %v4221_v11 = vcombine.low %v3426_v1, %v3430_v13  ;;  %v5650_v13 = vld [vmem:[#allocation2 + $0x8c] sm:$0x1] }
 0x191   : > { %4556 = vmatprep.mubr.msk.bf16.mxu0 %vm1214_vm13, %v4702_v30  ;;  %v2452_v30 = vld [vmem:[#allocation2 + $0x60] sm:$0xe] }
 0x192   : > { %v4144_v1 = vrot.slane %v2452_v30, 9  ;;  %v3388_v30 = vld [vmem:[#allocation2 + $0x88] sm:$0xe] }
 0x195   : > { %4497 = vmatmul.mubr.msk.bf16.gmra.mxu1 %vm1214_vm13, %v4708_v0  ;;  %v5624_v0 = vsel %vm5047_vm11, %v4208_v14, %v3437_v52  ;;  %v2529_v14 = vrot.slane %v5423_v16, 5  ;;  %v3385_v52 = vld [vmem:[#allocation2 + $0x70] sm:$0xe]  ;;  %v3387_v16 = vld [vmem:[#allocation2 + $0x80] sm:$0xe] }
 0x196   : > { %4500 = vmatprep.mubr.msk.bf16.mxu1 %vm1214_vm13, %v4709_v61  ;;  %v3441_v61 = vrot.slane %v5597_v57, 5  ;;  %v4222_v41 = vcombine.low %v5618_v23, %v5624_v0  ;;  %v4143_v23 = vrot.slane %v2451_v40, 9  ;;  %v5664_v0 = vsel %vm5047_vm11, %v4213_v27, %v3457_v33  ;;  %v2455_v27 = vld [vmem:[#allocation2 + $0x78] sm:$0xe] }
 0x197   : > { %v3477_v40 = vrot.slane %v5650_v13, 5  ;;  %v4147_v56 = vrot.slane %v2455_v27, 9 }
 0x198   : > { %4557 = vmatmul.mubr.msk.bf16.gmra.mxu0 %vm1214_vm13, %v4705_v59  ;;  %v4212_v59 = vrot.slane %v3382_v60, 9  ;;  %v3442_v47 = vsel %vm5047_vm11, %v4209_v19, %v3441_v61  ;;  %v5648_v60 = vld [vmem:[#allocation2 + $0x84] sm:$0x1]  ;;  %v2525_v19 = vrot.slane %v5410_v50, 5  ;;  %v4215_v61 = vrot.slane %v3385_v52, 9 }
 0x199   : > { %4560 = vmatprep.mubr.msk.bf16.mxu0 %vm1214_vm13, %v4706_v62  ;;  %v3453_v62 = vrot.slane %v5607_v2, 5  ;;  %v3473_v51 = vrot.slane %v5648_v60, 5 }
 0x19a   : > { %v2526_v52 = vsel %vm5047_vm11, %v4143_v23, %v2525_v19 }
 0x19b   : > { %v5659_v6 = vsel %vm5047_vm11, %v4212_v59, %v3453_v62  ;;  %v2942_v59 = vld [vmem:[#allocation2 + $0x10] sm:$0xf]  ;;  %v4218_v62 = vrot.slane %v3388_v30, 9 }
 0x19d   : > { %4501 = vmatmul.mubr.msk.bf16.gmra.mxu1 %vm1214_vm13, %v4713_v35  ;;  %v4216_v35 = vrot.slane %v3386_v22, 9  ;;  %v4217_v22 = vrot.slane %v3387_v16, 9  ;;  %v2978_v16 = vshll.u32 %v2942_v59, 16 }
 0x19e   : > { %4528 = vmatprep.mubr.msk.bf16.mxu1 %vm1214_vm13, %v4151_v44  ;;  %v3446_v44 = vsel %vm5047_vm11, %v4210_v55, %v3445_v29  ;;  %v3465_v55 = vrot.slane %v5637_v9, 5  ;;  %v5673_v29 = vsel %vm5047_vm11, %v4144_v1, %v2529_v14  ;;  %v4224_v1 = vcombine.low %v5655_v20, %v5659_v6 }
 0x19f   : > { %v5677_v50 = vsel %vm5047_vm11, %v4216_v35, %v3469_v36  ;;  %v5695_v35 = vld [vmem:[#allocation2 + $0x94] sm:$0x1]  ;;  %v5697_v36 = vld [vmem:[#allocation2 + $0x9c] sm:$0x1]  ;;  %v4155_v58 = vcombine.low %v2526_v52, %v5673_v29  ;;  %v5719_v6 = vsel %vm5047_vm11, %v4218_v62, %v3477_v40  ;;  %v2946_v40 = vld [vmem:[#allocation2 + $0x20] sm:$0xf] }
 0x1a0   : > { %4561 = vmatmul.mubr.msk.bf16.gmra.mxu0 %vm1214_vm13, %v4710_v38  ;;  %v2456_v38 = vld [vmem:[#allocation2 + $0x80] sm:$0xe]  ;;  %v5707_v32 = vsel %vm5047_vm11, %v4215_v61, %v3465_v55  ;;  %v3481_v30 = vrot.slane %v5695_v35, 5  ;;  %v3485_v48 = vrot.slane %v5697_v36, 5  ;;  %v2457_v55 = vld [vmem:[#allocation2 + $0x88] sm:$0xe] }
 0x1a1   : > { %4588 = vmatprep.mubr.msk.bf16.mxu0 %vm1214_vm13, %v4221_v11  ;;  %v5668_v11 = vsel %vm5047_vm11, %v4214_v37, %v3461_v12  ;;  %v4148_v33 = vrot.slane %v2456_v38, 9  ;;  %v2545_v37 = vrot.slane %v5465_v45, 5  ;;  %v4223_v12 = vcombine.low %v3442_v47, %v3446_v44  ;;  %v3389_v45 = vld [vmem:[#allocation2 + $0x90] sm:$0xe]  ;;  %v2948_v38 = vld [vmem:[#allocation2 + $0x28] sm:$0xf] }
 0x1a2   : > { %v4225_v14 = vcombine.low %v5664_v0, %v5668_v11  ;;  %v2458_v47 = vld [vmem:[#allocation2 + $0x90] sm:$0xe]  ;;  %v2975_v44 = vshrl.u32 %v2942_v59, 16  ;;  %v4226_v20 = vcombine.low %v5707_v32, %v5677_v50  ;;  %v4219_v19 = vrot.slane %v3389_v45, 9  ;;  %v2958_v11 = vld [vmem:[#allocation2 + $0x60] sm:$0xf] }
 0x1a3   : > { %v5723_v23 = vsel %vm5047_vm11, %v4148_v33, %v2545_v37  ;;  %v4150_v29 = vrot.slane %v2458_v47, 9  ;;  %v2542_v33 = vsel %vm5047_vm11, %v4147_v56, %v2541_v63  ;;  %v3017_v37 = vshrl.u32 %v2948_v38, 16  ;;  %v2952_v63 = vld [vmem:[#allocation2 + $0x38] sm:$0xf] }
 0x1a4   : > { %v4157_v52 = vcombine.low %v2542_v33, %v5723_v23  ;;  %v5736_v45 = vsel %vm5047_vm11, %v4219_v19, %v3481_v30  ;;  %v3006_v56 = vshll.u32 %v2946_v40, 16  ;;  %v3026_v33 = vshll.u32 %v5592_v53, 16 }
 0x1a5   : > { %4529 = vmatmul.mubr.msk.bf16.vlgmr.msra.gmra.mxu1 %vm1214_vm13, %v4152_v8  ;;  %v3390_v8 = vld [vmem:[#allocation2 + $0x98] sm:$0xe]  ;;  %v3019_v10 = vrot.slane %v3017_v37, 4  ;;  %v3014_v53 = vrot.slane %v3012_v15, 5 }
 0x1a6   : > { %4565 = vmatpush3.bf16.msra.mxu1 %v5550_v17  ;;  %4532 = vmatprep.mubr.msk.bf16.mxu1 %vm1214_vm13, %v4153_v39  ;;  %v5713_v17 = vsel %vm5047_vm11, %v4217_v22, %v3473_v51  ;;  %v2944_v39 = vld [vmem:[#allocation2 + $0x18] sm:$0xf]  ;;  %v4220_v61 = vrot.slane %v3390_v8, 9  ;;  %v2977_v22 = vrot.slane %v2975_v44, 4  ;;  %v2980_v51 = vrot.slane %v2978_v16, 5 }
 0x1a7   : > { %4566 = vmatprep.subr.bf16.mxu1 %v4715_v54  ;;  %v2989_v59 = vshrl.u32 %v2944_v39, 16  ;;  %v2992_v62 = vshll.u32 %v2944_v39, 16  ;;  %v4227_v27 = vcombine.low %v5713_v17, %v5719_v6  ;;  %v2950_v8 = vld [vmem:[#allocation2 + $0x30] sm:$0xf]  ;;  %v2984_v44 = vshll.u32 %v5574_v26, 16 }
 0x1a8   : > { %4589 = vmatmul.mubr.msk.bf16.vlgmr.msra.gmra.mxu0 %vm1214_vm13, %v4222_v41  ;;  %v2553_v41 = vrot.slane %v5480_v25, 5  ;;  %v4149_v25 = vrot.slane %v2457_v55, 9  ;;  %v5745_v47 = vsel %vm5047_vm11, %v4220_v61, %v3485_v48  ;;  %v3003_v16 = vshrl.u32 %v2946_v40, 16 }
 0x1a9   : > { %4592 = vmatprep.mubr.msk.bf16.mxu0 %vm1214_vm13, %v4223_v12  ;;  %v3020_v12 = vshll.u32 %v2948_v38, 16  ;;  %v2981_v39 = vor.u32 %v2980_v51, %v2977_v22  ;;  %v2991_v23 = vrot.slane %v2989_v59, 4  ;;  %v2994_v49 = vrot.slane %v2992_v62, 5  ;;  %v2956_v62 = vld [vmem:[#allocation2 + $0x48] sm:$0xf] }
 0x1aa   : > { %4567 = vmatpush3.bf16.msra.mxu1 %v4715_v54  ;;  %v2549_v54 = vrot.slane %v5478_v24, 5  ;;  %v5751_v24 = vsel %vm5047_vm11, %v4150_v29, %v2553_v41  ;;  %v3031_v19 = vshrl.u32 %v2950_v8, 16  ;;  %v3034_v30 = vshll.u32 %v2950_v8, 16 }
 0x1ab   : > { %v4228_v26 = vcombine.low %v5736_v45, %v5745_v47  ;;  %v3048_v61 = vshll.u32 %v2952_v63, 16  ;;  %v2998_v55 = vshll.u32 %v5586_v43, 16  ;;  %v3005_v29 = vrot.slane %v3003_v16, 4  ;;  %4604 = vmatprep.subr.bf16.mxu1 %v4716_v21 }
 0x1ac   : > { %v2550_v38 = vsel %vm5047_vm11, %v4149_v25, %v2549_v54  ;;  %v3008_v41 = vrot.slane %v3006_v56, 5  ;;  %v2982_v22 = vrot.slane %v2981_v39, 4  ;;  %v2986_v51 = vrot.slane %v2984_v44, 5 }
 0x1ad   : > { %4533 = vmatmul.mubr.msk.bf16.gmra.mxu1 %vm1214_vm13, %v4154_v34  ;;  %v3022_v34 = vrot.slane %v3020_v12, 5  ;;  %v4158_v48 = vcombine.low %v2550_v38, %v5751_v24  ;;  %v2995_v59 = vor.u32 %v2994_v49, %v2991_v23  ;;  %v3033_v37 = vrot.slane %v3031_v19, 4 }
 0x1ae   : > { %4536 = vmatprep.mubr.msk.bf16.mxu1 %vm1214_vm13, %v4155_v58  ;;  %v3045_v58 = vshrl.u32 %v2952_v63, 16  ;;  %v3036_v0 = vrot.slane %v3034_v30, 5  ;;  %v3050_v12 = vrot.slane %v3048_v61, 5  ;;  %v3000_v43 = vrot.slane %v2998_v55, 5 }
 0x1af   : > { %v3023_v40 = vor.u32 %v3022_v34, %v3019_v10  ;;  %v3009_v8 = vor.u32 %v3008_v41, %v3005_v29  ;;  %v3073_v44 = vshrl.u32 %v2956_v62, 16  ;;  %v3076_v46 = vshll.u32 %v2956_v62, 16  ;;  %v2960_v10 = vld [vmem:[#allocation2 + $0x68] sm:$0xf]  ;;  %v2964_v41 = vld [vmem:[#allocation2 + $0x78] sm:$0xf] }
 0x1b0   : > { %4593 = vmatmul.mubr.msk.bf16.gmra.mxu0 %vm1214_vm13, %v4224_v1  ;;  %v2954_v1 = vld [vmem:[#allocation2 + $0x40] sm:$0xf]  ;;  %v2996_v16 = vrot.slane %v2995_v59, 4  ;;  %v3087_v56 = vshrl.u32 %v2958_v11, 16  ;;  %v3090_v63 = vshll.u32 %v2958_v11, 16  ;;  %v2987_v24 = vsel %vm5057_vm12, %v2982_v22, %v2986_v51 }
 0x1b1   : > { %4596 = vmatprep.mubr.msk.bf16.mxu0 %vm1214_vm13, %v4225_v14  ;;  %v3047_v14 = vrot.slane %v3045_v58, 4  ;;  %v3059_v25 = vshrl.u32 %v2954_v1, 16  ;;  %v3062_v54 = vshll.u32 %v2954_v1, 16  ;;  %v3024_v39 = vrot.slane %v3023_v40, 4 }
 0x1b2   : > { %v3028_v23 = vrot.slane %v3026_v33, 5  ;;  %v3037_v49 = vor.u32 %v3036_v0, %v3033_v37  ;;  %v3010_v34 = vrot.slane %v3009_v8, 4  ;;  %v3054_v19 = vshll.u32 %v5599_v5, 16  ;;  %v2966_v33 = vld [vmem:[#allocation2 + $0x80] sm:$0xf] }
 0x1b3   : > { %v3051_v7 = vor.u32 %v3050_v12, %v3047_v14  ;;  %v3075_v30 = vrot.slane %v3073_v44, 4  ;;  %v3078_v38 = vrot.slane %v3076_v46, 5  ;;  %v3089_v58 = vrot.slane %v3087_v56, 4  ;;  %v2962_v0 = vld [vmem:[#allocation2 + $0x70] sm:$0xf] }
 0x1b4   : > { %v3092_v61 = vrot.slane %v3090_v63, 5  ;;  %v3101_v50 = vshrl.u32 %v2960_v10, 16  ;;  %v3104_v32 = vshll.u32 %v2960_v10, 16  ;;  %v3001_v57 = vsel %vm5057_vm12, %v2996_v16, %v3000_v43  ;;  %v2968_v43 = vld [vmem:[#allocation2 + $0x88] sm:$0xf] }
 0x1b5   : > { %4537 = vmatmul.mubr.msk.bf16.gmra.mxu1 %vm1214_vm13, %v4156_v4  ;;  %v3061_v4 = vrot.slane %v3059_v25, 4  ;;  %v3038_v55 = vrot.slane %v3037_v49, 4  ;;  %v3068_v17 = vshll.u32 %v5605_v3, 16  ;;  %v4187_v6 = vcombine.low %v2987_v24, %v3001_v57  ;;  %v2970_v10 = vld [vmem:[#allocation2 + $0x90] sm:$0xf] }
 0x1b6   : > { %4540 = vmatprep.mubr.msk.bf16.mxu1 %vm1214_vm13, %v4157_v52  ;;  %v3064_v52 = vrot.slane %v3062_v54, 5  ;;  %v3082_v5 = vshll.u32 %v5607_v2, 16  ;;  %v3015_v1 = vsel %vm5057_vm12, %v3010_v34, %v3014_v53  ;;  %v3042_v22 = vrot.slane %v3040_v42, 5 }
 0x1b7   : > { %v3056_v51 = vrot.slane %v3054_v19, 5  ;;  %v3079_v59 = vor.u32 %v3078_v38, %v3075_v30  ;;  %v3093_v62 = vor.u32 %v3092_v61, %v3089_v58  ;;  %v3103_v40 = vrot.slane %v3101_v50, 4 }
 0x1b8   : > { %4597 = vmatmul.mubr.msk.bf16.gmra.mxu0 %vm1214_vm13, %v4226_v20  ;;  %v3029_v20 = vsel %vm5057_vm12, %v3024_v39, %v3028_v23  ;;  %v3065_v29 = vor.u32 %v3064_v52, %v3061_v4  ;;  %v3106_v3 = vrot.slane %v3104_v32, 5  ;;  %v3043_v37 = vsel %vm5057_vm12, %v3038_v55, %v3042_v22  ;;  %v2972_v4 = vld [vmem:[#allocation2 + $0x98] sm:$0xf] }
 0x1b9   : > { %4600 = vmatprep.mubr.msk.bf16.mxu0 %vm1214_vm13, %v4227_v27  ;;  %v3052_v27 = vrot.slane %v3051_v7, 4  ;;  %v4188_v15 = vcombine.low %v3015_v1, %v3029_v20  ;;  %v3070_v2 = vrot.slane %v3068_v17, 5  ;;  %v3129_v11 = vshrl.u32 %v2964_v41, 16 }
 0x1ba   : > { %v3066_v12 = vrot.slane %v3065_v29, 4  ;;  %v3084_v25 = vrot.slane %v3082_v5, 5  ;;  %v3096_v54 = vshll.u32 %v5610_v28, 16  ;;  %v3080_v8 = vrot.slane %v3079_v59, 4 }
 0x1bb   : > { %v3057_v14 = vsel %vm5057_vm12, %v3052_v27, %v3056_v51  ;;  %v3110_v44 = vshll.u32 %v5614_v18, 16  ;;  %v3143_v46 = vshrl.u32 %v2966_v33, 16  ;;  %v3146_v16 = vshll.u32 %v2966_v33, 16 }
 0x1bc   : > { %v3094_v53 = vrot.slane %v3093_v62, 4  ;;  %v3107_v56 = vor.u32 %v3106_v3, %v3103_v40  ;;  %v3115_v63 = vshrl.u32 %v2962_v0, 16  ;;  %v3118_v24 = vshll.u32 %v2962_v0, 16 }
 0x1bd   : > { %4541 = vmatmul.mubr.msk.bf16.gmra.mxu1 %vm1214_vm13, %v4158_v48  ;;  %v3132_v48 = vshll.u32 %v2964_v41, 16  ;;  %v3131_v45 = vrot.slane %v3129_v11, 4  ;;  %v3160_v39 = vshll.u32 %v2968_v43, 16  ;;  %v4189_v23 = vcombine.low %v3043_v37, %v3057_v14 }
 0x1be   : > { %4568 = vmatprep.mubr.msk.bf16.mxu1 %vm1214_vm13, %v4187_v6  ;;  %v3071_v49 = vsel %vm5057_vm12, %v3066_v12, %v3070_v2  ;;  %v3085_v28 = vsel %vm5057_vm12, %v3080_v8, %v3084_v25  ;;  %v3098_v18 = vrot.slane %v3096_v54, 5  ;;  %v3145_v42 = vrot.slane %v3143_v46, 4 }
 0x1bf   : > { %v3134_v47 = vrot.slane %v3132_v48, 5  ;;  %v3148_v7 = vrot.slane %v3146_v16, 5  ;;  %v3108_v52 = vrot.slane %v3107_v56, 4  ;;  %v3112_v34 = vrot.slane %v3110_v44, 5 }
 0x1c0   : > { %4601 = vmatmul.mubr.msk.bf16.gmra.mxu0 %vm1214_vm13, %v4228_v26  ;;  %v3157_v26 = vshrl.u32 %v2968_v43, 16  ;;  %v3117_v19 = vrot.slane %v3115_v63, 4  ;;  %v3120_v30 = vrot.slane %v3118_v24, 5  ;;  %v3099_v38 = vsel %vm5057_vm12, %v3094_v53, %v3098_v18 }
 0x1c1   : > { %v3135_v58 = vor.u32 %v3134_v47, %v3131_v45  ;;  %v3162_v50 = vrot.slane %v3160_v39, 5  ;;  %v3171_v32 = vshrl.u32 %v2970_v10, 16  ;;  %v3174_v57 = vshll.u32 %v2970_v10, 16 }
 0x1c2   : > { %v3159_v61 = vrot.slane %v3157_v26, 4  ;;  %v3185_v20 = vshrl.u32 %v2972_v4, 16  ;;  %v3188_v55 = vshll.u32 %v2972_v4, 16  ;;  %v3124_v17 = vshll.u32 %v5637_v9, 16 }
 0x1c3   : > { %v3149_v6 = vor.u32 %v3148_v7, %v3145_v42  ;;  %v4190_v27 = vcombine.low %v3071_v49, %v3085_v28  ;;  %v3113_v29 = vsel %vm5057_vm12, %v3108_v52, %v3112_v34  ;;  %v3121_v5 = vor.u32 %v3120_v30, %v3117_v19 }
 0x1c4   : > { %v3138_v41 = vshll.u32 %v5620_v31, 16  ;;  %v4191_v1 = vcombine.low %v3099_v38, %v3113_v29  ;;  %v3136_v22 = vrot.slane %v3135_v58, 4  ;;  %v3152_v51 = vshll.u32 %v5648_v60, 16 }
 0x1c5   : > { %4569 = vmatmul.mubr.msk.bf16.vlgmr.msra.gmra.mxu1 %vm1214_vm13, %v4188_v15  ;;  %v3163_v59 = vor.u32 %v3162_v50, %v3159_v61  ;;  %v3173_v15 = vrot.slane %v3171_v32, 4  ;;  %v3176_v62 = vrot.slane %v3174_v57, 5  ;;  %v3187_v40 = vrot.slane %v3185_v20, 4  ;;  %v4717_v50 = vld [vmem:[%s6210_s5] sm:$0xff]  }
 0x1c6   : > { %4572 = vmatprep.mubr.msk.bf16.mxu1 %vm1214_vm13, %v4189_v23  ;;  %v3190_v3 = vrot.slane %v3188_v55, 5  ;;  %v3150_v9 = vrot.slane %v3149_v6, 4  ;;  %v3166_v33 = vshll.u32 %v5650_v13, 16  ;;  %v3122_v37 = vrot.slane %v3121_v5, 4  ;;  %4605 = vmatpush3.bf16.msra.mxu1 %v4716_v21 }
 0x1c7   : > { %v3140_v2 = vrot.slane %v3138_v41, 5  ;;  %v3126_v0 = vrot.slane %v3124_v17, 5  ;;  %v3154_v31 = vrot.slane %v3152_v51, 5  ;;  %v3164_v11 = vrot.slane %v3163_v59, 4  ;;  %4606 = vmatprep.subr.bf16.mxu1 %v4717_v50 }
 0x1c8   : > { %v3177_v48 = vor.u32 %v3176_v62, %v3173_v15  ;;  %v3191_v14 = vor.u32 %v3190_v3, %v3187_v40  ;;  %v3194_v12 = vshll.u32 %v5697_v36, 16  ;;  %v3168_v54 = vrot.slane %v3166_v33, 5 }
 0x1c9   : > { %v3141_v60 = vsel %vm5057_vm12, %v3136_v22, %v3140_v2  ;;  %v3155_v25 = vsel %vm5057_vm12, %v3150_v9, %v3154_v31  ;;  %v3127_v13 = vsel %vm5057_vm12, %v3122_v37, %v3126_v0  ;;  %v3180_v43 = vshll.u32 %v5695_v35, 16 }
 0x1ca   : > { %v4192_v8 = vcombine.low %v3127_v13, %v3141_v60  ;;  %v3169_v44 = vsel %vm5057_vm12, %v3164_v11, %v3168_v54  ;;  %v3178_v16 = vrot.slane %v3177_v48, 4  ;;  %v3192_v53 = vrot.slane %v3191_v14, 4  ;;  %4607 = vmatpush3.bf16.msra.mxu1 %v4717_v50 }
 0x1cb   : > { %v4193_v46 = vcombine.low %v3155_v25, %v3169_v44  ;;  %v3196_v56 = vrot.slane %v3194_v12, 5  ;;  %v3182_v36 = vrot.slane %v3180_v43, 5 }
 0x1cd   : > { %4573 = vmatmul.mubr.msk.bf16.gmra.mxu1 %vm1214_vm13, %v4190_v27  ;;  %v3183_v63 = vsel %vm5057_vm12, %v3178_v16, %v3182_v36  ;;  %v3197_v24 = vsel %vm5057_vm12, %v3192_v53, %v3196_v56 }
 0x1ce   : > { %4576 = vmatprep.mubr.msk.bf16.mxu1 %vm1214_vm13, %v4191_v1  ;;  %v4194_v35 = vcombine.low %v3183_v63, %v3197_v24 }
 0x1d5   : > { %4577 = vmatmul.mubr.msk.bf16.gmra.mxu1 %vm1214_vm13, %v4192_v8 }
 0x1d6   : > { %4580 = vmatprep.mubr.msk.bf16.mxu1 %vm1214_vm13, %v4193_v46 }
 0x1dd   : > { %4581 = vmatmul.mubr.msk.bf16.gmra.mxu1 %vm1214_vm13, %v4194_v35 }
 0x1e7   : > { %v4470_v45 = vpop.f32.mrf.mxu0 }
 0x1e9   : > { %v1722_v47 = vpop.f32.mrf.mxu0 }
 0x1eb   : > { %v4471_v26 = vpop.f32.mrf.mxu0 }
 0x1ed   : > { %v1725_v39 = vpop.f32.mrf.mxu0 }
 0x1f4   : > { %v4474_v23 = vpop.f32.mrf.mxu0 }
 0x1f6   : > { %v1738_v10 = vpop.f32.mrf.mxu0 }
 0x1f7   : > { %v4430_v49 = vpop.f32.mrf.mxu1 }
 0x1f8   : > { %v4475_v42 = vpop.f32.mrf.mxu0 }
 0x1f9   : > { %v1273_v28 = vpop.f32.mrf.mxu1 }
 0x1fa   : > { %v1741_v4 = vpop.f32.mrf.mxu0 }
 0x1fb   : > { %v4431_v18 = vpop.f32.mrf.mxu1 }
 0x1fd   : > { %v1276_v7 = vpop.f32.mrf.mxu1 }
 0x200   : > { %v4478_v34 = vpop.f32.mrf.mxu0 }
 0x202   : > { %v1754_v38 = vpop.f32.mrf.mxu0 }
 0x203   : > { %v4434_v52 = vpop.f32.mrf.mxu1 }
 0x204   : > { %v5839_v61 = vpop.f32.mrf.mxu0 }
 0x205   : > { %v1289_v19 = vpop.f32.mrf.mxu1 }
 0x206   : > { %v5844_v57 = vpop.f32.mrf.mxu0 }
 0x207   : > { %v4435_v30 = vpop.f32.mrf.mxu1 }
 0x209   : > { %v1292_v58 = vpop.f32.mrf.mxu1 }
 0x20b   : > { %v5846_v55 = vpop.f32.mrf.mxu0 }
 0x20d   : > { %v5848_v6 = vpop.f32.mrf.mxu0 }
 0x20e   : > { %v4438_v32 = vpop.f32.mrf.mxu1 }
 0x20f   : > { %v5850_v29 = vpop.f32.mrf.mxu0 }
 0x210   : > { %v1305_v20 = vpop.f32.mrf.mxu1 }
 0x211   : > { %v5852_v41 = vpop.f32.mrf.mxu0 }
 0x212   : > { %v4439_v17 = vpop.f32.mrf.mxu1 }
 0x214   : > { %v1308_v27 = vpop.f32.mrf.mxu1 }
 0x21d   : > { %v4442_v5 = vpop.f32.mrf.mxu1 }
 0x21f   : > { %v1321_v1 = vpop.f32.mrf.mxu1 }
 0x221   : > { %v4443_v22 = vpop.f32.mrf.mxu1 }
 0x222   : > { %v5854_v51 = vpop.f32.mrf.mxu0 }
 0x223   : > { %v1324_v59 = vpop.f32.mrf.mxu1 }
 0x224   : > { %v5856_v15 = vpop.f32.mrf.mxu0 }
 0x225   : > { %v4450_v62 = vpop.f32.mrf.mxu1 }
 0x226   : > { %v5858_v40 = vpop.f32.mrf.mxu0  ;;  %v1455_v3 = vadd.f32 %v4450_v62, %v4430_v49 }
 0x227   : > { %v1446_v9 = vpop.f32.mrf.mxu1 }
 0x228   : > { %v5860_v33 = vpop.f32.mrf.mxu0  ;;  %v1447_v37 = vadd.f32 %v1446_v9, %v1273_v28  ;;  %v5862_v2 = vadd.f32 %v4470_v45, %v1455_v3 }
 0x229   : > { %v4451_v0 = vpop.f32.mrf.mxu1 }
 0x22a   : > { %v1458_v31 = vadd.f32 %v4451_v0, %v4431_v18  ;;  %v5864_v11 = vadd.f32 %v1722_v47, %v1447_v37 }
 0x22b   : > { %v1449_v60 = vpop.f32.mrf.mxu1 }
 0x22c   : > { %v5866_v48 = vpop.f32.mrf.mxu0  ;;  %v1450_v14 = vadd.f32 %v1449_v60, %v1276_v7  ;;  %v5868_v12 = vadd.f32 %v4471_v26, %v1458_v31 }
 0x22d   : > { %v4454_v25 = vpop.f32.mrf.mxu1 }
 0x22e   : > { %v5870_v54 = vpop.f32.mrf.mxu0  ;;  %v1471_v13 = vadd.f32 %v4454_v25, %v4434_v52  ;;  %v5872_v43 = vadd.f32 %v1725_v39, %v1450_v14 }
 0x22f   : > { %v1462_v8 = vpop.f32.mrf.mxu1 }
 0x230   : > { %v5874_v44 = vpop.f32.mrf.mxu0  ;;  %v1463_v46 = vadd.f32 %v1462_v8, %v1289_v19  ;;  %v5876_v16 = vadd.f32 %v4474_v23, %v1471_v13 }
 0x231   : > { %v4455_v53 = vpop.f32.mrf.mxu1 }
 0x232   : > { %v5878_v56 = vpop.f32.mrf.mxu0  ;;  %v1474_v36 = vadd.f32 %v4455_v53, %v4435_v30  ;;  %v5880_v63 = vadd.f32 %v1738_v10, %v1463_v46 }
 0x233   : > { %v1465_v24 = vpop.f32.mrf.mxu1 }
 0x234   : > { %v1466_v35 = vadd.f32 %v1465_v24, %v1292_v58  ;;  %v5882_v45 = vadd.f32 %v4475_v42, %v1474_v36 }
 0x235   : > { %v4458_v47 = vpop.f32.mrf.mxu1 }
 0x236   : > { %v4518_v26 = vpop.f32.mrf.mxu0  ;;  %v1487_v39 = vadd.f32 %v4458_v47, %v4438_v32  ;;  %v5884_v49 = vadd.f32 %v1741_v4, %v1466_v35 }
 0x237   : > { %v1478_v28 = vpop.f32.mrf.mxu1 }
 0x238   : > { %v5886_v18 = vpop.f32.mrf.mxu0  ;;  %v1479_v23 = vadd.f32 %v1478_v28, %v1305_v20  ;;  %v1795_v7 = vadd.f32 %v4478_v34, %v1487_v39 }
 0x239   : > { %v4459_v21 = vpop.f32.mrf.mxu1 }
 0x23a   : > { %v5888_v52 = vpop.f32.mrf.mxu0  ;;  %v1490_v19 = vadd.f32 %v4459_v21, %v4439_v17  ;;  %v5890_v10 = vadd.f32 %v1754_v38, %v1479_v23 }
 0x23b   : > { %v1481_v30 = vpop.f32.mrf.mxu1 }
 0x23c   : > { %v5892_v58 = vpop.f32.mrf.mxu0  ;;  %v1482_v42 = vadd.f32 %v1481_v30, %v1308_v27  ;;  %v5895_v50 = vadd.f32 %v5839_v61, %v1490_v19 }
 0x23d   : > { %6225 = vst [vmem:[#allocation6_spill] sm:$0xff] %v5892_v58  ;;  %v4462_v4 = vpop.f32.mrf.mxu1 }
 0x23e   : > { %v1503_v32 = vadd.f32 %v4462_v4, %v4442_v5  ;;  %v5898_v62 = vadd.f32 %v5844_v57, %v1482_v42 }
 0x23f   : > { %v1494_v20 = vpop.f32.mrf.mxu1 }
 0x240   : > { %v4522_v34 = vpop.f32.mrf.mxu0  ;;  %v1495_v3 = vadd.f32 %v1494_v20, %v1321_v1  ;;  %v1799_v9 = vadd.f32 %v5846_v55, %v1503_v32 }
 0x241   : > { %v4463_v17 = vpop.f32.mrf.mxu1 }
 0x242   : > { %v5901_v38 = vpop.f32.mrf.mxu0  ;;  %v1506_v37 = vadd.f32 %v4463_v17, %v4443_v22  ;;  %v5904_v0 = vadd.f32 %v5848_v6, %v1495_v3 }
 0x243   : > { %6226 = vst [vmem:[#allocation7_spill] sm:$0xff] %v5901_v38  ;;  %v1497_v27 = vpop.f32.mrf.mxu1 }
 0x244   : > { %6227 = vst [vmem:[#allocation8_spill] sm:$0xff] %v5904_v0  ;;  %v5906_v61 = vpop.f32.mrf.mxu0  ;;  %v1498_v31 = vadd.f32 %v1497_v27, %v1324_v59  ;;  %v5909_v5 = vadd.f32 %v5850_v29, %v1506_v37 }
 0x245   : > { %6228 = vst [vmem:[#allocation9_spill] sm:$0xff] %v5906_v61  ;;  %v4490_v57 = vpop.f32.mrf.mxu1 }
 0x246   : > { %6229 = vst [vmem:[#allocation10_spill] sm:$0xff] %v5909_v5  ;;  %v5911_v60 = vpop.f32.mrf.mxu0  ;;  %v5914_v1 = vadd.f32 %v5852_v41, %v1498_v31 }
 0x247   : > { %6230 = vst [vmem:[#allocation11_spill] sm:$0xff] %v5911_v60  ;;  %v1931_v55 = vpop.f32.mrf.mxu1 }
 0x248   : > { %6231 = vst [vmem:[#allocation12_spill] sm:$0xff] %v5914_v1  ;;  %v5916_v14 = vpop.f32.mrf.mxu0  ;;  %v1994_v5 = vadd.f32 %v1931_v55, %v5864_v11 }
 0x249   : > { %v4491_v22 = vpop.f32.mrf.mxu1 }
 0x24a   : > { %v5918_v25 = vpop.f32.mrf.mxu0 }
 0x24b   : > { %v1934_v6 = vpop.f32.mrf.mxu1 }
 0x24c   : > { %v5920_v13 = vpop.f32.mrf.mxu0 }
 0x24d   : > { %v4494_v8 = vpop.f32.mrf.mxu1 }
 0x24e   : > { %v5922_v59 = vpop.f32.mrf.mxu0  ;;  %v2000_v11 = vadd.f32 %v4494_v8, %v5876_v16 }
 0x24f   : > { %v1947_v29 = vpop.f32.mrf.mxu1 }
 0x250   : > { %v5924_v46 = vpop.f32.mrf.mxu0 }
 0x251   : > { %v5926_v53 = vpop.f32.mrf.mxu1 }
 0x252   : > { %v5928_v36 = vpop.f32.mrf.mxu0 }
 0x253   : > { %v5930_v41 = vpop.f32.mrf.mxu1 }
 0x254   : > { %v5932_v24 = vpop.f32.mrf.mxu0 }
 0x255   : > { %6232 = vst [vmem:[#allocation13_spill] sm:$0xff] %v5932_v24  ;;  %v4498_v35 = vpop.f32.mrf.mxu1  ;;  %v1995_v24 = vadd.f32 %v1934_v6, %v5872_v43  ;;  %v2433_v6 = vadd.f32 %v5866_v48, %v2000_v11  ;;  %v6018_v48 = vld [vmem:[%s6209_s4] ss:$0 sm:$0xff] }
 0x256   : > { %v5934_v47 = vpop.f32.mrf.mxu0  ;;  %v2004_v39 = vadd.f32 %v4498_v35, %v1795_v7 }
 0x257   : > { %6233 = vst [vmem:[#allocation14_spill] sm:$0xff] %v5934_v47  ;;  %v5936_v28 = vpop.f32.mrf.mxu1 }
 0x258   : > { %v5938_v23 = vpop.f32.mrf.mxu0  ;;  %v5940_v21 = vadd.f32 %v4518_v26, %v2004_v39 }
 0x259   : > { %6234 = vst [vmem:[#allocation15_spill] sm:$0xff] %v5938_v23  ;;  %v5942_v19 = vpop.f32.mrf.mxu1 }
 0x25a   : > { %v5944_v30 = vpop.f32.mrf.mxu0 }
 0x25b   : > { %6235 = vst [vmem:[#allocation16_spill] sm:$0xff] %v5944_v30  ;;  %v5946_v42 = vpop.f32.mrf.mxu1 }
 0x25c   : > { %v5948_v4 = vpop.f32.mrf.mxu0 }
 0x25d   : > { %6236 = vst [vmem:[#allocation17_spill] sm:$0xff] %v5948_v4  ;;  %v4502_v32 = vpop.f32.mrf.mxu1 }
 0x25e   : > { %v5950_v20 = vpop.f32.mrf.mxu0  ;;  %v2008_v3 = vadd.f32 %v4502_v32, %v1799_v9 }
 0x25f   : > { %6237 = vst [vmem:[#allocation18_spill] sm:$0xff] %v5950_v20  ;;  %v5952_v17 = vpop.f32.mrf.mxu1 }
 0x260   : > { %6238 = vst [vmem:[#allocation19_spill] sm:$0xff] %v5952_v17  ;;  %v5954_v7 = vpop.f32.mrf.mxu0  ;;  %v5956_v37 = vadd.f32 %v4522_v34, %v2008_v3  ;;  %v1997_v17 = vadd.f32 %v4491_v22, %v5868_v12  ;;  %v1998_v12 = vadd.f32 %v1947_v29, %v5880_v63  ;;  %v1999_v63 = vadd.f32 %v5930_v41, %v5884_v49 }
 0x261   : > { %6239 = vst [vmem:[#allocation20_spill] sm:$0xff] %v5954_v7  ;;  %v5958_v26 = vpop.f32.mrf.mxu1 }
 0x262   : > { %6240 = vst [vmem:[#allocation21_spill] sm:$0xff] %v5956_v37  ;;  %6241 = vst [vmem:[#allocation22_spill] sm:$0xff] %v5958_v26  ;;  %v5960_v27 = vpop.f32.mrf.mxu0  ;;  %v2432_v41 = vadd.f32 %v5878_v56, %v1999_v63 }
 0x263   : > { %6242 = vst [vmem:[#allocation23_spill] sm:$0xff] %v5960_v27  ;;  %v5962_v31 = vpop.f32.mrf.mxu1 }
 0x264   : > { %6243 = vst [vmem:[#allocation24_spill] sm:$0xff] %v5962_v31  ;;  %v5964_v35 = vpop.f32.mrf.mxu0 }
 0x265   : > { %6244 = vst [vmem:[#allocation25_spill] sm:$0xff] %v5964_v35  ;;  %v4530_v39 = vpop.f32.mrf.mxu1 }
 0x266   : > { %v5966_v60 = vpop.f32.mrf.mxu0 }
 0x267   : > { %6245 = vst [vmem:[#allocation26_spill] sm:$0xff] %v5966_v60  ;;  %v2653_v61 = vpop.f32.mrf.mxu1  ;;  %v1996_v60 = vadd.f32 %v4490_v57, %v5862_v2 }
 0x268   : > { %v4590_v20 = vpop.f32.mrf.mxu0 }
 0x269   : > { %v4531_v9 = vpop.f32.mrf.mxu1  ;;  %v2429_v0 = vadd.f32 %v5854_v51, %v1996_v60  ;;  %v2428_v60 = vadd.f32 %v5860_v33, %v1995_v24 }
 0x26a   : > { %v3585_v4 = vpop.f32.mrf.mxu0 }
 0x26b   : > { %v2656_v32 = vpop.f32.mrf.mxu1 }
 0x26c   : > { %v4591_v34 = vpop.f32.mrf.mxu0 }
 0x26d   : > { %v4534_v38 = vpop.f32.mrf.mxu1 }
 0x26e   : > { %v5968_v30 = vpop.f32.mrf.mxu0 }
 0x26f   : > { %v2669_v7 = vpop.f32.mrf.mxu1 }
 0x270   : > { %v5974_v35 = vpop.f32.mrf.mxu0 }
 0x271   : > { %v4535_v3 = vpop.f32.mrf.mxu1  ;;  %6246 = vst [vmem:[#allocation27_spill] sm:$0xff] %v5974_v35  ;;  %v2718_v35 = vadd.f32 %v4530_v39, %v2429_v0 }
 0x272   : > { %v5982_v23 = vpop.f32.mrf.mxu0 }
 0x273   : > { %v2672_v37 = vpop.f32.mrf.mxu1  ;;  %v2928_v43 = vadd.f32 %v5916_v14, %v2718_v35 }
 0x274   : > { %v5992_v2 = vpop.f32.mrf.mxu0 }
 0x275   : > { %v5970_v27 = vpop.f32.mrf.mxu1 }
 0x276   : > { %v6003_v0 = vpop.f32.mrf.mxu0 }
 0x277   : > { %v5972_v31 = vpop.f32.mrf.mxu1 }
 0x278   : > { %v6013_v24 = vpop.f32.mrf.mxu0 }
 0x279   : > { %v5976_v1 = vpop.f32.mrf.mxu1 }
 0x27a   : > { %6247 = vst [vmem:[#allocation28_spill] sm:$0xff] %v5976_v1  ;;  %v2427_v1 = vadd.f32 %v5856_v15, %v1994_v5  ;;  %v2717_v5 = vadd.f32 %v2656_v32, %v2428_v60  ;;  %v6029_v32 = vpop.f32.mrf.mxu0 }
 0x27b   : > { %v5979_v26 = vpop.f32.mrf.mxu1 }
 0x27c   : > { %v2716_v55 = vadd.f32 %v2653_v61, %v2427_v1  ;;  %v2722_v61 = vadd.f32 %v4534_v38, %v2433_v6  ;;  %v2927_v49 = vadd.f32 %v5922_v59, %v2717_v5  ;;  %v2005_v38 = vadd.f32 %v5942_v19, %v5895_v50  ;;  %v4599_v60 = vpop.f32.mrf.mxu0  ;;  %v6250_v5 = vld [vmem:[#allocation13_spill] sm:$0xff]  ;;  %v6251_v6 = vld [vmem:[#allocation14_spill] sm:$0xff] }
 0x27d   : > { %v5984_v58 = vpop.f32.mrf.mxu1  ;;  %v2721_v59 = vadd.f32 %v2672_v37, %v2432_v41  ;;  %v2003_v19 = vadd.f32 %v5946_v42, %v5898_v62 }
 0x27e   : > { %6248 = vst [vmem:[#allocation29_spill] sm:$0xff] %v5984_v58  ;;  %v2430_v58 = vadd.f32 %v5858_v40, %v1997_v17  ;;  %v2926_v16 = vadd.f32 %v5918_v25, %v2716_v55  ;;  %v2001_v40 = vadd.f32 %v5926_v53, %v5882_v45  ;;  %v2438_v37 = vadd.f32 %v5888_v52, %v2005_v38  ;;  %v6259_v38 = vld [vmem:[#allocation12_spill] sm:$0xff] }
 0x27f   : > { %v5988_v47 = vpop.f32.mrf.mxu1 }
 0x280   : > { %v2719_v51 = vadd.f32 %v4531_v9, %v2430_v58  ;;  %v2431_v58 = vadd.f32 %v5870_v54, %v1998_v12  ;;  %v2002_v54 = vadd.f32 %v5936_v28, %v5890_v10 }
 0x281   : > { %v5994_v57 = vpop.f32.mrf.mxu1 }
 0x282   : > { %v2929_v8 = vadd.f32 %v5920_v13, %v2719_v51  ;;  %v2720_v29 = vadd.f32 %v2669_v7, %v2431_v58  ;;  %v2434_v13 = vadd.f32 %v5874_v44, %v2001_v40  ;;  %v6253_v40 = vld [vmem:[#allocation19_spill] sm:$0xff]  ;;  %v6254_v58 = vld [vmem:[#allocation28_spill] sm:$0xff] }
 0x283   : > { %v5999_v22 = vpop.f32.mrf.mxu1 }
 0x284   : > { %v2723_v9 = vadd.f32 %v4535_v3, %v2434_v13  ;;  %v2930_v10 = vadd.f32 %v5928_v36, %v2720_v29  ;;  %v6260_v13 = vld [vmem:[#allocation24_spill] sm:$0xff] }
 0x285   : > { %v4570_v15 = vpop.f32.mrf.mxu1  ;;  %v2007_v41 = vadd.f32 %v6260_v13, %v6259_v38 }
 0x286   : > { %v3361_v39 = vadd.f32 %v4570_v15, %v2928_v43  ;;  %v6249_v43 = vld [vmem:[#allocation27_spill] sm:$0xff]  ;;  %v2933_v62 = vadd.f32 %v6250_v5, %v2723_v9 }
 0x287   : > { %v3296_v33 = vpop.f32.mrf.mxu1 }
 0x288   : > { %v3650_v1 = vadd.f32 %v4590_v20, %v3361_v39  ;;  %v3359_v14 = vadd.f32 %v3296_v33, %v2926_v16  ;;  %v6252_v16 = vld [vmem:[#allocation8_spill] sm:$0xff]  ;;  %v2727_v33 = vadd.f32 %v6254_v58, %v2438_v37 }
 0x289   : > { %v4571_v45 = vpop.f32.mrf.mxu1  ;;  %v2006_v63 = vadd.f32 %v6253_v40, %v6252_v16 }
 0x28a   : > { %v3648_v25 = vadd.f32 %v3585_v4, %v3359_v14  ;;  %v3362_v53 = vadd.f32 %v4571_v45, %v2929_v8  ;;  %v3673_v17 = vadd.f32 %v6018_v48, %v3650_v1  ;;  %v2932_v4 = vadd.f32 %v5924_v46, %v2722_v61  ;;  %v6256_v45 = vld [vmem:[#allocation15_spill] sm:$0xff] }
 0x28b   : > { %v3299_v20 = vpop.f32.mrf.mxu1  ;;  %v2726_v46 = vadd.f32 %v5970_v27, %v5940_v21  ;;  %v2931_v21 = vadd.f32 %v6251_v6, %v2721_v59  ;;  %v6261_v59 = vld [vmem:[#allocation16_spill] sm:$0xff] }
 0x28c   : > { %v3651_v7 = vadd.f32 %v4591_v34, %v3362_v53  ;;  %v3360_v35 = vadd.f32 %v3299_v20, %v2927_v49  ;;  %v3671_v50 = vadd.f32 %v6018_v48, %v3648_v25  ;;  %v2435_v34 = vadd.f32 %v5886_v18, %v2002_v54  ;;  %v6257_v53 = vld [vmem:[#allocation10_spill] sm:$0xff] }
 0x28d   : > { %v4574_v11 = vpop.f32.mrf.mxu1  ;;  %v3689_v55 = vmax.f32 %v3673_v17, 0.0  ;;  %v2936_v25 = vadd.f32 %v6256_v45, %v2726_v46  ;;  %v6258_v49 = vld [vmem:[#allocation22_spill] sm:$0xff]  ;;  %v6264_v46 = vld [vmem:[#allocation21_spill] sm:$0xff] }
 0x28e   : > { %v3674_v44 = vadd.f32 %v6018_v48, %v3651_v7  ;;  %v3649_v56 = vadd.f32 %v5968_v30, %v3360_v35  ;;  %v3365_v28 = vadd.f32 %v4574_v11, %v2932_v4  ;;  %v2724_v30 = vadd.f32 %v5972_v31, %v2435_v34  ;;  %v6255_v31 = vld [vmem:[#allocation6_spill] sm:$0xff]  ;;  %v6265_v34 = vld [vmem:[#allocation29_spill] sm:$0xff] }
 0x28f   : > { %v3312_v3 = vpop.f32.mrf.mxu1  ;;  %v3687_v27 = vmax.f32 %v3671_v50, 0.0  ;;  %v2436_v14 = vadd.f32 %v6255_v31, %v2003_v19  ;;  %v2009_v54 = vadd.f32 %v6258_v49, %v6257_v53  ;;  %v6262_v50 = vld [vmem:[#allocation7_spill] sm:$0xff]  ;;  %v2730_v37 = vadd.f32 %v6265_v34, %v6264_v46 }
 0x290   : > { %v3690_v36 = vmax.f32 %v3674_v44, 0.0  ;;  %v3672_v12 = vadd.f32 %v6018_v48, %v3649_v56  ;;  %v3363_v51 = vadd.f32 %v3312_v3, %v2930_v10  ;;  %v3654_v15 = vadd.f32 %v6249_v43, %v3365_v28 }
 0x291   : > { %v4575_v42 = vpop.f32.mrf.mxu1  ;;  %v2934_v11 = vadd.f32 %v6261_v59, %v2724_v30  ;;  %v2725_v10 = vadd.f32 %v5979_v26, %v2436_v14  ;;  %v2439_v44 = vadd.f32 %v6262_v50, %v2006_v63 }
 0x292   : > { %v3704_v18 = vpack.c.bf16 %v3690_v36, %v3689_v55  ;;  %v3688_v39 = vmax.f32 %v3672_v12, 0.0  ;;  %v3652_v52 = vadd.f32 %v5982_v23, %v3363_v51  ;;  %v3366_v61 = vadd.f32 %v4575_v42, %v2933_v62  ;;  %v3620_v23 = vpop.f32.mrf.mxu0  ;;  %v6266_v12 = vld [vmem:[#allocation9_spill] sm:$0xff]  ;;  %v6267_v51 = vld [vmem:[#allocation11_spill] sm:$0xff] }
 0x293   : > { %v3315_v1 = vpop.f32.mrf.mxu1  ;;  %v3677_v20 = vadd.f32 %v6018_v48, %v3654_v15  ;;  %v2442_v26 = vadd.f32 %v6266_v12, %v2009_v54  ;;  %v2440_v30 = vadd.f32 %v6267_v51, %v2007_v41  ;;  %v2728_v62 = vadd.f32 %v5988_v47, %v2439_v44  ;;  %v6100_v51 = vld [vmem:[%s6211_s6] ss:$0 sm:$0xff] }
 0x294   : > { %v3703_v8 = vpack.c.bf16 %v3688_v39, %v3687_v27  ;;  %v3364_v29 = vadd.f32 %v3315_v1, %v2931_v21  ;;  %v3655_v17 = vadd.f32 %v5992_v2, %v3366_v61  ;;  %v3675_v35 = vadd.f32 %v6018_v48, %v3652_v52  ;;  %v6263_v2 = vld [vmem:[#allocation17_spill] sm:$0xff]  ;;  %v4602_v36 = vpop.f32.mrf.mxu0 }
 0x295   : > { %v4578_v7 = vpop.f32.mrf.mxu1  ;;  %v2937_v19 = vadd.f32 %v6263_v2, %v2727_v33  ;;  %v3693_v43 = vmax.f32 %v3677_v20, 0.0  ;;  %v2731_v27 = vadd.f32 %v5994_v57, %v2442_v26  ;;  %v6269_v33 = vld [vmem:[#allocation20_spill] sm:$0xff]  ;;  %v2729_v14 = vadd.f32 %v5999_v22, %v2440_v30 }
 0x296   : > { %v3653_v4 = vadd.f32 %v6003_v0, %v3364_v29  ;;  %v3369_v9 = vadd.f32 %v4578_v7, %v2936_v25  ;;  %4608 = vmatprep.mubr.msk.bf16.mxu1 %vm1214_vm13, %v3703_v8  ;;  %v3678_v56 = vadd.f32 %v6018_v48, %v3655_v17  ;;  %v3691_v42 = vmax.f32 %v3675_v35, 0.0  ;;  %v3633_v1 = vpop.f32.mrf.mxu0  ;;  %v3717_v30 = vld [vmem:[%s4887_s23 + $0x10] sm:$0xff] }
 0x297   : > { %v3328_v28 = vpop.f32.mrf.mxu1  ;;  %4609 = vmatmul.mubr.msk.bf16.vlgmr.msra.gmra.mxu1 %vm1214_vm13, %v3704_v18  ;;  %v2940_v61 = vadd.f32 %v6269_v33, %v2730_v37 }
 0x298   : > { %v3676_v0 = vadd.f32 %v6018_v48, %v3653_v4  ;;  %v3658_v3 = vadd.f32 %v6013_v24, %v3369_v9  ;;  %v3367_v55 = vadd.f32 %v3328_v28, %v2934_v11  ;;  %v3694_v15 = vmax.f32 %v3678_v56, 0.0  ;;  %v6268_v24 = vld [vmem:[#allocation18_spill] sm:$0xff]  ;;  %v4603_v22 = vpop.f32.mrf.mxu0 }
 0x299   : > { %v4579_v5 = vpop.f32.mrf.mxu1  ;;  %v2935_v52 = vadd.f32 %v6268_v24, %v2725_v10  ;;  %v6272_v9 = vld [vmem:[#allocation26_spill] sm:$0xff]  ;;  %v3716_v24 = vld [vmem:[%s4887_s23 + $0x8] sm:$0xff] }
 0x29a   : > { %v3692_v6 = vmax.f32 %v3676_v0, 0.0  ;;  %v3370_v21 = vadd.f32 %v4579_v5, %v2937_v19  ;;  %v3706_v18 = vpack.c.bf16 %v3694_v15, %v3693_v43  ;;  %v3656_v39 = vadd.f32 %v6029_v32, %v3367_v55  ;;  %v6270_v32 = vld [vmem:[#allocation23_spill] sm:$0xff]  ;;  %v3636_v28 = vpop.f32.mrf.mxu0  ;;  %v3715_v15 = vld [vmem:[%s4887_s23] sm:$0xff] }
 0x29b   : > { %v3331_v16 = vpop.f32.mrf.mxu1  ;;  %v3681_v63 = vadd.f32 %v6018_v48, %v3658_v3  ;;  %v2938_v29 = vadd.f32 %v6270_v32, %v2728_v62  ;;  %v2939_v59 = vadd.f32 %v6272_v9, %v2729_v14  ;;  %v3723_v9 = vld [vmem:[%s4887_s23 + $0x40] sm:$0xff] }
 0x29c   : > { %v3705_v40 = vpack.c.bf16 %v3692_v6, %v3691_v42  ;;  %v3659_v58 = vadd.f32 %v4599_v60, %v3370_v21  ;;  %v3368_v31 = vadd.f32 %v3331_v16, %v2935_v52  ;;  %v3679_v45 = vadd.f32 %v6018_v48, %v3656_v39  ;;  %v6271_v60 = vld [vmem:[#allocation25_spill] sm:$0xff] }
 0x29d   : > { %v4582_v47 = vpop.f32.mrf.mxu1  ;;  %v2941_v49 = vadd.f32 %v6271_v60, %v2731_v27  ;;  %v3697_v54 = vmax.f32 %v3681_v63, 0.0  ;;  %v3718_v6 = vld [vmem:[%s4887_s23 + $0x18] sm:$0xff] }
 0x29e   : > { %v3682_v8 = vadd.f32 %v6018_v48, %v3659_v58  ;;  %v3373_v57 = vadd.f32 %v4582_v47, %v2940_v61  ;;  %4612 = vmatprep.mubr.msk.bf16.mxu1 %vm1214_vm13, %v3705_v40  ;;  %v3657_v25 = vadd.f32 %v3620_v23, %v3368_v31  ;;  %v3695_v11 = vmax.f32 %v3679_v45, 0.0  ;;  %v3721_v58 = vld [vmem:[%s4887_s23 + $0x30] sm:$0xff]  ;;  %v3719_v47 = vld [vmem:[%s4887_s23 + $0x20] sm:$0xff] }
 0x29f   : > { %v3344_v53 = vpop.f32.mrf.mxu1  ;;  %4613 = vmatmul.mubr.msk.bf16.gmra.mxu1 %vm1214_vm13, %v3706_v18 }
 0x2a0   : > { %v3698_v38 = vmax.f32 %v3682_v8, 0.0  ;;  %v3662_v13 = vadd.f32 %v4602_v36, %v3373_v57  ;;  %v3371_v41 = vadd.f32 %v3344_v53, %v2938_v29  ;;  %v3680_v20 = vadd.f32 %v6018_v48, %v3657_v25  ;;  %v3722_v29 = vld [vmem:[%s4887_s23 + $0x38] sm:$0xff] }
 0x2a1   : > { %v4583_v17 = vpop.f32.mrf.mxu1 }
 0x2a2   : > { %v3708_v7 = vpack.c.bf16 %v3698_v38, %v3697_v54  ;;  %v3660_v35 = vadd.f32 %v3633_v1, %v3371_v41  ;;  %v3374_v4 = vadd.f32 %v4583_v17, %v2941_v49  ;;  %v3696_v23 = vmax.f32 %v3680_v20, 0.0  ;;  %v3720_v49 = vld [vmem:[%s4887_s23 + $0x28] sm:$0xff]  ;;  %v3725_v17 = vld [vmem:[%s4887_s23 + $0x50] sm:$0xff] }
 0x2a3   : > { %v3347_v10 = vpop.f32.mrf.mxu1  ;;  %v3685_v50 = vadd.f32 %v6018_v48, %v3662_v13 }
 0x2a4   : > { %v3663_v44 = vadd.f32 %v4603_v22, %v3374_v4  ;;  %v3372_v56 = vadd.f32 %v3347_v10, %v2939_v59  ;;  %v3707_v2 = vpack.c.bf16 %v3696_v23, %v3695_v11  ;;  %v3683_v19 = vadd.f32 %v6018_v48, %v3660_v35  ;;  %v3726_v10 = vld [vmem:[%s4887_s23 + $0x58] sm:$0xff] }
 0x2a5   : > { %v3701_v37 = vmax.f32 %v3685_v50, 0.0 }
 0x2a6   : > { %v3686_v46 = vadd.f32 %v6018_v48, %v3663_v44  ;;  %v3661_v34 = vadd.f32 %v3636_v28, %v3372_v56  ;;  %4616 = vmatprep.mubr.msk.bf16.mxu1 %vm1214_vm13, %v3707_v2  ;;  %v3699_v55 = vmax.f32 %v3683_v19, 0.0  ;;  %v3724_v2 = vld [vmem:[%s4887_s23 + $0x48] sm:$0xff] }
 0x2a7   : > { %4617 = vmatmul.mubr.msk.bf16.gmra.mxu1 %vm1214_vm13, %v3708_v7 }
 0x2a8   : > { %v3702_v0 = vmax.f32 %v3686_v46, 0.0  ;;  %v3684_v3 = vadd.f32 %v6018_v48, %v3661_v34 }
 0x2aa   : > { %v3710_v36 = vpack.c.bf16 %v3702_v0, %v3701_v37  ;;  %v3700_v12 = vmax.f32 %v3684_v3, 0.0  ;;  %v3729_v0 = vld [vmem:[%s4887_s23 + $0x70] sm:$0xff] }
 0x2ac   : > { %v3709_v26 = vpack.c.bf16 %v3700_v12, %v3699_v55 }
 0x2ae   : > { %4620 = vmatprep.mubr.msk.bf16.mxu1 %vm1214_vm13, %v3709_v26  ;;  %v3727_v26 = vld [vmem:[%s4887_s23 + $0x60] sm:$0xff] }
 0x2af   : > { %4621 = vmatmul.mubr.msk.bf16.gmra.mxu1 %vm1214_vm13, %v3710_v36 }
 0x357   : > { %v4610_v48 = vpop.f32.mrf.mxu1 }
 0x358   : > { %v3817_v43 = vadd.f32 %v4610_v48, %v6100_v51 }
 0x359   : > { %v3808_v5 = vpop.f32.mrf.mxu1 }
 0x35a   : > { %v3873_v62 = vadd.f32 %v3817_v43, %v3717_v30  ;;  %v3809_v42 = vadd.f32 %v6100_v51, %v3808_v5  ;;  %v3730_v5 = vld [vmem:[%s4887_s23 + $0x78] sm:$0xff] }
 0x35b   : > { %v4611_v21 = vpop.f32.mrf.mxu1 }
 0x35c   : > { %v3889_v27 = vmax.f32 %v3873_v62, 0.0  ;;  %v3871_v18 = vadd.f32 %v3809_v42, %v3715_v15  ;;  %v3820_v39 = vadd.f32 %v4611_v21, %v6100_v51 }
 0x35d   : > { %v3811_v52 = vpop.f32.mrf.mxu1 }
 0x35e   : > { %3905 = vst [vmem:[%s6111_s16 + $0x10] sm:$0xff] %v3889_v27  ;;  %v3887_v16 = vmax.f32 %v3871_v18, 0.0  ;;  %v3874_v40 = vadd.f32 %v3820_v39, %v3718_v6  ;;  %v3812_v63 = vadd.f32 %v6100_v51, %v3811_v52  ;;  %v3728_v27 = vld [vmem:[%s4887_s23 + $0x68] sm:$0xff]  ;;  %s6165_s23 = scalar_lea.sflag [#allocation4], %s272_s9 }
 0x35f   : > { %v4614_v33 = vpop.f32.mrf.mxu1 }
 0x360   : > { %3903 = vst [vmem:[%s6111_s16] sm:$0xff] %v3887_v16  ;;  %v3890_v61 = vmax.f32 %v3874_v40, 0.0  ;;  %v3872_v1 = vadd.f32 %v3812_v63, %v3716_v24  ;;  %v3833_v31 = vadd.f32 %v4614_v33, %v6100_v51 }
 0x361   : > { %v3824_v14 = vpop.f32.mrf.mxu1 }
 0x362   : > { %3906 = vst [vmem:[%s6111_s16 + $0x18] sm:$0xff] %v3890_v61  ;;  %v3888_v8 = vmax.f32 %v3872_v1, 0.0  ;;  %v3877_v57 = vadd.f32 %v3833_v31, %v3721_v58  ;;  %v3825_v32 = vadd.f32 %v6100_v51, %v3824_v14 }
 0x363   : > { %v4615_v45 = vpop.f32.mrf.mxu1 }
 0x364   : > { %3904 = vst [vmem:[%s6111_s16 + $0x8] sm:$0xff] %v3888_v8  ;;  %v3893_v25 = vmax.f32 %v3877_v57, 0.0  ;;  %v3875_v53 = vadd.f32 %v3825_v32, %v3719_v47  ;;  %v3836_v60 = vadd.f32 %v4615_v45, %v6100_v51 }
 0x365   : > { %v3827_v54 = vpop.f32.mrf.mxu1 }
 0x366   : > { %3909 = vst [vmem:[%s6111_s16 + $0x30] sm:$0xff] %v3893_v25  ;;  %v3891_v38 = vmax.f32 %v3875_v53, 0.0  ;;  %v3878_v13 = vadd.f32 %v3836_v60, %v3722_v29  ;;  %v3828_v41 = vadd.f32 %v6100_v51, %v3827_v54 }
 0x367   : > { %v4618_v7 = vpop.f32.mrf.mxu1 }
 0x368   : > { %3907 = vst [vmem:[%s6111_s16 + $0x20] sm:$0xff] %v3891_v38  ;;  %v3894_v22 = vmax.f32 %v3878_v13, 0.0  ;;  %v3876_v20 = vadd.f32 %v3828_v41, %v3720_v49  ;;  %v3849_v35 = vadd.f32 %v4618_v7, %v6100_v51 }
 0x369   : > { %v3840_v59 = vpop.f32.mrf.mxu1 }
 0x36a   : > { %3910 = vst [vmem:[%s6111_s16 + $0x38] sm:$0xff] %v3894_v22  ;;  %v3892_v4 = vmax.f32 %v3876_v20, 0.0  ;;  %v3881_v11 = vadd.f32 %v3849_v35, %v3725_v17  ;;  %v3841_v23 = vadd.f32 %v6100_v51, %v3840_v59 }
 0x36b   : > { %v4619_v50 = vpop.f32.mrf.mxu1 }
 0x36c   : > { %3908 = vst [vmem:[%s6111_s16 + $0x28] sm:$0xff] %v3892_v4  ;;  %v3897_v44 = vmax.f32 %v3881_v11, 0.0  ;;  %v3879_v56 = vadd.f32 %v3841_v23, %v3723_v9  ;;  %v3852_v28 = vadd.f32 %v4619_v50, %v6100_v51 }
 0x36d   : > { %v3843_v19 = vpop.f32.mrf.mxu1 }
 0x36e   : > { %3913 = vst [vmem:[%s6111_s16 + $0x50] sm:$0xff] %v3897_v44  ;;  %v3895_v46 = vmax.f32 %v3879_v56, 0.0  ;;  %v3882_v34 = vadd.f32 %v3852_v28, %v3726_v10  ;;  %v3844_v37 = vadd.f32 %v6100_v51, %v3843_v19 }
 0x36f   : > { %v4622_v3 = vpop.f32.mrf.mxu1 }
 0x370   : > { %3911 = vst [vmem:[%s6111_s16 + $0x40] sm:$0xff] %v3895_v46  ;;  %v3898_v55 = vmax.f32 %v3882_v34, 0.0  ;;  %v3880_v36 = vadd.f32 %v3844_v37, %v3724_v2  ;;  %v3865_v12 = vadd.f32 %v4622_v3, %v6100_v51 }
 0x371   : > { %v3856_v30 = vpop.f32.mrf.mxu1 }
 0x372   : > { %3914 = vst [vmem:[%s6111_s16 + $0x58] sm:$0xff] %v3898_v55  ;;  %v3896_v48 = vmax.f32 %v3880_v36, 0.0  ;;  %v3885_v43 = vadd.f32 %v3865_v12, %v3729_v0  ;;  %v3857_v15 = vadd.f32 %v6100_v51, %v3856_v30 }
 0x373   : > { %v4623_v62 = vpop.f32.mrf.mxu1 }
 0x374   : > { %3912 = vst [vmem:[%s6111_s16 + $0x48] sm:$0xff] %v3896_v48  ;;  %v3901_v42 = vmax.f32 %v3885_v43, 0.0  ;;  %v3883_v6 = vadd.f32 %v3857_v15, %v3727_v26  ;;  %v3868_v21 = vadd.f32 %v4623_v62, %v6100_v51 }
 0x375   : > { %v3859_v18 = vpop.f32.mrf.mxu1 }
 0x376   : > { %3917 = vst [vmem:[%s6111_s16 + $0x70] sm:$0xff] %v3901_v42  ;;  %v3899_v39 = vmax.f32 %v3883_v6, 0.0  ;;  %v3886_v24 = vadd.f32 %v3868_v21, %v3730_v5  ;;  %v3860_v52 = vadd.f32 %v6100_v51, %v3859_v18 }
 0x378   : > { %3915 = vst [vmem:[%s6111_s16 + $0x60] sm:$0xff] %v3899_v39  ;;  %v3902_v16 = vmax.f32 %v3886_v24, 0.0  ;;  %v3884_v40 = vadd.f32 %v3860_v52, %v3728_v27 }
 0x37a   : > { %3918 = vst [vmem:[%s6111_s16 + $0x78] sm:$0xff] %v3902_v16  ;;  %v3900_v63 = vmax.f32 %v3884_v40, 0.0 }
 0x37c   : > { %3916 = vst [vmem:[%s6111_s16 + $0x68] sm:$0xff] %v3900_v63 }
 0x37d   : > { %4733 = shalt.err (!%p4730_p3)
}
 0x37e   : > { %s4734_s9 = scalar_lea.hbm %s6157_s21, 2048  ;;  %s4738_s15 = scalar_lea.hbm %s6212_s7, 4096 }
 0x37f   : > { %p4735_p4 = scmp.ne.s32.totalorder %s6157_s21, %s4734_s9  ;;  %p4739_p9 = scmp.lt.s32.totalorder %s6157_s21, %s6212_s7 }
 0x380   : > { %p4740_p10 = scmp.lt.s32.totalorder %s4738_s15, %s4734_s9 }
 0x381   : > { %p4736_p7 = pnand %p4735_p4, %p4864_p5 }
 0x382   : > { %p4741_p11 = por %p4740_p10, %p4739_p9 }
 0x383   : > { %p4737_p8 = pneg %p4736_p7 }
 0x385   : > { %p4742_p12 = pnand %p4741_p11, %p4737_p8 }
 0x387   : > { %4745 = shalt.err (!%p4742_p12)
}
 0x388   : > { %s4784_s19 = smov 128   ;;  %s4785_s20 = smov 8  }
 0x389   : > { %4624 = dma.vmem_to_hbm [thread:$0]  (%p4864_p5), %s6159_s18, 2048, %s6157_s21, %s6165_s23, %s4784_s19, %s4784_s19, %s4785_s20  }
 0x38a PF: > { %p4630_p13 = scmp.ge.s32.totalorder %s4780_s27, 2  ;;  %s3949_s28 = sand.u32 1, %s4768_s24  }
 0x38b   : > { %s3950_s22 = scalar_lea.sflag [#allocation4], %s3949_s28 }
 0x38c   : > { %p4627_p0 = pnand %p4630_p13, %p4868_p6 }
 0x38e   : > { %p4628_p1 = pneg %p4627_p0 }
 0x390   : > { %4763 = dma.done.wait (%p4628_p1), %s3950_s22, 2048  }
 0x391   : > { %4765 = vsyncadd (%p4628_p1), %s3950_s22, 4294965248  ;;  %p17_p2 = scmp.ge.s32.totalorder %s4851_s30, 4   ;;  %s6273_s24 = smov %s4772_s25 }
 0x392   : > { %s6274_s25 = smov %s4776_s26  ;;  %s6275_s26 = smov %s4862_s10 }
 0x393   : > { %s6276_s27 = smov %s4851_s30  ;;  %19 = sbr.rel (!%p17_p2) target bundleno = 3 (0x3), region = 86 }
 0x398   :  { %3955 = vsyncpa [#allocation4], 1 }
 0x399   :  { %3957 = vsyncpa [#allocation4 + $0x1], 1 }

// kernel: tpu_custom_call.1
= control target key start
LH: loop header
LB: loop body
LE: loop exit
PB: predicated region body
PF: predicated region fallthrough
CT: control target
= control target key end

     0   :  { %12 = vsyncpa [#allocation4], 0  ;;  %s6205_s0 = inlined_call_operand.vmem [shape: f32[4,8,8,128], index: 0, kind: input, shape index: {}]   ;;  %s6206_s1 = inlined_call_operand.vmem [shape: bf16[128,32], index: 1, kind: input, shape index: {}]   ;;  %s6207_s2 = inlined_call_operand.vmem [shape: f32[1,32], index: 2, kind: input, shape index: {}]   ;;  %s6208_s3 = inlined_call_operand.vmem [shape: bf16[288,32], index: 3, kind: input, shape index: {}]   ;;  %s6209_s4 = inlined_call_operand.vmem [shape: f32[1,32], index: 4, kind: input, shape index: {}]   ;;  %s6210_s5 = inlined_call_operand.vmem [shape: bf16[32,128], index: 5, kind: input, shape index: {}]   ;;  %s6211_s6 = inlined_call_operand.vmem [shape: f32[1,128], index: 6, kind: input, shape index: {}]   ;;  %s6212_s7 = inlined_call_operand.hbm [shape: f32[4,8,8,128], index: 7, kind: output, shape index: {}]  }
   0x1   :  { %14 = vsyncpa [#allocation4 + $0x1], 0  ;;  %s4826_s24 = smov 0   ;;  %s4828_s25 = smov 0  }
   0x2   :  { %s4830_s26 = smov 0   ;;  %s4832_s27 = smov 0  }
   0x3 LB: > { %s4847_s28 = sadd.s32 4294967295, %s4780_s27   ;;  %s3996_s29 = sadd.s32 4294967294, %s4780_s27   ;;  %s4780_s27 = sphi %s4832_s27, %s6276_s27   ;;  %s4776_s26 = sphi %s4830_s26, %s6275_s26   ;;  %s4772_s25 = sphi %s4828_s25, %s6274_s25   ;;  %s4768_s24 = sphi %s4826_s24, %s6273_s24  }
   0x4   : > { %s4851_s30 = sadd.s32 1, %s4780_s27   ;;  %s179_s8 = sadd.s32 1, %s4776_s26 }
   0x5   : > { %s176_s9 = ssub.s32 %s4780_s27, %s4851_s30  ;;  %p189_p0 = scmp.ne.s32.totalorder %s4776_s26, %s4772_s25 }
   0x6   : > { %p177_p1 = scmp.eq.s32.totalorder %s176_s9, 0  ;;  %p190_p2 = scmp.eq.s32.totalorder %s4847_s28, 1 }
   0x7   : > { %p195_p3 = scmp.ne.s32.totalorder %s4772_s25, %s4768_s24  ;;  %p196_p4 = scmp.eq.s32.totalorder %s3996_s29, 1 }
   0x8   : > { %s4862_s10 = scalar_select %p177_p1, %s4776_s26, %s179_s8  }
   0x9   : > { %p4864_p5 = por %p190_p2, %p189_p0  ;;  %p4868_p6 = por %p196_p4, %p195_p3 }
   0xa   : > { %p3999_p7 = scmp.ge.s32.totalorder %s4780_s27, 1  ;;  %p242_p8 = scmp.lt.s32.totalorder %s4780_s27, 3 }
   0xc   : > { %p243_p9 = pnand %p3999_p7, %p242_p8 }
   0xe   : > { %246 = sbr.rel (%p243_p9) target bundleno = 906 (0x38a), region = 48 }
  0x13   : > { %v4666_v0 = vld [vmem:[%s6206_s1 + $0x38] sm:$0xff]   ;;  %s4001_s15 = sshll.u32 %s4847_s28, 1  ;;  %v4667_v1 = vld [vmem:[%s6206_s1 + $0x30] sm:$0xff]   ;;  %v4668_v2 = vld [vmem:[%s6206_s1 + $0x28] sm:$0xff]   ;;  %vm502_vm0 = vcmask 253952   ;;  %vm500_vm5 = vcmask 257024  }
  0x14   : > { %p276_p10 = scmp.lt.s32.totalorder %s4001_s15, 3  ;;  %4392 = vmatprep.subr.bf16.mxu0 %v4666_v0  ;;  %v4669_v3 = vld [vmem:[%s6206_s1 + $0x20] sm:$0xff]   ;;  %v4670_v7 = vld [vmem:[%s6206_s1 + $0x18] sm:$0xff]   ;;  %v4671_v8 = vld [vmem:[%s6206_s1 + $0x10] sm:$0xff]   ;;  %vm513_vm1 = vsmask.f32 256 }
  0x15   : > { %4393 = vmatpush3.bf16.msra.mxu0 %v4666_v0  ;;  %v4672_v9 = vld [vmem:[%s6206_s1 + $0x8] sm:$0xff]   ;;  %v4673_v10 = vld [vmem:[%s6206_s1] sm:$0xff]   ;;  %vm563_vm2 = vsmask.f32 7938  ;;  %vm4921_vm3 = vmand %vm502_vm0, %vm513_vm1  ;;  %vm1557_vm7 = vcmask 1042432   ;;  %vm1558_vm8 = vcmask 1046532  }
  0x16   : > { %s6278_s15 = smov (!%p276_p10, %s4001_s15), 3  ;;  %4394 = vmatprep.subr.bf16.mxu0 %v4667_v1  ;;  %v521_v33 = vld [vmem:[#allocation2 + $0x18] sm:$0x1]  ;;  %v571_v34 = vld [vmem:[#allocation2 + $0x1c] sm:$0x1]  ;;  %vm4929_vm4 = vmand %vm502_vm0, %vm563_vm2  ;;  %vm1214_vm13 = vcmask 261120  }
  0x17   : > { %s4257_s20 = sshll.u32 %s6278_s15, 6  ;;  %v522_v35 = vsel %vm4921_vm3, 0, %v521_v33  ;;  %v572_v37 = vsel %vm4929_vm4, 0, %v571_v34  ;;  %v515_v38 = vld [vmem:[#allocation2 + $0x8] sm:$0x1]  ;;  %vm4945_vm6 = vmand %vm500_vm5, %vm563_vm2  ;;  %s272_s9 = sand.u32 1, %s4772_s25  }
  0x18   : > { %s4887_s23 = scalar_lea.vmem %s6205_s0, %s4257_s20  ;;  %523 = vst [vmem:[#allocation2 + $0x18] sm:$0x1] %v522_v35  ;;  %v565_v39 = vld [vmem:[#allocation2 + $0xc] sm:$0x1]  ;;  %573 = vst [vmem:[#allocation2 + $0x1c] sm:$0x1] %v572_v37 }
  0x19   : > { %4395 = vmatpush3.bf16.msra.mxu0 %v4667_v1  ;;  %v284_v4 = vld [vmem:[%s4887_s23] sm:$0xff]  ;;  %v285_v5 = vld [vmem:[%s4887_s23 + $0x8] sm:$0xff]  ;;  %v286_v11 = vld [vmem:[%s4887_s23 + $0x10] sm:$0xff]  ;;  %v516_v40 = vsel %vm4921_vm3, 0, %v515_v38  ;;  %v566_v41 = vsel %vm4929_vm4, 0, %v565_v39  ;;  %s4000_s15 = sshll.u32 %s272_s9, 7 }
  0x1a   : > { %4396 = vmatprep.subr.bf16.mxu0 %v4668_v2  ;;  %v300_v6 = vpack.c.bf16 %v285_v5, %v284_v4  ;;  %v287_v12 = vld [vmem:[%s4887_s23 + $0x18] sm:$0xff]  ;;  %v288_v13 = vld [vmem:[%s4887_s23 + $0x20] sm:$0xff]  ;;  %v289_v14 = vld [vmem:[%s4887_s23 + $0x28] sm:$0xff]  ;;  %517 = vst [vmem:[#allocation2 + $0x8] sm:$0x1] %v516_v40  ;;  %s6111_s16 = scalar_lea.vmem [#allocation3], %s4000_s15 }
  0x1b   : > { %v301_v15 = vpack.c.bf16 %v287_v12, %v286_v11  ;;  %v302_v16 = vpack.c.bf16 %v289_v14, %v288_v13  ;;  %v290_v17 = vld [vmem:[%s4887_s23 + $0x30] sm:$0xff]  ;;  %v291_v18 = vld [vmem:[%s4887_s23 + $0x38] sm:$0xff]  ;;  %v292_v19 = vld [vmem:[%s4887_s23 + $0x40] sm:$0xff]  ;;  %567 = vst [vmem:[#allocation2 + $0xc] sm:$0x1] %v566_v41  ;;  %s4275_s17 = sshll.u32 %s4847_s28, 11 }
  0x1c   : > { %4408 = vmatprep.mubr.bf16.mxu0 %v300_v6  ;;  %v293_v20 = vld [vmem:[%s4887_s23 + $0x48] sm:$0xff]  ;;  %v303_v21 = vpack.c.bf16 %v291_v18, %v290_v17  ;;  %v294_v23 = vld [vmem:[%s4887_s23 + $0x50] sm:$0xff]  ;;  %v295_v24 = vld [vmem:[%s4887_s23 + $0x58] sm:$0xff]  ;;  %vm947_vm9 = vsmask.f32 3328  ;;  %s3934_s18 = sshll.u32 %s6111_s16, 4  ;;  %s6157_s21 = scalar_lea.hbm %s6212_s7, %s4275_s17  ;;  %s6159_s18 = int_to_ptr.vmem [resolvable:$true] %s3934_s18 }
  0x1d   : > { %4397 = vmatpush3.bf16.msra.mxu0 %v4668_v2  ;;  %v304_v22 = vpack.c.bf16 %v293_v20, %v292_v19  ;;  %v296_v25 = vld [vmem:[%s4887_s23 + $0x60] sm:$0xff]  ;;  %v297_v26 = vld [vmem:[%s4887_s23 + $0x68] sm:$0xff]  ;;  %v305_v27 = vpack.c.bf16 %v295_v24, %v294_v23  ;;  %v298_v29 = vld [vmem:[%s4887_s23 + $0x70] sm:$0xff]  ;;  %vm948_vm10 = vsmask.f32 7440  ;;  %s4720_s28 = scalar_lea.vmem %s6159_s18, 2048 }
  0x1e   : > { %4398 = vmatprep.subr.bf16.mxu0 %v4669_v3  ;;  %v306_v28 = vpack.c.bf16 %v297_v26, %v296_v25  ;;  %v299_v30 = vld [vmem:[%s4887_s23 + $0x78] sm:$0xff]  ;;  %v524_v42 = vld [vmem:[#allocation2 + $0x20] sm:$0x1]  ;;  %v574_v43 = vld [vmem:[#allocation2 + $0x24] sm:$0x1]  ;;  %p4721_p11 = scmp.ne.s32.totalorder %s6159_s18, %s4720_s28  ;;  %s4783_s22 = smov [#allocation3]  }
  0x1f   : > { %v307_v31 = vpack.c.bf16 %v299_v30, %v298_v29  ;;  %v525_v44 = vsel %vm4921_vm3, 0, %v524_v42  ;;  %v575_v45 = vsel %vm4929_vm4, 0, %v574_v43  ;;  %v518_v46 = vld [vmem:[#allocation2 + $0x10] sm:$0x1]  ;;  %v568_v47 = vld [vmem:[#allocation2 + $0x14] sm:$0x1]  ;;  %vm5047_vm11 = vmor %vm1557_vm7, %vm1558_vm8 }
  0x20   : > { %526 = vst [vmem:[#allocation2 + $0x20] sm:$0x1] %v525_v44  ;;  %576 = vst [vmem:[#allocation2 + $0x24] sm:$0x1] %v575_v45  ;;  %v519_v49 = vsel %vm4921_vm3, 0, %v518_v46  ;;  %v569_v50 = vsel %vm4929_vm4, 0, %v568_v47  ;;  %p4722_p12 = pnand %p4721_p11, %p4864_p5 }
  0x21   : > { %4399 = vmatpush3.bf16.msra.mxu0 %v4669_v3  ;;  %520 = vst [vmem:[#allocation2 + $0x10] sm:$0x1] %v519_v49  ;;  %570 = vst [vmem:[#allocation2 + $0x14] sm:$0x1] %v569_v50  ;;  %v533_v51 = vld [vmem:[#allocation2 + $0x38] sm:$0x1] }
  0x22   : > { %4400 = vmatprep.subr.bf16.mxu0 %v4670_v7  ;;  %v583_v52 = vld [vmem:[#allocation2 + $0x3c] sm:$0x1]  ;;  %v534_v53 = vsel %vm4921_vm3, 0, %v533_v51  ;;  %v527_v55 = vld [vmem:[#allocation2 + $0x28] sm:$0x1]  ;;  %v4675_v25 = vld [vmem:[%s6208_s3 + $0x20] sm:$0xff]   ;;  %p4723_p13 = pneg %p4722_p12 }
  0x23   : > { %v584_v54 = vsel %vm4929_vm4, 0, %v583_v52  ;;  %535 = vst [vmem:[#allocation2 + $0x38] sm:$0x1] %v534_v53  ;;  %v577_v56 = vld [vmem:[#allocation2 + $0x2c] sm:$0x1]  ;;  %v528_v57 = vsel %vm4921_vm3, 0, %v527_v55  ;;  %vm5057_vm12 = vmor %vm947_vm9, %vm948_vm10 }
  0x24   : > { %585 = vst [vmem:[#allocation2 + $0x3c] sm:$0x1] %v584_v54  ;;  %v578_v58 = vsel %vm4929_vm4, 0, %v577_v56  ;;  %529 = vst [vmem:[#allocation2 + $0x28] sm:$0x1] %v528_v57  ;;  %v4676_v35 = vld [vmem:[%s6208_s3 + $0x18] sm:$0xff]  }
  0x25   : > { %4401 = vmatpush3.bf16.msra.mxu0 %v4670_v7  ;;  %579 = vst [vmem:[#allocation2 + $0x2c] sm:$0x1] %v578_v58  ;;  %v536_v59 = vld [vmem:[#allocation2 + $0x40] sm:$0x1]  ;;  %v586_v60 = vld [vmem:[#allocation2 + $0x44] sm:$0x1]  ;;  %4424 = vmatprep.subr.bf16.mxu1 %v4676_v35 }
  0x26   : > { %4402 = vmatprep.subr.bf16.mxu0 %v4671_v8  ;;  %v537_v61 = vsel %vm4921_vm3, 0, %v536_v59  ;;  %v587_v62 = vsel %vm4929_vm4, 0, %v586_v60  ;;  %v530_v63 = vld [vmem:[#allocation2 + $0x30] sm:$0x1]  ;;  %v580_v0 = vld [vmem:[#allocation2 + $0x34] sm:$0x1]  ;;  %4425 = vmatpush3.bf16.msra.mxu1 %v4676_v35 }
  0x27   : > { %538 = vst [vmem:[#allocation2 + $0x40] sm:$0x1] %v537_v61  ;;  %588 = vst [vmem:[#allocation2 + $0x44] sm:$0x1] %v587_v62  ;;  %v531_v1 = vsel %vm4921_vm3, 0, %v530_v63  ;;  %v581_v2 = vsel %vm4929_vm4, 0, %v580_v0 }
  0x28   : > { %532 = vst [vmem:[#allocation2 + $0x30] sm:$0x1] %v531_v1  ;;  %582 = vst [vmem:[#allocation2 + $0x34] sm:$0x1] %v581_v2  ;;  %v545_v3 = vld [vmem:[#allocation2 + $0x68] sm:$0x1] }
  0x29   : > { %4403 = vmatpush3.bf16.msra.mxu0 %v4671_v8  ;;  %v595_v4 = vld [vmem:[#allocation2 + $0x6c] sm:$0x1]  ;;  %v546_v5 = vsel %vm4921_vm3, 0, %v545_v3  ;;  %v4782_v7 = vmov 0   ;;  %v539_v8 = vld [vmem:[#allocation2 + $0x58] sm:$0x1] }
  0x2a   : > { %4404 = vmatprep.subr.bf16.mxu0 %v4672_v9  ;;  %v596_v6 = vsel %vm4929_vm4, 0, %v595_v4  ;;  %547 = vst [vmem:[#allocation2 + $0x68] sm:$0x1] %v546_v5  ;;  %501 = vst.msk [vmem:[#allocation2] sm:$0xf] %vm500_vm5, %v4782_v7  ;;  %v4677_v41 = vld [vmem:[%s6208_s3 + $0x10] sm:$0xff]  }
  0x2b   : > { %597 = vst [vmem:[#allocation2 + $0x6c] sm:$0x1] %v596_v6  ;;  %503 = vst.msk [vmem:[#allocation2 + $0x4] sm:$0x1] %vm502_vm0, %v4782_v7  ;;  %v548_v12 = vld [vmem:[#allocation2 + $0x70] sm:$0x1]  ;;  %4426 = vmatprep.subr.bf16.mxu1 %v4677_v41 }
  0x2c   : > { %504 = vst.msk [vmem:[#allocation2 + $0x50] sm:$0xf] %vm500_vm5, %v4782_v7  ;;  %507 = vst.msk [vmem:[#allocation2 + $0x48] sm:$0xf] %vm500_vm5, %v4782_v7  ;;  %v598_v13 = vld [vmem:[#allocation2 + $0x74] sm:$0x1]  ;;  %4427 = vmatpush3.bf16.msra.mxu1 %v4677_v41 }
  0x2d   : > { %4405 = vmatpush3.bf16.msra.mxu0 %v4672_v9  ;;  %505 = vst.msk [vmem:[#allocation2 + $0x54] sm:$0x1] %vm502_vm0, %v4782_v7  ;;  %508 = vst.msk [vmem:[#allocation2 + $0x4c] sm:$0x1] %vm502_vm0, %v4782_v7  ;;  %v589_v9 = vld [vmem:[#allocation2 + $0x5c] sm:$0x1] }
  0x2e   : > { %4406 = vmatprep.subr.bf16.mxu0 %v4673_v10  ;;  %509 = vst.msk [vmem:[#allocation2 + $0x98] sm:$0xf] %vm500_vm5, %v4782_v7  ;;  %v590_v11 = vsel %vm4929_vm4, 0, %v589_v9  ;;  %v549_v14 = vsel %vm4921_vm3, 0, %v548_v12  ;;  %v542_v17 = vld [vmem:[#allocation2 + $0x60] sm:$0x1] }
  0x2f   : > { %510 = vst.msk [vmem:[#allocation2 + $0x9c] sm:$0x1] %vm502_vm0, %v4782_v7  ;;  %591 = vst [vmem:[#allocation2 + $0x5c] sm:$0x1] %v590_v11  ;;  %v592_v18 = vld [vmem:[#allocation2 + $0x64] sm:$0x1] }
  0x30   : > { %550 = vst [vmem:[#allocation2 + $0x70] sm:$0x1] %v549_v14  ;;  %v543_v19 = vsel %vm4921_vm3, 0, %v542_v17  ;;  %v593_v20 = vsel %vm4929_vm4, 0, %v592_v18  ;;  %v551_v26 = vld [vmem:[#allocation2 + $0x78] sm:$0x1] }
  0x31   : > { %4407 = vmatpush3.bf16.msra.mxu0 %v4673_v10  ;;  %v540_v10 = vsel %vm4921_vm3, 0, %v539_v8  ;;  %544 = vst [vmem:[#allocation2 + $0x60] sm:$0x1] %v543_v19  ;;  %594 = vst [vmem:[#allocation2 + $0x64] sm:$0x1] %v593_v20  ;;  %v5024_v42 = vld [vmem:[%s6208_s3 + $0x8] sm:$0xff]  }
  0x32   : > { %541 = vst [vmem:[#allocation2 + $0x58] sm:$0x1] %v540_v10  ;;  %v560_v30 = vld [vmem:[#allocation2 + $0x90] sm:$0x1]  ;;  %v554_v37 = vld [vmem:[#allocation2 + $0x80] sm:$0x1]  ;;  %4444 = vmatprep.subr.bf16.mxu1 %v5024_v42 }
  0x33   : > { %v561_v33 = vsel %vm4921_vm3, 0, %v560_v30  ;;  %v604_v38 = vld [vmem:[#allocation2 + $0x84] sm:$0x1]  ;;  %v555_v39 = vsel %vm4921_vm3, 0, %v554_v37  ;;  %v5030_v36 = vld [vmem:[%s6208_s3 + $0x48] sm:$0xff]   ;;  %s4724_s29 = sshll.u32 %s4783_s22, 4  ;;  %s4725_s29 = int_to_ptr.vmem [resolvable:$false] %s4724_s29 }
  0x34   : > { %4409 = vmatmul.mubr.bf16.vlgmr.msra.gmra.mxu0 %v301_v15  ;;  %v599_v15 = vsel %vm4929_vm4, 0, %v598_v13  ;;  %562 = vst [vmem:[#allocation2 + $0x90] sm:$0x1] %v561_v33  ;;  %v605_v40 = vsel %vm4929_vm4, 0, %v604_v38  ;;  %556 = vst [vmem:[#allocation2 + $0x80] sm:$0x1] %v555_v39  ;;  %p4727_p0 = scmp.lt.s32.totalorder %s6159_s18, %s4725_s29 }
  0x35   : > { %4412 = vmatprep.mubr.bf16.mxu0 %v302_v16  ;;  %600 = vst [vmem:[#allocation2 + $0x74] sm:$0x1] %v599_v15  ;;  %v4674_v16 = vld [vmem:[%s6208_s3 + $0x28] sm:$0xff]   ;;  %606 = vst [vmem:[#allocation2 + $0x84] sm:$0x1] %v605_v40  ;;  %s4726_s8 = scalar_lea.vmem %s4725_s29, 4096 }
  0x36   : > { %4464 = vmatprep.subr.bf16.mxu0 %v4674_v16  ;;  %v911_v43 = vld [vmem:[#allocation2] sm:$0xf]  ;;  %v919_v44 = vld [vmem:[#allocation2 + $0x50] sm:$0xf]  ;;  %v931_v55 = vld [vmem:[#allocation2 + $0x4] sm:$0x1]  ;;  %p4728_p1 = scmp.lt.s32.totalorder %s4726_s8, %s4720_s28 }
  0x37   : > { %4465 = vmatpush3.bf16.msra.mxu0 %v4674_v16  ;;  %v951_v45 = vshrl.u32 %v911_v43, 16  ;;  %v954_v46 = vshll.u32 %v911_v43, 16  ;;  %v1063_v47 = vshrl.u32 %v919_v44, 16  ;;  %v1066_v49 = vshll.u32 %v919_v44, 16  ;;  %v5036_v52 = vld [vmem:[%s6207_s2] ss:$0 sm:$0xff] }
  0x38   : > { %4466 = vmatprep.subr.bf16.mxu0 %v4675_v25  ;;  %v1509_v56 = vld [vmem:[#allocation2] sm:$0xe]  ;;  %v960_v59 = vshll.u32 %v931_v55, 16  ;;  %v939_v61 = vld [vmem:[#allocation2 + $0x54] sm:$0x1]  ;;  %v1562_v1 = vrot.slane %v931_v55, 5  ;;  %p4729_p2 = por %p4728_p1, %p4727_p0 }
  0x39   : > { %v953_v50 = vrot.slane %v951_v45, 4  ;;  %v956_v51 = vrot.slane %v954_v46, 5  ;;  %v1065_v53 = vrot.slane %v1063_v47, 4  ;;  %v1068_v54 = vrot.slane %v1066_v49, 5  ;;  %v1517_v62 = vld [vmem:[#allocation2 + $0x50] sm:$0xe] }
  0x3a   : > { %v4065_v0 = vrot.slane %v1509_v56, 9  ;;  %v1072_v3 = vshll.u32 %v939_v61, 16  ;;  %v5042_v8 = vrot.slane %v960_v59, 5  ;;  %v4073_v9 = vrot.slane %v1517_v62, 9  ;;  %v830_v33 = vld [vmem:[#allocation2 + $0x1c] sm:$0x1]  ;;  %p4730_p3 = pnand %p4729_p2, %p4723_p13 }
  0x3b   : > { %4467 = vmatpush3.bf16.msra.mxu0 %v4675_v25  ;;  %v957_v58 = vor.u32 %v956_v51, %v953_v50  ;;  %v1069_v2 = vor.u32 %v1068_v54, %v1065_v53  ;;  %v1594_v10 = vrot.slane %v939_v61, 5  ;;  %v815_v45 = vld [vmem:[#allocation2 + $0x8] sm:$0xf]  ;;  %v818_v46 = vld [vmem:[#allocation2 + $0xc] sm:$0x1] }
  0x3c   : > { %4413 = vmatmul.mubr.bf16.gmra.mxu0 %v303_v21  ;;  %v557_v21 = vld [vmem:[#allocation2 + $0x88] sm:$0x1]  ;;  %4504 = vmatprep.subr.bf16.mxu0 %v5030_v36  ;;  %v5053_v17 = vrot.slane %v1072_v3, 5 }
  0x3d   : > { %4416 = vmatprep.mubr.bf16.mxu0 %v304_v22  ;;  %v607_v22 = vld [vmem:[#allocation2 + $0x8c] sm:$0x1]  ;;  %v558_v23 = vsel %vm4921_vm3, 0, %v557_v21  ;;  %v5040_v7 = vrot.slane %v957_v58, 4  ;;  %v5051_v16 = vrot.slane %v1069_v2, 4 }
  0x3e   : > { %v608_v24 = vsel %vm4929_vm4, 0, %v607_v22  ;;  %559 = vst [vmem:[#allocation2 + $0x88] sm:$0x1] %v558_v23  ;;  %v836_v2 = vld [vmem:[#allocation2 + $0x24] sm:$0x1]  ;;  %v4716_v21 = vld [vmem:[%s6210_s5 + $0x8] sm:$0xff]  }
  0x3f   : > { %609 = vst [vmem:[#allocation2 + $0x8c] sm:$0x1] %v608_v24  ;;  %v5064_v24 = vsel %vm5047_vm11, %v4065_v0, %v1562_v1  ;;  %v963_v25 = vsel %vm5057_vm12, %v5040_v7, %v5042_v8  ;;  %v1075_v39 = vsel %vm5057_vm12, %v5051_v16, %v5053_v17  ;;  %v833_v1 = vld [vmem:[#allocation2 + $0x20] sm:$0xf] }
  0x44   : > { %4417 = vmatmul.mubr.bf16.gmra.mxu0 %v305_v27  ;;  %v601_v27 = vld [vmem:[#allocation2 + $0x7c] sm:$0x1] }
  0x45   : > { %4420 = vmatprep.mubr.bf16.mxu0 %v306_v28  ;;  %v552_v28 = vsel %vm4921_vm3, 0, %v551_v26  ;;  %v602_v29 = vsel %vm4929_vm4, 0, %v601_v27  ;;  %v5072_v26 = vsel %vm5047_vm11, %v4073_v9, %v1594_v10 }
  0x46   : > { %553 = vst [vmem:[#allocation2 + $0x78] sm:$0x1] %v552_v28  ;;  %603 = vst [vmem:[#allocation2 + $0x7c] sm:$0x1] %v602_v29 }
  0x4c   : > { %4421 = vmatmul.mubr.bf16.gmra.mxu0 %v307_v31  ;;  %v610_v31 = vld [vmem:[#allocation2 + $0x94] sm:$0x1] }
  0x4d   : > { %v611_v34 = vsel %vm4929_vm4, 0, %v610_v31  ;;  %v827_v31 = vld [vmem:[#allocation2 + $0x18] sm:$0xf] }
  0x4e   : > { %612 = vst [vmem:[#allocation2 + $0x94] sm:$0x1] %v611_v34 }
  0xf4   : > { %v4410_v57 = vpop.f32.mrf.mxu0 }
  0xf5   : > { %v422_v60 = vadd.f32 %v4410_v57, %v5036_v52 }
  0xf6   : > { %v413_v63 = vpop.f32.mrf.mxu0 }
  0xf7   : > { %v478_v4 = vmax.f32 %v422_v60, 0.0  ;;  %v414_v5 = vadd.f32 %v5036_v52, %v413_v63 }
  0xf8   : > { %v4411_v6 = vpop.f32.mrf.mxu0 }
  0xf9   : > { %v4260_v11 = vpack.c.bf16 %v478_v4, %v478_v4  ;;  %v476_v12 = vmax.f32 %v414_v5, 0.0  ;;  %v425_v13 = vadd.f32 %v4411_v6, %v5036_v52 }
  0xfa   : > { %v416_v14 = vpop.f32.mrf.mxu0 }
  0xfb   : > { %v670_v18 = vshrl.u32 %v4260_v11, 16  ;;  %v4258_v19 = vpack.c.bf16 %v476_v12, %v476_v12  ;;  %v479_v20 = vmax.f32 %v425_v13, 0.0  ;;  %v417_v22 = vadd.f32 %v5036_v52, %v416_v14  ;;  %v821_v12 = vld [vmem:[#allocation2 + $0x10] sm:$0xf]  ;;  %v824_v13 = vld [vmem:[#allocation2 + $0x14] sm:$0x1] }
  0xfc   : > { %v4414_v23 = vpop.f32.mrf.mxu0  ;;  %v673_v28 = vshll.u32 %v4260_v11, 16 }
  0xfd   : > { %v672_v27 = vrot.slane %v670_v18, 7  ;;  %v654_v29 = vshrl.u32 %v4258_v19, 16  ;;  %v4261_v30 = vpack.c.bf16 %v479_v20, %v479_v20  ;;  %v657_v34 = vshll.u32 %v4258_v19, 16 }
  0xfe   : > { %v477_v35 = vmax.f32 %v417_v22, 0.0  ;;  %v438_v37 = vadd.f32 %v4414_v23, %v5036_v52  ;;  %v429_v38 = vpop.f32.mrf.mxu0 }
  0xff   : > { %v675_v40 = vor.u32 %v673_v28, %v672_v27  ;;  %v676_v41 = vrot.slane %v672_v27, 4  ;;  %v656_v43 = vrot.slane %v654_v29, 7  ;;  %v678_v44 = vshrl.u32 %v4261_v30, 16 }
 0x100   : > { %v681_v47 = vshll.u32 %v4261_v30, 16  ;;  %v4259_v49 = vpack.c.bf16 %v477_v35, %v477_v35  ;;  %v482_v50 = vmax.f32 %v438_v37, 0.0  ;;  %v430_v51 = vadd.f32 %v5036_v52, %v429_v38  ;;  %v4415_v53 = vpop.f32.mrf.mxu0  ;;  %v851_v38 = vld [vmem:[#allocation2 + $0x38] sm:$0xf] }
 0x101   : > { %v828_v54 = vsel %vm4945_vm6, %v675_v40, %v827_v31  ;;  %v831_v55 = vsel %vm4921_vm3, %v676_v41, %v830_v33  ;;  %v659_v56 = vor.u32 %v657_v34, %v656_v43  ;;  %v660_v57 = vrot.slane %v656_v43, 4  ;;  %v854_v40 = vld [vmem:[#allocation2 + $0x3c] sm:$0x1] }
 0x102   : > { %829 = vst [vmem:[#allocation2 + $0x18] sm:$0xf] %v828_v54  ;;  %832 = vst [vmem:[#allocation2 + $0x1c] sm:$0x1] %v831_v55  ;;  %v680_v58 = vrot.slane %v678_v44, 7  ;;  %v662_v59 = vshrl.u32 %v4259_v49, 16  ;;  %v4264_v61 = vpack.c.bf16 %v482_v50, %v482_v50  ;;  %v432_v62 = vpop.f32.mrf.mxu0  ;;  %v441_v4 = vadd.f32 %v4415_v53, %v5036_v52 }
 0x103   : > { %v665_v60 = vshll.u32 %v4259_v49, 16  ;;  %v816_v63 = vsel %vm4945_vm6, %v659_v56, %v815_v45  ;;  %v819_v0 = vsel %vm4921_vm3, %v660_v57, %v818_v46  ;;  %v480_v3 = vmax.f32 %v430_v51, 0.0  ;;  %v839_v50 = vld [vmem:[#allocation2 + $0x28] sm:$0xf]  ;;  %v842_v51 = vld [vmem:[#allocation2 + $0x2c] sm:$0x1] }
 0x104   : > { %817 = vst [vmem:[#allocation2 + $0x8] sm:$0xf] %v816_v63  ;;  %820 = vst [vmem:[#allocation2 + $0xc] sm:$0x1] %v819_v0  ;;  %v683_v5 = vor.u32 %v681_v47, %v680_v58  ;;  %v684_v6 = vrot.slane %v680_v58, 4  ;;  %v664_v9 = vrot.slane %v662_v59, 7  ;;  %v4418_v11 = vpop.f32.mrf.mxu0  ;;  %v433_v20 = vadd.f32 %v5036_v52, %v432_v62 }
 0x105   : > { %v702_v10 = vshrl.u32 %v4264_v61, 16  ;;  %v705_v14 = vshll.u32 %v4264_v61, 16  ;;  %v4262_v18 = vpack.c.bf16 %v480_v3, %v480_v3  ;;  %v483_v19 = vmax.f32 %v441_v4, 0.0 }
 0x106   : > { %v834_v22 = vsel %vm4945_vm6, %v683_v5, %v833_v1  ;;  %v837_v23 = vsel %vm4921_vm3, %v684_v6, %v836_v2  ;;  %v667_v27 = vor.u32 %v665_v60, %v664_v9  ;;  %v668_v28 = vrot.slane %v664_v9, 4  ;;  %v445_v29 = vpop.f32.mrf.mxu0  ;;  %v857_v5 = vld [vmem:[#allocation2 + $0x40] sm:$0xf]  ;;  %v860_v6 = vld [vmem:[#allocation2 + $0x44] sm:$0x1] }
 0x107   : > { %835 = vst [vmem:[#allocation2 + $0x20] sm:$0xf] %v834_v22  ;;  %838 = vst [vmem:[#allocation2 + $0x24] sm:$0x1] %v837_v23  ;;  %v704_v30 = vrot.slane %v702_v10, 7  ;;  %v686_v31 = vshrl.u32 %v4262_v18, 16  ;;  %v4265_v34 = vpack.c.bf16 %v483_v19, %v483_v19  ;;  %v454_v43 = vadd.f32 %v4418_v11, %v5036_v52 }
 0x108   : > { %v689_v33 = vshll.u32 %v4262_v18, 16  ;;  %v822_v35 = vsel %vm4945_vm6, %v667_v27, %v821_v12  ;;  %v825_v37 = vsel %vm4921_vm3, %v668_v28, %v824_v13  ;;  %v481_v41 = vmax.f32 %v433_v20, 0.0  ;;  %v4419_v44 = vpop.f32.mrf.mxu0  ;;  %v845_v18 = vld [vmem:[#allocation2 + $0x30] sm:$0xf]  ;;  %v848_v19 = vld [vmem:[#allocation2 + $0x34] sm:$0x1] }
 0x109   : > { %823 = vst [vmem:[#allocation2 + $0x10] sm:$0xf] %v822_v35  ;;  %826 = vst [vmem:[#allocation2 + $0x14] sm:$0x1] %v825_v37  ;;  %v707_v45 = vor.u32 %v705_v14, %v704_v30  ;;  %v708_v46 = vrot.slane %v704_v30, 4  ;;  %v688_v47 = vrot.slane %v686_v31, 7  ;;  %v446_v56 = vadd.f32 %v5036_v52, %v445_v29 }
 0x10a   : > { %v710_v49 = vshrl.u32 %v4265_v34, 16  ;;  %v713_v53 = vshll.u32 %v4265_v34, 16  ;;  %v4263_v54 = vpack.c.bf16 %v481_v41, %v481_v41  ;;  %v486_v55 = vmax.f32 %v454_v43, 0.0  ;;  %v448_v57 = vpop.f32.mrf.mxu0  ;;  %v875_v43 = vld [vmem:[#allocation2 + $0x68] sm:$0xf] }
 0x10b   : > { %v852_v58 = vsel %vm4945_vm6, %v707_v45, %v851_v38  ;;  %v855_v59 = vsel %vm4921_vm3, %v708_v46, %v854_v40  ;;  %v691_v60 = vor.u32 %v689_v33, %v688_v47  ;;  %v692_v61 = vrot.slane %v688_v47, 4 }
 0x10c   : > { %853 = vst [vmem:[#allocation2 + $0x38] sm:$0xf] %v852_v58  ;;  %856 = vst [vmem:[#allocation2 + $0x3c] sm:$0x1] %v855_v59  ;;  %v712_v62 = vrot.slane %v710_v49, 7  ;;  %v694_v63 = vshrl.u32 %v4263_v54, 16  ;;  %v4268_v1 = vpack.c.bf16 %v486_v55, %v486_v55  ;;  %v4422_v2 = vpop.f32.mrf.mxu0  ;;  %v457_v10 = vadd.f32 %v4419_v44, %v5036_v52 }
 0x10d   : > { %v697_v0 = vshll.u32 %v4263_v54, 16  ;;  %v840_v3 = vsel %vm4945_vm6, %v691_v60, %v839_v50  ;;  %v843_v4 = vsel %vm4921_vm3, %v692_v61, %v842_v51  ;;  %v484_v9 = vmax.f32 %v446_v56, 0.0  ;;  %v878_v44 = vld [vmem:[#allocation2 + $0x6c] sm:$0x1]  ;;  %v866_v54 = vld [vmem:[#allocation2 + $0x5c] sm:$0x1] }
 0x10e   : > { %841 = vst [vmem:[#allocation2 + $0x28] sm:$0xf] %v840_v3  ;;  %844 = vst [vmem:[#allocation2 + $0x2c] sm:$0x1] %v843_v4  ;;  %v715_v11 = vor.u32 %v713_v53, %v712_v62  ;;  %v716_v12 = vrot.slane %v712_v62, 4  ;;  %v696_v13 = vrot.slane %v694_v63, 7  ;;  %v449_v27 = vadd.f32 %v5036_v52, %v448_v57  ;;  %v461_v33 = vpop.f32.mrf.mxu0 }
 0x10f   : > { %v734_v14 = vshrl.u32 %v4268_v1, 16  ;;  %v737_v20 = vshll.u32 %v4268_v1, 16  ;;  %v4266_v22 = vpack.c.bf16 %v484_v9, %v484_v9  ;;  %v487_v23 = vmax.f32 %v457_v10, 0.0  ;;  %v863_v53 = vld [vmem:[#allocation2 + $0x58] sm:$0xf] }
 0x110   : > { %v858_v28 = vsel %vm4945_vm6, %v715_v11, %v857_v5  ;;  %v861_v29 = vsel %vm4921_vm3, %v716_v12, %v860_v6  ;;  %v699_v30 = vor.u32 %v697_v0, %v696_v13  ;;  %v700_v31 = vrot.slane %v696_v13, 4  ;;  %v4423_v59 = vpop.f32.mrf.mxu0  ;;  %v881_v0 = vld [vmem:[#allocation2 + $0x70] sm:$0xf]  ;;  %v1510_v5 = vld [vmem:[#allocation2 + $0x8] sm:$0xe] }
 0x111   : > { %859 = vst [vmem:[#allocation2 + $0x40] sm:$0xf] %v858_v28  ;;  %862 = vst [vmem:[#allocation2 + $0x44] sm:$0x1] %v861_v29  ;;  %v736_v34 = vrot.slane %v734_v14, 7  ;;  %v718_v35 = vshrl.u32 %v4266_v22, 16  ;;  %v4269_v38 = vpack.c.bf16 %v487_v23, %v487_v23  ;;  %v470_v46 = vadd.f32 %v4422_v2, %v5036_v52 }
 0x112   : > { %v721_v37 = vshll.u32 %v4266_v22, 16  ;;  %v846_v40 = vsel %vm4945_vm6, %v699_v30, %v845_v18  ;;  %v849_v41 = vsel %vm4921_vm3, %v700_v31, %v848_v19  ;;  %v485_v45 = vmax.f32 %v449_v27, 0.0  ;;  %v884_v10 = vld [vmem:[#allocation2 + $0x74] sm:$0x1]  ;;  %v869_v11 = vld [vmem:[#allocation2 + $0x60] sm:$0xf]  ;;  %v464_v31 = vpop.f32.mrf.mxu0 }
 0x113   : > { %847 = vst [vmem:[#allocation2 + $0x30] sm:$0xf] %v846_v40  ;;  %850 = vst [vmem:[#allocation2 + $0x34] sm:$0x1] %v849_v41  ;;  %v739_v47 = vor.u32 %v737_v20, %v736_v34  ;;  %v740_v49 = vrot.slane %v736_v34, 4  ;;  %v720_v50 = vrot.slane %v718_v35, 7  ;;  %v462_v58 = vadd.f32 %v5036_v52, %v461_v33 }
 0x114   : > { %v742_v51 = vshrl.u32 %v4269_v38, 16  ;;  %v745_v55 = vshll.u32 %v4269_v38, 16  ;;  %v4267_v56 = vpack.c.bf16 %v485_v45, %v485_v45  ;;  %v490_v57 = vmax.f32 %v470_v46, 0.0  ;;  %v872_v20 = vld [vmem:[#allocation2 + $0x64] sm:$0x1] }
 0x115   : > { %v876_v60 = vsel %vm4945_vm6, %v739_v47, %v875_v43  ;;  %v879_v61 = vsel %vm4921_vm3, %v740_v49, %v878_v44  ;;  %v723_v62 = vor.u32 %v721_v37, %v720_v50  ;;  %v724_v63 = vrot.slane %v720_v50, 4  ;;  %v5129_v29 = vld [vmem:[#allocation2 + $0xc] sm:$0x1]  ;;  %v899_v38 = vld [vmem:[#allocation2 + $0x88] sm:$0xf] }
 0x116   : > { %877 = vst [vmem:[#allocation2 + $0x68] sm:$0xf] %v876_v60  ;;  %880 = vst [vmem:[#allocation2 + $0x6c] sm:$0x1] %v879_v61  ;;  %v744_v1 = vrot.slane %v742_v51, 7  ;;  %v726_v2 = vshrl.u32 %v4267_v56, 16  ;;  %v4272_v4 = vpack.c.bf16 %v490_v57, %v490_v57  ;;  %v473_v13 = vadd.f32 %v4423_v59, %v5036_v52 }
 0x117   : > { %v729_v3 = vshll.u32 %v4267_v56, 16  ;;  %v864_v6 = vsel %vm4945_vm6, %v723_v62, %v863_v53  ;;  %v867_v9 = vsel %vm4921_vm3, %v724_v63, %v866_v54  ;;  %v488_v12 = vmax.f32 %v462_v58, 0.0  ;;  %v902_v40 = vld [vmem:[#allocation2 + $0x8c] sm:$0x1]  ;;  %v1511_v46 = vld [vmem:[#allocation2 + $0x10] sm:$0xe] }
 0x118   : > { %865 = vst [vmem:[#allocation2 + $0x58] sm:$0xf] %v864_v6  ;;  %868 = vst [vmem:[#allocation2 + $0x5c] sm:$0x1] %v867_v9  ;;  %v747_v14 = vor.u32 %v745_v55, %v744_v1  ;;  %v748_v18 = vrot.slane %v744_v1, 4  ;;  %v728_v19 = vrot.slane %v726_v2, 7  ;;  %v465_v54 = vadd.f32 %v5036_v52, %v464_v31 }
 0x119   : > { %v766_v22 = vshrl.u32 %v4272_v4, 16  ;;  %v769_v23 = vshll.u32 %v4272_v4, 16  ;;  %v4270_v27 = vpack.c.bf16 %v488_v12, %v488_v12  ;;  %v491_v28 = vmax.f32 %v473_v13, 0.0  ;;  %v887_v50 = vld [vmem:[#allocation2 + $0x78] sm:$0xf] }
 0x11a   : > { %v4066_v30 = vrot.slane %v1510_v5, 9  ;;  %v882_v33 = vsel %vm4945_vm6, %v747_v14, %v881_v0  ;;  %v885_v34 = vsel %vm4921_vm3, %v748_v18, %v884_v10  ;;  %v731_v35 = vor.u32 %v729_v3, %v728_v19  ;;  %v890_v51 = vld [vmem:[#allocation2 + $0x7c] sm:$0x1]  ;;  %v5143_v60 = vld [vmem:[#allocation2 + $0x14] sm:$0x1] }
 0x11b   : > { %v732_v37 = vrot.slane %v728_v19, 4  ;;  %883 = vst [vmem:[#allocation2 + $0x70] sm:$0xf] %v882_v33  ;;  %886 = vst [vmem:[#allocation2 + $0x74] sm:$0x1] %v885_v34  ;;  %v768_v41 = vrot.slane %v766_v22, 7  ;;  %v4273_v45 = vpack.c.bf16 %v491_v28, %v491_v28 }
 0x11c   : > { %v750_v43 = vshrl.u32 %v4270_v27, 16  ;;  %v753_v44 = vshll.u32 %v4270_v27, 16  ;;  %v870_v47 = vsel %vm4945_vm6, %v731_v35, %v869_v11  ;;  %v1566_v53 = vrot.slane %v5129_v29, 5  ;;  %v5141_v55 = vld [vmem:[#allocation2 + $0x1c] sm:$0x1] }
 0x11d   : > { %v873_v49 = vsel %vm4921_vm3, %v732_v37, %v872_v20  ;;  %871 = vst [vmem:[#allocation2 + $0x60] sm:$0xf] %v870_v47  ;;  %v771_v56 = vor.u32 %v769_v23, %v768_v41  ;;  %v772_v57 = vrot.slane %v768_v41, 4  ;;  %v774_v59 = vshrl.u32 %v4273_v45, 16  ;;  %v1512_v0 = vld [vmem:[#allocation2 + $0x18] sm:$0xe] }
 0x11e   : > { %874 = vst [vmem:[#allocation2 + $0x64] sm:$0x1] %v873_v49  ;;  %v752_v58 = vrot.slane %v750_v43, 7  ;;  %v777_v61 = vshll.u32 %v4273_v45, 16  ;;  %v1567_v62 = vsel %vm5047_vm11, %v4066_v30, %v1566_v53  ;;  %v489_v63 = vmax.f32 %v465_v54, 0.0  ;;  %v4681_v47 = vld [vmem:[%s6208_s3 + $0x40] sm:$0xff]  }
 0x11f   : > { %v4067_v1 = vrot.slane %v1511_v46, 9  ;;  %v900_v52 = vsel %vm4945_vm6, %v771_v56, %v899_v38  ;;  %v903_v2 = vsel %vm4921_vm3, %v772_v57, %v902_v40  ;;  %v776_v5 = vrot.slane %v774_v59, 7  ;;  %v5153_v11 = vld [vmem:[#allocation2 + $0x8] sm:$0xf]  ;;  %v905_v14 = vld [vmem:[#allocation2 + $0x90] sm:$0xf] }
 0x120   : > { %v755_v3 = vor.u32 %v753_v44, %v752_v58  ;;  %v756_v4 = vrot.slane %v752_v58, 4  ;;  %901 = vst [vmem:[#allocation2 + $0x88] sm:$0xf] %v900_v52  ;;  %904 = vst [vmem:[#allocation2 + $0x8c] sm:$0x1] %v903_v2  ;;  %v4081_v6 = vcombine.low %v5064_v24, %v1567_v62  ;;  %v4271_v9 = vpack.c.bf16 %v489_v63, %v489_v63 }
 0x121   : > { %v1570_v10 = vrot.slane %v5143_v60, 5  ;;  %v908_v18 = vld [vmem:[#allocation2 + $0x94] sm:$0x1]  ;;  %v4068_v19 = vrot.slane %v1512_v0, 9  ;;  %v1574_v20 = vrot.slane %v5141_v55, 5  ;;  %v779_v22 = vor.u32 %v777_v61, %v776_v5 }
 0x122   : > { %v888_v12 = vsel %vm4945_vm6, %v755_v3, %v887_v50  ;;  %v891_v13 = vsel %vm4921_vm3, %v756_v4, %v890_v51  ;;  %v780_v24 = vrot.slane %v776_v5, 4  ;;  %4468 = vmatprep.mubr.msk.bf16.mxu0 %vm1214_vm13, %v4081_v6  ;;  %v758_v23 = vshrl.u32 %v4271_v9, 16  ;;  %v1513_v28 = vld [vmem:[#allocation2 + $0x20] sm:$0xe]  ;;  %v5167_v37 = vld [vmem:[#allocation2 + $0x24] sm:$0x1] }
 0x123   : > { %889 = vst [vmem:[#allocation2 + $0x78] sm:$0xf] %v888_v12  ;;  %892 = vst [vmem:[#allocation2 + $0x7c] sm:$0x1] %v891_v13  ;;  %v761_v27 = vshll.u32 %v4271_v9, 16  ;;  %v1571_v31 = vsel %vm5047_vm11, %v4067_v1, %v1570_v10  ;;  %v1575_v33 = vsel %vm5047_vm11, %v4068_v19, %v1574_v20  ;;  %v965_v34 = vshrl.u32 %v5153_v11, 16 }
 0x124   : > { %v893_v30 = vld [vmem:[#allocation2 + $0x80] sm:$0xf]  ;;  %v968_v35 = vshll.u32 %v5153_v11, 16  ;;  %v1514_v38 = vld [vmem:[#allocation2 + $0x28] sm:$0xe]  ;;  %v906_v40 = vsel %vm4945_vm6, %v779_v22, %v905_v14  ;;  %v909_v41 = vsel %vm4921_vm3, %v780_v24, %v908_v18  ;;  %v760_v43 = vrot.slane %v758_v23, 7 }
 0x125   : > { %v4082_v44 = vcombine.low %v1571_v31, %v1575_v33  ;;  %v5173_v45 = vld [vmem:[#allocation2 + $0x2c] sm:$0x1]  ;;  %v5175_v46 = vld [vmem:[#allocation2 + $0x10] sm:$0xf]  ;;  %907 = vst [vmem:[#allocation2 + $0x90] sm:$0xf] %v906_v40 }
 0x126   : > { %910 = vst [vmem:[#allocation2 + $0x94] sm:$0x1] %v909_v41  ;;  %v896_v49 = vld [vmem:[#allocation2 + $0x84] sm:$0x1]  ;;  %v967_v50 = vrot.slane %v965_v34, 4  ;;  %v970_v51 = vrot.slane %v968_v35, 5  ;;  %v763_v56 = vor.u32 %v761_v27, %v760_v43 }
 0x127   : > { %v974_v53 = vshll.u32 %v5129_v29, 16  ;;  %v4069_v54 = vrot.slane %v1513_v28, 9  ;;  %v764_v57 = vrot.slane %v760_v43, 4  ;;  %4469 = vmatmul.mubr.msk.bf16.vlgmr.msra.gmra.mxu0 %vm1214_vm13, %v4082_v44  ;;  %v1578_v58 = vrot.slane %v5167_v37, 5  ;;  %v5184_v0 = vld [vmem:[#allocation2 + $0x18] sm:$0xf] }
 0x128   : > { %v4070_v59 = vrot.slane %v1514_v38, 9  ;;  %v971_v61 = vor.u32 %v970_v51, %v967_v50  ;;  %v1582_v63 = vrot.slane %v5173_v45, 5  ;;  %v979_v1 = vshrl.u32 %v5175_v46, 16  ;;  %4505 = vmatpush3.bf16.msra.mxu0 %v5030_v36  ;;  %v5195_v4 = vld [vmem:[#allocation2 + $0x3c] sm:$0x1]  ;;  %v5200_v6 = vld [vmem:[%s6208_s3 + $0x68] sm:$0xff]  }
 0x129   : > { %v976_v62 = vrot.slane %v974_v53, 5  ;;  %v894_v29 = vsel %vm4945_vm6, %v763_v56, %v893_v30  ;;  %v897_v52 = vsel %vm4921_vm3, %v764_v57, %v896_v49  ;;  %v1579_v2 = vsel %vm5047_vm11, %v4069_v54, %v1578_v58  ;;  %v1515_v5 = vld [vmem:[#allocation2 + $0x30] sm:$0xe]  ;;  %4506 = vmatprep.subr.bf16.mxu0 %v4681_v47  ;;  %v1516_v10 = vld [vmem:[#allocation2 + $0x38] sm:$0xe] }
 0x12a   : > { %v982_v3 = vshll.u32 %v5175_v46, 16  ;;  %895 = vst [vmem:[#allocation2 + $0x80] sm:$0xf] %v894_v29  ;;  %898 = vst [vmem:[#allocation2 + $0x84] sm:$0x1] %v897_v52  ;;  %v972_v48 = vrot.slane %v971_v61, 4  ;;  %v1583_v32 = vsel %vm5047_vm11, %v4070_v59, %v1582_v63 }
 0x12b   : > { %v981_v36 = vrot.slane %v979_v1, 4  ;;  %v988_v9 = vshll.u32 %v5143_v60, 16  ;;  %v4083_v12 = vcombine.low %v1579_v2, %v1583_v32  ;;  %v993_v14 = vshrl.u32 %v5184_v0, 16  ;;  %v5207_v19 = vld [vmem:[#allocation2 + $0x34] sm:$0x1]  ;;  %v4679_v32 = vld [vmem:[%s6208_s3] sm:$0xff]  }
 0x12c   : > { %v984_v13 = vrot.slane %v982_v3, 5  ;;  %v996_v18 = vshll.u32 %v5184_v0, 16  ;;  %v977_v20 = vsel %vm5057_vm12, %v972_v48, %v976_v62  ;;  %v1002_v24 = vshll.u32 %v5141_v55, 16  ;;  %v5212_v27 = vld [vmem:[#allocation2 + $0x20] sm:$0xf]  ;;  %4507 = vmatpush3.bf16.msra.mxu0 %v4681_v47 }
 0x12d   : > { %v990_v22 = vrot.slane %v988_v9, 5  ;;  %v4071_v23 = vrot.slane %v1515_v5, 9  ;;  %v4029_v60 = vcombine.low %v963_v25, %v977_v20  ;;  %4472 = vmatprep.mubr.msk.bf16.mxu0 %vm1214_vm13, %v4083_v12  ;;  %v995_v30 = vrot.slane %v993_v14, 4  ;;  %v5220_v33 = vld [vmem:[#allocation2 + $0x28] sm:$0xf]  ;;  %4544 = vmatprep.subr.bf16.mxu0 %v5200_v6 }
 0x12e   : > { %v985_v28 = vor.u32 %v984_v13, %v981_v36  ;;  %v998_v31 = vrot.slane %v996_v18, 5  ;;  %v1004_v55 = vrot.slane %v1002_v24, 5  ;;  %v1586_v34 = vrot.slane %v5207_v19, 5  ;;  %v5234_v49 = vld [vmem:[#allocation2 + $0x5c] sm:$0x1] }
 0x12f   : > { %v4072_v35 = vrot.slane %v1516_v10, 9  ;;  %v1590_v38 = vrot.slane %v5195_v4, 5  ;;  %4428 = vmatprep.mubr.msk.bf16.mxu1 %vm1214_vm13, %v4029_v60  ;;  %v1007_v8 = vshrl.u32 %v5212_v27, 16  ;;  %v1010_v25 = vshll.u32 %v5212_v27, 16  ;;  %v1518_v50 = vld [vmem:[#allocation2 + $0x58] sm:$0xe] }
 0x130   : > { %v986_v40 = vrot.slane %v985_v28, 4  ;;  %v999_v7 = vor.u32 %v998_v31, %v995_v30  ;;  %v1587_v41 = vsel %vm5047_vm11, %v4071_v23, %v1586_v34  ;;  %v1016_v44 = vshll.u32 %v5167_v37, 16  ;;  %v5238_v57 = vld [vmem:[#allocation2 + $0x30] sm:$0xf]  ;;  %v5246_v5 = vld [vmem:[#allocation2 + $0x38] sm:$0xf] }
 0x131   : > { %v1591_v43 = vsel %vm5047_vm11, %v4072_v35, %v1590_v38  ;;  %v1021_v47 = vshrl.u32 %v5220_v33, 16  ;;  %v1009_v56 = vrot.slane %v1007_v8, 4  ;;  %v1012_v58 = vrot.slane %v1010_v25, 5  ;;  %v1519_v12 = vld [vmem:[#allocation2 + $0x60] sm:$0xe] }
 0x132   : > { %v991_v51 = vsel %vm5057_vm12, %v986_v40, %v990_v22  ;;  %v1000_v53 = vrot.slane %v999_v7, 4  ;;  %v4084_v54 = vcombine.low %v1587_v41, %v1591_v43  ;;  %v1018_v59 = vrot.slane %v1016_v44, 5  ;;  %v5258_v22 = vld [vmem:[#allocation2 + $0x64] sm:$0x1]  ;;  %v5260_v24 = vld [vmem:[#allocation2 + $0x6c] sm:$0x1] }
 0x133   : > { %v1023_v61 = vrot.slane %v1021_v47, 4  ;;  %v1024_v62 = vshll.u32 %v5220_v33, 16  ;;  %v1030_v63 = vshll.u32 %v5173_v45, 16  ;;  %v4074_v1 = vrot.slane %v1518_v50, 9  ;;  %v1520_v30 = vld [vmem:[#allocation2 + $0x68] sm:$0xe] }
 0x134   : > { %v1005_v37 = vsel %vm5057_vm12, %v1000_v53, %v1004_v55  ;;  %4473 = vmatmul.mubr.msk.bf16.gmra.mxu0 %vm1214_vm13, %v4084_v54  ;;  %v1598_v29 = vrot.slane %v5234_v49, 5  ;;  %v1013_v2 = vor.u32 %v1012_v58, %v1009_v56  ;;  %v1035_v48 = vshrl.u32 %v5238_v57, 16  ;;  %v5269_v35 = vld [vmem:[#allocation2 + $0x58] sm:$0xf]  ;;  %v5277_v25 = vld [vmem:[#allocation2 + $0x74] sm:$0x1] }
 0x135   : > { %v4030_v52 = vcombine.low %v991_v51, %v1005_v37  ;;  %v1026_v3 = vrot.slane %v1024_v62, 5  ;;  %v1032_v36 = vrot.slane %v1030_v63, 5  ;;  %v1038_v45 = vshll.u32 %v5238_v57, 16  ;;  %v1521_v47 = vld [vmem:[#allocation2 + $0x70] sm:$0xe] }
 0x136   : > { %v1599_v9 = vsel %vm5047_vm11, %v4074_v1, %v1598_v29  ;;  %v1044_v10 = vshll.u32 %v5207_v19, 16  ;;  %v1014_v13 = vrot.slane %v1013_v2, 4  ;;  %v1037_v20 = vrot.slane %v1035_v48, 4  ;;  %v5284_v56 = vld [vmem:[#allocation2 + $0x7c] sm:$0x1] }
 0x137   : > { %4429 = vmatmul.mubr.msk.bf16.vlgmr.msra.gmra.mxu1 %vm1214_vm13, %v4030_v52  ;;  %v1027_v14 = vor.u32 %v1026_v3, %v1023_v61  ;;  %v4085_v18 = vcombine.low %v5072_v26, %v1599_v9  ;;  %v1040_v23 = vrot.slane %v1038_v45, 5  ;;  %v1049_v28 = vshrl.u32 %v5246_v5, 16  ;;  %v5286_v58 = vld [vmem:[#allocation2 + $0x60] sm:$0xf]  ;;  %v1522_v63 = vld [vmem:[#allocation2 + $0x78] sm:$0xe] }
 0x138   : > { %4445 = vmatpush3.bf16.msra.mxu1 %v5024_v42  ;;  %v1046_v60 = vrot.slane %v1044_v10, 5  ;;  %v1052_v19 = vshll.u32 %v5246_v5, 16  ;;  %v1019_v31 = vsel %vm5057_vm12, %v1014_v13, %v1018_v59  ;;  %v1058_v26 = vshll.u32 %v5195_v4, 16  ;;  %v5274_v42 = vld [vmem:[%s6208_s3 + $0x38] sm:$0xff]   ;;  %v5298_v9 = vld [vmem:[#allocation2 + $0x68] sm:$0xf] }
 0x139   : > { %v1028_v55 = vrot.slane %v1027_v14, 4  ;;  %4476 = vmatprep.mubr.msk.bf16.mxu0 %vm1214_vm13, %v4085_v18  ;;  %v4075_v34 = vrot.slane %v1519_v12, 9  ;;  %4446 = vmatprep.subr.bf16.mxu1 %v4679_v32  ;;  %v1041_v38 = vor.u32 %v1040_v23, %v1037_v20  ;;  %v1051_v40 = vrot.slane %v1049_v28, 4  ;;  %v5305_v13 = vld [vmem:[#allocation2 + $0x84] sm:$0x1] }
 0x13a   : > { %v1054_v7 = vrot.slane %v1052_v19, 5  ;;  %v1602_v8 = vrot.slane %v5258_v22, 5  ;;  %v1060_v4 = vrot.slane %v1058_v26, 5  ;;  %v4076_v43 = vrot.slane %v1520_v30, 9  ;;  %v1523_v28 = vld [vmem:[#allocation2 + $0x80] sm:$0xe] }
 0x13b   : > { %v1033_v41 = vsel %vm5057_vm12, %v1028_v55, %v1032_v36  ;;  %v1606_v44 = vrot.slane %v5260_v24, 5  ;;  %v1042_v51 = vrot.slane %v1041_v38, 4  ;;  %v1077_v61 = vshrl.u32 %v5269_v35, 16  ;;  %v1524_v19 = vld [vmem:[#allocation2 + $0x88] sm:$0xe] }
 0x13c   : > { %v4031_v50 = vcombine.low %v1019_v31, %v1033_v41  ;;  %v1055_v53 = vor.u32 %v1054_v7, %v1051_v40  ;;  %v1603_v54 = vsel %vm5047_vm11, %v4075_v34, %v1602_v8  ;;  %4447 = vmatpush3.bf16.msra.mxu1 %v4679_v32  ;;  %v1080_v62 = vshll.u32 %v5269_v35, 16  ;;  %v2010_v34 = vld [vmem:[#allocation2 + $0x8] sm:$0xf]  ;;  %v5318_v41 = vld [vmem:[#allocation2 + $0xc] sm:$0x1] }
 0x13d   : > { %v1607_v59 = vsel %vm5047_vm11, %v4076_v43, %v1606_v44  ;;  %v1086_v37 = vshll.u32 %v5234_v49, 16  ;;  %4484 = vmatprep.subr.bf16.mxu1 %v5274_v42  ;;  %v1047_v1 = vsel %vm5057_vm12, %v1042_v51, %v1046_v60  ;;  %v4077_v2 = vrot.slane %v1521_v47, 9  ;;  %v5310_v60 = vld [vmem:[#allocation2 + $0x8c] sm:$0x1] }
 0x13e   : > { %4432 = vmatprep.mubr.msk.bf16.mxu1 %vm1214_vm13, %v4031_v50  ;;  %v1056_v29 = vrot.slane %v1055_v53, 4  ;;  %v4086_v52 = vcombine.low %v1603_v54, %v1607_v59  ;;  %v1079_v3 = vrot.slane %v1077_v61, 4  ;;  %v1082_v48 = vrot.slane %v1080_v62, 5  ;;  %v2012_v50 = vld [vmem:[#allocation2 + $0x10] sm:$0xf] }
 0x13f   : > { %v1088_v32 = vrot.slane %v1086_v37, 5  ;;  %v1610_v36 = vrot.slane %v5277_v25, 5  ;;  %v4078_v45 = vrot.slane %v1522_v63, 9  ;;  %v1614_v10 = vrot.slane %v5284_v56, 5 }
 0x140   : > { %v1061_v49 = vsel %vm5057_vm12, %v1056_v29, %v1060_v4  ;;  %4477 = vmatmul.mubr.msk.bf16.gmra.mxu0 %vm1214_vm13, %v4086_v52  ;;  %v1091_v12 = vshrl.u32 %v5286_v58, 16  ;;  %v1083_v18 = vor.u32 %v1082_v48, %v1079_v3  ;;  %v1094_v23 = vshll.u32 %v5286_v58, 16  ;;  %v5333_v29 = vld [vmem:[#allocation2 + $0x14] sm:$0x1] }
 0x141   : > { %v4032_v14 = vcombine.low %v1047_v1, %v1061_v49  ;;  %v1611_v20 = vsel %vm5047_vm11, %v4077_v2, %v1610_v36  ;;  %v1615_v30 = vsel %vm5047_vm11, %v4078_v45, %v1614_v10  ;;  %v1100_v55 = vshll.u32 %v5258_v22, 16 }
 0x142   : > { %v1093_v31 = vrot.slane %v1091_v12, 4  ;;  %v1105_v26 = vshrl.u32 %v5298_v9, 16  ;;  %v1084_v38 = vrot.slane %v1083_v18, 4  ;;  %v4087_v40 = vcombine.low %v1611_v20, %v1615_v30 }
 0x143   : > { %4433 = vmatmul.mubr.msk.bf16.gmra.mxu1 %vm1214_vm13, %v4032_v14  ;;  %v1096_v7 = vrot.slane %v1094_v23, 5  ;;  %v1108_v8 = vshll.u32 %v5298_v9, 16  ;;  %v1102_v4 = vrot.slane %v1100_v55, 5  ;;  %v1114_v44 = vshll.u32 %v5260_v24, 16  ;;  %v5343_v14 = vld [vmem:[#allocation2 + $0x78] sm:$0xf] }
 0x144   : > { %v1107_v43 = vrot.slane %v1105_v26, 4  ;;  %v4079_v47 = vrot.slane %v1523_v28, 9  ;;  %v1089_v22 = vsel %vm5057_vm12, %v1084_v38, %v1088_v32  ;;  %4480 = vmatprep.mubr.msk.bf16.mxu0 %vm1214_vm13, %v4087_v40  ;;  %v1618_v54 = vrot.slane %v5305_v13, 5  ;;  %v5351_v55 = vld [vmem:[#allocation2 + $0x80] sm:$0xf] }
 0x145   : > { %v1097_v51 = vor.u32 %v1096_v7, %v1093_v31  ;;  %v1110_v53 = vrot.slane %v1108_v8, 5  ;;  %v4033_v59 = vcombine.low %v1075_v39, %v1089_v22  ;;  %v1116_v61 = vrot.slane %v1114_v44, 5  ;;  %v5339_v39 = vld [vmem:[#allocation2 + $0x70] sm:$0xf]  ;;  %v5357_v44 = vld [vmem:[#allocation2 + $0x88] sm:$0xf] }
 0x146   : > { %v4080_v62 = vrot.slane %v1524_v19, 9  ;;  %v1622_v24 = vrot.slane %v5310_v60, 5  ;;  %v1619_v1 = vsel %vm5047_vm11, %v4079_v47, %v1618_v54  ;;  %v2043_v52 = vshrl.u32 %v2010_v34, 16 }
 0x147   : > { %v1098_v37 = vrot.slane %v1097_v51, 4  ;;  %v1111_v63 = vor.u32 %v1110_v53, %v1107_v43  ;;  %4436 = vmatprep.mubr.msk.bf16.mxu1 %vm1214_vm13, %v4033_v59  ;;  %v2046_v3 = vshll.u32 %v2010_v34, 16  ;;  %v2052_v16 = vshll.u32 %v5318_v41, 16 }
 0x148   : > { %v1623_v2 = vsel %vm5047_vm11, %v4080_v62, %v1622_v24  ;;  %v2057_v17 = vshrl.u32 %v2012_v50, 16  ;;  %v2045_v49 = vrot.slane %v2043_v52, 4  ;;  %v2060_v12 = vshll.u32 %v2012_v50, 16 }
 0x149   : > { %v1103_v48 = vsel %vm5057_vm12, %v1098_v37, %v1102_v4  ;;  %v1112_v32 = vrot.slane %v1111_v63, 4  ;;  %v4088_v36 = vcombine.low %v1619_v1, %v1623_v2  ;;  %v2048_v45 = vrot.slane %v2046_v3, 5  ;;  %v2014_v63 = vld [vmem:[#allocation2 + $0x18] sm:$0xf] }
 0x14a   : > { %v2059_v10 = vrot.slane %v2057_v17, 4  ;;  %v1119_v20 = vshrl.u32 %v5339_v39, 16  ;;  %v1122_v23 = vshll.u32 %v5339_v39, 16  ;;  %v2062_v30 = vrot.slane %v2060_v12, 5  ;;  %v5372_v12 = vld [vmem:[#allocation2 + $0x24] sm:$0x1] }
 0x14b   : > { %v1117_v18 = vsel %vm5057_vm12, %v1112_v32, %v1116_v61  ;;  %4481 = vmatmul.mubr.msk.bf16.gmra.mxu0 %vm1214_vm13, %v4088_v36  ;;  %v2049_v19 = vor.u32 %v2048_v45, %v2045_v49  ;;  %v2066_v31 = vshll.u32 %v5333_v29, 16  ;;  %v2054_v26 = vrot.slane %v2052_v16, 5  ;;  %v5369_v32 = vld [vmem:[#allocation2 + $0x1c] sm:$0x1]  ;;  %v2016_v36 = vld [vmem:[#allocation2 + $0x20] sm:$0xf] }
 0x14c   : > { %v4034_v28 = vcombine.low %v1103_v48, %v1117_v18  ;;  %v1121_v34 = vrot.slane %v1119_v20, 4  ;;  %v1124_v38 = vrot.slane %v1122_v23, 5  ;;  %v1133_v40 = vshrl.u32 %v5343_v14, 16 }
 0x14d   : > { %v2050_v7 = vrot.slane %v2049_v19, 4  ;;  %v2063_v8 = vor.u32 %v2062_v30, %v2059_v10  ;;  %v1128_v4 = vshll.u32 %v5277_v25, 16  ;;  %v1136_v43 = vshll.u32 %v5343_v14, 16  ;;  %v2018_v19 = vld [vmem:[#allocation2 + $0x28] sm:$0xf] }
 0x14e   : > { %4437 = vmatmul.mubr.msk.bf16.gmra.mxu1 %vm1214_vm13, %v4034_v28  ;;  %v1125_v47 = vor.u32 %v1124_v38, %v1121_v34  ;;  %v1135_v50 = vrot.slane %v1133_v40, 4  ;;  %v1142_v22 = vshll.u32 %v5284_v56, 16  ;;  %v1147_v51 = vshrl.u32 %v5351_v55, 16 }
 0x14f   : > { %v2064_v53 = vrot.slane %v2063_v8, 4  ;;  %v2068_v54 = vrot.slane %v2066_v31, 5  ;;  %v1138_v59 = vrot.slane %v1136_v43, 5  ;;  %v1150_v61 = vshll.u32 %v5351_v55, 16  ;;  %v5379_v8 = vld [vmem:[#allocation2 + $0x2c] sm:$0x1] }
 0x150   : > { %v2055_v62 = vsel %vm5057_vm12, %v2050_v7, %v2054_v26  ;;  %v1126_v24 = vrot.slane %v1125_v47, 4  ;;  %v1149_v25 = vrot.slane %v1147_v51, 4  ;;  %v1156_v37 = vshll.u32 %v5305_v13, 16 }
 0x151   : > { %v2069_v1 = vsel %vm5057_vm12, %v2064_v53, %v2068_v54  ;;  %v1139_v52 = vor.u32 %v1138_v59, %v1135_v50  ;;  %v1152_v56 = vrot.slane %v1150_v61, 5  ;;  %v1161_v2 = vshrl.u32 %v5357_v44, 16 }
 0x152   : > { %v4117_v3 = vcombine.low %v2055_v62, %v2069_v1  ;;  %v1130_v16 = vrot.slane %v1128_v4, 5  ;;  %v1144_v17 = vrot.slane %v1142_v22, 5  ;;  %v1164_v48 = vshll.u32 %v5357_v44, 16  ;;  %v2020_v62 = vld [vmem:[#allocation2 + $0x30] sm:$0xf] }
 0x153   : > { %v1140_v49 = vrot.slane %v1139_v52, 4  ;;  %v1153_v45 = vor.u32 %v1152_v56, %v1149_v25  ;;  %v1163_v10 = vrot.slane %v1161_v2, 4  ;;  %v1170_v13 = vshll.u32 %v5310_v60, 16  ;;  %v5390_v56 = vld [vmem:[#allocation2 + $0x34] sm:$0x1] }
 0x154   : > { %4508 = vmatprep.mubr.msk.bf16.mxu0 %vm1214_vm13, %v4117_v3  ;;  %v1131_v18 = vsel %vm5057_vm12, %v1126_v24, %v1130_v16  ;;  %v1166_v20 = vrot.slane %v1164_v48, 5  ;;  %v2071_v23 = vshrl.u32 %v2014_v63, 16  ;;  %v2074_v28 = vshll.u32 %v2014_v63, 16  ;;  %v4718_v63 = vld [vmem:[#allocation2] sm:$0xf] }
 0x155   : > { %v1145_v30 = vsel %vm5057_vm12, %v1140_v49, %v1144_v17  ;;  %v1154_v31 = vrot.slane %v1153_v45, 4  ;;  %v1158_v26 = vrot.slane %v1156_v37, 5  ;;  %v1172_v34 = vrot.slane %v1170_v13, 5 }
 0x156   : > { %v4035_v38 = vcombine.low %v1131_v18, %v1145_v30  ;;  %v1167_v40 = vor.u32 %v1166_v20, %v1163_v10  ;;  %v2073_v60 = vrot.slane %v2071_v23, 4  ;;  %v2076_v7 = vrot.slane %v2074_v28, 5  ;;  %v5396_v28 = vld [vmem:[#allocation2 + $0x3c] sm:$0x1] }
 0x157   : > { %v1159_v4 = vsel %vm5057_vm12, %v1154_v31, %v1158_v26  ;;  %v2080_v43 = vshll.u32 %v5369_v32, 16  ;;  %v2085_v47 = vshrl.u32 %v2016_v36, 16  ;;  %v2088_v50 = vshll.u32 %v2016_v36, 16  ;;  %v2022_v36 = vld [vmem:[#allocation2 + $0x38] sm:$0xf] }
 0x158   : > { %4440 = vmatprep.mubr.msk.bf16.mxu1 %vm1214_vm13, %v4035_v38  ;;  %v1168_v22 = vrot.slane %v1167_v40, 4  ;;  %v2077_v51 = vor.u32 %v2076_v7, %v2073_v60  ;;  %v2094_v53 = vshll.u32 %v5372_v12, 16  ;;  %v2099_v54 = vshrl.u32 %v2018_v19, 16  ;;  %v4693_v40 = vld [vmem:[%s6208_s3 + $0x60] sm:$0xff]  }
 0x159   : > { %v2087_v59 = vrot.slane %v2085_v47, 4  ;;  %v2090_v61 = vrot.slane %v2088_v50, 5  ;;  %v2102_v24 = vshll.u32 %v2018_v19, 16  ;;  %v2108_v25 = vshll.u32 %v5379_v8, 16  ;;  %v2024_v19 = vld [vmem:[#allocation2 + $0x40] sm:$0xf] }
 0x15a   : > { %v1173_v37 = vsel %vm5057_vm12, %v1168_v22, %v1172_v34  ;;  %v4047_v1 = vcombine.low %v4718_v63, %v5153_v11  ;;  %v2078_v52 = vrot.slane %v2077_v51, 4  ;;  %v2101_v2 = vrot.slane %v2099_v54, 4  ;;  %v5401_v34 = vld [vmem:[#allocation2 + $0x44] sm:$0x1]  ;;  %v2026_v47 = vld [vmem:[#allocation2 + $0x58] sm:$0xf] }
 0x15b   : > { %v4036_v3 = vcombine.low %v1159_v4, %v1173_v37  ;;  %v2082_v16 = vrot.slane %v2080_v43, 5  ;;  %v2091_v17 = vor.u32 %v2090_v61, %v2087_v59  ;;  %v2104_v48 = vrot.slane %v2102_v24, 5  ;;  %v5410_v50 = vld [vmem:[#allocation2 + $0x5c] sm:$0x1] }
 0x15c   : > { %v2096_v49 = vrot.slane %v2094_v53, 5  ;;  %v2110_v45 = vrot.slane %v2108_v25, 5  ;;  %v2113_v10 = vshrl.u32 %v2020_v62, 16  ;;  %v2116_v13 = vshll.u32 %v2020_v62, 16  ;;  %v2028_v53 = vld [vmem:[#allocation2 + $0x60] sm:$0xf] }
 0x15d   : > { %4441 = vmatmul.mubr.msk.bf16.gmra.mxu1 %vm1214_vm13, %v4036_v3  ;;  %v2083_v18 = vsel %vm5057_vm12, %v2078_v52, %v2082_v16  ;;  %v2092_v20 = vrot.slane %v2091_v17, 4  ;;  %v2105_v11 = vor.u32 %v2104_v48, %v2101_v2  ;;  %v2122_v23 = vshll.u32 %v5390_v56, 16  ;;  %v4688_v2 = vld [vmem:[%s6208_s3 + $0x30] sm:$0xff]   ;;  %v5423_v16 = vld [vmem:[#allocation2 + $0x64] sm:$0x1] }
 0x15e   : > { %4448 = vmatprep.mubr.msk.bf16.mxu1 %vm1214_vm13, %v4047_v1  ;;  %v2115_v30 = vrot.slane %v2113_v10, 4  ;;  %v2118_v31 = vrot.slane %v2116_v13, 5  ;;  %v4048_v26 = vcombine.low %v5175_v46, %v5184_v0  ;;  %v2127_v38 = vshrl.u32 %v2022_v36, 16 }
 0x15f   : > { %v2097_v60 = vsel %vm5057_vm12, %v2092_v20, %v2096_v49  ;;  %v2106_v7 = vrot.slane %v2105_v11, 4  ;;  %v4049_v4 = vcombine.low %v5212_v27, %v5220_v33  ;;  %v2130_v43 = vshll.u32 %v2022_v36, 16 }
 0x160   : > { %v4118_v22 = vcombine.low %v2083_v18, %v2097_v60  ;;  %v2119_v46 = vor.u32 %v2118_v31, %v2115_v30  ;;  %v2129_v0 = vrot.slane %v2127_v38, 4  ;;  %v2141_v51 = vshrl.u32 %v2024_v19, 16  ;;  %v2030_v18 = vld [vmem:[#allocation2 + $0x68] sm:$0xf]  ;;  %v2032_v38 = vld [vmem:[#allocation2 + $0x70] sm:$0xf] }
 0x161   : > { %v2124_v54 = vrot.slane %v2122_v23, 5  ;;  %v2132_v59 = vrot.slane %v2130_v43, 5  ;;  %v2136_v61 = vshll.u32 %v5396_v28, 16  ;;  %v2144_v62 = vshll.u32 %v2024_v19, 16  ;;  %v5439_v60 = vld [vmem:[%s6208_s3 + $0x58] sm:$0xff]  }
 0x162   : > { %4509 = vmatmul.mubr.msk.bf16.vlgmr.msra.gmra.mxu0 %vm1214_vm13, %v4118_v22  ;;  %v2111_v24 = vsel %vm5057_vm12, %v2106_v7, %v2110_v45  ;;  %v2120_v27 = vrot.slane %v2119_v46, 4  ;;  %v2143_v33 = vrot.slane %v2141_v51, 4  ;;  %v2155_v25 = vshrl.u32 %v2026_v47, 16 }
 0x163   : > { %v2133_v37 = vor.u32 %v2132_v59, %v2129_v0  ;;  %v2146_v63 = vrot.slane %v2144_v62, 5  ;;  %v2150_v1 = vshll.u32 %v5401_v34, 16  ;;  %v2158_v52 = vshll.u32 %v2026_v47, 16  ;;  %4545 = vmatpush3.bf16.msra.mxu0 %v5200_v6  ;;  %v5430_v6 = vld [vmem:[%s6208_s3 + $0x88] sm:$0xff]  }
 0x164   : > { %v2125_v3 = vsel %vm5057_vm12, %v2120_v27, %v2124_v54  ;;  %v2157_v17 = vrot.slane %v2155_v25, 4  ;;  %v2164_v48 = vshll.u32 %v5410_v50, 16  ;;  %v2169_v36 = vshrl.u32 %v2028_v53, 16  ;;  %4546 = vmatprep.subr.bf16.mxu0 %v4693_v40  ;;  %v5447_v0 = vld [vmem:[#allocation2 + $0x6c] sm:$0x1] }
 0x165   : > { %v4119_v49 = vcombine.low %v2111_v24, %v2125_v3  ;;  %4449 = vmatmul.mubr.msk.bf16.vlgmr.msra.gmra.mxu1 %vm1214_vm13, %v4048_v26  ;;  %v2134_v45 = vrot.slane %v2133_v37, 4  ;;  %v2147_v10 = vor.u32 %v2146_v63, %v2143_v33  ;;  %v2160_v13 = vrot.slane %v2158_v52, 5  ;;  %v4719_v27 = vld [vmem:[#allocation2 + $0x50] sm:$0xf] }
 0x166   : > { %4485 = vmatpush3.bf16.msra.mxu1 %v5274_v42  ;;  %4452 = vmatprep.mubr.msk.bf16.mxu1 %vm1214_vm13, %v4049_v4  ;;  %v2138_v20 = vrot.slane %v2136_v61, 5  ;;  %v2171_v11 = vrot.slane %v2169_v36, 4  ;;  %v2172_v23 = vshll.u32 %v2028_v53, 16  ;;  %v2152_v30 = vrot.slane %v2150_v1, 5  ;;  %v2034_v53 = vld [vmem:[#allocation2 + $0x78] sm:$0xf] }
 0x167   : > { %4512 = vmatprep.mubr.msk.bf16.mxu0 %vm1214_vm13, %v4119_v49  ;;  %v2148_v19 = vrot.slane %v2147_v10, 4  ;;  %v2161_v31 = vor.u32 %v2160_v13, %v2157_v17  ;;  %v2178_v26 = vshll.u32 %v5423_v16, 16  ;;  %4486 = vmatprep.subr.bf16.mxu1 %v4688_v2  ;;  %v2166_v7 = vrot.slane %v2164_v48, 5  ;;  %v5450_v61 = vld [vmem:[#allocation2 + $0x74] sm:$0x1] }
 0x168   : > { %v2139_v42 = vsel %vm5057_vm12, %v2134_v45, %v2138_v20  ;;  %v2174_v4 = vrot.slane %v2172_v23, 5  ;;  %v2183_v43 = vshrl.u32 %v2030_v18, 16  ;;  %4547 = vmatpush3.bf16.msra.mxu0 %v4693_v40  ;;  %v4050_v46 = vcombine.low %v5238_v57, %v5246_v5  ;;  %v2036_v57 = vld [vmem:[#allocation2 + $0x80] sm:$0xf]  ;;  %v5458_v48 = vld [vmem:[#allocation2 + $0x7c] sm:$0x1] }
 0x169   : > { %v2153_v47 = vsel %vm5057_vm12, %v2148_v19, %v2152_v30  ;;  %v2162_v22 = vrot.slane %v2161_v31, 4  ;;  %v2186_v51 = vshll.u32 %v2030_v18, 16  ;;  %4584 = vmatprep.subr.bf16.mxu0 %v5430_v6  ;;  %v2197_v24 = vshrl.u32 %v2032_v38, 16  ;;  %v5465_v45 = vld [vmem:[#allocation2 + $0x84] sm:$0x1] }
 0x16a   : > { %v4120_v54 = vcombine.low %v2139_v42, %v2153_v47  ;;  %v2175_v59 = vor.u32 %v2174_v4, %v2171_v11  ;;  %v2185_v62 = vrot.slane %v2183_v43, 4  ;;  %4487 = vmatpush3.bf16.msra.mxu1 %v4688_v2  ;;  %v2180_v40 = vrot.slane %v2178_v26, 5  ;;  %v2038_v19 = vld [vmem:[#allocation2 + $0x88] sm:$0xf]  ;;  %v2040_v47 = vld [vmem:[#allocation2 + $0x90] sm:$0xf] }
 0x16b   : > { %v4051_v33 = vcombine.low %v4719_v27, %v5269_v35  ;;  %v2188_v25 = vrot.slane %v2186_v51, 5  ;;  %v2200_v37 = vshll.u32 %v2032_v38, 16  ;;  %4524 = vmatprep.subr.bf16.mxu1 %v5439_v60  ;;  %v2192_v63 = vshll.u32 %v5447_v0, 16 }
 0x16c   : > { %4513 = vmatmul.mubr.msk.bf16.gmra.mxu0 %vm1214_vm13, %v4120_v54  ;;  %v2176_v5 = vrot.slane %v2175_v59, 4  ;;  %v2199_v1 = vrot.slane %v2197_v24, 4  ;;  %v2211_v52 = vshrl.u32 %v2034_v53, 16  ;;  %v2206_v17 = vshll.u32 %v5450_v61, 16  ;;  %v5478_v24 = vld [vmem:[#allocation2 + $0x8c] sm:$0x1] }
 0x16d   : > { %4453 = vmatmul.mubr.msk.bf16.gmra.mxu1 %vm1214_vm13, %v4050_v46  ;;  %v2189_v3 = vor.u32 %v2188_v25, %v2185_v62  ;;  %v2202_v2 = vrot.slane %v2200_v37, 5  ;;  %v2214_v35 = vshll.u32 %v2034_v53, 16  ;;  %v2167_v36 = vsel %vm5057_vm12, %v2162_v22, %v2166_v7  ;;  %v5480_v25 = vld [vmem:[#allocation2 + $0x94] sm:$0x1] }
 0x16e   : > { %v2181_v49 = vsel %vm5057_vm12, %v2176_v5, %v2180_v40  ;;  %4456 = vmatprep.mubr.msk.bf16.mxu1 %vm1214_vm13, %v4051_v33  ;;  %v2213_v10 = vrot.slane %v2211_v52, 4  ;;  %v2225_v13 = vshrl.u32 %v2036_v57, 16  ;;  %v2194_v30 = vrot.slane %v2192_v63, 5 }
 0x16f   : > { %v4121_v18 = vcombine.low %v2167_v36, %v2181_v49  ;;  %v2190_v20 = vrot.slane %v2189_v3, 4  ;;  %v2203_v11 = vor.u32 %v2202_v2, %v2199_v1  ;;  %v2216_v23 = vrot.slane %v2214_v35, 5  ;;  %v2444_v35 = vld [vmem:[#allocation2 + $0x10] sm:$0xe] }
 0x170   : > { %v2220_v31 = vshll.u32 %v5458_v48, 16  ;;  %v2227_v26 = vrot.slane %v2225_v13, 4  ;;  %v2228_v38 = vshll.u32 %v2036_v57, 16  ;;  %v2208_v7 = vrot.slane %v2206_v17, 5  ;;  %v2443_v17 = vld [vmem:[#allocation2 + $0x8] sm:$0xe] }
 0x171   : > { %4516 = vmatprep.mubr.msk.bf16.mxu0 %vm1214_vm13, %v4121_v18  ;;  %v2204_v42 = vrot.slane %v2203_v11, 4  ;;  %v2217_v4 = vor.u32 %v2216_v23, %v2213_v10  ;;  %v2234_v43 = vshll.u32 %v5465_v45, 16  ;;  %v2195_v22 = vsel %vm5057_vm12, %v2190_v20, %v2194_v30 }
 0x172   : > { %v2230_v46 = vrot.slane %v2228_v38, 5  ;;  %v4052_v51 = vcombine.low %v5286_v58, %v5298_v9  ;;  %v2239_v53 = vshrl.u32 %v2038_v19, 16  ;;  %v4053_v62 = vcombine.low %v5339_v39, %v5343_v14 }
 0x173   : > { %v2209_v54 = vsel %vm5057_vm12, %v2204_v42, %v2208_v7  ;;  %v2218_v59 = vrot.slane %v2217_v4, 4  ;;  %v2242_v40 = vshll.u32 %v2038_v19, 16  ;;  %v2253_v57 = vshrl.u32 %v2040_v47, 16  ;;  %v4695_v42 = vld [vmem:[#allocation2 + $0x8] ss:$8 sps:$4 sm:$0xff]  }
 0x174   : > { %v4122_v27 = vcombine.low %v2195_v22, %v2209_v54  ;;  %v2231_v33 = vor.u32 %v2230_v46, %v2227_v26  ;;  %v2241_v37 = vrot.slane %v2239_v53, 4  ;;  %v2222_v5 = vrot.slane %v2220_v31, 5  ;;  %v2445_v7 = vld [vmem:[#allocation2 + $0x18] sm:$0xe]  ;;  %v2447_v22 = vld [vmem:[#allocation2 + $0x28] sm:$0xe] }
 0x175   : > { %4457 = vmatmul.mubr.msk.bf16.gmra.mxu1 %vm1214_vm13, %v4052_v51  ;;  %v2244_v58 = vrot.slane %v2242_v40, 5  ;;  %v2256_v9 = vshll.u32 %v2040_v47, 16  ;;  %v2236_v1 = vrot.slane %v2234_v43, 5  ;;  %v2248_v39 = vshll.u32 %v5478_v24, 16  ;;  %v4692_v46 = vld [vmem:[#allocation2 + $0x10] ss:$8 sps:$4 sm:$0xff]  }
 0x176   : > { %4517 = vmatmul.mubr.msk.bf16.gmra.mxu0 %vm1214_vm13, %v4122_v27  ;;  %v2232_v63 = vrot.slane %v2231_v33, 4  ;;  %4460 = vmatprep.mubr.msk.bf16.mxu1 %vm1214_vm13, %v4053_v62  ;;  %v2255_v14 = vrot.slane %v2253_v57, 4  ;;  %v2262_v2 = vshll.u32 %v5480_v25, 16  ;;  %v2223_v36 = vsel %vm5057_vm12, %v2218_v59, %v2222_v5  ;;  %v2448_v53 = vld [vmem:[#allocation2 + $0x30] sm:$0xe] }
 0x177   : > { %v2245_v52 = vor.u32 %v2244_v58, %v2241_v37  ;;  %v2258_v3 = vrot.slane %v2256_v9, 5  ;;  %v2250_v20 = vrot.slane %v2248_v39, 5  ;;  %v4135_v11 = vrot.slane %v2443_v17, 9  ;;  %v4699_v57 = vld [vmem:[#allocation2 + $0x18] ss:$8 sps:$4 sm:$0xff]   ;;  %v4707_v5 = vld [vmem:[%s6208_s3 + $0x50] sm:$0xff]  }
 0x178   : > { %v2237_v49 = vsel %vm5057_vm12, %v2232_v63, %v2236_v1  ;;  %v2493_v23 = vrot.slane %v5318_v41, 5  ;;  %v4136_v19 = vrot.slane %v2444_v35, 9  ;;  %v2264_v31 = vrot.slane %v2262_v2, 5  ;;  %v4700_v9 = vld [vmem:[#allocation2 + $0x28] ss:$8 sps:$4 sm:$0xff]   ;;  %v5550_v17 = vld [vmem:[%s6208_s3 + $0x78] sm:$0xff]  }
 0x179   : > { %v4123_v10 = vcombine.low %v2223_v36, %v2237_v49  ;;  %v2246_v13 = vrot.slane %v2245_v52, 4  ;;  %v2259_v18 = vor.u32 %v2258_v3, %v2255_v14  ;;  %v4054_v26 = vcombine.low %v5351_v55, %v5357_v44  ;;  %v2446_v55 = vld [vmem:[#allocation2 + $0x20] sm:$0xe]  ;;  %v4697_v2 = vld [vmem:[#allocation2 + $0x30] ss:$8 sps:$4 sm:$0xff]  }
 0x17a   : > { %v2497_v38 = vrot.slane %v5333_v29, 5  ;;  %v5503_v41 = vsel %vm5047_vm11, %v4135_v11, %v2493_v23  ;;  %v4137_v51 = vrot.slane %v2445_v7, 9  ;;  %v2501_v54 = vrot.slane %v5369_v32, 5  ;;  %v2450_v1 = vld [vmem:[#allocation2 + $0x40] sm:$0xe] }
 0x17b   : > { %4520 = vmatprep.mubr.msk.bf16.mxu0 %vm1214_vm13, %v4123_v10  ;;  %v2260_v30 = vrot.slane %v2259_v18, 4  ;;  %v2251_v4 = vsel %vm5057_vm12, %v2246_v13, %v2250_v20  ;;  %v4138_v59 = vrot.slane %v2446_v55, 9  ;;  %v2505_v62 = vrot.slane %v5372_v12, 5  ;;  %v2449_v12 = vld [vmem:[#allocation2 + $0x38] sm:$0xe]  ;;  %v4712_v52 = vld [vmem:[%s6208_s3 + $0x80] sm:$0xff]  }
 0x17c   : > { %v5507_v47 = vsel %vm5047_vm11, %v4136_v19, %v2497_v38  ;;  %v4139_v40 = vrot.slane %v2447_v22, 9  ;;  %v2509_v27 = vrot.slane %v5379_v8, 5  ;;  %v4140_v33 = vrot.slane %v2448_v53, 9  ;;  %v4696_v14 = vld [vmem:[#allocation2 + $0x20] ss:$8 sps:$4 sm:$0xff]  }
 0x17d   : > { %v2265_v43 = vsel %vm5057_vm12, %v2260_v30, %v2264_v31  ;;  %4461 = vmatmul.mubr.msk.bf16.gmra.mxu1 %vm1214_vm13, %v4054_v26  ;;  %v4151_v44 = vcombine.low %v5503_v41, %v5507_v47  ;;  %v2513_v37 = vrot.slane %v5390_v56, 5  ;;  %v5523_v58 = vsel %vm5047_vm11, %v4137_v51, %v2501_v54  ;;  %v4703_v13 = vld [vmem:[#allocation2 + $0x38] ss:$8 sps:$4 sm:$0xff]   ;;  %v2454_v18 = vld [vmem:[#allocation2 + $0x70] sm:$0xe] }
 0x17e   : > { %v4124_v29 = vcombine.low %v2251_v4, %v2265_v43  ;;  %4488 = vmatprep.mubr.msk.bf16.mxu1 %vm1214_vm13, %v4695_v42  ;;  %v5527_v32 = vsel %vm5047_vm11, %v4138_v59, %v2505_v62  ;;  %v5533_v56 = vsel %vm5047_vm11, %v4139_v40, %v2509_v27  ;;  %v4141_v3 = vrot.slane %v2449_v12, 9  ;;  %v4704_v20 = vld [vmem:[#allocation2 + $0x58] ss:$8 sps:$4 sm:$0xff]   ;;  %v5574_v26 = vld [vmem:[#allocation2 + $0x14] sm:$0x1] }
 0x17f   : > { %v4152_v8 = vcombine.low %v5523_v58, %v5527_v32  ;;  %v5537_v63 = vsel %vm5047_vm11, %v4140_v33, %v2513_v37  ;;  %v2517_v35 = vrot.slane %v5396_v28, 5  ;;  %v4142_v36 = vrot.slane %v2450_v1, 9  ;;  %v2453_v28 = vld [vmem:[#allocation2 + $0x68] sm:$0xe]  ;;  %v3375_v38 = vld [vmem:[#allocation2 + $0x10] sm:$0xe] }
 0x180   : > { %4521 = vmatmul.mubr.msk.bf16.gmra.mxu0 %vm1214_vm13, %v4124_v29  ;;  %v4153_v39 = vcombine.low %v5533_v56, %v5537_v63  ;;  %v4701_v11 = vld [vmem:[#allocation2 + $0x40] ss:$8 sps:$4 sm:$0xff]   ;;  %v2533_v23 = vrot.slane %v5447_v0, 5  ;;  %v4146_v19 = vrot.slane %v2454_v18, 9  ;;  %v2537_v31 = vrot.slane %v5450_v61, 5 }
 0x181   : > { %4548 = vmatprep.mubr.msk.bf16.mxu0 %vm1214_vm13, %v4692_v46  ;;  %v5559_v49 = vsel %vm5047_vm11, %v4141_v3, %v2517_v35  ;;  %v4702_v30 = vld [vmem:[#allocation2 + $0x60] ss:$8 sps:$4 sm:$0xff]   ;;  %v5586_v43 = vld [vmem:[#allocation2 + $0x1c] sm:$0x1]  ;;  %v3376_v55 = vld [vmem:[#allocation2 + $0x18] sm:$0xe] }
 0x182   : > { %v5582_v7 = vsel %vm5047_vm11, %v4146_v19, %v2537_v31  ;;  %v4708_v0 = vld [vmem:[#allocation2 + $0x68] ss:$8 sps:$4 sm:$0xff]   ;;  %v4709_v61 = vld [vmem:[#allocation2 + $0x78] ss:$8 sps:$4 sm:$0xff]   ;;  %v4205_v29 = vrot.slane %v3375_v38, 9  ;;  %v3425_v22 = vrot.slane %v5574_v26, 5 }
 0x183   : > { %v5589_v46 = vld [vmem:[#allocation2 + $0x24] sm:$0x1]  ;;  %v3377_v51 = vld [vmem:[#allocation2 + $0x20] sm:$0xe]  ;;  %v5592_v53 = vld [vmem:[#allocation2 + $0x2c] sm:$0x1] }
 0x184   : > { %v3378_v54 = vld [vmem:[#allocation2 + $0x28] sm:$0xe]  ;;  %v4705_v59 = vld [vmem:[#allocation2 + $0x70] ss:$8 sps:$4 sm:$0xff]   ;;  %v4206_v40 = vrot.slane %v3376_v55, 9  ;;  %v3429_v27 = vrot.slane %v5586_v43, 5  ;;  %v3426_v1 = vsel %vm5047_vm11, %v4205_v29, %v3425_v22 }
 0x185   : > { %4489 = vmatmul.mubr.msk.bf16.vlgmr.msra.gmra.mxu1 %vm1214_vm13, %v4699_v57  ;;  %v4706_v62 = vld [vmem:[#allocation2 + $0x80] ss:$8 sps:$4 sm:$0xff]   ;;  %v4207_v33 = vrot.slane %v3377_v51, 9  ;;  %v3433_v37 = vrot.slane %v5589_v46, 5  ;;  %v5597_v57 = vld [vmem:[#allocation2 + $0x34] sm:$0x1] }
 0x186   : > { %4525 = vmatpush3.bf16.msra.mxu1 %v5439_v60  ;;  %4492 = vmatprep.mubr.msk.bf16.mxu1 %vm1214_vm13, %v4700_v9  ;;  %v2521_v60 = vrot.slane %v5401_v34, 5  ;;  %v3379_v12 = vld [vmem:[#allocation2 + $0x30] sm:$0xe]  ;;  %v3380_v9 = vld [vmem:[#allocation2 + $0x38] sm:$0xe]  ;;  %v2541_v63 = vrot.slane %v5458_v48, 5 }
 0x187   : > { %4526 = vmatprep.subr.bf16.mxu1 %v4707_v5  ;;  %v5605_v3 = vld [vmem:[#allocation2 + $0x44] sm:$0x1]  ;;  %v4713_v35 = vld [vmem:[#allocation2 + $0x88] ss:$8 sps:$4 sm:$0xff]   ;;  %v5614_v18 = vld [vmem:[#allocation2 + $0x6c] sm:$0x1] }
 0x188   : > { %4549 = vmatmul.mubr.msk.bf16.vlgmr.msra.gmra.mxu0 %vm1214_vm13, %v4696_v14  ;;  %v5563_v10 = vsel %vm5047_vm11, %v4142_v36, %v2521_v60  ;;  %v4208_v14 = vrot.slane %v3378_v54, 9  ;;  %v3381_v36 = vld [vmem:[#allocation2 + $0x40] sm:$0xe]  ;;  %v3382_v60 = vld [vmem:[#allocation2 + $0x48] sm:$0xe]  ;;  %v4209_v19 = vrot.slane %v3379_v12, 9 }
 0x189   : > { %4552 = vmatprep.mubr.msk.bf16.mxu0 %vm1214_vm13, %v4697_v2  ;;  %4585 = vmatpush3.bf16.msra.mxu0 %v5430_v6  ;;  %v4154_v34 = vcombine.low %v5559_v49, %v5563_v10  ;;  %v4145_v6 = vrot.slane %v2453_v28, 9  ;;  %v5607_v2 = vld [vmem:[#allocation2 + $0x4c] sm:$0x1]  ;;  %v5610_v28 = vld [vmem:[#allocation2 + $0x64] sm:$0x1]  ;;  %v4210_v55 = vrot.slane %v3380_v9, 9 }
 0x18a   : > { %4527 = vmatpush3.bf16.msra.mxu1 %v4707_v5  ;;  %4586 = vmatprep.subr.bf16.mxu0 %v4712_v52  ;;  %v5599_v5 = vld [vmem:[#allocation2 + $0x3c] sm:$0x1]  ;;  %v4710_v38 = vld [vmem:[#allocation2 + $0x90] ss:$8 sps:$4 sm:$0xff]   ;;  %v4211_v51 = vrot.slane %v3381_v36, 9  ;;  %v3449_v54 = vrot.slane %v5605_v3, 5 }
 0x18b   : > { %4564 = vmatprep.subr.bf16.mxu1 %v5550_v17  ;;  %v5578_v42 = vsel %vm5047_vm11, %v4145_v6, %v2533_v23  ;;  %v3384_v6 = vld [vmem:[#allocation2 + $0x68] sm:$0xe]  ;;  %v5618_v23 = vsel %vm5047_vm11, %v4207_v33, %v3433_v37  ;;  %v5620_v31 = vld [vmem:[#allocation2 + $0x7c] sm:$0x1]  ;;  %v3445_v29 = vrot.slane %v5599_v5, 5  ;;  %v3457_v33 = vrot.slane %v5610_v28, 5 }
 0x18c   : > { %v4156_v4 = vcombine.low %v5578_v42, %v5582_v7  ;;  %v3386_v22 = vld [vmem:[#allocation2 + $0x78] sm:$0xe]  ;;  %v4214_v37 = vrot.slane %v3384_v6, 9  ;;  %v3461_v12 = vrot.slane %v5614_v18, 5  ;;  %v5637_v9 = vld [vmem:[#allocation2 + $0x74] sm:$0x1] }
 0x18d   : > { %4493 = vmatmul.mubr.msk.bf16.gmra.mxu1 %vm1214_vm13, %v4703_v13  ;;  %4587 = vmatpush3.bf16.msra.mxu0 %v4712_v52  ;;  %v3437_v52 = vrot.slane %v5592_v53, 5  ;;  %v3430_v13 = vsel %vm5047_vm11, %v4206_v40, %v3429_v27  ;;  %v2451_v40 = vld [vmem:[#allocation2 + $0x58] sm:$0xe]  ;;  %v3469_v36 = vrot.slane %v5620_v31, 5  ;;  %v3012_v15 = vshll.u32 %v5589_v46, 16 }
 0x18e   : > { %4496 = vmatprep.mubr.msk.bf16.mxu1 %vm1214_vm13, %v4704_v20  ;;  %v3383_v20 = vld [vmem:[#allocation2 + $0x60] sm:$0xe]  ;;  %v3040_v42 = vshll.u32 %v5597_v57, 16 }
 0x18f   : > { %v4213_v27 = vrot.slane %v3383_v20, 9  ;;  %v5655_v20 = vsel %vm5047_vm11, %v4211_v51, %v3449_v54  ;;  %v4715_v54 = vld [vmem:[%s6208_s3 + $0x70] sm:$0xff]  }
 0x190   : > { %4553 = vmatmul.mubr.msk.bf16.gmra.mxu0 %vm1214_vm13, %v4701_v11  ;;  %v4221_v11 = vcombine.low %v3426_v1, %v3430_v13  ;;  %v5650_v13 = vld [vmem:[#allocation2 + $0x8c] sm:$0x1] }
 0x191   : > { %4556 = vmatprep.mubr.msk.bf16.mxu0 %vm1214_vm13, %v4702_v30  ;;  %v2452_v30 = vld [vmem:[#allocation2 + $0x60] sm:$0xe] }
 0x192   : > { %v4144_v1 = vrot.slane %v2452_v30, 9  ;;  %v3388_v30 = vld [vmem:[#allocation2 + $0x88] sm:$0xe] }
 0x195   : > { %4497 = vmatmul.mubr.msk.bf16.gmra.mxu1 %vm1214_vm13, %v4708_v0  ;;  %v5624_v0 = vsel %vm5047_vm11, %v4208_v14, %v3437_v52  ;;  %v2529_v14 = vrot.slane %v5423_v16, 5  ;;  %v3385_v52 = vld [vmem:[#allocation2 + $0x70] sm:$0xe]  ;;  %v3387_v16 = vld [vmem:[#allocation2 + $0x80] sm:$0xe] }
 0x196   : > { %4500 = vmatprep.mubr.msk.bf16.mxu1 %vm1214_vm13, %v4709_v61  ;;  %v3441_v61 = vrot.slane %v5597_v57, 5  ;;  %v4222_v41 = vcombine.low %v5618_v23, %v5624_v0  ;;  %v4143_v23 = vrot.slane %v2451_v40, 9  ;;  %v5664_v0 = vsel %vm5047_vm11, %v4213_v27, %v3457_v33  ;;  %v2455_v27 = vld [vmem:[#allocation2 + $0x78] sm:$0xe] }
 0x197   : > { %v3477_v40 = vrot.slane %v5650_v13, 5  ;;  %v4147_v56 = vrot.slane %v2455_v27, 9 }
 0x198   : > { %4557 = vmatmul.mubr.msk.bf16.gmra.mxu0 %vm1214_vm13, %v4705_v59  ;;  %v4212_v59 = vrot.slane %v3382_v60, 9  ;;  %v3442_v47 = vsel %vm5047_vm11, %v4209_v19, %v3441_v61  ;;  %v5648_v60 = vld [vmem:[#allocation2 + $0x84] sm:$0x1]  ;;  %v2525_v19 = vrot.slane %v5410_v50, 5  ;;  %v4215_v61 = vrot.slane %v3385_v52, 9 }
 0x199   : > { %4560 = vmatprep.mubr.msk.bf16.mxu0 %vm1214_vm13, %v4706_v62  ;;  %v3453_v62 = vrot.slane %v5607_v2, 5  ;;  %v3473_v51 = vrot.slane %v5648_v60, 5 }
 0x19a   : > { %v2526_v52 = vsel %vm5047_vm11, %v4143_v23, %v2525_v19 }
 0x19b   : > { %v5659_v6 = vsel %vm5047_vm11, %v4212_v59, %v3453_v62  ;;  %v2942_v59 = vld [vmem:[#allocation2 + $0x10] sm:$0xf]  ;;  %v4218_v62 = vrot.slane %v3388_v30, 9 }
 0x19d   : > { %4501 = vmatmul.mubr.msk.bf16.gmra.mxu1 %vm1214_vm13, %v4713_v35  ;;  %v4216_v35 = vrot.slane %v3386_v22, 9  ;;  %v4217_v22 = vrot.slane %v3387_v16, 9  ;;  %v2978_v16 = vshll.u32 %v2942_v59, 16 }
 0x19e   : > { %4528 = vmatprep.mubr.msk.bf16.mxu1 %vm1214_vm13, %v4151_v44  ;;  %v3446_v44 = vsel %vm5047_vm11, %v4210_v55, %v3445_v29  ;;  %v3465_v55 = vrot.slane %v5637_v9, 5  ;;  %v5673_v29 = vsel %vm5047_vm11, %v4144_v1, %v2529_v14  ;;  %v4224_v1 = vcombine.low %v5655_v20, %v5659_v6 }
 0x19f   : > { %v5677_v50 = vsel %vm5047_vm11, %v4216_v35, %v3469_v36  ;;  %v5695_v35 = vld [vmem:[#allocation2 + $0x94] sm:$0x1]  ;;  %v5697_v36 = vld [vmem:[#allocation2 + $0x9c] sm:$0x1]  ;;  %v4155_v58 = vcombine.low %v2526_v52, %v5673_v29  ;;  %v5719_v6 = vsel %vm5047_vm11, %v4218_v62, %v3477_v40  ;;  %v2946_v40 = vld [vmem:[#allocation2 + $0x20] sm:$0xf] }
 0x1a0   : > { %4561 = vmatmul.mubr.msk.bf16.gmra.mxu0 %vm1214_vm13, %v4710_v38  ;;  %v2456_v38 = vld [vmem:[#allocation2 + $0x80] sm:$0xe]  ;;  %v5707_v32 = vsel %vm5047_vm11, %v4215_v61, %v3465_v55  ;;  %v3481_v30 = vrot.slane %v5695_v35, 5  ;;  %v3485_v48 = vrot.slane %v5697_v36, 5  ;;  %v2457_v55 = vld [vmem:[#allocation2 + $0x88] sm:$0xe] }
 0x1a1   : > { %4588 = vmatprep.mubr.msk.bf16.mxu0 %vm1214_vm13, %v4221_v11  ;;  %v5668_v11 = vsel %vm5047_vm11, %v4214_v37, %v3461_v12  ;;  %v4148_v33 = vrot.slane %v2456_v38, 9  ;;  %v2545_v37 = vrot.slane %v5465_v45, 5  ;;  %v4223_v12 = vcombine.low %v3442_v47, %v3446_v44  ;;  %v3389_v45 = vld [vmem:[#allocation2 + $0x90] sm:$0xe]  ;;  %v2948_v38 = vld [vmem:[#allocation2 + $0x28] sm:$0xf] }
 0x1a2   : > { %v4225_v14 = vcombine.low %v5664_v0, %v5668_v11  ;;  %v2458_v47 = vld [vmem:[#allocation2 + $0x90] sm:$0xe]  ;;  %v2975_v44 = vshrl.u32 %v2942_v59, 16  ;;  %v4226_v20 = vcombine.low %v5707_v32, %v5677_v50  ;;  %v4219_v19 = vrot.slane %v3389_v45, 9  ;;  %v2958_v11 = vld [vmem:[#allocation2 + $0x60] sm:$0xf] }
 0x1a3   : > { %v5723_v23 = vsel %vm5047_vm11, %v4148_v33, %v2545_v37  ;;  %v4150_v29 = vrot.slane %v2458_v47, 9  ;;  %v2542_v33 = vsel %vm5047_vm11, %v4147_v56, %v2541_v63  ;;  %v3017_v37 = vshrl.u32 %v2948_v38, 16  ;;  %v2952_v63 = vld [vmem:[#allocation2 + $0x38] sm:$0xf] }
 0x1a4   : > { %v4157_v52 = vcombine.low %v2542_v33, %v5723_v23  ;;  %v5736_v45 = vsel %vm5047_vm11, %v4219_v19, %v3481_v30  ;;  %v3006_v56 = vshll.u32 %v2946_v40, 16  ;;  %v3026_v33 = vshll.u32 %v5592_v53, 16 }
 0x1a5   : > { %4529 = vmatmul.mubr.msk.bf16.vlgmr.msra.gmra.mxu1 %vm1214_vm13, %v4152_v8  ;;  %v3390_v8 = vld [vmem:[#allocation2 + $0x98] sm:$0xe]  ;;  %v3019_v10 = vrot.slane %v3017_v37, 4  ;;  %v3014_v53 = vrot.slane %v3012_v15, 5 }
 0x1a6   : > { %4565 = vmatpush3.bf16.msra.mxu1 %v5550_v17  ;;  %4532 = vmatprep.mubr.msk.bf16.mxu1 %vm1214_vm13, %v4153_v39  ;;  %v5713_v17 = vsel %vm5047_vm11, %v4217_v22, %v3473_v51  ;;  %v2944_v39 = vld [vmem:[#allocation2 + $0x18] sm:$0xf]  ;;  %v4220_v61 = vrot.slane %v3390_v8, 9  ;;  %v2977_v22 = vrot.slane %v2975_v44, 4  ;;  %v2980_v51 = vrot.slane %v2978_v16, 5 }
 0x1a7   : > { %4566 = vmatprep.subr.bf16.mxu1 %v4715_v54  ;;  %v2989_v59 = vshrl.u32 %v2944_v39, 16  ;;  %v2992_v62 = vshll.u32 %v2944_v39, 16  ;;  %v4227_v27 = vcombine.low %v5713_v17, %v5719_v6  ;;  %v2950_v8 = vld [vmem:[#allocation2 + $0x30] sm:$0xf]  ;;  %v2984_v44 = vshll.u32 %v5574_v26, 16 }
 0x1a8   : > { %4589 = vmatmul.mubr.msk.bf16.vlgmr.msra.gmra.mxu0 %vm1214_vm13, %v4222_v41  ;;  %v2553_v41 = vrot.slane %v5480_v25, 5  ;;  %v4149_v25 = vrot.slane %v2457_v55, 9  ;;  %v5745_v47 = vsel %vm5047_vm11, %v4220_v61, %v3485_v48  ;;  %v3003_v16 = vshrl.u32 %v2946_v40, 16 }
 0x1a9   : > { %4592 = vmatprep.mubr.msk.bf16.mxu0 %vm1214_vm13, %v4223_v12  ;;  %v3020_v12 = vshll.u32 %v2948_v38, 16  ;;  %v2981_v39 = vor.u32 %v2980_v51, %v2977_v22  ;;  %v2991_v23 = vrot.slane %v2989_v59, 4  ;;  %v2994_v49 = vrot.slane %v2992_v62, 5  ;;  %v2956_v62 = vld [vmem:[#allocation2 + $0x48] sm:$0xf] }
 0x1aa   : > { %4567 = vmatpush3.bf16.msra.mxu1 %v4715_v54  ;;  %v2549_v54 = vrot.slane %v5478_v24, 5  ;;  %v5751_v24 = vsel %vm5047_vm11, %v4150_v29, %v2553_v41  ;;  %v3031_v19 = vshrl.u32 %v2950_v8, 16  ;;  %v3034_v30 = vshll.u32 %v2950_v8, 16 }
 0x1ab   : > { %v4228_v26 = vcombine.low %v5736_v45, %v5745_v47  ;;  %v3048_v61 = vshll.u32 %v2952_v63, 16  ;;  %v2998_v55 = vshll.u32 %v5586_v43, 16  ;;  %v3005_v29 = vrot.slane %v3003_v16, 4  ;;  %4604 = vmatprep.subr.bf16.mxu1 %v4716_v21 }
 0x1ac   : > { %v2550_v38 = vsel %vm5047_vm11, %v4149_v25, %v2549_v54  ;;  %v3008_v41 = vrot.slane %v3006_v56, 5  ;;  %v2982_v22 = vrot.slane %v2981_v39, 4  ;;  %v2986_v51 = vrot.slane %v2984_v44, 5 }
 0x1ad   : > { %4533 = vmatmul.mubr.msk.bf16.gmra.mxu1 %vm1214_vm13, %v4154_v34  ;;  %v3022_v34 = vrot.slane %v3020_v12, 5  ;;  %v4158_v48 = vcombine.low %v2550_v38, %v5751_v24  ;;  %v2995_v59 = vor.u32 %v2994_v49, %v2991_v23  ;;  %v3033_v37 = vrot.slane %v3031_v19, 4 }
 0x1ae   : > { %4536 = vmatprep.mubr.msk.bf16.mxu1 %vm1214_vm13, %v4155_v58  ;;  %v3045_v58 = vshrl.u32 %v2952_v63, 16  ;;  %v3036_v0 = vrot.slane %v3034_v30, 5  ;;  %v3050_v12 = vrot.slane %v3048_v61, 5  ;;  %v3000_v43 = vrot.slane %v2998_v55, 5 }
 0x1af   : > { %v3023_v40 = vor.u32 %v3022_v34, %v3019_v10  ;;  %v3009_v8 = vor.u32 %v3008_v41, %v3005_v29  ;;  %v3073_v44 = vshrl.u32 %v2956_v62, 16  ;;  %v3076_v46 = vshll.u32 %v2956_v62, 16  ;;  %v2960_v10 = vld [vmem:[#allocation2 + $0x68] sm:$0xf]  ;;  %v2964_v41 = vld [vmem:[#allocation2 + $0x78] sm:$0xf] }
 0x1b0   : > { %4593 = vmatmul.mubr.msk.bf16.gmra.mxu0 %vm1214_vm13, %v4224_v1  ;;  %v2954_v1 = vld [vmem:[#allocation2 + $0x40] sm:$0xf]  ;;  %v2996_v16 = vrot.slane %v2995_v59, 4  ;;  %v3087_v56 = vshrl.u32 %v2958_v11, 16  ;;  %v3090_v63 = vshll.u32 %v2958_v11, 16  ;;  %v2987_v24 = vsel %vm5057_vm12, %v2982_v22, %v2986_v51 }
 0x1b1   : > { %4596 = vmatprep.mubr.msk.bf16.mxu0 %vm1214_vm13, %v4225_v14  ;;  %v3047_v14 = vrot.slane %v3045_v58, 4  ;;  %v3059_v25 = vshrl.u32 %v2954_v1, 16  ;;  %v3062_v54 = vshll.u32 %v2954_v1, 16  ;;  %v3024_v39 = vrot.slane %v3023_v40, 4 }
 0x1b2   : > { %v3028_v23 = vrot.slane %v3026_v33, 5  ;;  %v3037_v49 = vor.u32 %v3036_v0, %v3033_v37  ;;  %v3010_v34 = vrot.slane %v3009_v8, 4  ;;  %v3054_v19 = vshll.u32 %v5599_v5, 16  ;;  %v2966_v33 = vld [vmem:[#allocation2 + $0x80] sm:$0xf] }
 0x1b3   : > { %v3051_v7 = vor.u32 %v3050_v12, %v3047_v14  ;;  %v3075_v30 = vrot.slane %v3073_v44, 4  ;;  %v3078_v38 = vrot.slane %v3076_v46, 5  ;;  %v3089_v58 = vrot.slane %v3087_v56, 4  ;;  %v2962_v0 = vld [vmem:[#allocation2 + $0x70] sm:$0xf] }
 0x1b4   : > { %v3092_v61 = vrot.slane %v3090_v63, 5  ;;  %v3101_v50 = vshrl.u32 %v2960_v10, 16  ;;  %v3104_v32 = vshll.u32 %v2960_v10, 16  ;;  %v3001_v57 = vsel %vm5057_vm12, %v2996_v16, %v3000_v43  ;;  %v2968_v43 = vld [vmem:[#allocation2 + $0x88] sm:$0xf] }
 0x1b5   : > { %4537 = vmatmul.mubr.msk.bf16.gmra.mxu1 %vm1214_vm13, %v4156_v4  ;;  %v3061_v4 = vrot.slane %v3059_v25, 4  ;;  %v3038_v55 = vrot.slane %v3037_v49, 4  ;;  %v3068_v17 = vshll.u32 %v5605_v3, 16  ;;  %v4187_v6 = vcombine.low %v2987_v24, %v3001_v57  ;;  %v2970_v10 = vld [vmem:[#allocation2 + $0x90] sm:$0xf] }
 0x1b6   : > { %4540 = vmatprep.mubr.msk.bf16.mxu1 %vm1214_vm13, %v4157_v52  ;;  %v3064_v52 = vrot.slane %v3062_v54, 5  ;;  %v3082_v5 = vshll.u32 %v5607_v2, 16  ;;  %v3015_v1 = vsel %vm5057_vm12, %v3010_v34, %v3014_v53  ;;  %v3042_v22 = vrot.slane %v3040_v42, 5 }
 0x1b7   : > { %v3056_v51 = vrot.slane %v3054_v19, 5  ;;  %v3079_v59 = vor.u32 %v3078_v38, %v3075_v30  ;;  %v3093_v62 = vor.u32 %v3092_v61, %v3089_v58  ;;  %v3103_v40 = vrot.slane %v3101_v50, 4 }
 0x1b8   : > { %4597 = vmatmul.mubr.msk.bf16.gmra.mxu0 %vm1214_vm13, %v4226_v20  ;;  %v3029_v20 = vsel %vm5057_vm12, %v3024_v39, %v3028_v23  ;;  %v3065_v29 = vor.u32 %v3064_v52, %v3061_v4  ;;  %v3106_v3 = vrot.slane %v3104_v32, 5  ;;  %v3043_v37 = vsel %vm5057_vm12, %v3038_v55, %v3042_v22  ;;  %v2972_v4 = vld [vmem:[#allocation2 + $0x98] sm:$0xf] }
 0x1b9   : > { %4600 = vmatprep.mubr.msk.bf16.mxu0 %vm1214_vm13, %v4227_v27  ;;  %v3052_v27 = vrot.slane %v3051_v7, 4  ;;  %v4188_v15 = vcombine.low %v3015_v1, %v3029_v20  ;;  %v3070_v2 = vrot.slane %v3068_v17, 5  ;;  %v3129_v11 = vshrl.u32 %v2964_v41, 16 }
 0x1ba   : > { %v3066_v12 = vrot.slane %v3065_v29, 4  ;;  %v3084_v25 = vrot.slane %v3082_v5, 5  ;;  %v3096_v54 = vshll.u32 %v5610_v28, 16  ;;  %v3080_v8 = vrot.slane %v3079_v59, 4 }
 0x1bb   : > { %v3057_v14 = vsel %vm5057_vm12, %v3052_v27, %v3056_v51  ;;  %v3110_v44 = vshll.u32 %v5614_v18, 16  ;;  %v3143_v46 = vshrl.u32 %v2966_v33, 16  ;;  %v3146_v16 = vshll.u32 %v2966_v33, 16 }
 0x1bc   : > { %v3094_v53 = vrot.slane %v3093_v62, 4  ;;  %v3107_v56 = vor.u32 %v3106_v3, %v3103_v40  ;;  %v3115_v63 = vshrl.u32 %v2962_v0, 16  ;;  %v3118_v24 = vshll.u32 %v2962_v0, 16 }
 0x1bd   : > { %4541 = vmatmul.mubr.msk.bf16.gmra.mxu1 %vm1214_vm13, %v4158_v48  ;;  %v3132_v48 = vshll.u32 %v2964_v41, 16  ;;  %v3131_v45 = vrot.slane %v3129_v11, 4  ;;  %v3160_v39 = vshll.u32 %v2968_v43, 16  ;;  %v4189_v23 = vcombine.low %v3043_v37, %v3057_v14 }
 0x1be   : > { %4568 = vmatprep.mubr.msk.bf16.mxu1 %vm1214_vm13, %v4187_v6  ;;  %v3071_v49 = vsel %vm5057_vm12, %v3066_v12, %v3070_v2  ;;  %v3085_v28 = vsel %vm5057_vm12, %v3080_v8, %v3084_v25  ;;  %v3098_v18 = vrot.slane %v3096_v54, 5  ;;  %v3145_v42 = vrot.slane %v3143_v46, 4 }
 0x1bf   : > { %v3134_v47 = vrot.slane %v3132_v48, 5  ;;  %v3148_v7 = vrot.slane %v3146_v16, 5  ;;  %v3108_v52 = vrot.slane %v3107_v56, 4  ;;  %v3112_v34 = vrot.slane %v3110_v44, 5 }
 0x1c0   : > { %4601 = vmatmul.mubr.msk.bf16.gmra.mxu0 %vm1214_vm13, %v4228_v26  ;;  %v3157_v26 = vshrl.u32 %v2968_v43, 16  ;;  %v3117_v19 = vrot.slane %v3115_v63, 4  ;;  %v3120_v30 = vrot.slane %v3118_v24, 5  ;;  %v3099_v38 = vsel %vm5057_vm12, %v3094_v53, %v3098_v18 }
 0x1c1   : > { %v3135_v58 = vor.u32 %v3134_v47, %v3131_v45  ;;  %v3162_v50 = vrot.slane %v3160_v39, 5  ;;  %v3171_v32 = vshrl.u32 %v2970_v10, 16  ;;  %v3174_v57 = vshll.u32 %v2970_v10, 16 }
 0x1c2   : > { %v3159_v61 = vrot.slane %v3157_v26, 4  ;;  %v3185_v20 = vshrl.u32 %v2972_v4, 16  ;;  %v3188_v55 = vshll.u32 %v2972_v4, 16  ;;  %v3124_v17 = vshll.u32 %v5637_v9, 16 }
 0x1c3   : > { %v3149_v6 = vor.u32 %v3148_v7, %v3145_v42  ;;  %v4190_v27 = vcombine.low %v3071_v49, %v3085_v28  ;;  %v3113_v29 = vsel %vm5057_vm12, %v3108_v52, %v3112_v34  ;;  %v3121_v5 = vor.u32 %v3120_v30, %v3117_v19 }
 0x1c4   : > { %v3138_v41 = vshll.u32 %v5620_v31, 16  ;;  %v4191_v1 = vcombine.low %v3099_v38, %v3113_v29  ;;  %v3136_v22 = vrot.slane %v3135_v58, 4  ;;  %v3152_v51 = vshll.u32 %v5648_v60, 16 }
 0x1c5   : > { %4569 = vmatmul.mubr.msk.bf16.vlgmr.msra.gmra.mxu1 %vm1214_vm13, %v4188_v15  ;;  %v3163_v59 = vor.u32 %v3162_v50, %v3159_v61  ;;  %v3173_v15 = vrot.slane %v3171_v32, 4  ;;  %v3176_v62 = vrot.slane %v3174_v57, 5  ;;  %v3187_v40 = vrot.slane %v3185_v20, 4  ;;  %v4717_v50 = vld [vmem:[%s6210_s5] sm:$0xff]  }
 0x1c6   : > { %4572 = vmatprep.mubr.msk.bf16.mxu1 %vm1214_vm13, %v4189_v23  ;;  %v3190_v3 = vrot.slane %v3188_v55, 5  ;;  %v3150_v9 = vrot.slane %v3149_v6, 4  ;;  %v3166_v33 = vshll.u32 %v5650_v13, 16  ;;  %v3122_v37 = vrot.slane %v3121_v5, 4  ;;  %4605 = vmatpush3.bf16.msra.mxu1 %v4716_v21 }
 0x1c7   : > { %v3140_v2 = vrot.slane %v3138_v41, 5  ;;  %v3126_v0 = vrot.slane %v3124_v17, 5  ;;  %v3154_v31 = vrot.slane %v3152_v51, 5  ;;  %v3164_v11 = vrot.slane %v3163_v59, 4  ;;  %4606 = vmatprep.subr.bf16.mxu1 %v4717_v50 }
 0x1c8   : > { %v3177_v48 = vor.u32 %v3176_v62, %v3173_v15  ;;  %v3191_v14 = vor.u32 %v3190_v3, %v3187_v40  ;;  %v3194_v12 = vshll.u32 %v5697_v36, 16  ;;  %v3168_v54 = vrot.slane %v3166_v33, 5 }
 0x1c9   : > { %v3141_v60 = vsel %vm5057_vm12, %v3136_v22, %v3140_v2  ;;  %v3155_v25 = vsel %vm5057_vm12, %v3150_v9, %v3154_v31  ;;  %v3127_v13 = vsel %vm5057_vm12, %v3122_v37, %v3126_v0  ;;  %v3180_v43 = vshll.u32 %v5695_v35, 16 }
 0x1ca   : > { %v4192_v8 = vcombine.low %v3127_v13, %v3141_v60  ;;  %v3169_v44 = vsel %vm5057_vm12, %v3164_v11, %v3168_v54  ;;  %v3178_v16 = vrot.slane %v3177_v48, 4  ;;  %v3192_v53 = vrot.slane %v3191_v14, 4  ;;  %4607 = vmatpush3.bf16.msra.mxu1 %v4717_v50 }
 0x1cb   : > { %v4193_v46 = vcombine.low %v3155_v25, %v3169_v44  ;;  %v3196_v56 = vrot.slane %v3194_v12, 5  ;;  %v3182_v36 = vrot.slane %v3180_v43, 5 }
 0x1cd   : > { %4573 = vmatmul.mubr.msk.bf16.gmra.mxu1 %vm1214_vm13, %v4190_v27  ;;  %v3183_v63 = vsel %vm5057_vm12, %v3178_v16, %v3182_v36  ;;  %v3197_v24 = vsel %vm5057_vm12, %v3192_v53, %v3196_v56 }
 0x1ce   : > { %4576 = vmatprep.mubr.msk.bf16.mxu1 %vm1214_vm13, %v4191_v1  ;;  %v4194_v35 = vcombine.low %v3183_v63, %v3197_v24 }
 0x1d5   : > { %4577 = vmatmul.mubr.msk.bf16.gmra.mxu1 %vm1214_vm13, %v4192_v8 }
 0x1d6   : > { %4580 = vmatprep.mubr.msk.bf16.mxu1 %vm1214_vm13, %v4193_v46 }
 0x1dd   : > { %4581 = vmatmul.mubr.msk.bf16.gmra.mxu1 %vm1214_vm13, %v4194_v35 }
 0x1e7   : > { %v4470_v45 = vpop.f32.mrf.mxu0 }
 0x1e9   : > { %v1722_v47 = vpop.f32.mrf.mxu0 }
 0x1eb   : > { %v4471_v26 = vpop.f32.mrf.mxu0 }
 0x1ed   : > { %v1725_v39 = vpop.f32.mrf.mxu0 }
 0x1f4   : > { %v4474_v23 = vpop.f32.mrf.mxu0 }
 0x1f6   : > { %v1738_v10 = vpop.f32.mrf.mxu0 }
 0x1f7   : > { %v4430_v49 = vpop.f32.mrf.mxu1 }
 0x1f8   : > { %v4475_v42 = vpop.f32.mrf.mxu0 }
 0x1f9   : > { %v1273_v28 = vpop.f32.mrf.mxu1 }
 0x1fa   : > { %v1741_v4 = vpop.f32.mrf.mxu0 }
 0x1fb   : > { %v4431_v18 = vpop.f32.mrf.mxu1 }
 0x1fd   : > { %v1276_v7 = vpop.f32.mrf.mxu1 }
 0x200   : > { %v4478_v34 = vpop.f32.mrf.mxu0 }
 0x202   : > { %v1754_v38 = vpop.f32.mrf.mxu0 }
 0x203   : > { %v4434_v52 = vpop.f32.mrf.mxu1 }
 0x204   : > { %v5839_v61 = vpop.f32.mrf.mxu0 }
 0x205   : > { %v1289_v19 = vpop.f32.mrf.mxu1 }
 0x206   : > { %v5844_v57 = vpop.f32.mrf.mxu0 }
 0x207   : > { %v4435_v30 = vpop.f32.mrf.mxu1 }
 0x209   : > { %v1292_v58 = vpop.f32.mrf.mxu1 }
 0x20b   : > { %v5846_v55 = vpop.f32.mrf.mxu0 }
 0x20d   : > { %v5848_v6 = vpop.f32.mrf.mxu0 }
 0x20e   : > { %v4438_v32 = vpop.f32.mrf.mxu1 }
 0x20f   : > { %v5850_v29 = vpop.f32.mrf.mxu0 }
 0x210   : > { %v1305_v20 = vpop.f32.mrf.mxu1 }
 0x211   : > { %v5852_v41 = vpop.f32.mrf.mxu0 }
 0x212   : > { %v4439_v17 = vpop.f32.mrf.mxu1 }
 0x214   : > { %v1308_v27 = vpop.f32.mrf.mxu1 }
 0x21d   : > { %v4442_v5 = vpop.f32.mrf.mxu1 }
 0x21f   : > { %v1321_v1 = vpop.f32.mrf.mxu1 }
 0x221   : > { %v4443_v22 = vpop.f32.mrf.mxu1 }
 0x222   : > { %v5854_v51 = vpop.f32.mrf.mxu0 }
 0x223   : > { %v1324_v59 = vpop.f32.mrf.mxu1 }
 0x224   : > { %v5856_v15 = vpop.f32.mrf.mxu0 }
 0x225   : > { %v4450_v62 = vpop.f32.mrf.mxu1 }
 0x226   : > { %v5858_v40 = vpop.f32.mrf.mxu0  ;;  %v1455_v3 = vadd.f32 %v4450_v62, %v4430_v49 }
 0x227   : > { %v1446_v9 = vpop.f32.mrf.mxu1 }
 0x228   : > { %v5860_v33 = vpop.f32.mrf.mxu0  ;;  %v1447_v37 = vadd.f32 %v1446_v9, %v1273_v28  ;;  %v5862_v2 = vadd.f32 %v4470_v45, %v1455_v3 }
 0x229   : > { %v4451_v0 = vpop.f32.mrf.mxu1 }
 0x22a   : > { %v1458_v31 = vadd.f32 %v4451_v0, %v4431_v18  ;;  %v5864_v11 = vadd.f32 %v1722_v47, %v1447_v37 }
 0x22b   : > { %v1449_v60 = vpop.f32.mrf.mxu1 }
 0x22c   : > { %v5866_v48 = vpop.f32.mrf.mxu0  ;;  %v1450_v14 = vadd.f32 %v1449_v60, %v1276_v7  ;;  %v5868_v12 = vadd.f32 %v4471_v26, %v1458_v31 }
 0x22d   : > { %v4454_v25 = vpop.f32.mrf.mxu1 }
 0x22e   : > { %v5870_v54 = vpop.f32.mrf.mxu0  ;;  %v1471_v13 = vadd.f32 %v4454_v25, %v4434_v52  ;;  %v5872_v43 = vadd.f32 %v1725_v39, %v1450_v14 }
 0x22f   : > { %v1462_v8 = vpop.f32.mrf.mxu1 }
 0x230   : > { %v5874_v44 = vpop.f32.mrf.mxu0  ;;  %v1463_v46 = vadd.f32 %v1462_v8, %v1289_v19  ;;  %v5876_v16 = vadd.f32 %v4474_v23, %v1471_v13 }
 0x231   : > { %v4455_v53 = vpop.f32.mrf.mxu1 }
 0x232   : > { %v5878_v56 = vpop.f32.mrf.mxu0  ;;  %v1474_v36 = vadd.f32 %v4455_v53, %v4435_v30  ;;  %v5880_v63 = vadd.f32 %v1738_v10, %v1463_v46 }
 0x233   : > { %v1465_v24 = vpop.f32.mrf.mxu1 }
 0x234   : > { %v1466_v35 = vadd.f32 %v1465_v24, %v1292_v58  ;;  %v5882_v45 = vadd.f32 %v4475_v42, %v1474_v36 }
 0x235   : > { %v4458_v47 = vpop.f32.mrf.mxu1 }
 0x236   : > { %v4518_v26 = vpop.f32.mrf.mxu0  ;;  %v1487_v39 = vadd.f32 %v4458_v47, %v4438_v32  ;;  %v5884_v49 = vadd.f32 %v1741_v4, %v1466_v35 }
 0x237   : > { %v1478_v28 = vpop.f32.mrf.mxu1 }
 0x238   : > { %v5886_v18 = vpop.f32.mrf.mxu0  ;;  %v1479_v23 = vadd.f32 %v1478_v28, %v1305_v20  ;;  %v1795_v7 = vadd.f32 %v4478_v34, %v1487_v39 }
 0x239   : > { %v4459_v21 = vpop.f32.mrf.mxu1 }
 0x23a   : > { %v5888_v52 = vpop.f32.mrf.mxu0  ;;  %v1490_v19 = vadd.f32 %v4459_v21, %v4439_v17  ;;  %v5890_v10 = vadd.f32 %v1754_v38, %v1479_v23 }
 0x23b   : > { %v1481_v30 = vpop.f32.mrf.mxu1 }
 0x23c   : > { %v5892_v58 = vpop.f32.mrf.mxu0  ;;  %v1482_v42 = vadd.f32 %v1481_v30, %v1308_v27  ;;  %v5895_v50 = vadd.f32 %v5839_v61, %v1490_v19 }
 0x23d   : > { %6225 = vst [vmem:[#allocation6_spill] sm:$0xff] %v5892_v58  ;;  %v4462_v4 = vpop.f32.mrf.mxu1 }
 0x23e   : > { %v1503_v32 = vadd.f32 %v4462_v4, %v4442_v5  ;;  %v5898_v62 = vadd.f32 %v5844_v57, %v1482_v42 }
 0x23f   : > { %v1494_v20 = vpop.f32.mrf.mxu1 }
 0x240   : > { %v4522_v34 = vpop.f32.mrf.mxu0  ;;  %v1495_v3 = vadd.f32 %v1494_v20, %v1321_v1  ;;  %v1799_v9 = vadd.f32 %v5846_v55, %v1503_v32 }
 0x241   : > { %v4463_v17 = vpop.f32.mrf.mxu1 }
 0x242   : > { %v5901_v38 = vpop.f32.mrf.mxu0  ;;  %v1506_v37 = vadd.f32 %v4463_v17, %v4443_v22  ;;  %v5904_v0 = vadd.f32 %v5848_v6, %v1495_v3 }
 0x243   : > { %6226 = vst [vmem:[#allocation7_spill] sm:$0xff] %v5901_v38  ;;  %v1497_v27 = vpop.f32.mrf.mxu1 }
 0x244   : > { %6227 = vst [vmem:[#allocation8_spill] sm:$0xff] %v5904_v0  ;;  %v5906_v61 = vpop.f32.mrf.mxu0  ;;  %v1498_v31 = vadd.f32 %v1497_v27, %v1324_v59  ;;  %v5909_v5 = vadd.f32 %v5850_v29, %v1506_v37 }
 0x245   : > { %6228 = vst [vmem:[#allocation9_spill] sm:$0xff] %v5906_v61  ;;  %v4490_v57 = vpop.f32.mrf.mxu1 }
 0x246   : > { %6229 = vst [vmem:[#allocation10_spill] sm:$0xff] %v5909_v5  ;;  %v5911_v60 = vpop.f32.mrf.mxu0  ;;  %v5914_v1 = vadd.f32 %v5852_v41, %v1498_v31 }
 0x247   : > { %6230 = vst [vmem:[#allocation11_spill] sm:$0xff] %v5911_v60  ;;  %v1931_v55 = vpop.f32.mrf.mxu1 }
 0x248   : > { %6231 = vst [vmem:[#allocation12_spill] sm:$0xff] %v5914_v1  ;;  %v5916_v14 = vpop.f32.mrf.mxu0  ;;  %v1994_v5 = vadd.f32 %v1931_v55, %v5864_v11 }
 0x249   : > { %v4491_v22 = vpop.f32.mrf.mxu1 }
 0x24a   : > { %v5918_v25 = vpop.f32.mrf.mxu0 }
 0x24b   : > { %v1934_v6 = vpop.f32.mrf.mxu1 }
 0x24c   : > { %v5920_v13 = vpop.f32.mrf.mxu0 }
 0x24d   : > { %v4494_v8 = vpop.f32.mrf.mxu1 }
 0x24e   : > { %v5922_v59 = vpop.f32.mrf.mxu0  ;;  %v2000_v11 = vadd.f32 %v4494_v8, %v5876_v16 }
 0x24f   : > { %v1947_v29 = vpop.f32.mrf.mxu1 }
 0x250   : > { %v5924_v46 = vpop.f32.mrf.mxu0 }
 0x251   : > { %v5926_v53 = vpop.f32.mrf.mxu1 }
 0x252   : > { %v5928_v36 = vpop.f32.mrf.mxu0 }
 0x253   : > { %v5930_v41 = vpop.f32.mrf.mxu1 }
 0x254   : > { %v5932_v24 = vpop.f32.mrf.mxu0 }
 0x255   : > { %6232 = vst [vmem:[#allocation13_spill] sm:$0xff] %v5932_v24  ;;  %v4498_v35 = vpop.f32.mrf.mxu1  ;;  %v1995_v24 = vadd.f32 %v1934_v6, %v5872_v43  ;;  %v2433_v6 = vadd.f32 %v5866_v48, %v2000_v11  ;;  %v6018_v48 = vld [vmem:[%s6209_s4] ss:$0 sm:$0xff] }
 0x256   : > { %v5934_v47 = vpop.f32.mrf.mxu0  ;;  %v2004_v39 = vadd.f32 %v4498_v35, %v1795_v7 }
 0x257   : > { %6233 = vst [vmem:[#allocation14_spill] sm:$0xff] %v5934_v47  ;;  %v5936_v28 = vpop.f32.mrf.mxu1 }
 0x258   : > { %v5938_v23 = vpop.f32.mrf.mxu0  ;;  %v5940_v21 = vadd.f32 %v4518_v26, %v2004_v39 }
 0x259   : > { %6234 = vst [vmem:[#allocation15_spill] sm:$0xff] %v5938_v23  ;;  %v5942_v19 = vpop.f32.mrf.mxu1 }
 0x25a   : > { %v5944_v30 = vpop.f32.mrf.mxu0 }
 0x25b   : > { %6235 = vst [vmem:[#allocation16_spill] sm:$0xff] %v5944_v30  ;;  %v5946_v42 = vpop.f32.mrf.mxu1 }
 0x25c   : > { %v5948_v4 = vpop.f32.mrf.mxu0 }
 0x25d   : > { %6236 = vst [vmem:[#allocation17_spill] sm:$0xff] %v5948_v4  ;;  %v4502_v32 = vpop.f32.mrf.mxu1 }
 0x25e   : > { %v5950_v20 = vpop.f32.mrf.mxu0  ;;  %v2008_v3 = vadd.f32 %v4502_v32, %v1799_v9 }
 0x25f   : > { %6237 = vst [vmem:[#allocation18_spill] sm:$0xff] %v5950_v20  ;;  %v5952_v17 = vpop.f32.mrf.mxu1 }
 0x260   : > { %6238 = vst [vmem:[#allocation19_spill] sm:$0xff] %v5952_v17  ;;  %v5954_v7 = vpop.f32.mrf.mxu0  ;;  %v5956_v37 = vadd.f32 %v4522_v34, %v2008_v3  ;;  %v1997_v17 = vadd.f32 %v4491_v22, %v5868_v12  ;;  %v1998_v12 = vadd.f32 %v1947_v29, %v5880_v63  ;;  %v1999_v63 = vadd.f32 %v5930_v41, %v5884_v49 }
 0x261   : > { %6239 = vst [vmem:[#allocation20_spill] sm:$0xff] %v5954_v7  ;;  %v5958_v26 = vpop.f32.mrf.mxu1 }
 0x262   : > { %6240 = vst [vmem:[#allocation21_spill] sm:$0xff] %v5956_v37  ;;  %6241 = vst [vmem:[#allocation22_spill] sm:$0xff] %v5958_v26  ;;  %v5960_v27 = vpop.f32.mrf.mxu0  ;;  %v2432_v41 = vadd.f32 %v5878_v56, %v1999_v63 }
 0x263   : > { %6242 = vst [vmem:[#allocation23_spill] sm:$0xff] %v5960_v27  ;;  %v5962_v31 = vpop.f32.mrf.mxu1 }
 0x264   : > { %6243 = vst [vmem:[#allocation24_spill] sm:$0xff] %v5962_v31  ;;  %v5964_v35 = vpop.f32.mrf.mxu0 }
 0x265   : > { %6244 = vst [vmem:[#allocation25_spill] sm:$0xff] %v5964_v35  ;;  %v4530_v39 = vpop.f32.mrf.mxu1 }
 0x266   : > { %v5966_v60 = vpop.f32.mrf.mxu0 }
 0x267   : > { %6245 = vst [vmem:[#allocation26_spill] sm:$0xff] %v5966_v60  ;;  %v2653_v61 = vpop.f32.mrf.mxu1  ;;  %v1996_v60 = vadd.f32 %v4490_v57, %v5862_v2 }
 0x268   : > { %v4590_v20 = vpop.f32.mrf.mxu0 }
 0x269   : > { %v4531_v9 = vpop.f32.mrf.mxu1  ;;  %v2429_v0 = vadd.f32 %v5854_v51, %v1996_v60  ;;  %v2428_v60 = vadd.f32 %v5860_v33, %v1995_v24 }
 0x26a   : > { %v3585_v4 = vpop.f32.mrf.mxu0 }
 0x26b   : > { %v2656_v32 = vpop.f32.mrf.mxu1 }
 0x26c   : > { %v4591_v34 = vpop.f32.mrf.mxu0 }
 0x26d   : > { %v4534_v38 = vpop.f32.mrf.mxu1 }
 0x26e   : > { %v5968_v30 = vpop.f32.mrf.mxu0 }
 0x26f   : > { %v2669_v7 = vpop.f32.mrf.mxu1 }
 0x270   : > { %v5974_v35 = vpop.f32.mrf.mxu0 }
 0x271   : > { %v4535_v3 = vpop.f32.mrf.mxu1  ;;  %6246 = vst [vmem:[#allocation27_spill] sm:$0xff] %v5974_v35  ;;  %v2718_v35 = vadd.f32 %v4530_v39, %v2429_v0 }
 0x272   : > { %v5982_v23 = vpop.f32.mrf.mxu0 }
 0x273   : > { %v2672_v37 = vpop.f32.mrf.mxu1  ;;  %v2928_v43 = vadd.f32 %v5916_v14, %v2718_v35 }
 0x274   : > { %v5992_v2 = vpop.f32.mrf.mxu0 }
 0x275   : > { %v5970_v27 = vpop.f32.mrf.mxu1 }
 0x276   : > { %v6003_v0 = vpop.f32.mrf.mxu0 }
 0x277   : > { %v5972_v31 = vpop.f32.mrf.mxu1 }
 0x278   : > { %v6013_v24 = vpop.f32.mrf.mxu0 }
 0x279   : > { %v5976_v1 = vpop.f32.mrf.mxu1 }
 0x27a   : > { %6247 = vst [vmem:[#allocation28_spill] sm:$0xff] %v5976_v1  ;;  %v2427_v1 = vadd.f32 %v5856_v15, %v1994_v5  ;;  %v2717_v5 = vadd.f32 %v2656_v32, %v2428_v60  ;;  %v6029_v32 = vpop.f32.mrf.mxu0 }
 0x27b   : > { %v5979_v26 = vpop.f32.mrf.mxu1 }
 0x27c   : > { %v2716_v55 = vadd.f32 %v2653_v61, %v2427_v1  ;;  %v2722_v61 = vadd.f32 %v4534_v38, %v2433_v6  ;;  %v2927_v49 = vadd.f32 %v5922_v59, %v2717_v5  ;;  %v2005_v38 = vadd.f32 %v5942_v19, %v5895_v50  ;;  %v4599_v60 = vpop.f32.mrf.mxu0  ;;  %v6250_v5 = vld [vmem:[#allocation13_spill] sm:$0xff]  ;;  %v6251_v6 = vld [vmem:[#allocation14_spill] sm:$0xff] }
 0x27d   : > { %v5984_v58 = vpop.f32.mrf.mxu1  ;;  %v2721_v59 = vadd.f32 %v2672_v37, %v2432_v41  ;;  %v2003_v19 = vadd.f32 %v5946_v42, %v5898_v62 }
 0x27e   : > { %6248 = vst [vmem:[#allocation29_spill] sm:$0xff] %v5984_v58  ;;  %v2430_v58 = vadd.f32 %v5858_v40, %v1997_v17  ;;  %v2926_v16 = vadd.f32 %v5918_v25, %v2716_v55  ;;  %v2001_v40 = vadd.f32 %v5926_v53, %v5882_v45  ;;  %v2438_v37 = vadd.f32 %v5888_v52, %v2005_v38  ;;  %v6259_v38 = vld [vmem:[#allocation12_spill] sm:$0xff] }
 0x27f   : > { %v5988_v47 = vpop.f32.mrf.mxu1 }
 0x280   : > { %v2719_v51 = vadd.f32 %v4531_v9, %v2430_v58  ;;  %v2431_v58 = vadd.f32 %v5870_v54, %v1998_v12  ;;  %v2002_v54 = vadd.f32 %v5936_v28, %v5890_v10 }
 0x281   : > { %v5994_v57 = vpop.f32.mrf.mxu1 }
 0x282   : > { %v2929_v8 = vadd.f32 %v5920_v13, %v2719_v51  ;;  %v2720_v29 = vadd.f32 %v2669_v7, %v2431_v58  ;;  %v2434_v13 = vadd.f32 %v5874_v44, %v2001_v40  ;;  %v6253_v40 = vld [vmem:[#allocation19_spill] sm:$0xff]  ;;  %v6254_v58 = vld [vmem:[#allocation28_spill] sm:$0xff] }
 0x283   : > { %v5999_v22 = vpop.f32.mrf.mxu1 }
 0x284   : > { %v2723_v9 = vadd.f32 %v4535_v3, %v2434_v13  ;;  %v2930_v10 = vadd.f32 %v5928_v36, %v2720_v29  ;;  %v6260_v13 = vld [vmem:[#allocation24_spill] sm:$0xff] }
 0x285   : > { %v4570_v15 = vpop.f32.mrf.mxu1  ;;  %v2007_v41 = vadd.f32 %v6260_v13, %v6259_v38 }
 0x286   : > { %v3361_v39 = vadd.f32 %v4570_v15, %v2928_v43  ;;  %v6249_v43 = vld [vmem:[#allocation27_spill] sm:$0xff]  ;;  %v2933_v62 = vadd.f32 %v6250_v5, %v2723_v9 }
 0x287   : > { %v3296_v33 = vpop.f32.mrf.mxu1 }
 0x288   : > { %v3650_v1 = vadd.f32 %v4590_v20, %v3361_v39  ;;  %v3359_v14 = vadd.f32 %v3296_v33, %v2926_v16  ;;  %v6252_v16 = vld [vmem:[#allocation8_spill] sm:$0xff]  ;;  %v2727_v33 = vadd.f32 %v6254_v58, %v2438_v37 }
 0x289   : > { %v4571_v45 = vpop.f32.mrf.mxu1  ;;  %v2006_v63 = vadd.f32 %v6253_v40, %v6252_v16 }
 0x28a   : > { %v3648_v25 = vadd.f32 %v3585_v4, %v3359_v14  ;;  %v3362_v53 = vadd.f32 %v4571_v45, %v2929_v8  ;;  %v3673_v17 = vadd.f32 %v6018_v48, %v3650_v1  ;;  %v2932_v4 = vadd.f32 %v5924_v46, %v2722_v61  ;;  %v6256_v45 = vld [vmem:[#allocation15_spill] sm:$0xff] }
 0x28b   : > { %v3299_v20 = vpop.f32.mrf.mxu1  ;;  %v2726_v46 = vadd.f32 %v5970_v27, %v5940_v21  ;;  %v2931_v21 = vadd.f32 %v6251_v6, %v2721_v59  ;;  %v6261_v59 = vld [vmem:[#allocation16_spill] sm:$0xff] }
 0x28c   : > { %v3651_v7 = vadd.f32 %v4591_v34, %v3362_v53  ;;  %v3360_v35 = vadd.f32 %v3299_v20, %v2927_v49  ;;  %v3671_v50 = vadd.f32 %v6018_v48, %v3648_v25  ;;  %v2435_v34 = vadd.f32 %v5886_v18, %v2002_v54  ;;  %v6257_v53 = vld [vmem:[#allocation10_spill] sm:$0xff] }
 0x28d   : > { %v4574_v11 = vpop.f32.mrf.mxu1  ;;  %v3689_v55 = vmax.f32 %v3673_v17, 0.0  ;;  %v2936_v25 = vadd.f32 %v6256_v45, %v2726_v46  ;;  %v6258_v49 = vld [vmem:[#allocation22_spill] sm:$0xff]  ;;  %v6264_v46 = vld [vmem:[#allocation21_spill] sm:$0xff] }
 0x28e   : > { %v3674_v44 = vadd.f32 %v6018_v48, %v3651_v7  ;;  %v3649_v56 = vadd.f32 %v5968_v30, %v3360_v35  ;;  %v3365_v28 = vadd.f32 %v4574_v11, %v2932_v4  ;;  %v2724_v30 = vadd.f32 %v5972_v31, %v2435_v34  ;;  %v6255_v31 = vld [vmem:[#allocation6_spill] sm:$0xff]  ;;  %v6265_v34 = vld [vmem:[#allocation29_spill] sm:$0xff] }
 0x28f   : > { %v3312_v3 = vpop.f32.mrf.mxu1  ;;  %v3687_v27 = vmax.f32 %v3671_v50, 0.0  ;;  %v2436_v14 = vadd.f32 %v6255_v31, %v2003_v19  ;;  %v2009_v54 = vadd.f32 %v6258_v49, %v6257_v53  ;;  %v6262_v50 = vld [vmem:[#allocation7_spill] sm:$0xff]  ;;  %v2730_v37 = vadd.f32 %v6265_v34, %v6264_v46 }
 0x290   : > { %v3690_v36 = vmax.f32 %v3674_v44, 0.0  ;;  %v3672_v12 = vadd.f32 %v6018_v48, %v3649_v56  ;;  %v3363_v51 = vadd.f32 %v3312_v3, %v2930_v10  ;;  %v3654_v15 = vadd.f32 %v6249_v43, %v3365_v28 }
 0x291   : > { %v4575_v42 = vpop.f32.mrf.mxu1  ;;  %v2934_v11 = vadd.f32 %v6261_v59, %v2724_v30  ;;  %v2725_v10 = vadd.f32 %v5979_v26, %v2436_v14  ;;  %v2439_v44 = vadd.f32 %v6262_v50, %v2006_v63 }
 0x292   : > { %v3704_v18 = vpack.c.bf16 %v3690_v36, %v3689_v55  ;;  %v3688_v39 = vmax.f32 %v3672_v12, 0.0  ;;  %v3652_v52 = vadd.f32 %v5982_v23, %v3363_v51  ;;  %v3366_v61 = vadd.f32 %v4575_v42, %v2933_v62  ;;  %v3620_v23 = vpop.f32.mrf.mxu0  ;;  %v6266_v12 = vld [vmem:[#allocation9_spill] sm:$0xff]  ;;  %v6267_v51 = vld [vmem:[#allocation11_spill] sm:$0xff] }
 0x293   : > { %v3315_v1 = vpop.f32.mrf.mxu1  ;;  %v3677_v20 = vadd.f32 %v6018_v48, %v3654_v15  ;;  %v2442_v26 = vadd.f32 %v6266_v12, %v2009_v54  ;;  %v2440_v30 = vadd.f32 %v6267_v51, %v2007_v41  ;;  %v2728_v62 = vadd.f32 %v5988_v47, %v2439_v44  ;;  %v6100_v51 = vld [vmem:[%s6211_s6] ss:$0 sm:$0xff] }
 0x294   : > { %v3703_v8 = vpack.c.bf16 %v3688_v39, %v3687_v27  ;;  %v3364_v29 = vadd.f32 %v3315_v1, %v2931_v21  ;;  %v3655_v17 = vadd.f32 %v5992_v2, %v3366_v61  ;;  %v3675_v35 = vadd.f32 %v6018_v48, %v3652_v52  ;;  %v6263_v2 = vld [vmem:[#allocation17_spill] sm:$0xff]  ;;  %v4602_v36 = vpop.f32.mrf.mxu0 }
 0x295   : > { %v4578_v7 = vpop.f32.mrf.mxu1  ;;  %v2937_v19 = vadd.f32 %v6263_v2, %v2727_v33  ;;  %v3693_v43 = vmax.f32 %v3677_v20, 0.0  ;;  %v2731_v27 = vadd.f32 %v5994_v57, %v2442_v26  ;;  %v6269_v33 = vld [vmem:[#allocation20_spill] sm:$0xff]  ;;  %v2729_v14 = vadd.f32 %v5999_v22, %v2440_v30 }
 0x296   : > { %v3653_v4 = vadd.f32 %v6003_v0, %v3364_v29  ;;  %v3369_v9 = vadd.f32 %v4578_v7, %v2936_v25  ;;  %4608 = vmatprep.mubr.msk.bf16.mxu1 %vm1214_vm13, %v3703_v8  ;;  %v3678_v56 = vadd.f32 %v6018_v48, %v3655_v17  ;;  %v3691_v42 = vmax.f32 %v3675_v35, 0.0  ;;  %v3633_v1 = vpop.f32.mrf.mxu0  ;;  %v3717_v30 = vld [vmem:[%s4887_s23 + $0x10] sm:$0xff] }
 0x297   : > { %v3328_v28 = vpop.f32.mrf.mxu1  ;;  %4609 = vmatmul.mubr.msk.bf16.vlgmr.msra.gmra.mxu1 %vm1214_vm13, %v3704_v18  ;;  %v2940_v61 = vadd.f32 %v6269_v33, %v2730_v37 }
 0x298   : > { %v3676_v0 = vadd.f32 %v6018_v48, %v3653_v4  ;;  %v3658_v3 = vadd.f32 %v6013_v24, %v3369_v9  ;;  %v3367_v55 = vadd.f32 %v3328_v28, %v2934_v11  ;;  %v3694_v15 = vmax.f32 %v3678_v56, 0.0  ;;  %v6268_v24 = vld [vmem:[#allocation18_spill] sm:$0xff]  ;;  %v4603_v22 = vpop.f32.mrf.mxu0 }
 0x299   : > { %v4579_v5 = vpop.f32.mrf.mxu1  ;;  %v2935_v52 = vadd.f32 %v6268_v24, %v2725_v10  ;;  %v6272_v9 = vld [vmem:[#allocation26_spill] sm:$0xff]  ;;  %v3716_v24 = vld [vmem:[%s4887_s23 + $0x8] sm:$0xff] }
 0x29a   : > { %v3692_v6 = vmax.f32 %v3676_v0, 0.0  ;;  %v3370_v21 = vadd.f32 %v4579_v5, %v2937_v19  ;;  %v3706_v18 = vpack.c.bf16 %v3694_v15, %v3693_v43  ;;  %v3656_v39 = vadd.f32 %v6029_v32, %v3367_v55  ;;  %v6270_v32 = vld [vmem:[#allocation23_spill] sm:$0xff]  ;;  %v3636_v28 = vpop.f32.mrf.mxu0  ;;  %v3715_v15 = vld [vmem:[%s4887_s23] sm:$0xff] }
 0x29b   : > { %v3331_v16 = vpop.f32.mrf.mxu1  ;;  %v3681_v63 = vadd.f32 %v6018_v48, %v3658_v3  ;;  %v2938_v29 = vadd.f32 %v6270_v32, %v2728_v62  ;;  %v2939_v59 = vadd.f32 %v6272_v9, %v2729_v14  ;;  %v3723_v9 = vld [vmem:[%s4887_s23 + $0x40] sm:$0xff] }
 0x29c   : > { %v3705_v40 = vpack.c.bf16 %v3692_v6, %v3691_v42  ;;  %v3659_v58 = vadd.f32 %v4599_v60, %v3370_v21  ;;  %v3368_v31 = vadd.f32 %v3331_v16, %v2935_v52  ;;  %v3679_v45 = vadd.f32 %v6018_v48, %v3656_v39  ;;  %v6271_v60 = vld [vmem:[#allocation25_spill] sm:$0xff] }
 0x29d   : > { %v4582_v47 = vpop.f32.mrf.mxu1  ;;  %v2941_v49 = vadd.f32 %v6271_v60, %v2731_v27  ;;  %v3697_v54 = vmax.f32 %v3681_v63, 0.0  ;;  %v3718_v6 = vld [vmem:[%s4887_s23 + $0x18] sm:$0xff] }
 0x29e   : > { %v3682_v8 = vadd.f32 %v6018_v48, %v3659_v58  ;;  %v3373_v57 = vadd.f32 %v4582_v47, %v2940_v61  ;;  %4612 = vmatprep.mubr.msk.bf16.mxu1 %vm1214_vm13, %v3705_v40  ;;  %v3657_v25 = vadd.f32 %v3620_v23, %v3368_v31  ;;  %v3695_v11 = vmax.f32 %v3679_v45, 0.0  ;;  %v3721_v58 = vld [vmem:[%s4887_s23 + $0x30] sm:$0xff]  ;;  %v3719_v47 = vld [vmem:[%s4887_s23 + $0x20] sm:$0xff] }
 0x29f   : > { %v3344_v53 = vpop.f32.mrf.mxu1  ;;  %4613 = vmatmul.mubr.msk.bf16.gmra.mxu1 %vm1214_vm13, %v3706_v18 }
 0x2a0   : > { %v3698_v38 = vmax.f32 %v3682_v8, 0.0  ;;  %v3662_v13 = vadd.f32 %v4602_v36, %v3373_v57  ;;  %v3371_v41 = vadd.f32 %v3344_v53, %v2938_v29  ;;  %v3680_v20 = vadd.f32 %v6018_v48, %v3657_v25  ;;  %v3722_v29 = vld [vmem:[%s4887_s23 + $0x38] sm:$0xff] }
 0x2a1   : > { %v4583_v17 = vpop.f32.mrf.mxu1 }
 0x2a2   : > { %v3708_v7 = vpack.c.bf16 %v3698_v38, %v3697_v54  ;;  %v3660_v35 = vadd.f32 %v3633_v1, %v3371_v41  ;;  %v3374_v4 = vadd.f32 %v4583_v17, %v2941_v49  ;;  %v3696_v23 = vmax.f32 %v3680_v20, 0.0  ;;  %v3720_v49 = vld [vmem:[%s4887_s23 + $0x28] sm:$0xff]  ;;  %v3725_v17 = vld [vmem:[%s4887_s23 + $0x50] sm:$0xff] }
 0x2a3   : > { %v3347_v10 = vpop.f32.mrf.mxu1  ;;  %v3685_v50 = vadd.f32 %v6018_v48, %v3662_v13 }
 0x2a4   : > { %v3663_v44 = vadd.f32 %v4603_v22, %v3374_v4  ;;  %v3372_v56 = vadd.f32 %v3347_v10, %v2939_v59  ;;  %v3707_v2 = vpack.c.bf16 %v3696_v23, %v3695_v11  ;;  %v3683_v19 = vadd.f32 %v6018_v48, %v3660_v35  ;;  %v3726_v10 = vld [vmem:[%s4887_s23 + $0x58] sm:$0xff] }
 0x2a5   : > { %v3701_v37 = vmax.f32 %v3685_v50, 0.0 }
 0x2a6   : > { %v3686_v46 = vadd.f32 %v6018_v48, %v3663_v44  ;;  %v3661_v34 = vadd.f32 %v3636_v28, %v3372_v56  ;;  %4616 = vmatprep.mubr.msk.bf16.mxu1 %vm1214_vm13, %v3707_v2  ;;  %v3699_v55 = vmax.f32 %v3683_v19, 0.0  ;;  %v3724_v2 = vld [vmem:[%s4887_s23 + $0x48] sm:$0xff] }
 0x2a7   : > { %4617 = vmatmul.mubr.msk.bf16.gmra.mxu1 %vm1214_vm13, %v3708_v7 }
 0x2a8   : > { %v3702_v0 = vmax.f32 %v3686_v46, 0.0  ;;  %v3684_v3 = vadd.f32 %v6018_v48, %v3661_v34 }
 0x2aa   : > { %v3710_v36 = vpack.c.bf16 %v3702_v0, %v3701_v37  ;;  %v3700_v12 = vmax.f32 %v3684_v3, 0.0  ;;  %v3729_v0 = vld [vmem:[%s4887_s23 + $0x70] sm:$0xff] }
 0x2ac   : > { %v3709_v26 = vpack.c.bf16 %v3700_v12, %v3699_v55 }
 0x2ae   : > { %4620 = vmatprep.mubr.msk.bf16.mxu1 %vm1214_vm13, %v3709_v26  ;;  %v3727_v26 = vld [vmem:[%s4887_s23 + $0x60] sm:$0xff] }
 0x2af   : > { %4621 = vmatmul.mubr.msk.bf16.gmra.mxu1 %vm1214_vm13, %v3710_v36 }
 0x357   : > { %v4610_v48 = vpop.f32.mrf.mxu1 }
 0x358   : > { %v3817_v43 = vadd.f32 %v4610_v48, %v6100_v51 }
 0x359   : > { %v3808_v5 = vpop.f32.mrf.mxu1 }
 0x35a   : > { %v3873_v62 = vadd.f32 %v3817_v43, %v3717_v30  ;;  %v3809_v42 = vadd.f32 %v6100_v51, %v3808_v5  ;;  %v3730_v5 = vld [vmem:[%s4887_s23 + $0x78] sm:$0xff] }
 0x35b   : > { %v4611_v21 = vpop.f32.mrf.mxu1 }
 0x35c   : > { %v3889_v27 = vmax.f32 %v3873_v62, 0.0  ;;  %v3871_v18 = vadd.f32 %v3809_v42, %v3715_v15  ;;  %v3820_v39 = vadd.f32 %v4611_v21, %v6100_v51 }
 0x35d   : > { %v3811_v52 = vpop.f32.mrf.mxu1 }
 0x35e   : > { %3905 = vst [vmem:[%s6111_s16 + $0x10] sm:$0xff] %v3889_v27  ;;  %v3887_v16 = vmax.f32 %v3871_v18, 0.0  ;;  %v3874_v40 = vadd.f32 %v3820_v39, %v3718_v6  ;;  %v3812_v63 = vadd.f32 %v6100_v51, %v3811_v52  ;;  %v3728_v27 = vld [vmem:[%s4887_s23 + $0x68] sm:$0xff]  ;;  %s6165_s23 = scalar_lea.sflag [#allocation4], %s272_s9 }
 0x35f   : > { %v4614_v33 = vpop.f32.mrf.mxu1 }
 0x360   : > { %3903 = vst [vmem:[%s6111_s16] sm:$0xff] %v3887_v16  ;;  %v3890_v61 = vmax.f32 %v3874_v40, 0.0  ;;  %v3872_v1 = vadd.f32 %v3812_v63, %v3716_v24  ;;  %v3833_v31 = vadd.f32 %v4614_v33, %v6100_v51 }
 0x361   : > { %v3824_v14 = vpop.f32.mrf.mxu1 }
 0x362   : > { %3906 = vst [vmem:[%s6111_s16 + $0x18] sm:$0xff] %v3890_v61  ;;  %v3888_v8 = vmax.f32 %v3872_v1, 0.0  ;;  %v3877_v57 = vadd.f32 %v3833_v31, %v3721_v58  ;;  %v3825_v32 = vadd.f32 %v6100_v51, %v3824_v14 }
 0x363   : > { %v4615_v45 = vpop.f32.mrf.mxu1 }
 0x364   : > { %3904 = vst [vmem:[%s6111_s16 + $0x8] sm:$0xff] %v3888_v8  ;;  %v3893_v25 = vmax.f32 %v3877_v57, 0.0  ;;  %v3875_v53 = vadd.f32 %v3825_v32, %v3719_v47  ;;  %v3836_v60 = vadd.f32 %v4615_v45, %v6100_v51 }
 0x365   : > { %v3827_v54 = vpop.f32.mrf.mxu1 }
 0x366   : > { %3909 = vst [vmem:[%s6111_s16 + $0x30] sm:$0xff] %v3893_v25  ;;  %v3891_v38 = vmax.f32 %v3875_v53, 0.0  ;;  %v3878_v13 = vadd.f32 %v3836_v60, %v3722_v29  ;;  %v3828_v41 = vadd.f32 %v6100_v51, %v3827_v54 }
 0x367   : > { %v4618_v7 = vpop.f32.mrf.mxu1 }
 0x368   : > { %3907 = vst [vmem:[%s6111_s16 + $0x20] sm:$0xff] %v3891_v38  ;;  %v3894_v22 = vmax.f32 %v3878_v13, 0.0  ;;  %v3876_v20 = vadd.f32 %v3828_v41, %v3720_v49  ;;  %v3849_v35 = vadd.f32 %v4618_v7, %v6100_v51 }
 0x369   : > { %v3840_v59 = vpop.f32.mrf.mxu1 }
 0x36a   : > { %3910 = vst [vmem:[%s6111_s16 + $0x38] sm:$0xff] %v3894_v22  ;;  %v3892_v4 = vmax.f32 %v3876_v20, 0.0  ;;  %v3881_v11 = vadd.f32 %v3849_v35, %v3725_v17  ;;  %v3841_v23 = vadd.f32 %v6100_v51, %v3840_v59 }
 0x36b   : > { %v4619_v50 = vpop.f32.mrf.mxu1 }
 0x36c   : > { %3908 = vst [vmem:[%s6111_s16 + $0x28] sm:$0xff] %v3892_v4  ;;  %v3897_v44 = vmax.f32 %v3881_v11, 0.0  ;;  %v3879_v56 = vadd.f32 %v3841_v23, %v3723_v9  ;;  %v3852_v28 = vadd.f32 %v4619_v50, %v6100_v51 }
 0x36d   : > { %v3843_v19 = vpop.f32.mrf.mxu1 }
 0x36e   : > { %3913 = vst [vmem:[%s6111_s16 + $0x50] sm:$0xff] %v3897_v44  ;;  %v3895_v46 = vmax.f32 %v3879_v56, 0.0  ;;  %v3882_v34 = vadd.f32 %v3852_v28, %v3726_v10  ;;  %v3844_v37 = vadd.f32 %v6100_v51, %v3843_v19 }
 0x36f   : > { %v4622_v3 = vpop.f32.mrf.mxu1 }
 0x370   : > { %3911 = vst [vmem:[%s6111_s16 + $0x40] sm:$0xff] %v3895_v46  ;;  %v3898_v55 = vmax.f32 %v3882_v34, 0.0  ;;  %v3880_v36 = vadd.f32 %v3844_v37, %v3724_v2  ;;  %v3865_v12 = vadd.f32 %v4622_v3, %v6100_v51 }
 0x371   : > { %v3856_v30 = vpop.f32.mrf.mxu1 }
 0x372   : > { %3914 = vst [vmem:[%s6111_s16 + $0x58] sm:$0xff] %v3898_v55  ;;  %v3896_v48 = vmax.f32 %v3880_v36, 0.0  ;;  %v3885_v43 = vadd.f32 %v3865_v12, %v3729_v0  ;;  %v3857_v15 = vadd.f32 %v6100_v51, %v3856_v30 }
 0x373   : > { %v4623_v62 = vpop.f32.mrf.mxu1 }
 0x374   : > { %3912 = vst [vmem:[%s6111_s16 + $0x48] sm:$0xff] %v3896_v48  ;;  %v3901_v42 = vmax.f32 %v3885_v43, 0.0  ;;  %v3883_v6 = vadd.f32 %v3857_v15, %v3727_v26  ;;  %v3868_v21 = vadd.f32 %v4623_v62, %v6100_v51 }
 0x375   : > { %v3859_v18 = vpop.f32.mrf.mxu1 }
 0x376   : > { %3917 = vst [vmem:[%s6111_s16 + $0x70] sm:$0xff] %v3901_v42  ;;  %v3899_v39 = vmax.f32 %v3883_v6, 0.0  ;;  %v3886_v24 = vadd.f32 %v3868_v21, %v3730_v5  ;;  %v3860_v52 = vadd.f32 %v6100_v51, %v3859_v18 }
 0x378   : > { %3915 = vst [vmem:[%s6111_s16 + $0x60] sm:$0xff] %v3899_v39  ;;  %v3902_v16 = vmax.f32 %v3886_v24, 0.0  ;;  %v3884_v40 = vadd.f32 %v3860_v52, %v3728_v27 }
 0x37a   : > { %3918 = vst [vmem:[%s6111_s16 + $0x78] sm:$0xff] %v3902_v16  ;;  %v3900_v63 = vmax.f32 %v3884_v40, 0.0 }
 0x37c   : > { %3916 = vst [vmem:[%s6111_s16 + $0x68] sm:$0xff] %v3900_v63 }
 0x37d   : > { %4733 = shalt.err (!%p4730_p3)
}
 0x37e   : > { %s4734_s9 = scalar_lea.hbm %s6157_s21, 2048  ;;  %s4738_s15 = scalar_lea.hbm %s6212_s7, 4096 }
 0x37f   : > { %p4735_p4 = scmp.ne.s32.totalorder %s6157_s21, %s4734_s9  ;;  %p4739_p9 = scmp.lt.s32.totalorder %s6157_s21, %s6212_s7 }
 0x380   : > { %p4740_p10 = scmp.lt.s32.totalorder %s4738_s15, %s4734_s9 }
 0x381   : > { %p4736_p7 = pnand %p4735_p4, %p4864_p5 }
 0x382   : > { %p4741_p11 = por %p4740_p10, %p4739_p9 }
 0x383   : > { %p4737_p8 = pneg %p4736_p7 }
 0x385   : > { %p4742_p12 = pnand %p4741_p11, %p4737_p8 }
 0x387   : > { %4745 = shalt.err (!%p4742_p12)
}
 0x388   : > { %s4784_s19 = smov 128   ;;  %s4785_s20 = smov 8  }
 0x389   : > { %4624 = dma.vmem_to_hbm [thread:$0]  (%p4864_p5), %s6159_s18, 2048, %s6157_s21, %s6165_s23, %s4784_s19, %s4784_s19, %s4785_s20  }
 0x38a PF: > { %p4630_p13 = scmp.ge.s32.totalorder %s4780_s27, 2  ;;  %s3949_s28 = sand.u32 1, %s4768_s24  }
 0x38b   : > { %s3950_s22 = scalar_lea.sflag [#allocation4], %s3949_s28 }
 0x38c   : > { %p4627_p0 = pnand %p4630_p13, %p4868_p6 }
 0x38e   : > { %p4628_p1 = pneg %p4627_p0 }
 0x390   : > { %4763 = dma.done.wait (%p4628_p1), %s3950_s22, 2048  }
 0x391   : > { %4765 = vsyncadd (%p4628_p1), %s3950_s22, 4294965248  ;;  %p17_p2 = scmp.ge.s32.totalorder %s4851_s30, 4   ;;  %s6273_s24 = smov %s4772_s25 }
 0x392   : > { %s6274_s25 = smov %s4776_s26  ;;  %s6275_s26 = smov %s4862_s10 }
 0x393   : > { %s6276_s27 = smov %s4851_s30  ;;  %19 = sbr.rel (!%p17_p2) target bundleno = 3 (0x3), region = 86 }
 0x398   :  { %3955 = vsyncpa [#allocation4], 1 }
 0x399   :  { %3957 = vsyncpa [#allocation4 + $0x1], 1 }

</bundles_post_ra>
